<compile_context>
chip_gen: v7x
topology: tpu7x:2x2x1
jax: 0.10.0
libtpu: 0.0.40
codegen_flags: <defaults>
</compile_context>

<pallas_src>
import functools

import jax
import jax.numpy as jnp
from jax.experimental import pallas as pl
from jax.experimental.pallas import tpu as pltpu

_TILE_M = 512  # rows per grid step; largest step buffer (512 x 2304 bf16) ~ 2.3 MiB


# ---------------------------------------------------------------------------
# Fused conv (+BN bias, +residual / fused 1x1 shortcut, +ReLU, +optional head)
# ---------------------------------------------------------------------------
def _fused_conv_kernel(*refs, relu, has_res, has_short, has_head):
    it = iter(refs)
    x_ref = next(it)                     # (tm, K)  bf16 im2col patches
    w_ref = next(it)                     # (K, C)   bf16, BN scale folded in
    b_ref = next(it)                     # (1, C)   f32 folded BN bias(es)
    r_ref = next(it) if has_res else None
    if has_short:
        xs_ref = next(it)                # (tm, Ks) bf16 strided block input
        ws_ref = next(it)                # (Ks, C)  bf16 folded shortcut weight
    if has_head:
        pool_ref = next(it)              # (B, tm)  f32 average-pool matrix
        fcw_ref = next(it)               # (C, nc)  f32
        fcb_ref = next(it)               # (1, nc)  f32
    o_ref = next(it)

    out = jnp.dot(x_ref[...], w_ref[...], preferred_element_type=jnp.float32)
    out = out + b_ref[...]
    if has_res:
        out = out + r_ref[...].astype(jnp.float32)
    if has_short:
        out = out + jnp.dot(xs_ref[...], ws_ref[...],
                            preferred_element_type=jnp.float32)
    if relu:
        out = jnp.maximum(out, 0.0)
    if has_head:
        # avg_pool2d(.,4) over the final 4x4 map expressed as a pooling matmul,
        # followed by the Linear layer -> logits, all inside this kernel.
        pooled = jnp.dot(pool_ref[...], out, preferred_element_type=jnp.float32)
        o_ref[...] = (jnp.dot(pooled, fcw_ref[...],
                              preferred_element_type=jnp.float32) + fcb_ref[...])
    else:
        o_ref[...] = out.astype(o_ref.dtype)


def fused_conv(patches, w, b, *, relu=True, residual=None, shortcut=None, head=None):
    """maybe_relu(patches @ w + b [+ residual] [+ xs @ ws]) (+ fused pool/linear)."""
    M, K = patches.shape
    C = w.shape[1]
    tm = min(_TILE_M, M)
    assert M % tm == 0, (M, tm)
    grid = (M // tm,)

    arrays = [patches, w, b]
    in_specs = [pl.BlockSpec((tm, K), lambda i: (i, 0)),
                pl.BlockSpec((K, C), lambda i: (0, 0)),   # resident weight
                pl.BlockSpec((1, C), lambda i: (0, 0))]   # resident bias
    if residual is not None:
        arrays.append(residual)
        in_specs.append(pl.BlockSpec((tm, C), lambda i: (i, 0)))
    if shortcut is not None:
        xs, ws = shortcut
        Ks = xs.shape[1]
        arrays += [xs, ws]
        in_specs += [pl.BlockSpec((tm, Ks), lambda i: (i, 0)),
                     pl.BlockSpec((Ks, C), lambda i: (0, 0))]
    if head is not None:
        assert grid == (1,), "head fusion assumes a single M tile"
        pool_mat, fcw, fcb = head
        B, nc = pool_mat.shape[0], fcw.shape[1]
        arrays += [pool_mat, fcw, fcb]
        in_specs += [pl.BlockSpec((B, tm), lambda i: (0, 0)),
                     pl.BlockSpec((C, nc), lambda i: (0, 0)),
                     pl.BlockSpec((1, nc), lambda i: (0, 0))]
        out_shape = jax.ShapeDtypeStruct((B, nc), jnp.float32)
        out_specs = pl.BlockSpec((B, nc), lambda i: (0, 0))
    else:
        out_shape = jax.ShapeDtypeStruct((M, C), jnp.bfloat16)
        out_specs = pl.BlockSpec((tm, C), lambda i: (i, 0))

    kernel = functools.partial(_fused_conv_kernel, relu=relu,
                               has_res=residual is not None,
                               has_short=shortcut is not None,
                               has_head=head is not None)
    return pl.pallas_call(
        kernel,
        out_shape=out_shape,
        grid=grid,
        in_specs=in_specs,
        out_specs=out_specs,
        compiler_params=pltpu.CompilerParams(
            dimension_semantics=("parallel",)),   # 2-TC sharding on v7x
    )(*arrays)


# ---------------------------------------------------------------------------
# Plain-JAX glue: bf16 im2col + conv / block wrappers
# ---------------------------------------------------------------------------
def im2col(x, ksize, stride, pad):
    N, H, W, C = x.shape
    xp = jnp.pad(x, ((0, 0), (pad, pad), (pad, pad), (0, 0)))
    Ho = (H + 2 * pad - ksize) // stride + 1
    Wo = (W + 2 * pad - ksize) // stride + 1
    cols = []
    for dy in range(ksize):
        for dx in range(ksize):
            cols.append(xp[:, dy:dy + stride * Ho:stride, dx:dx + stride * Wo:stride, :])
    patches = jnp.concatenate(cols, axis=-1)          # (N, Ho, Wo, k*k*C), (dy,dx,c)
    return patches.reshape(N * Ho * Wo, ksize * ksize * C), (N, Ho, Wo)


def conv3x3(x, p, *, stride=1, relu=True, residual=None, shortcut=None,
            head=None, bias=None):
    patches, (N, Ho, Wo) = im2col(x, 3, stride, 1)
    b = p["b"] if bias is None else bias
    y = fused_conv(patches, p["w"], b, relu=relu,
                   residual=residual, shortcut=shortcut, head=head)
    if head is not None:
        return y                                       # (N, num_classes) logits
    return y.reshape(N, Ho, Wo, -1)


def basic_block(x, p, *, head=None):
    s = p["stride"]
    cin = x.shape[-1]
    out1 = conv3x3(x, p["conv1"], stride=s, relu=True)
    if "short" in p:
        # 1x1 stride-s shortcut conv fused into conv2's kernel (second matmul);
        # both BN biases combined into a single epilogue bias.
        xs = x[:, ::s, ::s, :].reshape(-1, cin)
        b_tot = p["conv2"]["b"] + p["short"]["b"]
        return conv3x3(out1, p["conv2"], stride=1, relu=True, bias=b_tot,
                       shortcut=(xs, p["short"]["w"]), head=head)
    # identity shortcut: residual is the block input x
    res = x.reshape(-1, cin)
    return conv3x3(out1, p["conv2"], stride=1, relu=True, residual=res, head=head)


def small_resnet_forward(params, x_nchw):
    N, _, H, W = x_nchw.shape
    # avg_pool2d(out, 4) + flatten only matches PyTorch when the final map is 4x4
    assert H == 32 and W == 32, "SmallResNet head assumes a 32x32 input"
    # TODO(synk): general avg_pool2d(.,4) for inputs larger than 32x32 not implemented.
    x = jnp.transpose(x_nchw, (0, 2, 3, 1)).astype(jnp.bfloat16)   # NCHW -> NHWC bf16
    out = conv3x3(x, params["conv1"], stride=1, relu=True)

    blocks = [bp for layer in params["layers"] for bp in layer]
    hw = (H // 8) * (W // 8)                                        # 16 final positions
    pool_mat = jnp.kron(jnp.eye(N, dtype=jnp.float32),
                        jnp.full((1, hw), 1.0 / hw, jnp.float32))   # (N, N*hw)
    head = (pool_mat, params["fc_w"], params["fc_b"])
    for bi, bp in enumerate(blocks):
        out = basic_block(out, bp, head=head if bi == len(blocks) - 1 else None)
    return out                                                      # (N, 10) f32 logits


# ---------------------------------------------------------------------------
# Deterministic parameter init (shapes from SmallResNet.__init__, reduction=2)
# BN (eval mode) scale is folded into the conv weights here, at prep time.
# ---------------------------------------------------------------------------
def _conv_w(key, kh, kw, cin, cout):
    fan_in = kh * kw * cin
    return jax.random.normal(key, (kh, kw, cin, cout), jnp.float32) * (2.0 / fan_in) ** 0.5


def _bn_fold(key, c, eps=1e-5):
    k1, k2 = jax.random.split(key)
    gamma = 1.0 + 0.1 * jax.random.normal(k1, (c,), jnp.float32)
    beta = 0.1 * jax.random.normal(k2, (c,), jnp.float32)
    running_mean = jnp.zeros((c,), jnp.float32)    # PyTorch defaults
    running_var = jnp.ones((c,), jnp.float32)
    scale = gamma / jnp.sqrt(running_var + eps)
    bias = beta - running_mean * scale
    return scale, bias


def init_params(key, num_blocks=(1, 1, 1, 1), num_classes=10):
    keys = iter(jax.random.split(key, 64))
    nk = lambda: next(keys)

    def conv_bn(kh, kw, cin, cout):
        w = _conv_w(nk(), kh, kw, cin, cout)                      # HWIO f32
        scale, bias = _bn_fold(nk(), cout)
        w_folded = (w * scale).reshape(kh * kw * cin, cout)       # BN scale into cols
        return {"w": w_folded.astype(jnp.bfloat16),
                "b": bias.reshape(1, cout).astype(jnp.float32)}

    reduction = 2
    in_planes = 64 // reduction
    params = {"conv1": conv_bn(3, 3, 3, in_planes)}
    layers = []
    for planes, nblk, stride in zip(
            (64 // reduction, 128 // reduction, 256 // reduction, 512 // reduction),
            num_blocks, (1, 2, 2, 2)):
        blocks = []
        for s in [stride] + [1] * (nblk - 1):
            bp = {"stride": s,
                  "conv1": conv_bn(3, 3, in_planes, planes),
                  "conv2": conv_bn(3, 3, planes, planes)}
            if s != 1 or in_planes != planes:                     # BasicBlock expansion=1
                bp["short"] = conv_bn(1, 1, in_planes, planes)
            blocks.append(bp)
            in_planes = planes
        layers.append(blocks)
    params["layers"] = layers
    params["fc_w"] = (jax.random.normal(nk(), (in_planes, num_classes), jnp.float32)
                      * (1.0 / in_planes) ** 0.5)
    params["fc_b"] = jnp.zeros((1, num_classes), jnp.float32)
    return params


if __name__ == "__main__":
    key = jax.random.PRNGKey(0)
    pkey, xkey = jax.random.split(key)
    params = init_params(pkey)
    # 32x32 spatial so the three stride-2 stages give the 4x4 map avg_pool2d(.,4) expects.
    x = jax.random.normal(xkey, (2, 3, 32, 32), jnp.float32)   # NCHW like PyTorch
    fwd = jax.jit(lambda inp: small_resnet_forward(params, inp))
    logits = fwd(x)
    jax.block_until_ready(logits)
    assert logits.shape == (2, 10) and logits.dtype == jnp.float32
    print("KERNEL_OK")
</pallas_src>

<mosaic_0001>
module attributes {stable_mosaic.version = 11 : i64} {
  func.func @_fused_conv_kernel(%arg0: i32, %arg1: memref<512x27xbf16, #tpu.memory_space<vmem>>, %arg2: memref<27x32xbf16, #tpu.memory_space<vmem>>, %arg3: memref<1x32xf32, #tpu.memory_space<vmem>>, %arg4: memref<512x32xbf16, #tpu.memory_space<vmem>>) attributes {dimension_semantics = [#tpu.dimension_semantics<parallel>], iteration_bounds = array<i64: 4>, scalar_prefetch = 0 : i64, scratch_operands = 0 : i64, tpu.core_type = #tpu.core_type<tc>, window_params = [{transform_indices = @transform_0, window_bounds = array<i64: 512, 27>}, {pipeline_mode = #tpu.pipeline_mode<synchronous>, transform_indices = @transform_1, window_bounds = array<i64: 27, 32>}, {pipeline_mode = #tpu.pipeline_mode<synchronous>, transform_indices = @transform_2, window_bounds = array<i64: 1, 32>}, {transform_indices = @transform_3, window_bounds = array<i64: 512, 32>}]} {
    %c0 = arith.constant 0 : index
    %c0_0 = arith.constant 0 : index
    %0 = vector.load %arg1[%c0, %c0_0] : memref<512x27xbf16, #tpu.memory_space<vmem>>, vector<512x27xbf16>
    %c0_1 = arith.constant 0 : index
    %c0_2 = arith.constant 0 : index
    %1 = vector.load %arg2[%c0_1, %c0_2] : memref<27x32xbf16, #tpu.memory_space<vmem>>, vector<27x32xbf16>
    %cst = arith.constant dense<0.000000e+00> : vector<512x32xf32>
    %2 = tpu.matmul %0, %1, %cst {dimension_numbers = #tpu.dot_dimension_numbers<[1], [0], [0], [1], [0, 0, 1, 1], [], []>} : vector<512x27xbf16>, vector<27x32xbf16>, vector<512x32xf32> -> vector<512x32xf32>
    %c0_3 = arith.constant 0 : index
    %c0_4 = arith.constant 0 : index
    %3 = vector.load %arg3[%c0_3, %c0_4] : memref<1x32xf32, #tpu.memory_space<vmem>>, vector<1x32xf32>
    %4 = vector.broadcast %3 : vector<1x32xf32> to vector<512x32xf32>
    %5 = arith.addf %2, %4 : vector<512x32xf32>
    %cst_5 = arith.constant 0.000000e+00 : f32
    %6 = vector.broadcast %cst_5 : f32 to vector<512x32xf32>
    %7 = arith.maximumf %5, %6 : vector<512x32xf32>
    %8 = arith.truncf %7 : vector<512x32xf32> to vector<512x32xbf16>
    %c0_6 = arith.constant 0 : index
    %c0_7 = arith.constant 0 : index
    %9 = vector.load %arg4[%c0_6, %c0_7] : memref<512x32xbf16, #tpu.memory_space<vmem>>, vector<512x32xbf16>
    tpu.vector_store %arg4[%c0_6, %c0_7], %8 {strides = array<i32>} : memref<512x32xbf16, #tpu.memory_space<vmem>>, vector<512x32xbf16>,
    return
  }
  func.func @transform_0(%arg0: i32) -> (i32, i32) {
    %c0_i32 = arith.constant 0 : i32
    %c0_i32_0 = arith.constant 0 : i32
    return %arg0, %c0_i32 : i32, i32
  }
  func.func @transform_1(%arg0: i32) -> (i32, i32) {
    %c0_i32 = arith.constant 0 : i32
    %c0_i32_0 = arith.constant 0 : i32
    %c0_i32_1 = arith.constant 0 : i32
    return %c0_i32, %c0_i32_0 : i32, i32
  }
  func.func @transform_2(%arg0: i32) -> (i32, i32) {
    %c0_i32 = arith.constant 0 : i32
    %c0_i32_0 = arith.constant 0 : i32
    %c0_i32_1 = arith.constant 0 : i32
    return %c0_i32, %c0_i32_0 : i32, i32
  }
  func.func @transform_3(%arg0: i32) -> (i32, i32) {
    %c0_i32 = arith.constant 0 : i32
    %c0_i32_0 = arith.constant 0 : i32
    return %arg0, %c0_i32 : i32, i32
  }
}

module attributes {stable_mosaic.version = 11 : i64} {
  func.func @_fused_conv_kernel(%arg0: i32, %arg1: memref<512x288xbf16, #tpu.memory_space<vmem>>, %arg2: memref<288x32xbf16, #tpu.memory_space<vmem>>, %arg3: memref<1x32xf32, #tpu.memory_space<vmem>>, %arg4: memref<512x32xbf16, #tpu.memory_space<vmem>>) attributes {dimension_semantics = [#tpu.dimension_semantics<parallel>], iteration_bounds = array<i64: 4>, scalar_prefetch = 0 : i64, scratch_operands = 0 : i64, tpu.core_type = #tpu.core_type<tc>, window_params = [{transform_indices = @transform_0, window_bounds = array<i64: 512, 288>}, {pipeline_mode = #tpu.pipeline_mode<synchronous>, transform_indices = @transform_1, window_bounds = array<i64: 288, 32>}, {pipeline_mode = #tpu.pipeline_mode<synchronous>, transform_indices = @transform_2, window_bounds = array<i64: 1, 32>}, {transform_indices = @transform_3, window_bounds = array<i64: 512, 32>}]} {
    %c0 = arith.constant 0 : index
    %c0_0 = arith.constant 0 : index
    %0 = vector.load %arg1[%c0, %c0_0] : memref<512x288xbf16, #tpu.memory_space<vmem>>, vector<512x288xbf16>
    %c0_1 = arith.constant 0 : index
    %c0_2 = arith.constant 0 : index
    %1 = vector.load %arg2[%c0_1, %c0_2] : memref<288x32xbf16, #tpu.memory_space<vmem>>, vector<288x32xbf16>
    %cst = arith.constant dense<0.000000e+00> : vector<512x32xf32>
    %2 = tpu.matmul %0, %1, %cst {dimension_numbers = #tpu.dot_dimension_numbers<[1], [0], [0], [1], [0, 0, 1, 1], [], []>} : vector<512x288xbf16>, vector<288x32xbf16>, vector<512x32xf32> -> vector<512x32xf32>
    %c0_3 = arith.constant 0 : index
    %c0_4 = arith.constant 0 : index
    %3 = vector.load %arg3[%c0_3, %c0_4] : memref<1x32xf32, #tpu.memory_space<vmem>>, vector<1x32xf32>
    %4 = vector.broadcast %3 : vector<1x32xf32> to vector<512x32xf32>
    %5 = arith.addf %2, %4 : vector<512x32xf32>
    %cst_5 = arith.constant 0.000000e+00 : f32
    %6 = vector.broadcast %cst_5 : f32 to vector<512x32xf32>
    %7 = arith.maximumf %5, %6 : vector<512x32xf32>
    %8 = arith.truncf %7 : vector<512x32xf32> to vector<512x32xbf16>
    %c0_6 = arith.constant 0 : index
    %c0_7 = arith.constant 0 : index
    %9 = vector.load %arg4[%c0_6, %c0_7] : memref<512x32xbf16, #tpu.memory_space<vmem>>, vector<512x32xbf16>
    tpu.vector_store %arg4[%c0_6, %c0_7], %8 {strides = array<i32>} : memref<512x32xbf16, #tpu.memory_space<vmem>>, vector<512x32xbf16>,
    return
  }
  func.func @transform_0(%arg0: i32) -> (i32, i32) {
    %c0_i32 = arith.constant 0 : i32
    %c0_i32_0 = arith.constant 0 : i32
    return %arg0, %c0_i32 : i32, i32
  }
  func.func @transform_1(%arg0: i32) -> (i32, i32) {
    %c0_i32 = arith.constant 0 : i32
    %c0_i32_0 = arith.constant 0 : i32
    %c0_i32_1 = arith.constant 0 : i32
    return %c0_i32, %c0_i32_0 : i32, i32
  }
  func.func @transform_2(%arg0: i32) -> (i32, i32) {
    %c0_i32 = arith.constant 0 : i32
    %c0_i32_0 = arith.constant 0 : i32
    %c0_i32_1 = arith.constant 0 : i32
    return %c0_i32, %c0_i32_0 : i32, i32
  }
  func.func @transform_3(%arg0: i32) -> (i32, i32) {
    %c0_i32 = arith.constant 0 : i32
    %c0_i32_0 = arith.constant 0 : i32
    return %arg0, %c0_i32 : i32, i32
  }
}

module attributes {stable_mosaic.version = 11 : i64} {
  func.func @_fused_conv_kernel(%arg0: i32, %arg1: memref<512x288xbf16, #tpu.memory_space<vmem>>, %arg2: memref<288x32xbf16, #tpu.memory_space<vmem>>, %arg3: memref<1x32xf32, #tpu.memory_space<vmem>>, %arg4: memref<512x32xbf16, #tpu.memory_space<vmem>>, %arg5: memref<512x32xbf16, #tpu.memory_space<vmem>>) attributes {dimension_semantics = [#tpu.dimension_semantics<parallel>], iteration_bounds = array<i64: 4>, scalar_prefetch = 0 : i64, scratch_operands = 0 : i64, tpu.core_type = #tpu.core_type<tc>, window_params = [{transform_indices = @transform_0, window_bounds = array<i64: 512, 288>}, {pipeline_mode = #tpu.pipeline_mode<synchronous>, transform_indices = @transform_1, window_bounds = array<i64: 288, 32>}, {pipeline_mode = #tpu.pipeline_mode<synchronous>, transform_indices = @transform_2, window_bounds = array<i64: 1, 32>}, {transform_indices = @transform_3, window_bounds = array<i64: 512, 32>}, {transform_indices = @transform_4, window_bounds = array<i64: 512, 32>}]} {
    %c0 = arith.constant 0 : index
    %c0_0 = arith.constant 0 : index
    %0 = vector.load %arg1[%c0, %c0_0] : memref<512x288xbf16, #tpu.memory_space<vmem>>, vector<512x288xbf16>
    %c0_1 = arith.constant 0 : index
    %c0_2 = arith.constant 0 : index
    %1 = vector.load %arg2[%c0_1, %c0_2] : memref<288x32xbf16, #tpu.memory_space<vmem>>, vector<288x32xbf16>
    %cst = arith.constant dense<0.000000e+00> : vector<512x32xf32>
    %2 = tpu.matmul %0, %1, %cst {dimension_numbers = #tpu.dot_dimension_numbers<[1], [0], [0], [1], [0, 0, 1, 1], [], []>} : vector<512x288xbf16>, vector<288x32xbf16>, vector<512x32xf32> -> vector<512x32xf32>
    %c0_3 = arith.constant 0 : index
    %c0_4 = arith.constant 0 : index
    %3 = vector.load %arg3[%c0_3, %c0_4] : memref<1x32xf32, #tpu.memory_space<vmem>>, vector<1x32xf32>
    %4 = vector.broadcast %3 : vector<1x32xf32> to vector<512x32xf32>
    %5 = arith.addf %2, %4 : vector<512x32xf32>
    %c0_5 = arith.constant 0 : index
    %c0_6 = arith.constant 0 : index
    %6 = vector.load %arg4[%c0_5, %c0_6] : memref<512x32xbf16, #tpu.memory_space<vmem>>, vector<512x32xbf16>
    %7 = arith.extf %6 : vector<512x32xbf16> to vector<512x32xf32>
    %8 = arith.addf %5, %7 : vector<512x32xf32>
    %cst_7 = arith.constant 0.000000e+00 : f32
    %9 = vector.broadcast %cst_7 : f32 to vector<512x32xf32>
    %10 = arith.maximumf %8, %9 : vector<512x32xf32>
    %11 = arith.truncf %10 : vector<512x32xf32> to vector<512x32xbf16>
    %c0_8 = arith.constant 0 : index
    %c0_9 = arith.constant 0 : index
    %12 = vector.load %arg5[%c0_8, %c0_9] : memref<512x32xbf16, #tpu.memory_space<vmem>>, vector<512x32xbf16>
    tpu.vector_store %arg5[%c0_8, %c0_9], %11 {strides = array<i32>} : memref<512x32xbf16, #tpu.memory_space<vmem>>, vector<512x32xbf16>,
    return
  }
  func.func @transform_0(%arg0: i32) -> (i32, i32) {
    %c0_i32 = arith.constant 0 : i32
    %c0_i32_0 = arith.constant 0 : i32
    return %arg0, %c0_i32 : i32, i32
  }
  func.func @transform_1(%arg0: i32) -> (i32, i32) {
    %c0_i32 = arith.constant 0 : i32
    %c0_i32_0 = arith.constant 0 : i32
    %c0_i32_1 = arith.constant 0 : i32
    return %c0_i32, %c0_i32_0 : i32, i32
  }
  func.func @transform_2(%arg0: i32) -> (i32, i32) {
    %c0_i32 = arith.constant 0 : i32
    %c0_i32_0 = arith.constant 0 : i32
    %c0_i32_1 = arith.constant 0 : i32
    return %c0_i32, %c0_i32_0 : i32, i32
  }
  func.func @transform_3(%arg0: i32) -> (i32, i32) {
    %c0_i32 = arith.constant 0 : i32
    %c0_i32_0 = arith.constant 0 : i32
    return %arg0, %c0_i32 : i32, i32
  }
  func.func @transform_4(%arg0: i32) -> (i32, i32) {
    %c0_i32 = arith.constant 0 : i32
    %c0_i32_0 = arith.constant 0 : i32
    return %arg0, %c0_i32 : i32, i32
  }
}

module attributes {stable_mosaic.version = 11 : i64} {
  func.func @_fused_conv_kernel(%arg0: i32, %arg1: memref<512x288xbf16, #tpu.memory_space<vmem>>, %arg2: memref<288x64xbf16, #tpu.memory_space<vmem>>, %arg3: memref<1x64xf32, #tpu.memory_space<vmem>>, %arg4: memref<512x64xbf16, #tpu.memory_space<vmem>>) attributes {dimension_semantics = [#tpu.dimension_semantics<parallel>], iteration_bounds = array<i64: 1>, scalar_prefetch = 0 : i64, scratch_operands = 0 : i64, tpu.core_type = #tpu.core_type<tc>, window_params = [{transform_indices = @transform_0, window_bounds = array<i64: 512, 288>}, {pipeline_mode = #tpu.pipeline_mode<synchronous>, transform_indices = @transform_1, window_bounds = array<i64: 288, 64>}, {pipeline_mode = #tpu.pipeline_mode<synchronous>, transform_indices = @transform_2, window_bounds = array<i64: 1, 64>}, {transform_indices = @transform_3, window_bounds = array<i64: 512, 64>}]} {
    %c0 = arith.constant 0 : index
    %c0_0 = arith.constant 0 : index
    %0 = vector.load %arg1[%c0, %c0_0] : memref<512x288xbf16, #tpu.memory_space<vmem>>, vector<512x288xbf16>
    %c0_1 = arith.constant 0 : index
    %c0_2 = arith.constant 0 : index
    %1 = vector.load %arg2[%c0_1, %c0_2] : memref<288x64xbf16, #tpu.memory_space<vmem>>, vector<288x64xbf16>
    %cst = arith.constant dense<0.000000e+00> : vector<512x64xf32>
    %2 = tpu.matmul %0, %1, %cst {dimension_numbers = #tpu.dot_dimension_numbers<[1], [0], [0], [1], [0, 0, 1, 1], [], []>} : vector<512x288xbf16>, vector<288x64xbf16>, vector<512x64xf32> -> vector<512x64xf32>
    %c0_3 = arith.constant 0 : index
    %c0_4 = arith.constant 0 : index
    %3 = vector.load %arg3[%c0_3, %c0_4] : memref<1x64xf32, #tpu.memory_space<vmem>>, vector<1x64xf32>
    %4 = vector.broadcast %3 : vector<1x64xf32> to vector<512x64xf32>
    %5 = arith.addf %2, %4 : vector<512x64xf32>
    %cst_5 = arith.constant 0.000000e+00 : f32
    %6 = vector.broadcast %cst_5 : f32 to vector<512x64xf32>
    %7 = arith.maximumf %5, %6 : vector<512x64xf32>
    %8 = arith.truncf %7 : vector<512x64xf32> to vector<512x64xbf16>
    %c0_6 = arith.constant 0 : index
    %c0_7 = arith.constant 0 : index
    %9 = vector.load %arg4[%c0_6, %c0_7] : memref<512x64xbf16, #tpu.memory_space<vmem>>, vector<512x64xbf16>
    tpu.vector_store %arg4[%c0_6, %c0_7], %8 {strides = array<i32>} : memref<512x64xbf16, #tpu.memory_space<vmem>>, vector<512x64xbf16>,
    return
  }
  func.func @transform_0(%arg0: i32) -> (i32, i32) {
    %c0_i32 = arith.constant 0 : i32
    %c0_i32_0 = arith.constant 0 : i32
    return %arg0, %c0_i32 : i32, i32
  }
  func.func @transform_1(%arg0: i32) -> (i32, i32) {
    %c0_i32 = arith.constant 0 : i32
    %c0_i32_0 = arith.constant 0 : i32
    %c0_i32_1 = arith.constant 0 : i32
    return %c0_i32, %c0_i32_0 : i32, i32
  }
  func.func @transform_2(%arg0: i32) -> (i32, i32) {
    %c0_i32 = arith.constant 0 : i32
    %c0_i32_0 = arith.constant 0 : i32
    %c0_i32_1 = arith.constant 0 : i32
    return %c0_i32, %c0_i32_0 : i32, i32
  }
  func.func @transform_3(%arg0: i32) -> (i32, i32) {
    %c0_i32 = arith.constant 0 : i32
    %c0_i32_0 = arith.constant 0 : i32
    return %arg0, %c0_i32 : i32, i32
  }
}

module attributes {stable_mosaic.version = 11 : i64} {
  func.func @_fused_conv_kernel(%arg0: i32, %arg1: memref<512x576xbf16, #tpu.memory_space<vmem>>, %arg2: memref<576x64xbf16, #tpu.memory_space<vmem>>, %arg3: memref<1x64xf32, #tpu.memory_space<vmem>>, %arg4: memref<512x32xbf16, #tpu.memory_space<vmem>>, %arg5: memref<32x64xbf16, #tpu.memory_space<vmem>>, %arg6: memref<512x64xbf16, #tpu.memory_space<vmem>>) attributes {dimension_semantics = [#tpu.dimension_semantics<parallel>], iteration_bounds = array<i64: 1>, scalar_prefetch = 0 : i64, scratch_operands = 0 : i64, tpu.core_type = #tpu.core_type<tc>, window_params = [{transform_indices = @transform_0, window_bounds = array<i64: 512, 576>}, {pipeline_mode = #tpu.pipeline_mode<synchronous>, transform_indices = @transform_1, window_bounds = array<i64: 576, 64>}, {pipeline_mode = #tpu.pipeline_mode<synchronous>, transform_indices = @transform_2, window_bounds = array<i64: 1, 64>}, {transform_indices = @transform_3, window_bounds = array<i64: 512, 32>}, {pipeline_mode = #tpu.pipeline_mode<synchronous>, transform_indices = @transform_4, window_bounds = array<i64: 32, 64>}, {transform_indices = @transform_5, window_bounds = array<i64: 512, 64>}]} {
    %c0 = arith.constant 0 : index
    %c0_0 = arith.constant 0 : index
    %0 = vector.load %arg1[%c0, %c0_0] : memref<512x576xbf16, #tpu.memory_space<vmem>>, vector<512x576xbf16>
    %c0_1 = arith.constant 0 : index
    %c0_2 = arith.constant 0 : index
    %1 = vector.load %arg2[%c0_1, %c0_2] : memref<576x64xbf16, #tpu.memory_space<vmem>>, vector<576x64xbf16>
    %cst = arith.constant dense<0.000000e+00> : vector<512x64xf32>
    %2 = tpu.matmul %0, %1, %cst {dimension_numbers = #tpu.dot_dimension_numbers<[1], [0], [0], [1], [0, 0, 1, 1], [], []>} : vector<512x576xbf16>, vector<576x64xbf16>, vector<512x64xf32> -> vector<512x64xf32>
    %c0_3 = arith.constant 0 : index
    %c0_4 = arith.constant 0 : index
    %3 = vector.load %arg3[%c0_3, %c0_4] : memref<1x64xf32, #tpu.memory_space<vmem>>, vector<1x64xf32>
    %4 = vector.broadcast %3 : vector<1x64xf32> to vector<512x64xf32>
    %5 = arith.addf %2, %4 : vector<512x64xf32>
    %c0_5 = arith.constant 0 : index
    %c0_6 = arith.constant 0 : index
    %6 = vector.load %arg4[%c0_5, %c0_6] : memref<512x32xbf16, #tpu.memory_space<vmem>>, vector<512x32xbf16>
    %c0_7 = arith.constant 0 : index
    %c0_8 = arith.constant 0 : index
    %7 = vector.load %arg5[%c0_7, %c0_8] : memref<32x64xbf16, #tpu.memory_space<vmem>>, vector<32x64xbf16>
    %cst_9 = arith.constant dense<0.000000e+00> : vector<512x64xf32>
    %8 = tpu.matmul %6, %7, %cst_9 {dimension_numbers = #tpu.dot_dimension_numbers<[1], [0], [0], [1], [0, 0, 1, 1], [], []>} : vector<512x32xbf16>, vector<32x64xbf16>, vector<512x64xf32> -> vector<512x64xf32>
    %9 = arith.addf %5, %8 : vector<512x64xf32>
    %cst_10 = arith.constant 0.000000e+00 : f32
    %10 = vector.broadcast %cst_10 : f32 to vector<512x64xf32>
    %11 = arith.maximumf %9, %10 : vector<512x64xf32>
    %12 = arith.truncf %11 : vector<512x64xf32> to vector<512x64xbf16>
    %c0_11 = arith.constant 0 : index
    %c0_12 = arith.constant 0 : index
    %13 = vector.load %arg6[%c0_11, %c0_12] : memref<512x64xbf16, #tpu.memory_space<vmem>>, vector<512x64xbf16>
    tpu.vector_store %arg6[%c0_11, %c0_12], %12 {strides = array<i32>} : memref<512x64xbf16, #tpu.memory_space<vmem>>, vector<512x64xbf16>,
    return
  }
  func.func @transform_0(%arg0: i32) -> (i32, i32) {
    %c0_i32 = arith.constant 0 : i32
    %c0_i32_0 = arith.constant 0 : i32
    return %arg0, %c0_i32 : i32, i32
  }
  func.func @transform_1(%arg0: i32) -> (i32, i32) {
    %c0_i32 = arith.constant 0 : i32
    %c0_i32_0 = arith.constant 0 : i32
    %c0_i32_1 = arith.constant 0 : i32
    return %c0_i32, %c0_i32_0 : i32, i32
  }
  func.func @transform_2(%arg0: i32) -> (i32, i32) {
    %c0_i32 = arith.constant 0 : i32
    %c0_i32_0 = arith.constant 0 : i32
    %c0_i32_1 = arith.constant 0 : i32
    return %c0_i32, %c0_i32_0 : i32, i32
  }
  func.func @transform_3(%arg0: i32) -> (i32, i32) {
    %c0_i32 = arith.constant 0 : i32
    %c0_i32_0 = arith.constant 0 : i32
    return %arg0, %c0_i32 : i32, i32
  }
  func.func @transform_4(%arg0: i32) -> (i32, i32) {
    %c0_i32 = arith.constant 0 : i32
    %c0_i32_0 = arith.constant 0 : i32
    %c0_i32_1 = arith.constant 0 : i32
    return %c0_i32, %c0_i32_0 : i32, i32
  }
  func.func @transform_5(%arg0: i32) -> (i32, i32) {
    %c0_i32 = arith.constant 0 : i32
    %c0_i32_0 = arith.constant 0 : i32
    return %arg0, %c0_i32 : i32, i32
  }
}

module attributes {stable_mosaic.version = 11 : i64} {
  func.func @_fused_conv_kernel(%arg0: i32, %arg1: memref<128x576xbf16, #tpu.memory_space<vmem>>, %arg2: memref<576x128xbf16, #tpu.memory_space<vmem>>, %arg3: memref<1x128xf32, #tpu.memory_space<vmem>>, %arg4: memref<128x128xbf16, #tpu.memory_space<vmem>>) attributes {dimension_semantics = [#tpu.dimension_semantics<parallel>], iteration_bounds = array<i64: 1>, scalar_prefetch = 0 : i64, scratch_operands = 0 : i64, tpu.core_type = #tpu.core_type<tc>, window_params = [{transform_indices = @transform_0, window_bounds = array<i64: 128, 576>}, {pipeline_mode = #tpu.pipeline_mode<synchronous>, transform_indices = @transform_1, window_bounds = array<i64: 576, 128>}, {pipeline_mode = #tpu.pipeline_mode<synchronous>, transform_indices = @transform_2, window_bounds = array<i64: 1, 128>}, {transform_indices = @transform_3, window_bounds = array<i64: 128, 128>}]} {
    %c0 = arith.constant 0 : index
    %c0_0 = arith.constant 0 : index
    %0 = vector.load %arg1[%c0, %c0_0] : memref<128x576xbf16, #tpu.memory_space<vmem>>, vector<128x576xbf16>
    %c0_1 = arith.constant 0 : index
    %c0_2 = arith.constant 0 : index
    %1 = vector.load %arg2[%c0_1, %c0_2] : memref<576x128xbf16, #tpu.memory_space<vmem>>, vector<576x128xbf16>
    %cst = arith.constant dense<0.000000e+00> : vector<128x128xf32>
    %2 = tpu.matmul %0, %1, %cst {dimension_numbers = #tpu.dot_dimension_numbers<[1], [0], [0], [1], [0, 0, 1, 1], [], []>} : vector<128x576xbf16>, vector<576x128xbf16>, vector<128x128xf32> -> vector<128x128xf32>
    %c0_3 = arith.constant 0 : index
    %c0_4 = arith.constant 0 : index
    %3 = vector.load %arg3[%c0_3, %c0_4] : memref<1x128xf32, #tpu.memory_space<vmem>>, vector<1x128xf32>
    %4 = vector.broadcast %3 : vector<1x128xf32> to vector<128x128xf32>
    %5 = arith.addf %2, %4 : vector<128x128xf32>
    %cst_5 = arith.constant 0.000000e+00 : f32
    %6 = vector.broadcast %cst_5 : f32 to vector<128x128xf32>
    %7 = arith.maximumf %5, %6 : vector<128x128xf32>
    %8 = arith.truncf %7 : vector<128x128xf32> to vector<128x128xbf16>
    %c0_6 = arith.constant 0 : index
    %c0_7 = arith.constant 0 : index
    %9 = vector.load %arg4[%c0_6, %c0_7] : memref<128x128xbf16, #tpu.memory_space<vmem>>, vector<128x128xbf16>
    tpu.vector_store %arg4[%c0_6, %c0_7], %8 {strides = array<i32>} : memref<128x128xbf16, #tpu.memory_space<vmem>>, vector<128x128xbf16>,
    return
  }
  func.func @transform_0(%arg0: i32) -> (i32, i32) {
    %c0_i32 = arith.constant 0 : i32
    %c0_i32_0 = arith.constant 0 : i32
    return %arg0, %c0_i32 : i32, i32
  }
  func.func @transform_1(%arg0: i32) -> (i32, i32) {
    %c0_i32 = arith.constant 0 : i32
    %c0_i32_0 = arith.constant 0 : i32
    %c0_i32_1 = arith.constant 0 : i32
    return %c0_i32, %c0_i32_0 : i32, i32
  }
  func.func @transform_2(%arg0: i32) -> (i32, i32) {
    %c0_i32 = arith.constant 0 : i32
    %c0_i32_0 = arith.constant 0 : i32
    %c0_i32_1 = arith.constant 0 : i32
    return %c0_i32, %c0_i32_0 : i32, i32
  }
  func.func @transform_3(%arg0: i32) -> (i32, i32) {
    %c0_i32 = arith.constant 0 : i32
    %c0_i32_0 = arith.constant 0 : i32
    return %arg0, %c0_i32 : i32, i32
  }
}

module attributes {stable_mosaic.version = 11 : i64} {
  func.func @_fused_conv_kernel(%arg0: i32, %arg1: memref<128x1152xbf16, #tpu.memory_space<vmem>>, %arg2: memref<1152x128xbf16, #tpu.memory_space<vmem>>, %arg3: memref<1x128xf32, #tpu.memory_space<vmem>>, %arg4: memref<128x64xbf16, #tpu.memory_space<vmem>>, %arg5: memref<64x128xbf16, #tpu.memory_space<vmem>>, %arg6: memref<128x128xbf16, #tpu.memory_space<vmem>>) attributes {dimension_semantics = [#tpu.dimension_semantics<parallel>], iteration_bounds = array<i64: 1>, scalar_prefetch = 0 : i64, scratch_operands = 0 : i64, tpu.core_type = #tpu.core_type<tc>, window_params = [{transform_indices = @transform_0, window_bounds = array<i64: 128, 1152>}, {pipeline_mode = #tpu.pipeline_mode<synchronous>, transform_indices = @transform_1, window_bounds = array<i64: 1152, 128>}, {pipeline_mode = #tpu.pipeline_mode<synchronous>, transform_indices = @transform_2, window_bounds = array<i64: 1, 128>}, {transform_indices = @transform_3, window_bounds = array<i64: 128, 64>}, {pipeline_mode = #tpu.pipeline_mode<synchronous>, transform_indices = @transform_4, window_bounds = array<i64: 64, 128>}, {transform_indices = @transform_5, window_bounds = array<i64: 128, 128>}]} {
    %c0 = arith.constant 0 : index
    %c0_0 = arith.constant 0 : index
    %0 = vector.load %arg1[%c0, %c0_0] : memref<128x1152xbf16, #tpu.memory_space<vmem>>, vector<128x1152xbf16>
    %c0_1 = arith.constant 0 : index
    %c0_2 = arith.constant 0 : index
    %1 = vector.load %arg2[%c0_1, %c0_2] : memref<1152x128xbf16, #tpu.memory_space<vmem>>, vector<1152x128xbf16>
    %cst = arith.constant dense<0.000000e+00> : vector<128x128xf32>
    %2 = tpu.matmul %0, %1, %cst {dimension_numbers = #tpu.dot_dimension_numbers<[1], [0], [0], [1], [0, 0, 1, 1], [], []>} : vector<128x1152xbf16>, vector<1152x128xbf16>, vector<128x128xf32> -> vector<128x128xf32>
    %c0_3 = arith.constant 0 : index
    %c0_4 = arith.constant 0 : index
    %3 = vector.load %arg3[%c0_3, %c0_4] : memref<1x128xf32, #tpu.memory_space<vmem>>, vector<1x128xf32>
    %4 = vector.broadcast %3 : vector<1x128xf32> to vector<128x128xf32>
    %5 = arith.addf %2, %4 : vector<128x128xf32>
    %c0_5 = arith.constant 0 : index
    %c0_6 = arith.constant 0 : index
    %6 = vector.load %arg4[%c0_5, %c0_6] : memref<128x64xbf16, #tpu.memory_space<vmem>>, vector<128x64xbf16>
    %c0_7 = arith.constant 0 : index
    %c0_8 = arith.constant 0 : index
    %7 = vector.load %arg5[%c0_7, %c0_8] : memref<64x128xbf16, #tpu.memory_space<vmem>>, vector<64x128xbf16>
    %cst_9 = arith.constant dense<0.000000e+00> : vector<128x128xf32>
    %8 = tpu.matmul %6, %7, %cst_9 {dimension_numbers = #tpu.dot_dimension_numbers<[1], [0], [0], [1], [0, 0, 1, 1], [], []>} : vector<128x64xbf16>, vector<64x128xbf16>, vector<128x128xf32> -> vector<128x128xf32>
    %9 = arith.addf %5, %8 : vector<128x128xf32>
    %cst_10 = arith.constant 0.000000e+00 : f32
    %10 = vector.broadcast %cst_10 : f32 to vector<128x128xf32>
    %11 = arith.maximumf %9, %10 : vector<128x128xf32>
    %12 = arith.truncf %11 : vector<128x128xf32> to vector<128x128xbf16>
    %c0_11 = arith.constant 0 : index
    %c0_12 = arith.constant 0 : index
    %13 = vector.load %arg6[%c0_11, %c0_12] : memref<128x128xbf16, #tpu.memory_space<vmem>>, vector<128x128xbf16>
    tpu.vector_store %arg6[%c0_11, %c0_12], %12 {strides = array<i32>} : memref<128x128xbf16, #tpu.memory_space<vmem>>, vector<128x128xbf16>,
    return
  }
  func.func @transform_0(%arg0: i32) -> (i32, i32) {
    %c0_i32 = arith.constant 0 : i32
    %c0_i32_0 = arith.constant 0 : i32
    return %arg0, %c0_i32 : i32, i32
  }
  func.func @transform_1(%arg0: i32) -> (i32, i32) {
    %c0_i32 = arith.constant 0 : i32
    %c0_i32_0 = arith.constant 0 : i32
    %c0_i32_1 = arith.constant 0 : i32
    return %c0_i32, %c0_i32_0 : i32, i32
  }
  func.func @transform_2(%arg0: i32) -> (i32, i32) {
    %c0_i32 = arith.constant 0 : i32
    %c0_i32_0 = arith.constant 0 : i32
    %c0_i32_1 = arith.constant 0 : i32
    return %c0_i32, %c0_i32_0 : i32, i32
  }
  func.func @transform_3(%arg0: i32) -> (i32, i32) {
    %c0_i32 = arith.constant 0 : i32
    %c0_i32_0 = arith.constant 0 : i32
    return %arg0, %c0_i32 : i32, i32
  }
  func.func @transform_4(%arg0: i32) -> (i32, i32) {
    %c0_i32 = arith.constant 0 : i32
    %c0_i32_0 = arith.constant 0 : i32
    %c0_i32_1 = arith.constant 0 : i32
    return %c0_i32, %c0_i32_0 : i32, i32
  }
  func.func @transform_5(%arg0: i32) -> (i32, i32) {
    %c0_i32 = arith.constant 0 : i32
    %c0_i32_0 = arith.constant 0 : i32
    return %arg0, %c0_i32 : i32, i32
  }
}

module attributes {stable_mosaic.version = 11 : i64} {
  func.func @_fused_conv_kernel(%arg0: i32, %arg1: memref<32x1152xbf16, #tpu.memory_space<vmem>>, %arg2: memref<1152x256xbf16, #tpu.memory_space<vmem>>, %arg3: memref<1x256xf32, #tpu.memory_space<vmem>>, %arg4: memref<32x256xbf16, #tpu.memory_space<vmem>>) attributes {dimension_semantics = [#tpu.dimension_semantics<parallel>], iteration_bounds = array<i64: 1>, scalar_prefetch = 0 : i64, scratch_operands = 0 : i64, tpu.core_type = #tpu.core_type<tc>, window_params = [{transform_indices = @transform_0, window_bounds = array<i64: 32, 1152>}, {pipeline_mode = #tpu.pipeline_mode<synchronous>, transform_indices = @transform_1, window_bounds = array<i64: 1152, 256>}, {pipeline_mode = #tpu.pipeline_mode<synchronous>, transform_indices = @transform_2, window_bounds = array<i64: 1, 256>}, {transform_indices = @transform_3, window_bounds = array<i64: 32, 256>}]} {
    %c0 = arith.constant 0 : index
    %c0_0 = arith.constant 0 : index
    %0 = vector.load %arg1[%c0, %c0_0] : memref<32x1152xbf16, #tpu.memory_space<vmem>>, vector<32x1152xbf16>
    %c0_1 = arith.constant 0 : index
    %c0_2 = arith.constant 0 : index
    %1 = vector.load %arg2[%c0_1, %c0_2] : memref<1152x256xbf16, #tpu.memory_space<vmem>>, vector<1152x256xbf16>
    %cst = arith.constant dense<0.000000e+00> : vector<32x256xf32>
    %2 = tpu.matmul %0, %1, %cst {dimension_numbers = #tpu.dot_dimension_numbers<[1], [0], [0], [1], [0, 0, 1, 1], [], []>} : vector<32x1152xbf16>, vector<1152x256xbf16>, vector<32x256xf32> -> vector<32x256xf32>
    %c0_3 = arith.constant 0 : index
    %c0_4 = arith.constant 0 : index
    %3 = vector.load %arg3[%c0_3, %c0_4] : memref<1x256xf32, #tpu.memory_space<vmem>>, vector<1x256xf32>
    %4 = vector.broadcast %3 : vector<1x256xf32> to vector<32x256xf32>
    %5 = arith.addf %2, %4 : vector<32x256xf32>
    %cst_5 = arith.constant 0.000000e+00 : f32
    %6 = vector.broadcast %cst_5 : f32 to vector<32x256xf32>
    %7 = arith.maximumf %5, %6 : vector<32x256xf32>
    %8 = arith.truncf %7 : vector<32x256xf32> to vector<32x256xbf16>
    %c0_6 = arith.constant 0 : index
    %c0_7 = arith.constant 0 : index
    %9 = vector.load %arg4[%c0_6, %c0_7] : memref<32x256xbf16, #tpu.memory_space<vmem>>, vector<32x256xbf16>
    tpu.vector_store %arg4[%c0_6, %c0_7], %8 {strides = array<i32>} : memref<32x256xbf16, #tpu.memory_space<vmem>>, vector<32x256xbf16>,
    return
  }
  func.func @transform_0(%arg0: i32) -> (i32, i32) {
    %c0_i32 = arith.constant 0 : i32
    %c0_i32_0 = arith.constant 0 : i32
    return %arg0, %c0_i32 : i32, i32
  }
  func.func @transform_1(%arg0: i32) -> (i32, i32) {
    %c0_i32 = arith.constant 0 : i32
    %c0_i32_0 = arith.constant 0 : i32
    %c0_i32_1 = arith.constant 0 : i32
    return %c0_i32, %c0_i32_0 : i32, i32
  }
  func.func @transform_2(%arg0: i32) -> (i32, i32) {
    %c0_i32 = arith.constant 0 : i32
    %c0_i32_0 = arith.constant 0 : i32
    %c0_i32_1 = arith.constant 0 : i32
    return %c0_i32, %c0_i32_0 : i32, i32
  }
  func.func @transform_3(%arg0: i32) -> (i32, i32) {
    %c0_i32 = arith.constant 0 : i32
    %c0_i32_0 = arith.constant 0 : i32
    return %arg0, %c0_i32 : i32, i32
  }
}

module attributes {stable_mosaic.version = 11 : i64} {
  func.func @_fused_conv_kernel(%arg0: i32, %arg1: memref<32x2304xbf16, #tpu.memory_space<vmem>>, %arg2: memref<2304x256xbf16, #tpu.memory_space<vmem>>, %arg3: memref<1x256xf32, #tpu.memory_space<vmem>>, %arg4: memref<32x128xbf16, #tpu.memory_space<vmem>>, %arg5: memref<128x256xbf16, #tpu.memory_space<vmem>>, %arg6: memref<2x32xf32, #tpu.memory_space<vmem>>, %arg7: memref<256x10xf32, #tpu.memory_space<vmem>>, %arg8: memref<1x10xf32, #tpu.memory_space<vmem>>, %arg9: memref<2x10xf32, #tpu.memory_space<vmem>>) attributes {dimension_semantics = [#tpu.dimension_semantics<parallel>], iteration_bounds = array<i64: 1>, scalar_prefetch = 0 : i64, scratch_operands = 0 : i64, tpu.core_type = #tpu.core_type<tc>, window_params = [{transform_indices = @transform_0, window_bounds = array<i64: 32, 2304>}, {pipeline_mode = #tpu.pipeline_mode<synchronous>, transform_indices = @transform_1, window_bounds = array<i64: 2304, 256>}, {pipeline_mode = #tpu.pipeline_mode<synchronous>, transform_indices = @transform_2, window_bounds = array<i64: 1, 256>}, {transform_indices = @transform_3, window_bounds = array<i64: 32, 128>}, {pipeline_mode = #tpu.pipeline_mode<synchronous>, transform_indices = @transform_4, window_bounds = array<i64: 128, 256>}, {pipeline_mode = #tpu.pipeline_mode<synchronous>, transform_indices = @transform_5, window_bounds = array<i64: 2, 32>}, {pipeline_mode = #tpu.pipeline_mode<synchronous>, transform_indices = @transform_6, window_bounds = array<i64: 256, 10>}, {pipeline_mode = #tpu.pipeline_mode<synchronous>, transform_indices = @transform_7, window_bounds = array<i64: 1, 10>}, {pipeline_mode = #tpu.pipeline_mode<synchronous>, transform_indices = @transform_8, window_bounds = array<i64: 2, 10>}]} {
    %c0 = arith.constant 0 : index
    %c0_0 = arith.constant 0 : index
    %0 = vector.load %arg1[%c0, %c0_0] : memref<32x2304xbf16, #tpu.memory_space<vmem>>, vector<32x2304xbf16>
    %c0_1 = arith.constant 0 : index
    %c0_2 = arith.constant 0 : index
    %1 = vector.load %arg2[%c0_1, %c0_2] : memref<2304x256xbf16, #tpu.memory_space<vmem>>, vector<2304x256xbf16>
    %cst = arith.constant dense<0.000000e+00> : vector<32x256xf32>
    %2 = tpu.matmul %0, %1, %cst {dimension_numbers = #tpu.dot_dimension_numbers<[1], [0], [0], [1], [0, 0, 1, 1], [], []>} : vector<32x2304xbf16>, vector<2304x256xbf16>, vector<32x256xf32> -> vector<32x256xf32>
    %c0_3 = arith.constant 0 : index
    %c0_4 = arith.constant 0 : index
    %3 = vector.load %arg3[%c0_3, %c0_4] : memref<1x256xf32, #tpu.memory_space<vmem>>, vector<1x256xf32>
    %4 = vector.broadcast %3 : vector<1x256xf32> to vector<32x256xf32>
    %5 = arith.addf %2, %4 : vector<32x256xf32>
    %c0_5 = arith.constant 0 : index
    %c0_6 = arith.constant 0 : index
    %6 = vector.load %arg4[%c0_5, %c0_6] : memref<32x128xbf16, #tpu.memory_space<vmem>>, vector<32x128xbf16>
    %c0_7 = arith.constant 0 : index
    %c0_8 = arith.constant 0 : index
    %7 = vector.load %arg5[%c0_7, %c0_8] : memref<128x256xbf16, #tpu.memory_space<vmem>>, vector<128x256xbf16>
    %cst_9 = arith.constant dense<0.000000e+00> : vector<32x256xf32>
    %8 = tpu.matmul %6, %7, %cst_9 {dimension_numbers = #tpu.dot_dimension_numbers<[1], [0], [0], [1], [0, 0, 1, 1], [], []>} : vector<32x128xbf16>, vector<128x256xbf16>, vector<32x256xf32> -> vector<32x256xf32>
    %9 = arith.addf %5, %8 : vector<32x256xf32>
    %cst_10 = arith.constant 0.000000e+00 : f32
    %10 = vector.broadcast %cst_10 : f32 to vector<32x256xf32>
    %11 = arith.maximumf %9, %10 : vector<32x256xf32>
    %c0_11 = arith.constant 0 : index
    %c0_12 = arith.constant 0 : index
    %12 = vector.load %arg6[%c0_11, %c0_12] : memref<2x32xf32, #tpu.memory_space<vmem>>, vector<2x32xf32>
    %cst_13 = arith.constant dense<0.000000e+00> : vector<2x256xf32>
    %13 = tpu.matmul %12, %11, %cst_13 {dimension_numbers = #tpu.dot_dimension_numbers<[1], [0], [0], [1], [0, 0, 1, 1], [], []>} : vector<2x32xf32>, vector<32x256xf32>, vector<2x256xf32> -> vector<2x256xf32>
    %c0_14 = arith.constant 0 : index
    %c0_15 = arith.constant 0 : index
    %14 = vector.load %arg7[%c0_14, %c0_15] : memref<256x10xf32, #tpu.memory_space<vmem>>, vector<256x10xf32>
    %cst_16 = arith.constant dense<0.000000e+00> : vector<2x10xf32>
    %15 = tpu.matmul %13, %14, %cst_16 {dimension_numbers = #tpu.dot_dimension_numbers<[1], [0], [0], [1], [0, 0, 1, 1], [], []>} : vector<2x256xf32>, vector<256x10xf32>, vector<2x10xf32> -> vector<2x10xf32>
    %c0_17 = arith.constant 0 : index
    %c0_18 = arith.constant 0 : index
    %16 = vector.load %arg8[%c0_17, %c0_18] : memref<1x10xf32, #tpu.memory_space<vmem>>, vector<1x10xf32>
    %17 = vector.broadcast %16 : vector<1x10xf32> to vector<2x10xf32>
    %18 = arith.addf %15, %17 : vector<2x10xf32>
    %c0_19 = arith.constant 0 : index
    %c0_20 = arith.constant 0 : index
    %19 = vector.load %arg9[%c0_19, %c0_20] : memref<2x10xf32, #tpu.memory_space<vmem>>, vector<2x10xf32>
    tpu.vector_store %arg9[%c0_19, %c0_20], %18 {strides = array<i32>} : memref<2x10xf32, #tpu.memory_space<vmem>>, vector<2x10xf32>,
    return
  }
  func.func @transform_0(%arg0: i32) -> (i32, i32) {
    %c0_i32 = arith.constant 0 : i32
    %c0_i32_0 = arith.constant 0 : i32
    return %arg0, %c0_i32 : i32, i32
  }
  func.func @transform_1(%arg0: i32) -> (i32, i32) {
    %c0_i32 = arith.constant 0 : i32
    %c0_i32_0 = arith.constant 0 : i32
    %c0_i32_1 = arith.constant 0 : i32
    return %c0_i32, %c0_i32_0 : i32, i32
  }
  func.func @transform_2(%arg0: i32) -> (i32, i32) {
    %c0_i32 = arith.constant 0 : i32
    %c0_i32_0 = arith.constant 0 : i32
    %c0_i32_1 = arith.constant 0 : i32
    return %c0_i32, %c0_i32_0 : i32, i32
  }
  func.func @transform_3(%arg0: i32) -> (i32, i32) {
    %c0_i32 = arith.constant 0 : i32
    %c0_i32_0 = arith.constant 0 : i32
    return %arg0, %c0_i32 : i32, i32
  }
  func.func @transform_4(%arg0: i32) -> (i32, i32) {
    %c0_i32 = arith.constant 0 : i32
    %c0_i32_0 = arith.constant 0 : i32
    %c0_i32_1 = arith.constant 0 : i32
    return %c0_i32, %c0_i32_0 : i32, i32
  }
  func.func @transform_5(%arg0: i32) -> (i32, i32) {
    %c0_i32 = arith.constant 0 : i32
    %c0_i32_0 = arith.constant 0 : i32
    %c0_i32_1 = arith.constant 0 : i32
    return %c0_i32, %c0_i32_0 : i32, i32
  }
  func.func @transform_6(%arg0: i32) -> (i32, i32) {
    %c0_i32 = arith.constant 0 : i32
    %c0_i32_0 = arith.constant 0 : i32
    %c0_i32_1 = arith.constant 0 : i32
    return %c0_i32, %c0_i32_0 : i32, i32
  }
  func.func @transform_7(%arg0: i32) -> (i32, i32) {
    %c0_i32 = arith.constant 0 : i32
    %c0_i32_0 = arith.constant 0 : i32
    %c0_i32_1 = arith.constant 0 : i32
    return %c0_i32, %c0_i32_0 : i32, i32
  }
  func.func @transform_8(%arg0: i32) -> (i32, i32) {
    %c0_i32 = arith.constant 0 : i32
    %c0_i32_0 = arith.constant 0 : i32
    %c0_i32_1 = arith.constant 0 : i32
    return %c0_i32, %c0_i32_0 : i32, i32
  }
}

</mosaic_0001>

<bundles_post_ra>
// kernel: _lambda_.9
= control target key start
LH: loop header
LB: loop body
LE: loop exit
PB: predicated region body
PF: predicated region fallthrough
CT: control target
= control target key end

     0   :  { %s1639_s12 = smov 0   ;;  %s1934_s0 = inlined_call_operand.vmem [shape: bf16[2048,27], index: 0, kind: input, shape index: {}]   ;;  %s1935_s1 = inlined_call_operand.vmem [shape: bf16[27,32], index: 1, kind: input, shape index: {}]   ;;  %s1936_s2 = inlined_call_operand.vmem [shape: f32[1,32], index: 2, kind: input, shape index: {}]   ;;  %s1937_s3 = inlined_call_operand.vmem [shape: bf16[2048,32], index: 3, kind: output, shape index: {}]  }
   0x1 LB: > { %s1255_s13 = sadd.s32 4294967295, %s1616_s12   ;;  %p1259_p0 = scmp.ge.s32.totalorder %s1616_s12, 1  ;;  %s1616_s12 = sphi %s1639_s12, %s13_s12  }
   0x2   : > { %p138_p1 = scmp.lt.s32.totalorder %s1616_s12, 5 }
   0x4   : > { %p139_p2 = pnand %p1259_p0, %p138_p1 }
   0x5   : > { %v1576_v0 = vld [vmem:[%s1935_s1] sm:$0xff] (!%p139_p2)   ;;  %vm518_vm0 = vcmask (!%p139_p2), 1044480   ;;  %v1577_v1 = vld [vmem:[%s1935_s1 + $0x8] sm:$0x3f] (!%p139_p2)   ;;  %vm519_vm1 = vcmask (!%p139_p2), 1045504   ;;  %s1260_s18 = sshll.u32 (!%p139_p2), %s1255_s13, 6 }
   0x6   : > { %142 = sbr.rel (%p139_p2) target bundleno = 297 (0x129), region = 32  ;;  %1495 = vmatprep.subr.bf16.mxu0 (!%p139_p2), %v1576_v0  ;;  %1563 = vmatprep.subr.bf16.mxu1 (!%p139_p2), %v1576_v0  ;;  %v1618_v2 = vmov (!%p139_p2), 65535   ;;  %p163_p3 = scmp.lt.s32.totalorder (!%p139_p2), %s1260_s18, 255  ;;  %vm421_vm2 = vcmask (!%p139_p2), 220160   ;;  %v1730_v38 = vld [vmem:[%s1936_s2] ss:$0 sm:$0xff] (!%p139_p2) }
   0x7   : > { %1496 = vmatpush3.bf16.msra.mxu0 (!%p139_p2), %v1576_v0  ;;  %1565 = vmatpush3.bf16.msra.mxu1 (!%p139_p2), %v1576_v0  ;;  %v520_v3 = vsel (!%p139_p2), %vm518_vm0, 4294967295, %v1618_v2  ;;  %vm1134_vm3 = vcmask (!%p139_p2), 257024  }
   0x8   : > { %v521_v4 = vsel (!%p139_p2), %vm519_vm1, %v520_v3, 0 }
   0x9   : > { %v523_v5 = vand.u32 (!%p139_p2), %v1577_v1, %v521_v4 }
   0xb   : > { %1497 = vmatprep.subr.bf16.mxu0 (!%p139_p2), %v523_v5  ;;  %1564 = vmatprep.subr.bf16.mxu1 (!%p139_p2), %v523_v5 }
   0xc   : > { %1498 = vmatpush3.bf16.msra.mxu0 (!%p139_p2), %v523_v5  ;;  %1566 = vmatpush3.bf16.msra.mxu1 (!%p139_p2), %v523_v5 }
   0xd   : > { %s1939_s18 = smov (!%p163_p3, %s1260_s18), 255 }
   0xe   : > { %s1261_s19 = sshll.u32 %s1939_s18, 2 }
   0xf   : > { %s1661_s22 = scalar_lea.vmem %s1934_s0, %s1261_s19  ;;  %s1742_s27 = scalar_lea.vmem %s1937_s3, %s1261_s19 }
  0x10   : > { %v1578_v6 = vld [vmem:[%s1661_s22] sm:$0xff]   ;;  %v1580_v8 = vld [vmem:[%s1661_s22 + $0x8] sm:$0xff]   ;;  %v1582_v10 = vld [vmem:[%s1661_s22 + $0x10] sm:$0xff]  }
  0x11   : > { %v1579_v7 = vld [vmem:[%s1661_s22 + $0x80] sm:$0xff]   ;;  %1499 = vmatprep.mubr.msk.bf16.mxu0 %vm421_vm2, %v1578_v6  ;;  %v1581_v9 = vld [vmem:[%s1661_s22 + $0x88] sm:$0xff]   ;;  %v1583_v11 = vld [vmem:[%s1661_s22 + $0x90] sm:$0xff]  }
  0x12   : > { %1531 = vmatprep.mubr.msk.bf16.mxu1 %vm421_vm2, %v1579_v7  ;;  %1500 = vmatmul.mubr.msk.bf16.vlgmr.msra.gmra.mrb[0].mxu0 %vm421_vm2, %v1580_v8  ;;  %v1584_v12 = vld [vmem:[%s1661_s22 + $0x18] sm:$0xff]   ;;  %v1586_v14 = vld [vmem:[%s1661_s22 + $0x20] sm:$0xff]   ;;  %v1588_v16 = vld [vmem:[%s1661_s22 + $0x28] sm:$0xff]  }
  0x13   : > { %1532 = vmatmul.mubr.msk.bf16.vlgmr.msra.gmra.mrb[0].mxu1 %vm421_vm2, %v1581_v9  ;;  %1503 = vmatprep.mubr.msk.bf16.mxu0 %vm421_vm2, %v1582_v10  ;;  %v1585_v13 = vld [vmem:[%s1661_s22 + $0x98] sm:$0xff]   ;;  %v1587_v15 = vld [vmem:[%s1661_s22 + $0xa0] sm:$0xff]   ;;  %v1589_v17 = vld [vmem:[%s1661_s22 + $0xa8] sm:$0xff]  }
  0x14   : > { %1535 = vmatprep.mubr.msk.bf16.mxu1 %vm421_vm2, %v1583_v11  ;;  %v1590_v18 = vld [vmem:[%s1661_s22 + $0x30] sm:$0xff]   ;;  %v1592_v20 = vld [vmem:[%s1661_s22 + $0x38] sm:$0xff]   ;;  %v1594_v22 = vld [vmem:[%s1661_s22 + $0x40] sm:$0xff]  }
  0x15   : > { %v1591_v19 = vld [vmem:[%s1661_s22 + $0xb0] sm:$0xff]   ;;  %v1593_v21 = vld [vmem:[%s1661_s22 + $0xb8] sm:$0xff]   ;;  %v1595_v23 = vld [vmem:[%s1661_s22 + $0xc0] sm:$0xff]  }
  0x16   : > { %v1596_v24 = vld [vmem:[%s1661_s22 + $0x48] sm:$0xff]   ;;  %v1598_v26 = vld [vmem:[%s1661_s22 + $0x50] sm:$0xff]   ;;  %v1600_v28 = vld [vmem:[%s1661_s22 + $0x58] sm:$0xff]  }
  0x17   : > { %v1597_v25 = vld [vmem:[%s1661_s22 + $0xc8] sm:$0xff]   ;;  %v1599_v27 = vld [vmem:[%s1661_s22 + $0xd0] sm:$0xff]   ;;  %v1601_v29 = vld [vmem:[%s1661_s22 + $0xd8] sm:$0xff]  }
  0x18   : > { %v1602_v30 = vld [vmem:[%s1661_s22 + $0x60] sm:$0xff]   ;;  %v1604_v32 = vld [vmem:[%s1661_s22 + $0x68] sm:$0xff]   ;;  %v1606_v34 = vld [vmem:[%s1661_s22 + $0x70] sm:$0xff]  }
  0x19   : > { %v1603_v31 = vld [vmem:[%s1661_s22 + $0xe0] sm:$0xff]   ;;  %v1605_v33 = vld [vmem:[%s1661_s22 + $0xe8] sm:$0xff]   ;;  %v1607_v35 = vld [vmem:[%s1661_s22 + $0xf0] sm:$0xff]  }
  0x1a   : > { %1504 = vmatmul.mubr.msk.bf16.gmra.mrb[4].mxu0 %vm421_vm2, %v1584_v12  ;;  %v1608_v36 = vld [vmem:[%s1661_s22 + $0x78] sm:$0xff]  }
  0x1b   : > { %1536 = vmatmul.mubr.msk.bf16.gmra.mrb[4].mxu1 %vm421_vm2, %v1585_v13  ;;  %1507 = vmatprep.mubr.msk.bf16.mxu0 %vm421_vm2, %v1586_v14  ;;  %v1609_v37 = vld [vmem:[%s1661_s22 + $0xf8] sm:$0xff]  }
  0x1c   : > { %1539 = vmatprep.mubr.msk.bf16.mxu1 %vm421_vm2, %v1587_v15 }
  0x22   : > { %1508 = vmatmul.mubr.msk.bf16.gmra.mrb[8].mxu0 %vm421_vm2, %v1588_v16 }
  0x23   : > { %1540 = vmatmul.mubr.msk.bf16.gmra.mrb[8].mxu1 %vm421_vm2, %v1589_v17  ;;  %1511 = vmatprep.mubr.msk.bf16.mxu0 %vm421_vm2, %v1590_v18 }
  0x24   : > { %1543 = vmatprep.mubr.msk.bf16.mxu1 %vm421_vm2, %v1591_v19 }
  0x2a   : > { %1512 = vmatmul.mubr.msk.bf16.gmra.mrb[12].mxu0 %vm421_vm2, %v1592_v20 }
  0x2b   : > { %1544 = vmatmul.mubr.msk.bf16.gmra.mrb[12].mxu1 %vm421_vm2, %v1593_v21  ;;  %1515 = vmatprep.mubr.msk.bf16.mxu0 %vm421_vm2, %v1594_v22 }
  0x2c   : > { %1547 = vmatprep.mubr.msk.bf16.mxu1 %vm421_vm2, %v1595_v23 }
  0x32   : > { %1516 = vmatmul.mubr.msk.bf16.gmra.mrb[16].mxu0 %vm421_vm2, %v1596_v24 }
  0x33   : > { %1548 = vmatmul.mubr.msk.bf16.gmra.mrb[16].mxu1 %vm421_vm2, %v1597_v25  ;;  %1519 = vmatprep.mubr.msk.bf16.mxu0 %vm421_vm2, %v1598_v26 }
  0x34   : > { %1551 = vmatprep.mubr.msk.bf16.mxu1 %vm421_vm2, %v1599_v27 }
  0x3a   : > { %1520 = vmatmul.mubr.msk.bf16.gmra.mrb[20].mxu0 %vm421_vm2, %v1600_v28 }
  0x3b   : > { %1552 = vmatmul.mubr.msk.bf16.gmra.mrb[20].mxu1 %vm421_vm2, %v1601_v29  ;;  %1523 = vmatprep.mubr.msk.bf16.mxu0 %vm421_vm2, %v1602_v30 }
  0x3c   : > { %1555 = vmatprep.mubr.msk.bf16.mxu1 %vm421_vm2, %v1603_v31 }
  0x42   : > { %1524 = vmatmul.mubr.msk.bf16.gmra.mrb[24].mxu0 %vm421_vm2, %v1604_v32 }
  0x43   : > { %1556 = vmatmul.mubr.msk.bf16.gmra.mrb[24].mxu1 %vm421_vm2, %v1605_v33  ;;  %1527 = vmatprep.mubr.msk.bf16.mxu0 %vm421_vm2, %v1606_v34 }
  0x44   : > { %1559 = vmatprep.mubr.msk.bf16.mxu1 %vm421_vm2, %v1607_v35 }
  0x4a   : > { %1528 = vmatmul.mubr.msk.bf16.gmra.mrb[28].mxu0 %vm421_vm2, %v1608_v36 }
  0x4b   : > { %1560 = vmatmul.mubr.msk.bf16.gmra.mrb[28].mxu1 %vm421_vm2, %v1609_v37 }
  0xe5   : > { %v1501_v39 = vpop.f32.mrb[0].mxu0 }
  0xe6   : > { %v568_v40 = vadd.f32 %v1501_v39, %v1730_v38  ;;  %v1533_v41 = vpop.f32.mrb[0].mxu1  ;;  %v559_v42 = vpop.f32.mrb[1].mxu0 }
  0xe7   : > { %v696_v43 = vadd.f32 %v1533_v41, %v1730_v38  ;;  %v560_v44 = vadd.f32 %v1730_v38, %v559_v42  ;;  %v687_v45 = vpop.f32.mrb[1].mxu1  ;;  %v1502_v46 = vpop.f32.mrb[2].mxu0 }
  0xe8   : > { %v816_v47 = vmax.f32 %v568_v40, 0.0  ;;  %v688_v48 = vadd.f32 %v1730_v38, %v687_v45  ;;  %v571_v49 = vadd.f32 %v1502_v46, %v1730_v38  ;;  %v1534_v50 = vpop.f32.mrb[2].mxu1  ;;  %v562_v51 = vpop.f32.mrb[3].mxu0 }
  0xe9   : > { %v848_v52 = vmax.f32 %v696_v43, 0.0  ;;  %v814_v53 = vmax.f32 %v560_v44, 0.0  ;;  %v699_v54 = vadd.f32 %v1534_v50, %v1730_v38  ;;  %v563_v55 = vadd.f32 %v1730_v38, %v562_v51  ;;  %v690_v56 = vpop.f32.mrb[3].mxu1 }
  0xea   : > { %v1399_v57 = vpack.c.bf16 %v816_v47, %v816_v47  ;;  %v846_v58 = vmax.f32 %v688_v48, 0.0  ;;  %v817_v59 = vmax.f32 %v571_v49, 0.0  ;;  %v691_v60 = vadd.f32 %v1730_v38, %v690_v56 }
  0xeb   : > { %v1431_v61 = vpack.c.bf16 %v848_v52, %v848_v52  ;;  %v1397_v62 = vpack.c.bf16 %v814_v53, %v814_v53  ;;  %v849_v63 = vmax.f32 %v699_v54, 0.0  ;;  %v815_v0 = vmax.f32 %v563_v55, 0.0 }
  0xec   : > { %1137 = vst.msk [vmem:[%s1742_s27 + $0x8] sm:$0xf] %vm1134_vm3, %v1399_v57  ;;  %v1429_v1 = vpack.c.bf16 %v846_v58, %v846_v58  ;;  %v1400_v2 = vpack.c.bf16 %v817_v59, %v817_v59  ;;  %v847_v3 = vmax.f32 %v691_v60, 0.0 }
  0xed   : > { %1169 = vst.msk [vmem:[%s1742_s27 + $0x88] sm:$0xf] %vm1134_vm3, %v1431_v61  ;;  %1135 = vst.msk [vmem:[%s1742_s27] sm:$0xf] %vm1134_vm3, %v1397_v62  ;;  %v1432_v4 = vpack.c.bf16 %v849_v63, %v849_v63  ;;  %v1398_v5 = vpack.c.bf16 %v815_v0, %v815_v0  ;;  %v1505_v6 = vpop.f32.mrb[4].mxu0 }
  0xee   : > { %1167 = vst.msk [vmem:[%s1742_s27 + $0x80] sm:$0xf] %vm1134_vm3, %v1429_v1  ;;  %1138 = vst.msk [vmem:[%s1742_s27 + $0xc] sm:$0xf] %vm1134_vm3, %v1400_v2  ;;  %v1430_v7 = vpack.c.bf16 %v847_v3, %v847_v3  ;;  %v584_v8 = vadd.f32 %v1505_v6, %v1730_v38  ;;  %v1537_v9 = vpop.f32.mrb[4].mxu1  ;;  %v575_v10 = vpop.f32.mrb[5].mxu0 }
  0xef   : > { %1170 = vst.msk [vmem:[%s1742_s27 + $0x8c] sm:$0xf] %vm1134_vm3, %v1432_v4  ;;  %1136 = vst.msk [vmem:[%s1742_s27 + $0x4] sm:$0xf] %vm1134_vm3, %v1398_v5  ;;  %v712_v11 = vadd.f32 %v1537_v9, %v1730_v38  ;;  %v576_v12 = vadd.f32 %v1730_v38, %v575_v10  ;;  %v703_v13 = vpop.f32.mrb[5].mxu1  ;;  %v1506_v14 = vpop.f32.mrb[6].mxu0 }
  0xf0   : > { %1168 = vst.msk [vmem:[%s1742_s27 + $0x84] sm:$0xf] %vm1134_vm3, %v1430_v7  ;;  %v820_v15 = vmax.f32 %v584_v8, 0.0  ;;  %v704_v16 = vadd.f32 %v1730_v38, %v703_v13  ;;  %v587_v17 = vadd.f32 %v1506_v14, %v1730_v38  ;;  %v1538_v18 = vpop.f32.mrb[6].mxu1  ;;  %v578_v19 = vpop.f32.mrb[7].mxu0 }
  0xf1   : > { %v852_v20 = vmax.f32 %v712_v11, 0.0  ;;  %v818_v21 = vmax.f32 %v576_v12, 0.0  ;;  %v715_v22 = vadd.f32 %v1538_v18, %v1730_v38  ;;  %v579_v23 = vadd.f32 %v1730_v38, %v578_v19  ;;  %v706_v24 = vpop.f32.mrb[7].mxu1 }
  0xf2   : > { %v1403_v25 = vpack.c.bf16 %v820_v15, %v820_v15  ;;  %v850_v26 = vmax.f32 %v704_v16, 0.0  ;;  %v821_v27 = vmax.f32 %v587_v17, 0.0  ;;  %v707_v28 = vadd.f32 %v1730_v38, %v706_v24 }
  0xf3   : > { %v1435_v29 = vpack.c.bf16 %v852_v20, %v852_v20  ;;  %v1401_v30 = vpack.c.bf16 %v818_v21, %v818_v21  ;;  %v853_v31 = vmax.f32 %v715_v22, 0.0  ;;  %v819_v32 = vmax.f32 %v579_v23, 0.0 }
  0xf4   : > { %1141 = vst.msk [vmem:[%s1742_s27 + $0x18] sm:$0xf] %vm1134_vm3, %v1403_v25  ;;  %v1433_v33 = vpack.c.bf16 %v850_v26, %v850_v26  ;;  %v1404_v34 = vpack.c.bf16 %v821_v27, %v821_v27  ;;  %v851_v35 = vmax.f32 %v707_v28, 0.0 }
  0xf5   : > { %1173 = vst.msk [vmem:[%s1742_s27 + $0x98] sm:$0xf] %vm1134_vm3, %v1435_v29  ;;  %1139 = vst.msk [vmem:[%s1742_s27 + $0x10] sm:$0xf] %vm1134_vm3, %v1401_v30  ;;  %v1436_v36 = vpack.c.bf16 %v853_v31, %v853_v31  ;;  %v1402_v37 = vpack.c.bf16 %v819_v32, %v819_v32  ;;  %v1509_v39 = vpop.f32.mrb[8].mxu0 }
  0xf6   : > { %1171 = vst.msk [vmem:[%s1742_s27 + $0x90] sm:$0xf] %vm1134_vm3, %v1433_v33  ;;  %1142 = vst.msk [vmem:[%s1742_s27 + $0x1c] sm:$0xf] %vm1134_vm3, %v1404_v34  ;;  %v1434_v40 = vpack.c.bf16 %v851_v35, %v851_v35  ;;  %v600_v41 = vadd.f32 %v1509_v39, %v1730_v38  ;;  %v1541_v42 = vpop.f32.mrb[8].mxu1  ;;  %v591_v43 = vpop.f32.mrb[9].mxu0 }
  0xf7   : > { %1174 = vst.msk [vmem:[%s1742_s27 + $0x9c] sm:$0xf] %vm1134_vm3, %v1436_v36  ;;  %1140 = vst.msk [vmem:[%s1742_s27 + $0x14] sm:$0xf] %vm1134_vm3, %v1402_v37  ;;  %v728_v44 = vadd.f32 %v1541_v42, %v1730_v38  ;;  %v592_v45 = vadd.f32 %v1730_v38, %v591_v43  ;;  %v719_v46 = vpop.f32.mrb[9].mxu1  ;;  %v1510_v47 = vpop.f32.mrb[10].mxu0 }
  0xf8   : > { %1172 = vst.msk [vmem:[%s1742_s27 + $0x94] sm:$0xf] %vm1134_vm3, %v1434_v40  ;;  %v824_v48 = vmax.f32 %v600_v41, 0.0  ;;  %v720_v49 = vadd.f32 %v1730_v38, %v719_v46  ;;  %v603_v50 = vadd.f32 %v1510_v47, %v1730_v38  ;;  %v1542_v51 = vpop.f32.mrb[10].mxu1  ;;  %v594_v52 = vpop.f32.mrb[11].mxu0 }
  0xf9   : > { %v856_v53 = vmax.f32 %v728_v44, 0.0  ;;  %v822_v54 = vmax.f32 %v592_v45, 0.0  ;;  %v731_v55 = vadd.f32 %v1542_v51, %v1730_v38  ;;  %v595_v56 = vadd.f32 %v1730_v38, %v594_v52  ;;  %v722_v57 = vpop.f32.mrb[11].mxu1 }
  0xfa   : > { %v1407_v58 = vpack.c.bf16 %v824_v48, %v824_v48  ;;  %v854_v59 = vmax.f32 %v720_v49, 0.0  ;;  %v825_v60 = vmax.f32 %v603_v50, 0.0  ;;  %v723_v61 = vadd.f32 %v1730_v38, %v722_v57 }
  0xfb   : > { %v1439_v62 = vpack.c.bf16 %v856_v53, %v856_v53  ;;  %v1405_v63 = vpack.c.bf16 %v822_v54, %v822_v54  ;;  %v857_v0 = vmax.f32 %v731_v55, 0.0  ;;  %v823_v1 = vmax.f32 %v595_v56, 0.0 }
  0xfc   : > { %1145 = vst.msk [vmem:[%s1742_s27 + $0x28] sm:$0xf] %vm1134_vm3, %v1407_v58  ;;  %v1437_v2 = vpack.c.bf16 %v854_v59, %v854_v59  ;;  %v1408_v3 = vpack.c.bf16 %v825_v60, %v825_v60  ;;  %v855_v4 = vmax.f32 %v723_v61, 0.0 }
  0xfd   : > { %1177 = vst.msk [vmem:[%s1742_s27 + $0xa8] sm:$0xf] %vm1134_vm3, %v1439_v62  ;;  %1143 = vst.msk [vmem:[%s1742_s27 + $0x20] sm:$0xf] %vm1134_vm3, %v1405_v63  ;;  %v1440_v5 = vpack.c.bf16 %v857_v0, %v857_v0  ;;  %v1406_v6 = vpack.c.bf16 %v823_v1, %v823_v1  ;;  %v1513_v7 = vpop.f32.mrb[12].mxu0 }
  0xfe   : > { %1175 = vst.msk [vmem:[%s1742_s27 + $0xa0] sm:$0xf] %vm1134_vm3, %v1437_v2  ;;  %1146 = vst.msk [vmem:[%s1742_s27 + $0x2c] sm:$0xf] %vm1134_vm3, %v1408_v3  ;;  %v1438_v8 = vpack.c.bf16 %v855_v4, %v855_v4  ;;  %v616_v9 = vadd.f32 %v1513_v7, %v1730_v38  ;;  %v1545_v10 = vpop.f32.mrb[12].mxu1  ;;  %v607_v11 = vpop.f32.mrb[13].mxu0 }
  0xff   : > { %1178 = vst.msk [vmem:[%s1742_s27 + $0xac] sm:$0xf] %vm1134_vm3, %v1440_v5  ;;  %1144 = vst.msk [vmem:[%s1742_s27 + $0x24] sm:$0xf] %vm1134_vm3, %v1406_v6  ;;  %v744_v12 = vadd.f32 %v1545_v10, %v1730_v38  ;;  %v608_v13 = vadd.f32 %v1730_v38, %v607_v11  ;;  %v735_v14 = vpop.f32.mrb[13].mxu1  ;;  %v1514_v15 = vpop.f32.mrb[14].mxu0 }
 0x100   : > { %1176 = vst.msk [vmem:[%s1742_s27 + $0xa4] sm:$0xf] %vm1134_vm3, %v1438_v8  ;;  %v828_v16 = vmax.f32 %v616_v9, 0.0  ;;  %v736_v17 = vadd.f32 %v1730_v38, %v735_v14  ;;  %v619_v18 = vadd.f32 %v1514_v15, %v1730_v38  ;;  %v1546_v19 = vpop.f32.mrb[14].mxu1  ;;  %v610_v20 = vpop.f32.mrb[15].mxu0 }
 0x101   : > { %v860_v21 = vmax.f32 %v744_v12, 0.0  ;;  %v826_v22 = vmax.f32 %v608_v13, 0.0  ;;  %v747_v23 = vadd.f32 %v1546_v19, %v1730_v38  ;;  %v611_v24 = vadd.f32 %v1730_v38, %v610_v20  ;;  %v738_v25 = vpop.f32.mrb[15].mxu1 }
 0x102   : > { %v1411_v26 = vpack.c.bf16 %v828_v16, %v828_v16  ;;  %v858_v27 = vmax.f32 %v736_v17, 0.0  ;;  %v829_v28 = vmax.f32 %v619_v18, 0.0  ;;  %v739_v29 = vadd.f32 %v1730_v38, %v738_v25 }
 0x103   : > { %v1443_v30 = vpack.c.bf16 %v860_v21, %v860_v21  ;;  %v1409_v31 = vpack.c.bf16 %v826_v22, %v826_v22  ;;  %v861_v32 = vmax.f32 %v747_v23, 0.0  ;;  %v827_v33 = vmax.f32 %v611_v24, 0.0 }
 0x104   : > { %1149 = vst.msk [vmem:[%s1742_s27 + $0x38] sm:$0xf] %vm1134_vm3, %v1411_v26  ;;  %v1441_v34 = vpack.c.bf16 %v858_v27, %v858_v27  ;;  %v1412_v35 = vpack.c.bf16 %v829_v28, %v829_v28  ;;  %v859_v36 = vmax.f32 %v739_v29, 0.0 }
 0x105   : > { %1181 = vst.msk [vmem:[%s1742_s27 + $0xb8] sm:$0xf] %vm1134_vm3, %v1443_v30  ;;  %1147 = vst.msk [vmem:[%s1742_s27 + $0x30] sm:$0xf] %vm1134_vm3, %v1409_v31  ;;  %v1444_v37 = vpack.c.bf16 %v861_v32, %v861_v32  ;;  %v1410_v39 = vpack.c.bf16 %v827_v33, %v827_v33  ;;  %v1517_v40 = vpop.f32.mrb[16].mxu0 }
 0x106   : > { %1179 = vst.msk [vmem:[%s1742_s27 + $0xb0] sm:$0xf] %vm1134_vm3, %v1441_v34  ;;  %1150 = vst.msk [vmem:[%s1742_s27 + $0x3c] sm:$0xf] %vm1134_vm3, %v1412_v35  ;;  %v1442_v41 = vpack.c.bf16 %v859_v36, %v859_v36  ;;  %v632_v42 = vadd.f32 %v1517_v40, %v1730_v38  ;;  %v1549_v43 = vpop.f32.mrb[16].mxu1  ;;  %v623_v44 = vpop.f32.mrb[17].mxu0 }
 0x107   : > { %1182 = vst.msk [vmem:[%s1742_s27 + $0xbc] sm:$0xf] %vm1134_vm3, %v1444_v37  ;;  %1148 = vst.msk [vmem:[%s1742_s27 + $0x34] sm:$0xf] %vm1134_vm3, %v1410_v39  ;;  %v760_v45 = vadd.f32 %v1549_v43, %v1730_v38  ;;  %v624_v46 = vadd.f32 %v1730_v38, %v623_v44  ;;  %v751_v47 = vpop.f32.mrb[17].mxu1  ;;  %v1518_v48 = vpop.f32.mrb[18].mxu0 }
 0x108   : > { %1180 = vst.msk [vmem:[%s1742_s27 + $0xb4] sm:$0xf] %vm1134_vm3, %v1442_v41  ;;  %v832_v49 = vmax.f32 %v632_v42, 0.0  ;;  %v752_v50 = vadd.f32 %v1730_v38, %v751_v47  ;;  %v635_v51 = vadd.f32 %v1518_v48, %v1730_v38  ;;  %v1550_v52 = vpop.f32.mrb[18].mxu1  ;;  %v626_v53 = vpop.f32.mrb[19].mxu0 }
 0x109   : > { %v864_v54 = vmax.f32 %v760_v45, 0.0  ;;  %v830_v55 = vmax.f32 %v624_v46, 0.0  ;;  %v763_v56 = vadd.f32 %v1550_v52, %v1730_v38  ;;  %v627_v57 = vadd.f32 %v1730_v38, %v626_v53  ;;  %v754_v58 = vpop.f32.mrb[19].mxu1 }
 0x10a   : > { %v1415_v59 = vpack.c.bf16 %v832_v49, %v832_v49  ;;  %v862_v60 = vmax.f32 %v752_v50, 0.0  ;;  %v833_v61 = vmax.f32 %v635_v51, 0.0  ;;  %v755_v62 = vadd.f32 %v1730_v38, %v754_v58 }
 0x10b   : > { %v1447_v63 = vpack.c.bf16 %v864_v54, %v864_v54  ;;  %v1413_v0 = vpack.c.bf16 %v830_v55, %v830_v55  ;;  %v865_v1 = vmax.f32 %v763_v56, 0.0  ;;  %v831_v2 = vmax.f32 %v627_v57, 0.0 }
 0x10c   : > { %1153 = vst.msk [vmem:[%s1742_s27 + $0x48] sm:$0xf] %vm1134_vm3, %v1415_v59  ;;  %v1445_v3 = vpack.c.bf16 %v862_v60, %v862_v60  ;;  %v1416_v4 = vpack.c.bf16 %v833_v61, %v833_v61  ;;  %v863_v5 = vmax.f32 %v755_v62, 0.0 }
 0x10d   : > { %1185 = vst.msk [vmem:[%s1742_s27 + $0xc8] sm:$0xf] %vm1134_vm3, %v1447_v63  ;;  %1151 = vst.msk [vmem:[%s1742_s27 + $0x40] sm:$0xf] %vm1134_vm3, %v1413_v0  ;;  %v1448_v6 = vpack.c.bf16 %v865_v1, %v865_v1  ;;  %v1414_v7 = vpack.c.bf16 %v831_v2, %v831_v2  ;;  %v1521_v8 = vpop.f32.mrb[20].mxu0 }
 0x10e   : > { %1183 = vst.msk [vmem:[%s1742_s27 + $0xc0] sm:$0xf] %vm1134_vm3, %v1445_v3  ;;  %1154 = vst.msk [vmem:[%s1742_s27 + $0x4c] sm:$0xf] %vm1134_vm3, %v1416_v4  ;;  %v1446_v9 = vpack.c.bf16 %v863_v5, %v863_v5  ;;  %v648_v10 = vadd.f32 %v1521_v8, %v1730_v38  ;;  %v1553_v11 = vpop.f32.mrb[20].mxu1  ;;  %v639_v12 = vpop.f32.mrb[21].mxu0 }
 0x10f   : > { %1186 = vst.msk [vmem:[%s1742_s27 + $0xcc] sm:$0xf] %vm1134_vm3, %v1448_v6  ;;  %1152 = vst.msk [vmem:[%s1742_s27 + $0x44] sm:$0xf] %vm1134_vm3, %v1414_v7  ;;  %v776_v13 = vadd.f32 %v1553_v11, %v1730_v38  ;;  %v640_v14 = vadd.f32 %v1730_v38, %v639_v12  ;;  %v767_v15 = vpop.f32.mrb[21].mxu1  ;;  %v1522_v16 = vpop.f32.mrb[22].mxu0 }
 0x110   : > { %1184 = vst.msk [vmem:[%s1742_s27 + $0xc4] sm:$0xf] %vm1134_vm3, %v1446_v9  ;;  %v836_v17 = vmax.f32 %v648_v10, 0.0  ;;  %v768_v18 = vadd.f32 %v1730_v38, %v767_v15  ;;  %v651_v19 = vadd.f32 %v1522_v16, %v1730_v38  ;;  %v1554_v20 = vpop.f32.mrb[22].mxu1  ;;  %v642_v21 = vpop.f32.mrb[23].mxu0 }
 0x111   : > { %v868_v22 = vmax.f32 %v776_v13, 0.0  ;;  %v834_v23 = vmax.f32 %v640_v14, 0.0  ;;  %v779_v24 = vadd.f32 %v1554_v20, %v1730_v38  ;;  %v643_v25 = vadd.f32 %v1730_v38, %v642_v21  ;;  %v770_v26 = vpop.f32.mrb[23].mxu1 }
 0x112   : > { %v1419_v27 = vpack.c.bf16 %v836_v17, %v836_v17  ;;  %v866_v28 = vmax.f32 %v768_v18, 0.0  ;;  %v837_v29 = vmax.f32 %v651_v19, 0.0  ;;  %v771_v30 = vadd.f32 %v1730_v38, %v770_v26 }
 0x113   : > { %v1451_v31 = vpack.c.bf16 %v868_v22, %v868_v22  ;;  %v1417_v32 = vpack.c.bf16 %v834_v23, %v834_v23  ;;  %v869_v33 = vmax.f32 %v779_v24, 0.0  ;;  %v835_v34 = vmax.f32 %v643_v25, 0.0 }
 0x114   : > { %1157 = vst.msk [vmem:[%s1742_s27 + $0x58] sm:$0xf] %vm1134_vm3, %v1419_v27  ;;  %v1449_v35 = vpack.c.bf16 %v866_v28, %v866_v28  ;;  %v1420_v36 = vpack.c.bf16 %v837_v29, %v837_v29  ;;  %v867_v37 = vmax.f32 %v771_v30, 0.0 }
 0x115   : > { %1189 = vst.msk [vmem:[%s1742_s27 + $0xd8] sm:$0xf] %vm1134_vm3, %v1451_v31  ;;  %1155 = vst.msk [vmem:[%s1742_s27 + $0x50] sm:$0xf] %vm1134_vm3, %v1417_v32  ;;  %v1452_v39 = vpack.c.bf16 %v869_v33, %v869_v33  ;;  %v1418_v40 = vpack.c.bf16 %v835_v34, %v835_v34  ;;  %v1525_v41 = vpop.f32.mrb[24].mxu0 }
 0x116   : > { %1187 = vst.msk [vmem:[%s1742_s27 + $0xd0] sm:$0xf] %vm1134_vm3, %v1449_v35  ;;  %1158 = vst.msk [vmem:[%s1742_s27 + $0x5c] sm:$0xf] %vm1134_vm3, %v1420_v36  ;;  %v1450_v42 = vpack.c.bf16 %v867_v37, %v867_v37  ;;  %v664_v43 = vadd.f32 %v1525_v41, %v1730_v38  ;;  %v1557_v44 = vpop.f32.mrb[24].mxu1  ;;  %v655_v45 = vpop.f32.mrb[25].mxu0 }
 0x117   : > { %1190 = vst.msk [vmem:[%s1742_s27 + $0xdc] sm:$0xf] %vm1134_vm3, %v1452_v39  ;;  %1156 = vst.msk [vmem:[%s1742_s27 + $0x54] sm:$0xf] %vm1134_vm3, %v1418_v40  ;;  %v792_v46 = vadd.f32 %v1557_v44, %v1730_v38  ;;  %v656_v47 = vadd.f32 %v1730_v38, %v655_v45  ;;  %v783_v48 = vpop.f32.mrb[25].mxu1  ;;  %v1526_v49 = vpop.f32.mrb[26].mxu0 }
 0x118   : > { %1188 = vst.msk [vmem:[%s1742_s27 + $0xd4] sm:$0xf] %vm1134_vm3, %v1450_v42  ;;  %v840_v50 = vmax.f32 %v664_v43, 0.0  ;;  %v784_v51 = vadd.f32 %v1730_v38, %v783_v48  ;;  %v667_v52 = vadd.f32 %v1526_v49, %v1730_v38  ;;  %v1558_v53 = vpop.f32.mrb[26].mxu1  ;;  %v658_v54 = vpop.f32.mrb[27].mxu0 }
 0x119   : > { %v872_v55 = vmax.f32 %v792_v46, 0.0  ;;  %v838_v56 = vmax.f32 %v656_v47, 0.0  ;;  %v795_v57 = vadd.f32 %v1558_v53, %v1730_v38  ;;  %v659_v58 = vadd.f32 %v1730_v38, %v658_v54  ;;  %v786_v59 = vpop.f32.mrb[27].mxu1 }
 0x11a   : > { %v1423_v60 = vpack.c.bf16 %v840_v50, %v840_v50  ;;  %v870_v61 = vmax.f32 %v784_v51, 0.0  ;;  %v841_v62 = vmax.f32 %v667_v52, 0.0  ;;  %v787_v63 = vadd.f32 %v1730_v38, %v786_v59 }
 0x11b   : > { %v1455_v0 = vpack.c.bf16 %v872_v55, %v872_v55  ;;  %v1421_v1 = vpack.c.bf16 %v838_v56, %v838_v56  ;;  %v873_v2 = vmax.f32 %v795_v57, 0.0  ;;  %v839_v3 = vmax.f32 %v659_v58, 0.0 }
 0x11c   : > { %1161 = vst.msk [vmem:[%s1742_s27 + $0x68] sm:$0xf] %vm1134_vm3, %v1423_v60  ;;  %v1453_v4 = vpack.c.bf16 %v870_v61, %v870_v61  ;;  %v1424_v5 = vpack.c.bf16 %v841_v62, %v841_v62  ;;  %v871_v6 = vmax.f32 %v787_v63, 0.0 }
 0x11d   : > { %1193 = vst.msk [vmem:[%s1742_s27 + $0xe8] sm:$0xf] %vm1134_vm3, %v1455_v0  ;;  %1159 = vst.msk [vmem:[%s1742_s27 + $0x60] sm:$0xf] %vm1134_vm3, %v1421_v1  ;;  %v1456_v7 = vpack.c.bf16 %v873_v2, %v873_v2  ;;  %v1422_v8 = vpack.c.bf16 %v839_v3, %v839_v3  ;;  %v1529_v9 = vpop.f32.mrb[28].mxu0 }
 0x11e   : > { %1191 = vst.msk [vmem:[%s1742_s27 + $0xe0] sm:$0xf] %vm1134_vm3, %v1453_v4  ;;  %1162 = vst.msk [vmem:[%s1742_s27 + $0x6c] sm:$0xf] %vm1134_vm3, %v1424_v5  ;;  %v1454_v10 = vpack.c.bf16 %v871_v6, %v871_v6  ;;  %v680_v11 = vadd.f32 %v1529_v9, %v1730_v38  ;;  %v1561_v12 = vpop.f32.mrb[28].mxu1  ;;  %v671_v13 = vpop.f32.mrb[29].mxu0 }
 0x11f   : > { %1194 = vst.msk [vmem:[%s1742_s27 + $0xec] sm:$0xf] %vm1134_vm3, %v1456_v7  ;;  %1160 = vst.msk [vmem:[%s1742_s27 + $0x64] sm:$0xf] %vm1134_vm3, %v1422_v8  ;;  %v808_v14 = vadd.f32 %v1561_v12, %v1730_v38  ;;  %v672_v15 = vadd.f32 %v1730_v38, %v671_v13  ;;  %v799_v16 = vpop.f32.mrb[29].mxu1  ;;  %v1530_v17 = vpop.f32.mrb[30].mxu0 }
 0x120   : > { %1192 = vst.msk [vmem:[%s1742_s27 + $0xe4] sm:$0xf] %vm1134_vm3, %v1454_v10  ;;  %v844_v18 = vmax.f32 %v680_v11, 0.0  ;;  %v800_v19 = vadd.f32 %v1730_v38, %v799_v16  ;;  %v683_v20 = vadd.f32 %v1530_v17, %v1730_v38  ;;  %v1562_v21 = vpop.f32.mrb[30].mxu1  ;;  %v674_v22 = vpop.f32.mrb[31].mxu0 }
 0x121   : > { %v876_v23 = vmax.f32 %v808_v14, 0.0  ;;  %v842_v24 = vmax.f32 %v672_v15, 0.0  ;;  %v811_v25 = vadd.f32 %v1562_v21, %v1730_v38  ;;  %v675_v26 = vadd.f32 %v1730_v38, %v674_v22  ;;  %v802_v27 = vpop.f32.mrb[31].mxu1 }
 0x122   : > { %v1427_v28 = vpack.c.bf16 %v844_v18, %v844_v18  ;;  %v874_v29 = vmax.f32 %v800_v19, 0.0  ;;  %v845_v30 = vmax.f32 %v683_v20, 0.0  ;;  %v803_v31 = vadd.f32 %v1730_v38, %v802_v27 }
 0x123   : > { %v1459_v32 = vpack.c.bf16 %v876_v23, %v876_v23  ;;  %v1425_v33 = vpack.c.bf16 %v842_v24, %v842_v24  ;;  %v877_v34 = vmax.f32 %v811_v25, 0.0  ;;  %v843_v35 = vmax.f32 %v675_v26, 0.0 }
 0x124   : > { %1165 = vst.msk [vmem:[%s1742_s27 + $0x78] sm:$0xf] %vm1134_vm3, %v1427_v28  ;;  %v1457_v36 = vpack.c.bf16 %v874_v29, %v874_v29  ;;  %v1428_v37 = vpack.c.bf16 %v845_v30, %v845_v30  ;;  %v875_v39 = vmax.f32 %v803_v31, 0.0 }
 0x125   : > { %1197 = vst.msk [vmem:[%s1742_s27 + $0xf8] sm:$0xf] %vm1134_vm3, %v1459_v32  ;;  %1163 = vst.msk [vmem:[%s1742_s27 + $0x70] sm:$0xf] %vm1134_vm3, %v1425_v33  ;;  %v1460_v40 = vpack.c.bf16 %v877_v34, %v877_v34  ;;  %v1426_v41 = vpack.c.bf16 %v843_v35, %v843_v35 }
 0x126   : > { %1195 = vst.msk [vmem:[%s1742_s27 + $0xf0] sm:$0xf] %vm1134_vm3, %v1457_v36  ;;  %1166 = vst.msk [vmem:[%s1742_s27 + $0x7c] sm:$0xf] %vm1134_vm3, %v1428_v37  ;;  %v1458_v38 = vpack.c.bf16 %v875_v39, %v875_v39 }
 0x127   : > { %1198 = vst.msk [vmem:[%s1742_s27 + $0xfc] sm:$0xf] %vm1134_vm3, %v1460_v40  ;;  %1164 = vst.msk [vmem:[%s1742_s27 + $0x74] sm:$0xf] %vm1134_vm3, %v1426_v41 }
 0x128   : > { %1196 = vst.msk [vmem:[%s1742_s27 + $0xf4] sm:$0xf] %vm1134_vm3, %v1458_v38 }
 0x129 PF: > { %s13_s12 = sadd.s32 1, %s1616_s12  }
 0x12a   : > { %p10_p4 = scmp.ge.s32.totalorder %s13_s12, 6  }
 0x12c   :  { %12 = sbr.rel (!%p10_p4) target bundleno = 1 (0x1), region = 62 }

// kernel: _lambda_.10
= control target key start
LH: loop header
LB: loop body
LE: loop exit
PB: predicated region body
PF: predicated region fallthrough
CT: control target
= control target key end

     0   :  { %s2658_s12 = smov 0   ;;  %s3220_s0 = inlined_call_operand.vmem [shape: bf16[2048,288], index: 0, kind: input, shape index: {}]   ;;  %s3221_s1 = inlined_call_operand.vmem [shape: bf16[288,32], index: 1, kind: input, shape index: {}]   ;;  %s3222_s2 = inlined_call_operand.vmem [shape: f32[1,32], index: 2, kind: input, shape index: {}]   ;;  %s3223_s3 = inlined_call_operand.vmem [shape: bf16[2048,32], index: 3, kind: output, shape index: {}]  }
   0x1 LB: > { %s2053_s13 = sadd.s32 4294967295, %s2635_s12   ;;  %p2057_p0 = scmp.ge.s32.totalorder %s2635_s12, 1  ;;  %s2635_s12 = sphi %s2658_s12, %s13_s12  }
   0x2   : > { %p139_p1 = scmp.lt.s32.totalorder %s2635_s12, 5 }
   0x4   : > { %p140_p2 = pnand %p2057_p0, %p139_p1 }
   0x5   : > { %v2483_v0 = vld [vmem:[%s3221_s1] sm:$0xff] (!%p140_p2)   ;;  %v2637_v1 = vmov (!%p140_p2), 0   ;;  %s2058_s16 = sshll.u32 (!%p140_p2), %s2053_s13, 6  ;;  %v2484_v2 = vld [vmem:[%s3221_s1 + $0x8] sm:$0xff] (!%p140_p2)   ;;  %v2485_v3 = vld [vmem:[%s3221_s1 + $0x10] sm:$0xff] (!%p140_p2)   ;;  %vm937_vm0 = vcmask (!%p140_p2), 261120  }
   0x6   : > { %143 = sbr.rel (%p140_p2) target bundleno = 477 (0x1dd), region = 32  ;;  %1034 = vmatprep.subr.bf16.mxu0 (!%p140_p2), %v2637_v1  ;;  %2441 = vmatprep.subr.bf16.mxu1 (!%p140_p2), %v2637_v1  ;;  %p165_p3 = scmp.lt.s32.totalorder (!%p140_p2), %s2058_s16, 255  ;;  %v2486_v4 = vld [vmem:[%s3221_s1 + $0x18] sm:$0xff] (!%p140_p2)   ;;  %v2487_v5 = vld [vmem:[%s3221_s1 + $0x20] sm:$0xff] (!%p140_p2)   ;;  %v2488_v7 = vld [vmem:[%s3221_s1 + $0x28] sm:$0xff] (!%p140_p2)   ;;  %vm1932_vm1 = vcmask (!%p140_p2), 257024  }
   0x7   : > { %1035 = vmatpush1.bf16.msra.mxu0 (!%p140_p2), %v2483_v0  ;;  %2457 = vmatpush1.bf16.msra.mxu1 (!%p140_p2), %v2483_v0  ;;  %v2489_v9 = vld [vmem:[%s3221_s1 + $0x30] sm:$0xff] (!%p140_p2)   ;;  %v2490_v10 = vld [vmem:[%s3221_s1 + $0x38] sm:$0xff] (!%p140_p2)   ;;  %v2491_v11 = vld [vmem:[%s3221_s1 + $0x40] sm:$0xff] (!%p140_p2)  }
   0x8   : > { %1036 = vmatprep.subr.bf16.mxu0 (!%p140_p2), %v2637_v1  ;;  %2442 = vmatprep.subr.bf16.mxu1 (!%p140_p2), %v2637_v1  ;;  %v2492_v12 = vld [vmem:[%s3221_s1 + $0x48] sm:$0xff] (!%p140_p2)   ;;  %v2493_v13 = vld [vmem:[%s3221_s1 + $0x50] sm:$0xff] (!%p140_p2)   ;;  %v2494_v14 = vld [vmem:[%s3221_s1 + $0x58] sm:$0xff] (!%p140_p2)  }
   0x9   : > { %v2495_v15 = vld [vmem:[%s3221_s1 + $0x60] sm:$0xff] (!%p140_p2)   ;;  %v2496_v16 = vld [vmem:[%s3221_s1 + $0x68] sm:$0xff] (!%p140_p2)   ;;  %v2497_v17 = vld [vmem:[%s3221_s1 + $0x70] sm:$0xff] (!%p140_p2)  }
   0xa   : > { %v2498_v18 = vld [vmem:[%s3221_s1 + $0x78] sm:$0xff] (!%p140_p2)   ;;  %v2505_v19 = vld [vmem:[%s3221_s1 + $0x80] sm:$0xff] (!%p140_p2)   ;;  %v2530_v24 = vld [vmem:[%s3221_s1 + $0x88] sm:$0xff] (!%p140_p2)  }
   0xb   : > { %1037 = vmatpush1.bf16.msra.mxu0 (!%p140_p2), %v2484_v2  ;;  %2458 = vmatpush1.bf16.msra.mxu1 (!%p140_p2), %v2484_v2 }
   0xc   : > { %1038 = vmatprep.subr.bf16.mxu0 (!%p140_p2), %v2637_v1  ;;  %2443 = vmatprep.subr.bf16.mxu1 (!%p140_p2), %v2637_v1 }
   0xd   : > { %s3225_s16 = smov (!%p165_p3, %s2058_s16), 255 }
   0xe   : > { %s2473_s23 = smul.u32 12, %s3225_s16  ;;  %s2061_s5 = sshll.u32 %s3225_s16, 2 }
   0xf   : > { %1039 = vmatpush1.bf16.msra.mxu0 %v2485_v3  ;;  %2459 = vmatpush1.bf16.msra.mxu1 %v2485_v3  ;;  %s2967_s8 = scalar_lea.vmem %s3223_s3, %s2061_s5 }
  0x10   : > { %1040 = vmatprep.subr.bf16.mxu0 %v2637_v1  ;;  %2444 = vmatprep.subr.bf16.mxu1 %v2637_v1  ;;  %s2695_s28 = scalar_lea.vmem %s3220_s0, %s2473_s23 }
  0x11   : > { %v2501_v6 = vld [vmem:[%s2695_s28 + $0x4] ss:$12 sps:$4 sm:$0xff]   ;;  %v2499_v20 = vld [vmem:[%s2695_s28] ss:$12 sps:$4 sm:$0xff]   ;;  %v2506_v22 = vld [vmem:[%s2695_s28 + $0x1c] ss:$12 sps:$4 sm:$0xff]  }
  0x12   : > { %v2504_v8 = vld [vmem:[%s2695_s28 + $0x244] ss:$12 sps:$4 sm:$0xff]   ;;  %1066 = vmatprep.mubr.bf16.mxu0 %v2501_v6  ;;  %v2502_v21 = vld [vmem:[%s2695_s28 + $0x240] ss:$12 sps:$4 sm:$0xff]   ;;  %v2508_v23 = vld [vmem:[%s2695_s28 + $0x25c] ss:$12 sps:$4 sm:$0xff]  }
  0x13   : > { %1041 = vmatpush1.bf16.msra.mxu0 %v2486_v4  ;;  %2460 = vmatpush1.bf16.msra.mxu1 %v2486_v4  ;;  %v2510_v25 = vld [vmem:[%s2695_s28 + $0x18] ss:$12 sps:$4 sm:$0xff]   ;;  %v2512_v27 = vld [vmem:[%s2695_s28 + $0x34] ss:$12 sps:$4 sm:$0xff]   ;;  %v2516_v29 = vld [vmem:[%s2695_s28 + $0x30] ss:$12 sps:$4 sm:$0xff]  }
  0x14   : > { %1042 = vmatprep.subr.bf16.mxu0 %v2637_v1  ;;  %2445 = vmatprep.subr.bf16.mxu1 %v2637_v1  ;;  %v2511_v26 = vld [vmem:[%s2695_s28 + $0x258] ss:$12 sps:$4 sm:$0xff]   ;;  %v2514_v28 = vld [vmem:[%s2695_s28 + $0x274] ss:$12 sps:$4 sm:$0xff]   ;;  %v2517_v30 = vld [vmem:[%s2695_s28 + $0x270] ss:$12 sps:$4 sm:$0xff]  }
  0x15   : > { %1258 = vmatprep.mubr.bf16.mxu1 %v2504_v8  ;;  %v2518_v31 = vld [vmem:[%s2695_s28 + $0x4c] ss:$12 sps:$4 sm:$0xff]   ;;  %v2522_v33 = vld [vmem:[%s2695_s28 + $0x48] ss:$12 sps:$4 sm:$0xff]   ;;  %v2524_v35 = vld [vmem:[%s2695_s28 + $0x64] ss:$12 sps:$4 sm:$0xff]  }
  0x16   : > { %v2520_v32 = vld [vmem:[%s2695_s28 + $0x28c] ss:$12 sps:$4 sm:$0xff]   ;;  %v2523_v34 = vld [vmem:[%s2695_s28 + $0x288] ss:$12 sps:$4 sm:$0xff]   ;;  %v2526_v36 = vld [vmem:[%s2695_s28 + $0x2a4] ss:$12 sps:$4 sm:$0xff]  }
  0x17   : > { %1043 = vmatpush1.bf16.msra.mxu0 %v2487_v5  ;;  %2461 = vmatpush1.bf16.msra.mxu1 %v2487_v5  ;;  %v2528_v37 = vld [vmem:[%s2695_s28 + $0x60] ss:$12 sps:$4 sm:$0xff]   ;;  %v2531_v39 = vld [vmem:[%s2695_s28 + $0x7c] ss:$12 sps:$4 sm:$0xff]   ;;  %v2535_v41 = vld [vmem:[%s2695_s28 + $0x78] ss:$12 sps:$4 sm:$0xff]  }
  0x18   : > { %1044 = vmatprep.subr.bf16.mxu0 %v2637_v1  ;;  %2446 = vmatprep.subr.bf16.mxu1 %v2637_v1  ;;  %v2529_v38 = vld [vmem:[%s2695_s28 + $0x2a0] ss:$12 sps:$4 sm:$0xff]   ;;  %v2533_v40 = vld [vmem:[%s2695_s28 + $0x2bc] ss:$12 sps:$4 sm:$0xff]   ;;  %v2536_v42 = vld [vmem:[%s2695_s28 + $0x2b8] ss:$12 sps:$4 sm:$0xff]  }
  0x19   : > { %v2537_v43 = vld [vmem:[%s2695_s28 + $0x94] ss:$12 sps:$4 sm:$0xff]   ;;  %v2541_v45 = vld [vmem:[%s2695_s28 + $0x90] ss:$12 sps:$4 sm:$0xff]   ;;  %v2543_v47 = vld [vmem:[%s2695_s28 + $0xac] ss:$12 sps:$4 sm:$0xff]  }
  0x1a   : > { %v2539_v44 = vld [vmem:[%s2695_s28 + $0x2d4] ss:$12 sps:$4 sm:$0xff]   ;;  %v2542_v46 = vld [vmem:[%s2695_s28 + $0x2d0] ss:$12 sps:$4 sm:$0xff]   ;;  %v2545_v48 = vld [vmem:[%s2695_s28 + $0x2ec] ss:$12 sps:$4 sm:$0xff]  }
  0x1b   : > { %1045 = vmatpush1.bf16.msra.mxu0 %v2488_v7  ;;  %2462 = vmatpush1.bf16.msra.mxu1 %v2488_v7  ;;  %v2547_v49 = vld [vmem:[%s2695_s28 + $0xa8] ss:$12 sps:$4 sm:$0xff]   ;;  %v2549_v51 = vld [vmem:[%s2695_s28 + $0xc4] ss:$12 sps:$4 sm:$0xff]   ;;  %v2552_v53 = vld [vmem:[%s2695_s28 + $0xc0] ss:$12 sps:$4 sm:$0xff]  }
  0x1c   : > { %1046 = vmatprep.subr.bf16.mxu0 %v2637_v1  ;;  %2447 = vmatprep.subr.bf16.mxu1 %v2637_v1  ;;  %v2548_v50 = vld [vmem:[%s2695_s28 + $0x2e8] ss:$12 sps:$4 sm:$0xff]   ;;  %v2553_v54 = vld [vmem:[%s2695_s28 + $0x20] ss:$12 sps:$4 sm:$0xff]   ;;  %v2556_v56 = vld [vmem:[%s2695_s28 + $0x38] ss:$12 sps:$4 sm:$0xff]  }
  0x1d   : > { %v2551_v52 = vld [vmem:[%s2695_s28 + $0x8] ss:$12 sps:$4 sm:$0xff]   ;;  %v2557_v57 = vld [vmem:[%s2695_s28 + $0xd8] ss:$12 sps:$4 sm:$0xff]   ;;  %v2558_v58 = vld [vmem:[%s2695_s28 + $0x50] ss:$12 sps:$4 sm:$0xff]  }
  0x1e   : > { %v2554_v55 = vld [vmem:[%s2695_s28 + $0xdc] ss:$12 sps:$4 sm:$0xff]   ;;  %v2559_v59 = vld [vmem:[%s2695_s28 + $0xf4] ss:$12 sps:$4 sm:$0xff]   ;;  %v2564_v63 = vld [vmem:[%s2695_s28 + $0x10c] ss:$12 sps:$4 sm:$0xff]  }
  0x1f   : > { %1047 = vmatpush1.bf16.msra.mxu0 %v2489_v9  ;;  %2463 = vmatpush1.bf16.msra.mxu1 %v2489_v9  ;;  %v2561_v60 = vld [vmem:[%s2695_s28 + $0x68] ss:$12 sps:$4 sm:$0xff]   ;;  %v2562_v61 = vld [vmem:[%s2695_s28 + $0xf0] ss:$12 sps:$4 sm:$0xff]   ;;  %v2563_v62 = vld [vmem:[%s2695_s28 + $0x80] ss:$12 sps:$4 sm:$0xff]  }
  0x20   : > { %1048 = vmatprep.subr.bf16.mxu0 %v2637_v1  ;;  %2448 = vmatprep.subr.bf16.mxu1 %v2637_v1  ;;  %v2566_v0 = vld [vmem:[%s2695_s28 + $0x98] ss:$12 sps:$4 sm:$0xff]   ;;  %v2568_v2 = vld [vmem:[%s2695_s28 + $0xb0] ss:$12 sps:$4 sm:$0xff]   ;;  %v2571_v4 = vld [vmem:[%s2695_s28 + $0xc8] ss:$12 sps:$4 sm:$0xff]  }
  0x21   : > { %v2569_v3 = vld [vmem:[%s2695_s28 + $0x124] ss:$12 sps:$4 sm:$0xff]   ;;  %v2572_v5 = vld [vmem:[%s2695_s28 + $0x120] ss:$12 sps:$4 sm:$0xff]   ;;  %v2574_v7 = vld [vmem:[%s2695_s28 + $0x13c] ss:$12 sps:$4 sm:$0xff]  }
  0x22   : > { %v2573_v6 = vld [vmem:[%s2695_s28 + $0xe0] ss:$12 sps:$4 sm:$0xff]   ;;  %v2576_v8 = vld [vmem:[%s2695_s28 + $0xf8] ss:$12 sps:$4 sm:$0xff]  }
  0x23   : > { %1049 = vmatpush1.bf16.msra.mxu0 %v2490_v10  ;;  %2464 = vmatpush1.bf16.msra.mxu1 %v2490_v10  ;;  %v2577_v9 = vld [vmem:[%s2695_s28 + $0x138] ss:$12 sps:$4 sm:$0xff]   ;;  %v2578_v10 = vld [vmem:[%s2695_s28 + $0x110] ss:$12 sps:$4 sm:$0xff]  }
  0x24   : > { %1050 = vmatprep.subr.bf16.mxu0 %v2637_v1  ;;  %2449 = vmatprep.subr.bf16.mxu1 %v2637_v1 }
  0x27   : > { %1051 = vmatpush1.bf16.msra.mxu0 %v2491_v11  ;;  %2465 = vmatpush1.bf16.msra.mxu1 %v2491_v11  ;;  %v2579_v11 = vld [vmem:[%s2695_s28 + $0x154] ss:$12 sps:$4 sm:$0xff]  }
  0x28   : > { %1052 = vmatprep.subr.bf16.mxu0 %v2637_v1  ;;  %2450 = vmatprep.subr.bf16.mxu1 %v2637_v1 }
  0x2b   : > { %1053 = vmatpush1.bf16.msra.mxu0 %v2492_v12  ;;  %2466 = vmatpush1.bf16.msra.mxu1 %v2492_v12  ;;  %v2581_v12 = vld [vmem:[%s2695_s28 + $0x128] ss:$12 sps:$4 sm:$0xff]  }
  0x2c   : > { %1054 = vmatprep.subr.bf16.mxu0 %v2637_v1  ;;  %2451 = vmatprep.subr.bf16.mxu1 %v2637_v1 }
  0x2f   : > { %1055 = vmatpush1.bf16.msra.mxu0 %v2493_v13  ;;  %2467 = vmatpush1.bf16.msra.mxu1 %v2493_v13  ;;  %v2582_v13 = vld [vmem:[%s2695_s28 + $0x150] ss:$12 sps:$4 sm:$0xff]  }
  0x30   : > { %1056 = vmatprep.subr.bf16.mxu0 %v2637_v1  ;;  %2452 = vmatprep.subr.bf16.mxu1 %v2637_v1 }
  0x33   : > { %1057 = vmatpush1.bf16.msra.mxu0 %v2494_v14  ;;  %2468 = vmatpush1.bf16.msra.mxu1 %v2494_v14  ;;  %v2583_v14 = vld [vmem:[%s2695_s28 + $0x140] ss:$12 sps:$4 sm:$0xff]  }
  0x34   : > { %1058 = vmatprep.subr.bf16.mxu0 %v2637_v1  ;;  %2453 = vmatprep.subr.bf16.mxu1 %v2637_v1 }
  0x37   : > { %1059 = vmatpush1.bf16.msra.mxu0 %v2495_v15  ;;  %2469 = vmatpush1.bf16.msra.mxu1 %v2495_v15  ;;  %v2584_v15 = vld [vmem:[%s2695_s28 + $0x16c] ss:$12 sps:$4 sm:$0xff]  }
  0x38   : > { %1060 = vmatprep.subr.bf16.mxu0 %v2637_v1  ;;  %2454 = vmatprep.subr.bf16.mxu1 %v2637_v1 }
  0x3b   : > { %1061 = vmatpush1.bf16.msra.mxu0 %v2496_v16  ;;  %2470 = vmatpush1.bf16.msra.mxu1 %v2496_v16  ;;  %v2586_v16 = vld [vmem:[%s2695_s28 + $0x158] ss:$12 sps:$4 sm:$0xff]  }
  0x3c   : > { %1062 = vmatprep.subr.bf16.mxu0 %v2637_v1  ;;  %2455 = vmatprep.subr.bf16.mxu1 %v2637_v1 }
  0x3f   : > { %1063 = vmatpush1.bf16.msra.mxu0 %v2497_v17  ;;  %2471 = vmatpush1.bf16.msra.mxu1 %v2497_v17  ;;  %v2587_v17 = vld [vmem:[%s2695_s28 + $0x168] ss:$12 sps:$4 sm:$0xff]  }
  0x40   : > { %1064 = vmatprep.subr.bf16.mxu0 %v2637_v1  ;;  %2456 = vmatprep.subr.bf16.mxu1 %v2637_v1  ;;  %v2567_v1 = vld [vmem:[%s2695_s28 + $0x108] ss:$12 sps:$4 sm:$0xff]  }
  0x43   : > { %1065 = vmatpush1.bf16.msra.mxu0 %v2498_v18  ;;  %2472 = vmatpush1.bf16.msra.mxu1 %v2498_v18  ;;  %v2588_v18 = vld [vmem:[%s2695_s28 + $0x170] ss:$12 sps:$4 sm:$0xff]  }
  0x44   : > { %2373 = vmatprep.subr.bf16.mxu1 %v2505_v19 }
  0x46   : > { %1067 = vmatmul.mubr.bf16.vlgmr.msra.gmra.mrb[0].mxu0 %v2499_v20  ;;  %1259 = vmatmul.mubr.bf16.vlgmr.msra.gmra.mrb[0].mxu1 %v2502_v21  ;;  %v2591_v20 = vld [vmem:[%s2695_s28 + $0x188] ss:$12 sps:$4 sm:$0xff]   ;;  %v2592_v21 = vld [vmem:[%s2695_s28 + $0x180] ss:$12 sps:$4 sm:$0xff]  }
  0x47   : > { %2374 = vmatpush3.bf16.msra.mxu1 %v2505_v19  ;;  %1074 = vmatprep.mubr.bf16.mxu0 %v2506_v22  ;;  %v2589_v19 = vld [vmem:[%s2695_s28 + $0x184] ss:$12 sps:$4 sm:$0xff]   ;;  %v2593_v22 = vld [vmem:[%s2695_s28 + $0x1a0] ss:$12 sps:$4 sm:$0xff]  }
  0x48   : > { %1266 = vmatprep.mubr.bf16.mxu1 %v2508_v23  ;;  %2375 = vmatprep.subr.bf16.mxu1 %v2530_v24  ;;  %v2594_v23 = vld [vmem:[%s2695_s28 + $0x19c] ss:$12 sps:$4 sm:$0xff]  }
  0x4b   : > { %2376 = vmatpush3.bf16.msra.mxu1 %v2530_v24  ;;  %v2596_v24 = vld [vmem:[%s2695_s28 + $0x1b8] ss:$12 sps:$4 sm:$0xff]  }
  0x4e   : > { %1075 = vmatmul.mubr.bf16.gmra.mrb[4].mxu0 %v2510_v25  ;;  %1267 = vmatmul.mubr.bf16.gmra.mrb[4].mxu1 %v2511_v26  ;;  %v2597_v25 = vld [vmem:[%s2695_s28 + $0x198] ss:$12 sps:$4 sm:$0xff]   ;;  %v2598_v26 = vld [vmem:[%s2695_s28 + $0x1d0] ss:$12 sps:$4 sm:$0xff]  }
  0x4f   : > { %1082 = vmatprep.mubr.bf16.mxu0 %v2512_v27  ;;  %1274 = vmatprep.mubr.bf16.mxu1 %v2514_v28  ;;  %v2599_v27 = vld [vmem:[%s2695_s28 + $0x1b4] ss:$12 sps:$4 sm:$0xff]  }
  0x50   : > { %v2601_v28 = vld [vmem:[%s2695_s28 + $0x1e8] ss:$12 sps:$4 sm:$0xff]  }
  0x56   : > { %1083 = vmatmul.mubr.bf16.gmra.mrb[8].mxu0 %v2516_v29  ;;  %1275 = vmatmul.mubr.bf16.gmra.mrb[8].mxu1 %v2517_v30  ;;  %v2602_v29 = vld [vmem:[%s2695_s28 + $0x1b0] ss:$12 sps:$4 sm:$0xff]   ;;  %v2603_v30 = vld [vmem:[%s2695_s28 + $0x200] ss:$12 sps:$4 sm:$0xff]  }
  0x57   : > { %1090 = vmatprep.mubr.bf16.mxu0 %v2518_v31  ;;  %1282 = vmatprep.mubr.bf16.mxu1 %v2520_v32  ;;  %v2604_v31 = vld [vmem:[%s2695_s28 + $0x1cc] ss:$12 sps:$4 sm:$0xff]  }
  0x58   : > { %v2606_v32 = vld [vmem:[%s2695_s28 + $0x218] ss:$12 sps:$4 sm:$0xff]  }
  0x5e   : > { %1091 = vmatmul.mubr.bf16.gmra.mrb[12].mxu0 %v2522_v33  ;;  %1283 = vmatmul.mubr.bf16.gmra.mrb[12].mxu1 %v2523_v34  ;;  %v2607_v33 = vld [vmem:[%s2695_s28 + $0x1c8] ss:$12 sps:$4 sm:$0xff]   ;;  %v2608_v34 = vld [vmem:[%s2695_s28 + $0x230] ss:$12 sps:$4 sm:$0xff]  }
  0x5f   : > { %1098 = vmatprep.mubr.bf16.mxu0 %v2524_v35  ;;  %1290 = vmatprep.mubr.bf16.mxu1 %v2526_v36  ;;  %v2609_v35 = vld [vmem:[%s2695_s28 + $0x1e4] ss:$12 sps:$4 sm:$0xff]   ;;  %v2611_v36 = vld [vmem:[%s2695_s28 + $0x248] ss:$12 sps:$4 sm:$0xff]  }
  0x66   : > { %1099 = vmatmul.mubr.bf16.gmra.mrb[16].mxu0 %v2528_v37  ;;  %1291 = vmatmul.mubr.bf16.gmra.mrb[16].mxu1 %v2529_v38  ;;  %v2612_v37 = vld [vmem:[%s2695_s28 + $0x1e0] ss:$12 sps:$4 sm:$0xff]  }
  0x67   : > { %1106 = vmatprep.mubr.bf16.mxu0 %v2531_v39  ;;  %1298 = vmatprep.mubr.bf16.mxu1 %v2533_v40  ;;  %v2613_v38 = vld [vmem:[%s2695_s28 + $0x260] ss:$12 sps:$4 sm:$0xff]   ;;  %v2614_v39 = vld [vmem:[%s2695_s28 + $0x1fc] ss:$12 sps:$4 sm:$0xff]   ;;  %v2616_v40 = vld [vmem:[%s2695_s28 + $0x278] ss:$12 sps:$4 sm:$0xff]  }
  0x6e   : > { %1107 = vmatmul.mubr.bf16.gmra.mrb[20].mxu0 %v2535_v41  ;;  %1299 = vmatmul.mubr.bf16.gmra.mrb[20].mxu1 %v2536_v42  ;;  %v2617_v41 = vld [vmem:[%s2695_s28 + $0x1f8] ss:$12 sps:$4 sm:$0xff]   ;;  %v2618_v42 = vld [vmem:[%s2695_s28 + $0x290] ss:$12 sps:$4 sm:$0xff]  }
  0x6f   : > { %1114 = vmatprep.mubr.bf16.mxu0 %v2537_v43  ;;  %1306 = vmatprep.mubr.bf16.mxu1 %v2539_v44  ;;  %v2619_v43 = vld [vmem:[%s2695_s28 + $0x214] ss:$12 sps:$4 sm:$0xff]  }
  0x70   : > { %v2621_v44 = vld [vmem:[%s2695_s28 + $0x2a8] ss:$12 sps:$4 sm:$0xff]  }
  0x76   : > { %1115 = vmatmul.mubr.bf16.gmra.mrb[24].mxu0 %v2541_v45  ;;  %1307 = vmatmul.mubr.bf16.gmra.mrb[24].mxu1 %v2542_v46  ;;  %v2622_v45 = vld [vmem:[%s2695_s28 + $0x210] ss:$12 sps:$4 sm:$0xff]   ;;  %v2623_v46 = vld [vmem:[%s2695_s28 + $0x2c0] ss:$12 sps:$4 sm:$0xff]  }
  0x77   : > { %1122 = vmatprep.mubr.bf16.mxu0 %v2543_v47  ;;  %1314 = vmatprep.mubr.bf16.mxu1 %v2545_v48  ;;  %v2624_v47 = vld [vmem:[%s2695_s28 + $0x22c] ss:$12 sps:$4 sm:$0xff]  }
  0x78   : > { %v2626_v48 = vld [vmem:[%s2695_s28 + $0x2d8] ss:$12 sps:$4 sm:$0xff]  }
  0x7e   : > { %1123 = vmatmul.mubr.bf16.gmra.mrb[28].mxu0 %v2547_v49  ;;  %1315 = vmatmul.mubr.bf16.gmra.mrb[28].mxu1 %v2548_v50  ;;  %v2627_v49 = vld [vmem:[%s2695_s28 + $0x228] ss:$12 sps:$4 sm:$0xff]   ;;  %v2628_v50 = vld [vmem:[%s2695_s28 + $0x2f0] ss:$12 sps:$4 sm:$0xff]  }
  0x7f   : > { %1130 = vmatprep.mubr.bf16.mxu0 %v2549_v51  ;;  %2377 = vmatprep.mubr.msk.bf16.mxu1 %vm937_vm0, %v2551_v52 }
  0x86   : > { %1131 = vmatmul.mubr.bf16.gmra.mrb[32].mxu0 %v2552_v53  ;;  %2378 = vmatmul.mubr.msk.bf16.vlgmr.msra.gmra.mrb[32].mxu1 %vm937_vm0, %v2553_v54 }
  0x87   : > { %1138 = vmatprep.mubr.bf16.mxu0 %v2554_v55  ;;  %2381 = vmatprep.mubr.msk.bf16.mxu1 %vm937_vm0, %v2556_v56 }
  0x8e   : > { %1139 = vmatmul.mubr.bf16.gmra.mrb[36].mxu0 %v2557_v57  ;;  %2382 = vmatmul.mubr.msk.bf16.gmra.mrb[36].mxu1 %vm937_vm0, %v2558_v58 }
  0x8f   : > { %1146 = vmatprep.mubr.bf16.mxu0 %v2559_v59  ;;  %2385 = vmatprep.mubr.msk.bf16.mxu1 %vm937_vm0, %v2561_v60 }
  0x96   : > { %1147 = vmatmul.mubr.bf16.gmra.mrb[40].mxu0 %v2562_v61  ;;  %2386 = vmatmul.mubr.msk.bf16.gmra.mrb[40].mxu1 %vm937_vm0, %v2563_v62 }
  0x97   : > { %1154 = vmatprep.mubr.bf16.mxu0 %v2564_v63  ;;  %2389 = vmatprep.mubr.msk.bf16.mxu1 %vm937_vm0, %v2566_v0 }
  0x9e   : > { %1155 = vmatmul.mubr.bf16.gmra.mrb[44].mxu0 %v2567_v1  ;;  %2390 = vmatmul.mubr.msk.bf16.gmra.mrb[44].mxu1 %vm937_vm0, %v2568_v2 }
  0x9f   : > { %1162 = vmatprep.mubr.bf16.mxu0 %v2569_v3  ;;  %2393 = vmatprep.mubr.msk.bf16.mxu1 %vm937_vm0, %v2571_v4 }
  0xa6   : > { %1163 = vmatmul.mubr.bf16.gmra.mrb[48].mxu0 %v2572_v5  ;;  %2394 = vmatmul.mubr.msk.bf16.gmra.mrb[48].mxu1 %vm937_vm0, %v2573_v6 }
  0xa7   : > { %1170 = vmatprep.mubr.bf16.mxu0 %v2574_v7  ;;  %2397 = vmatprep.mubr.msk.bf16.mxu1 %vm937_vm0, %v2576_v8 }
  0xae   : > { %1171 = vmatmul.mubr.bf16.gmra.mrb[52].mxu0 %v2577_v9  ;;  %2398 = vmatmul.mubr.msk.bf16.gmra.mrb[52].mxu1 %vm937_vm0, %v2578_v10 }
  0xaf   : > { %1178 = vmatprep.mubr.bf16.mxu0 %v2579_v11  ;;  %2401 = vmatprep.mubr.msk.bf16.mxu1 %vm937_vm0, %v2581_v12 }
  0xb6   : > { %1179 = vmatmul.mubr.bf16.gmra.mrb[56].mxu0 %v2582_v13  ;;  %2402 = vmatmul.mubr.msk.bf16.gmra.mrb[56].mxu1 %vm937_vm0, %v2583_v14 }
  0xb7   : > { %1186 = vmatprep.mubr.bf16.mxu0 %v2584_v15  ;;  %2405 = vmatprep.mubr.msk.bf16.mxu1 %vm937_vm0, %v2586_v16 }
  0xbe   : > { %1187 = vmatmul.mubr.bf16.gmra.mrb[60].mxu0 %v2587_v17  ;;  %2406 = vmatmul.mubr.msk.bf16.gmra.mrb[60].mxu1 %vm937_vm0, %v2588_v18 }
  0xbf   : > { %1194 = vmatprep.mubr.bf16.mxu0 %v2589_v19  ;;  %2409 = vmatprep.mubr.msk.bf16.mxu1 %vm937_vm0, %v2591_v20 }
  0xc6   : > { %1195 = vmatmul.mubr.bf16.gmra.mrb[64].mxu0 %v2592_v21  ;;  %2410 = vmatmul.mubr.msk.bf16.gmra.mrb[64].mxu1 %vm937_vm0, %v2593_v22 }
  0xc7   : > { %1202 = vmatprep.mubr.bf16.mxu0 %v2594_v23  ;;  %2413 = vmatprep.mubr.msk.bf16.mxu1 %vm937_vm0, %v2596_v24 }
  0xce   : > { %1203 = vmatmul.mubr.bf16.gmra.mrb[68].mxu0 %v2597_v25  ;;  %2414 = vmatmul.mubr.msk.bf16.gmra.mrb[68].mxu1 %vm937_vm0, %v2598_v26 }
  0xcf   : > { %1210 = vmatprep.mubr.bf16.mxu0 %v2599_v27  ;;  %2417 = vmatprep.mubr.msk.bf16.mxu1 %vm937_vm0, %v2601_v28 }
  0xd6   : > { %1211 = vmatmul.mubr.bf16.gmra.mrb[72].mxu0 %v2602_v29  ;;  %2418 = vmatmul.mubr.msk.bf16.gmra.mrb[72].mxu1 %vm937_vm0, %v2603_v30 }
  0xd7   : > { %1218 = vmatprep.mubr.bf16.mxu0 %v2604_v31  ;;  %2421 = vmatprep.mubr.msk.bf16.mxu1 %vm937_vm0, %v2606_v32 }
  0xde   : > { %1219 = vmatmul.mubr.bf16.gmra.mrb[76].mxu0 %v2607_v33  ;;  %2422 = vmatmul.mubr.msk.bf16.gmra.mrb[76].mxu1 %vm937_vm0, %v2608_v34 }
  0xdf   : > { %1226 = vmatprep.mubr.bf16.mxu0 %v2609_v35  ;;  %2425 = vmatprep.mubr.msk.bf16.mxu1 %vm937_vm0, %v2611_v36 }
  0xe6   : > { %1227 = vmatmul.mubr.bf16.gmra.mrb[80].mxu0 %v2612_v37  ;;  %2426 = vmatmul.mubr.msk.bf16.gmra.mrb[80].mxu1 %vm937_vm0, %v2613_v38 }
  0xe7   : > { %1234 = vmatprep.mubr.bf16.mxu0 %v2614_v39  ;;  %2429 = vmatprep.mubr.msk.bf16.mxu1 %vm937_vm0, %v2616_v40 }
  0xee   : > { %1235 = vmatmul.mubr.bf16.gmra.mrb[84].mxu0 %v2617_v41  ;;  %2430 = vmatmul.mubr.msk.bf16.gmra.mrb[84].mxu1 %vm937_vm0, %v2618_v42 }
  0xef   : > { %1242 = vmatprep.mubr.bf16.mxu0 %v2619_v43  ;;  %2433 = vmatprep.mubr.msk.bf16.mxu1 %vm937_vm0, %v2621_v44 }
  0xf6   : > { %1243 = vmatmul.mubr.bf16.gmra.mrb[88].mxu0 %v2622_v45  ;;  %2434 = vmatmul.mubr.msk.bf16.gmra.mrb[88].mxu1 %vm937_vm0, %v2623_v46 }
  0xf7   : > { %1250 = vmatprep.mubr.bf16.mxu0 %v2624_v47  ;;  %2437 = vmatprep.mubr.msk.bf16.mxu1 %vm937_vm0, %v2626_v48 }
  0xfe   : > { %1251 = vmatmul.mubr.bf16.gmra.mrb[92].mxu0 %v2627_v49  ;;  %2438 = vmatmul.mubr.msk.bf16.gmra.mrb[92].mxu1 %vm937_vm0, %v2628_v50 }
 0x119   : > { %v2888_v51 = vpop.f32.mrb[0].mxu0  ;;  %v2890_v52 = vpop.f32.mrb[0].mxu1 }
 0x11a   : > { %v1070_v53 = vpop.f32.mrb[1].mxu0  ;;  %v1262_v54 = vpop.f32.mrb[1].mxu1 }
 0x11b   : > { %v2892_v55 = vpop.f32.mrb[2].mxu0  ;;  %v2894_v56 = vpop.f32.mrb[2].mxu1  ;;  %v2951_v53 = vld [vmem:[%s3222_s2] ss:$0 sm:$0xff] }
 0x11c   : > { %v1073_v57 = vpop.f32.mrb[3].mxu0  ;;  %v1265_v58 = vpop.f32.mrb[3].mxu1 }
 0x11d   : > { %v1069_v57 = vadd.f32 %v2951_v53, %v2888_v51 }
 0x121   : > { %v1076_v59 = vpop.f32.mrb[4].mxu0  ;;  %v2896_v60 = vpop.f32.mrb[4].mxu1 }
 0x122   : > { %v1078_v61 = vpop.f32.mrb[5].mxu0  ;;  %v1270_v62 = vpop.f32.mrb[5].mxu1  ;;  %v1077_v54 = vadd.f32 %v2951_v53, %v1076_v59 }
 0x123   : > { %v1079_v63 = vpop.f32.mrb[6].mxu0  ;;  %v2898_v0 = vpop.f32.mrb[6].mxu1 }
 0x124   : > { %v1081_v1 = vpop.f32.mrb[7].mxu0  ;;  %v1273_v2 = vpop.f32.mrb[7].mxu1  ;;  %v1080_v62 = vadd.f32 %v2951_v53, %v1079_v63 }
 0x129   : > { %v2900_v3 = vpop.f32.mrb[8].mxu0  ;;  %v2902_v4 = vpop.f32.mrb[8].mxu1 }
 0x12a   : > { %v1086_v5 = vpop.f32.mrb[9].mxu0  ;;  %v1278_v6 = vpop.f32.mrb[9].mxu1 }
 0x12b   : > { %v2904_v7 = vpop.f32.mrb[10].mxu0  ;;  %v2906_v8 = vpop.f32.mrb[10].mxu1  ;;  %v1072_v6 = vadd.f32 %v2951_v53, %v2892_v55 }
 0x12c   : > { %v1089_v9 = vpop.f32.mrb[11].mxu0  ;;  %v1281_v10 = vpop.f32.mrb[11].mxu1 }
 0x131   : > { %v2908_v11 = vpop.f32.mrb[12].mxu0  ;;  %v2910_v12 = vpop.f32.mrb[12].mxu1 }
 0x132   : > { %v1094_v13 = vpop.f32.mrb[13].mxu0  ;;  %v1286_v14 = vpop.f32.mrb[13].mxu1 }
 0x133   : > { %v2912_v15 = vpop.f32.mrb[14].mxu0  ;;  %v2914_v16 = vpop.f32.mrb[14].mxu1 }
 0x134   : > { %v1097_v17 = vpop.f32.mrb[15].mxu0  ;;  %v1289_v18 = vpop.f32.mrb[15].mxu1 }
 0x139   : > { %v2916_v19 = vpop.f32.mrb[16].mxu0  ;;  %v2918_v20 = vpop.f32.mrb[16].mxu1 }
 0x13a   : > { %v1102_v21 = vpop.f32.mrb[17].mxu0  ;;  %v1294_v22 = vpop.f32.mrb[17].mxu1 }
 0x13b   : > { %v2920_v23 = vpop.f32.mrb[18].mxu0  ;;  %v2922_v24 = vpop.f32.mrb[18].mxu1 }
 0x13c   : > { %v1105_v25 = vpop.f32.mrb[19].mxu0  ;;  %v1297_v26 = vpop.f32.mrb[19].mxu1 }
 0x13d   : > { %v1093_v26 = vadd.f32 %v2951_v53, %v2908_v11 }
 0x141   : > { %v2924_v27 = vpop.f32.mrb[20].mxu0  ;;  %v2926_v28 = vpop.f32.mrb[20].mxu1 }
 0x142   : > { %v1110_v29 = vpop.f32.mrb[21].mxu0  ;;  %v1302_v30 = vpop.f32.mrb[21].mxu1 }
 0x143   : > { %v2928_v31 = vpop.f32.mrb[22].mxu0  ;;  %v2930_v32 = vpop.f32.mrb[22].mxu1  ;;  %v1085_v30 = vadd.f32 %v2951_v53, %v2900_v3 }
 0x144   : > { %v1113_v33 = vpop.f32.mrb[23].mxu0  ;;  %v1305_v34 = vpop.f32.mrb[23].mxu1 }
 0x149   : > { %v2932_v35 = vpop.f32.mrb[24].mxu0  ;;  %v2934_v36 = vpop.f32.mrb[24].mxu1 }
 0x14a   : > { %v1118_v37 = vpop.f32.mrb[25].mxu0  ;;  %v1310_v38 = vpop.f32.mrb[25].mxu1 }
 0x14b   : > { %v2936_v39 = vpop.f32.mrb[26].mxu0  ;;  %v2938_v40 = vpop.f32.mrb[26].mxu1  ;;  %v1096_v38 = vadd.f32 %v2951_v53, %v2912_v15 }
 0x14c   : > { %v1121_v41 = vpop.f32.mrb[27].mxu0  ;;  %v1313_v42 = vpop.f32.mrb[27].mxu1 }
 0x151   : > { %v2940_v43 = vpop.f32.mrb[28].mxu0  ;;  %v2942_v44 = vpop.f32.mrb[28].mxu1 }
 0x152   : > { %v1126_v45 = vpop.f32.mrb[29].mxu0  ;;  %v1318_v46 = vpop.f32.mrb[29].mxu1 }
 0x153   : > { %v2944_v47 = vpop.f32.mrb[30].mxu0  ;;  %v2946_v48 = vpop.f32.mrb[30].mxu1  ;;  %v1088_v45 = vadd.f32 %v2951_v53, %v2904_v7 }
 0x154   : > { %v1129_v49 = vpop.f32.mrb[31].mxu0  ;;  %v1321_v50 = vpop.f32.mrb[31].mxu1 }
 0x159   : > { %v2956_v58 = vpop.f32.mrb[32].mxu0  ;;  %v2379_v61 = vpop.f32.mrb[32].mxu1 }
 0x15a   : > { %v1366_v1 = vadd.f32 %v2379_v61, %v1077_v54  ;;  %v1134_v2 = vpop.f32.mrb[33].mxu0  ;;  %v1357_v5 = vpop.f32.mrb[33].mxu1 }
 0x15b   : > { %v1358_v9 = vadd.f32 %v1357_v5, %v1069_v57  ;;  %v2962_v10 = vpop.f32.mrb[34].mxu0  ;;  %v2380_v13 = vpop.f32.mrb[34].mxu1 }
 0x15c   : > { %v1614_v59 = vmax.f32 %v1366_v1, 0.0  ;;  %v1369_v14 = vadd.f32 %v2380_v13, %v1080_v62  ;;  %v1137_v17 = vpop.f32.mrb[35].mxu0  ;;  %v1360_v51 = vpop.f32.mrb[35].mxu1  ;;  %v1101_v13 = vadd.f32 %v2951_v53, %v2916_v19 }
 0x15d   : > { %v1612_v63 = vmax.f32 %v1358_v9, 0.0  ;;  %v1361_v18 = vadd.f32 %v1360_v51, %v1072_v6  ;;  %v1109_v6 = vadd.f32 %v2951_v53, %v2924_v27  ;;  %v1112_v51 = vadd.f32 %v2951_v53, %v2928_v31 }
 0x15e   : > { %v2277_v55 = vpack.c.bf16 %v1614_v59, %v1614_v59  ;;  %v1615_v21 = vmax.f32 %v1369_v14, 0.0 }
 0x15f   : > { %v2275_v22 = vpack.c.bf16 %v1612_v63, %v1612_v63  ;;  %v1613_v25 = vmax.f32 %v1361_v18, 0.0 }
 0x160   : > { %1935 = vst.msk [vmem:[%s2967_s8 + $0x8] sm:$0xf] %vm1932_vm1, %v2277_v55  ;;  %v2278_v29 = vpack.c.bf16 %v1615_v21, %v1615_v21  ;;  %v1104_v55 = vadd.f32 %v2951_v53, %v2920_v23 }
 0x161   : > { %1933 = vst.msk [vmem:[%s2967_s8] sm:$0xf] %vm1932_vm1, %v2275_v22  ;;  %v2276_v33 = vpack.c.bf16 %v1613_v25, %v1613_v25  ;;  %v2977_v34 = vpop.f32.mrb[36].mxu0  ;;  %v2383_v37 = vpop.f32.mrb[36].mxu1 }
 0x162   : > { %1936 = vst.msk [vmem:[%s2967_s8 + $0xc] sm:$0xf] %vm1932_vm1, %v2278_v29  ;;  %v1382_v41 = vadd.f32 %v2383_v37, %v1093_v26  ;;  %v1142_v42 = vpop.f32.mrb[37].mxu0  ;;  %v1373_v11 = vpop.f32.mrb[37].mxu1 }
 0x163   : > { %1934 = vst.msk [vmem:[%s2967_s8 + $0x4] sm:$0xf] %vm1932_vm1, %v2276_v33  ;;  %v1374_v3 = vadd.f32 %v1373_v11, %v1085_v30  ;;  %v2987_v46 = vpop.f32.mrb[38].mxu0  ;;  %v2384_v49 = vpop.f32.mrb[38].mxu1  ;;  %v1125_v42 = vadd.f32 %v2951_v53, %v2940_v43  ;;  %v1120_v43 = vadd.f32 %v2951_v53, %v2936_v39  ;;  %v1141_v39 = vadd.f32 %v2951_v53, %v2977_v34 }
 0x164   : > { %v1618_v50 = vmax.f32 %v1382_v41, 0.0  ;;  %v1385_v54 = vadd.f32 %v2384_v49, %v1096_v38  ;;  %v1145_v57 = vpop.f32.mrb[39].mxu0  ;;  %v1376_v15 = vpop.f32.mrb[39].mxu1  ;;  %v1136_v34 = vadd.f32 %v2951_v53, %v2962_v10 }
 0x165   : > { %v1616_v61 = vmax.f32 %v1374_v3, 0.0  ;;  %v1377_v62 = vadd.f32 %v1376_v15, %v1088_v45  ;;  %v1117_v45 = vadd.f32 %v2951_v53, %v2932_v35 }
 0x166   : > { %v2281_v1 = vpack.c.bf16 %v1618_v50, %v1618_v50  ;;  %v1619_v2 = vmax.f32 %v1385_v54, 0.0  ;;  %v1128_v54 = vadd.f32 %v2951_v53, %v2944_v47 }
 0x167   : > { %v2279_v5 = vpack.c.bf16 %v1616_v61, %v1616_v61  ;;  %v1617_v7 = vmax.f32 %v1377_v62, 0.0 }
 0x168   : > { %1939 = vst.msk [vmem:[%s2967_s8 + $0x18] sm:$0xf] %vm1932_vm1, %v2281_v1  ;;  %v2282_v9 = vpack.c.bf16 %v1619_v2, %v1619_v2 }
 0x169   : > { %1937 = vst.msk [vmem:[%s2967_s8 + $0x10] sm:$0xf] %vm1932_vm1, %v2279_v5  ;;  %v2280_v59 = vpack.c.bf16 %v1617_v7, %v1617_v7  ;;  %v2997_v14 = vpop.f32.mrb[40].mxu0  ;;  %v2387_v17 = vpop.f32.mrb[40].mxu1 }
 0x16a   : > { %1940 = vst.msk [vmem:[%s2967_s8 + $0x1c] sm:$0xf] %vm1932_vm1, %v2282_v9  ;;  %v1398_v63 = vadd.f32 %v2387_v17, %v1109_v6  ;;  %v1150_v18 = vpop.f32.mrb[41].mxu0  ;;  %v1389_v27 = vpop.f32.mrb[41].mxu1 }
 0x16b   : > { %1938 = vst.msk [vmem:[%s2967_s8 + $0x14] sm:$0xf] %vm1932_vm1, %v2280_v59  ;;  %v1390_v19 = vadd.f32 %v1389_v27, %v1101_v13  ;;  %v3007_v21 = vpop.f32.mrb[42].mxu0  ;;  %v2388_v22 = vpop.f32.mrb[42].mxu1  ;;  %v1133_v18 = vadd.f32 %v2951_v53, %v2956_v58 }
 0x16c   : > { %v1622_v25 = vmax.f32 %v1398_v63, 0.0  ;;  %v1401_v26 = vadd.f32 %v2388_v22, %v1112_v51  ;;  %v1153_v29 = vpop.f32.mrb[43].mxu0  ;;  %v1392_v31 = vpop.f32.mrb[43].mxu1  ;;  %v1144_v22 = vadd.f32 %v2951_v53, %v2987_v46 }
 0x16d   : > { %v1620_v30 = vmax.f32 %v1390_v19, 0.0  ;;  %v1393_v33 = vadd.f32 %v1392_v31, %v1104_v55 }
 0x16e   : > { %v2285_v37 = vpack.c.bf16 %v1622_v25, %v1622_v25  ;;  %v1623_v38 = vmax.f32 %v1401_v26, 0.0 }
 0x16f   : > { %v2283_v41 = vpack.c.bf16 %v1620_v30, %v1620_v30  ;;  %v1621_v23 = vmax.f32 %v1393_v33, 0.0 }
 0x170   : > { %1943 = vst.msk [vmem:[%s2967_s8 + $0x28] sm:$0xf] %vm1932_vm1, %v2285_v37  ;;  %v2286_v11 = vpack.c.bf16 %v1623_v38, %v1623_v38 }
 0x171   : > { %1941 = vst.msk [vmem:[%s2967_s8 + $0x20] sm:$0xf] %vm1932_vm1, %v2283_v41  ;;  %v2284_v3 = vpack.c.bf16 %v1621_v23, %v1621_v23  ;;  %v1156_v49 = vpop.f32.mrb[44].mxu0  ;;  %v2391_v50 = vpop.f32.mrb[44].mxu1 }
 0x172   : > { %1944 = vst.msk [vmem:[%s2967_s8 + $0x2c] sm:$0xf] %vm1932_vm1, %v2286_v11  ;;  %v1414_v57 = vadd.f32 %v2391_v50, %v1125_v42  ;;  %v1158_v15 = vpop.f32.mrb[45].mxu0  ;;  %v1405_v61 = vpop.f32.mrb[45].mxu1  ;;  %v1157_v10 = vadd.f32 %v2951_v53, %v1156_v49  ;;  %v1152_v49 = vadd.f32 %v2951_v53, %v3007_v21 }
 0x173   : > { %1942 = vst.msk [vmem:[%s2967_s8 + $0x24] sm:$0xf] %vm1932_vm1, %v2284_v3  ;;  %v1406_v35 = vadd.f32 %v1405_v61, %v1117_v45  ;;  %v1159_v62 = vpop.f32.mrb[46].mxu0  ;;  %v2392_v1 = vpop.f32.mrb[46].mxu1 }
 0x174   : > { %v1626_v2 = vmax.f32 %v1414_v57, 0.0  ;;  %v1417_v5 = vadd.f32 %v2392_v1, %v1128_v54  ;;  %v1161_v7 = vpop.f32.mrb[47].mxu0  ;;  %v1408_v6 = vpop.f32.mrb[47].mxu1  ;;  %v1149_v54 = vadd.f32 %v2951_v53, %v2997_v14 }
 0x175   : > { %v1624_v47 = vmax.f32 %v1406_v35, 0.0  ;;  %v1409_v9 = vadd.f32 %v1408_v6, %v1120_v43  ;;  %v1160_v43 = vadd.f32 %v2951_v53, %v1159_v62 }
 0x176   : > { %v2289_v13 = vpack.c.bf16 %v1626_v2, %v1626_v2  ;;  %v1627_v59 = vmax.f32 %v1417_v5, 0.0 }
 0x177   : > { %v2287_v17 = vpack.c.bf16 %v1624_v47, %v1624_v47  ;;  %v1625_v51 = vmax.f32 %v1409_v9, 0.0 }
 0x178   : > { %1947 = vst.msk [vmem:[%s2967_s8 + $0x38] sm:$0xf] %vm1932_vm1, %v2289_v13  ;;  %v2290_v63 = vpack.c.bf16 %v1627_v59, %v1627_v59 }
 0x179   : > { %1945 = vst.msk [vmem:[%s2967_s8 + $0x30] sm:$0xf] %vm1932_vm1, %v2287_v17  ;;  %v2288_v27 = vpack.c.bf16 %v1625_v51, %v1625_v51  ;;  %v1164_v55 = vpop.f32.mrb[48].mxu0  ;;  %v2395_v19 = vpop.f32.mrb[48].mxu1 }
 0x17a   : > { %1948 = vst.msk [vmem:[%s2967_s8 + $0x3c] sm:$0xf] %vm1932_vm1, %v2290_v63  ;;  %v1430_v25 = vadd.f32 %v2395_v19, %v1141_v39  ;;  %v1166_v26 = vpop.f32.mrb[49].mxu0  ;;  %v1421_v29 = vpop.f32.mrb[49].mxu1 }
 0x17b   : > { %1946 = vst.msk [vmem:[%s2967_s8 + $0x34] sm:$0xf] %vm1932_vm1, %v2288_v27  ;;  %v1422_v58 = vadd.f32 %v1421_v29, %v1133_v18  ;;  %v1167_v31 = vpop.f32.mrb[50].mxu0  ;;  %v2396_v30 = vpop.f32.mrb[50].mxu1  ;;  %v1165_v27 = vadd.f32 %v2951_v53, %v1164_v55 }
 0x17c   : > { %v1630_v33 = vmax.f32 %v1430_v25, 0.0  ;;  %v1433_v37 = vadd.f32 %v2396_v30, %v1144_v22  ;;  %v1169_v38 = vpop.f32.mrb[51].mxu0  ;;  %v1424_v41 = vpop.f32.mrb[51].mxu1  ;;  %v1168_v30 = vadd.f32 %v2951_v53, %v1167_v31 }
 0x17d   : > { %v1628_v46 = vmax.f32 %v1422_v58, 0.0  ;;  %v1425_v23 = vadd.f32 %v1424_v41, %v1136_v34 }
 0x17e   : > { %v2293_v42 = vpack.c.bf16 %v1630_v33, %v1630_v33  ;;  %v1631_v11 = vmax.f32 %v1433_v37, 0.0 }
 0x17f   : > { %v2291_v45 = vpack.c.bf16 %v1628_v46, %v1628_v46  ;;  %v1629_v3 = vmax.f32 %v1425_v23, 0.0 }
 0x180   : > { %1951 = vst.msk [vmem:[%s2967_s8 + $0x48] sm:$0xf] %vm1932_vm1, %v2293_v42  ;;  %v2294_v50 = vpack.c.bf16 %v1631_v11, %v1631_v11 }
 0x181   : > { %1949 = vst.msk [vmem:[%s2967_s8 + $0x40] sm:$0xf] %vm1932_vm1, %v2291_v45  ;;  %v2292_v57 = vpack.c.bf16 %v1629_v3, %v1629_v3  ;;  %v1172_v15 = vpop.f32.mrb[52].mxu0  ;;  %v2399_v61 = vpop.f32.mrb[52].mxu1 }
 0x182   : > { %1952 = vst.msk [vmem:[%s2967_s8 + $0x4c] sm:$0xf] %vm1932_vm1, %v2294_v50  ;;  %v1446_v35 = vadd.f32 %v2399_v61, %v1157_v10  ;;  %v1174_v1 = vpop.f32.mrb[53].mxu0  ;;  %v1437_v2 = vpop.f32.mrb[53].mxu1  ;;  %v1173_v21 = vadd.f32 %v2951_v53, %v1172_v15 }
 0x183   : > { %1950 = vst.msk [vmem:[%s2967_s8 + $0x44] sm:$0xf] %vm1932_vm1, %v2292_v57  ;;  %v1438_v5 = vadd.f32 %v1437_v2, %v1149_v54  ;;  %v1175_v14 = vpop.f32.mrb[54].mxu0  ;;  %v2400_v7 = vpop.f32.mrb[54].mxu1 }
 0x184   : > { %v1634_v6 = vmax.f32 %v1446_v35, 0.0  ;;  %v1449_v47 = vadd.f32 %v2400_v7, %v1160_v43  ;;  %v1177_v9 = vpop.f32.mrb[55].mxu0  ;;  %v1440_v13 = vpop.f32.mrb[55].mxu1  ;;  %v1176_v26 = vadd.f32 %v2951_v53, %v1175_v14 }
 0x185   : > { %v1632_v62 = vmax.f32 %v1438_v5, 0.0  ;;  %v1441_v59 = vadd.f32 %v1440_v13, %v1152_v49 }
 0x186   : > { %v2297_v17 = vpack.c.bf16 %v1634_v6, %v1634_v6  ;;  %v1635_v51 = vmax.f32 %v1449_v47, 0.0 }
 0x187   : > { %v2295_v39 = vpack.c.bf16 %v1632_v62, %v1632_v62  ;;  %v1633_v63 = vmax.f32 %v1441_v59, 0.0 }
 0x188   : > { %1955 = vst.msk [vmem:[%s2967_s8 + $0x58] sm:$0xf] %vm1932_vm1, %v2297_v17  ;;  %v2298_v18 = vpack.c.bf16 %v1635_v51, %v1635_v51 }
 0x189   : > { %1953 = vst.msk [vmem:[%s2967_s8 + $0x50] sm:$0xf] %vm1932_vm1, %v2295_v39  ;;  %v2296_v19 = vpack.c.bf16 %v1633_v63, %v1633_v63  ;;  %v1180_v22 = vpop.f32.mrb[56].mxu0  ;;  %v2403_v25 = vpop.f32.mrb[56].mxu1 }
 0x18a   : > { %1956 = vst.msk [vmem:[%s2967_s8 + $0x5c] sm:$0xf] %vm1932_vm1, %v2298_v18  ;;  %v1462_v29 = vadd.f32 %v2403_v25, %v1173_v21  ;;  %v1182_v34 = vpop.f32.mrb[57].mxu0  ;;  %v1453_v58 = vpop.f32.mrb[57].mxu1  ;;  %v1181_v54 = vadd.f32 %v2951_v53, %v1180_v22 }
 0x18b   : > { %1954 = vst.msk [vmem:[%s2967_s8 + $0x54] sm:$0xf] %vm1932_vm1, %v2296_v19  ;;  %v1454_v33 = vadd.f32 %v1453_v58, %v1165_v27  ;;  %v1183_v55 = vpop.f32.mrb[58].mxu0  ;;  %v2404_v37 = vpop.f32.mrb[58].mxu1 }
 0x18c   : > { %v1638_v38 = vmax.f32 %v1462_v29, 0.0  ;;  %v1465_v41 = vadd.f32 %v2404_v37, %v1176_v26  ;;  %v1185_v46 = vpop.f32.mrb[59].mxu0  ;;  %v1456_v23 = vpop.f32.mrb[59].mxu1  ;;  %v1184_v2 = vadd.f32 %v2951_v53, %v1183_v55 }
 0x18d   : > { %v1636_v42 = vmax.f32 %v1454_v33, 0.0  ;;  %v1457_v11 = vadd.f32 %v1456_v23, %v1168_v30 }
 0x18e   : > { %v2301_v45 = vpack.c.bf16 %v1638_v38, %v1638_v38  ;;  %v1639_v3 = vmax.f32 %v1465_v41, 0.0 }
 0x18f   : > { %v2299_v10 = vpack.c.bf16 %v1636_v42, %v1636_v42  ;;  %v1637_v50 = vmax.f32 %v1457_v11, 0.0 }
 0x190   : > { %1959 = vst.msk [vmem:[%s2967_s8 + $0x68] sm:$0xf] %vm1932_vm1, %v2301_v45  ;;  %v2302_v31 = vpack.c.bf16 %v1639_v3, %v1639_v3 }
 0x191   : > { %1957 = vst.msk [vmem:[%s2967_s8 + $0x60] sm:$0xf] %vm1932_vm1, %v2299_v10  ;;  %v2300_v57 = vpack.c.bf16 %v1637_v50, %v1637_v50  ;;  %v1188_v15 = vpop.f32.mrb[60].mxu0  ;;  %v2407_v61 = vpop.f32.mrb[60].mxu1 }
 0x192   : > { %1960 = vst.msk [vmem:[%s2967_s8 + $0x6c] sm:$0xf] %vm1932_vm1, %v2302_v31  ;;  %v1189_v43 = vadd.f32 %v2951_v53, %v1188_v15  ;;  %v1190_v35 = vpop.f32.mrb[61].mxu0  ;;  %v1469_v1 = vpop.f32.mrb[61].mxu1 }
 0x193   : > { %1958 = vst.msk [vmem:[%s2967_s8 + $0x64] sm:$0xf] %vm1932_vm1, %v2300_v57  ;;  %v1470_v49 = vadd.f32 %v1469_v1, %v1181_v54  ;;  %v1191_v5 = vpop.f32.mrb[62].mxu0  ;;  %v2408_v14 = vpop.f32.mrb[62].mxu1 }
 0x194   : > { %v1478_v7 = vadd.f32 %v2407_v61, %v1189_v43  ;;  %v1192_v6 = vadd.f32 %v2951_v53, %v1191_v5  ;;  %v1193_v47 = vpop.f32.mrb[63].mxu0  ;;  %v1472_v9 = vpop.f32.mrb[63].mxu1 }
 0x195   : > { %v1640_v13 = vmax.f32 %v1470_v49, 0.0  ;;  %v1473_v62 = vadd.f32 %v1472_v9, %v1184_v2 }
 0x196   : > { %v1642_v59 = vmax.f32 %v1478_v7, 0.0  ;;  %v1481_v17 = vadd.f32 %v2408_v14, %v1192_v6 }
 0x197   : > { %v2303_v51 = vpack.c.bf16 %v1640_v13, %v1640_v13  ;;  %v1641_v39 = vmax.f32 %v1473_v62, 0.0 }
 0x198   : > { %v2305_v63 = vpack.c.bf16 %v1642_v59, %v1642_v59  ;;  %v1643_v21 = vmax.f32 %v1481_v17, 0.0 }
 0x199   : > { %1961 = vst.msk [vmem:[%s2967_s8 + $0x70] sm:$0xf] %vm1932_vm1, %v2303_v51  ;;  %v2304_v18 = vpack.c.bf16 %v1641_v39, %v1641_v39  ;;  %v1196_v27 = vpop.f32.mrb[64].mxu0  ;;  %v2411_v19 = vpop.f32.mrb[64].mxu1 }
 0x19a   : > { %1963 = vst.msk [vmem:[%s2967_s8 + $0x78] sm:$0xf] %vm1932_vm1, %v2305_v63  ;;  %v2306_v22 = vpack.c.bf16 %v1643_v21, %v1643_v21  ;;  %v1197_v25 = vadd.f32 %v2951_v53, %v1196_v27  ;;  %v1198_v26 = vpop.f32.mrb[65].mxu0  ;;  %v1485_v29 = vpop.f32.mrb[65].mxu1 }
 0x19b   : > { %1962 = vst.msk [vmem:[%s2967_s8 + $0x74] sm:$0xf] %vm1932_vm1, %v2304_v18  ;;  %v1199_v34 = vpop.f32.mrb[66].mxu0  ;;  %v2412_v58 = vpop.f32.mrb[66].mxu1 }
 0x19c   : > { %1964 = vst.msk [vmem:[%s2967_s8 + $0x7c] sm:$0xf] %vm1932_vm1, %v2306_v22  ;;  %v1486_v30 = vadd.f32 %v1485_v29, %v1197_v25  ;;  %v1200_v33 = vadd.f32 %v2951_v53, %v1199_v34  ;;  %v1201_v55 = vpop.f32.mrb[67].mxu0  ;;  %v1488_v37 = vpop.f32.mrb[67].mxu1 }
 0x19e   : > { %v1644_v38 = vmax.f32 %v1486_v30, 0.0  ;;  %v1489_v41 = vadd.f32 %v1488_v37, %v1200_v33 }
 0x1a0   : > { %v2307_v46 = vpack.c.bf16 %v1644_v38, %v1644_v38  ;;  %v1645_v23 = vmax.f32 %v1489_v41, 0.0 }
 0x1a1   : > { %v1204_v42 = vpop.f32.mrb[68].mxu0  ;;  %v2415_v11 = vpop.f32.mrb[68].mxu1 }
 0x1a2   : > { %1965 = vst.msk [vmem:[%s2967_s8 + $0x80] sm:$0xf] %vm1932_vm1, %v2307_v46  ;;  %v2308_v45 = vpack.c.bf16 %v1645_v23, %v1645_v23  ;;  %v1205_v3 = vadd.f32 %v2951_v53, %v1204_v42  ;;  %v1206_v10 = vpop.f32.mrb[69].mxu0  ;;  %v1501_v50 = vpop.f32.mrb[69].mxu1  ;;  %v1269_v23 = vadd.f32 %v2951_v53, %v2896_v60  ;;  %v1264_v60 = vadd.f32 %v2951_v53, %v2894_v56 }
 0x1a3   : > { %v1207_v31 = vpop.f32.mrb[70].mxu0  ;;  %v2416_v54 = vpop.f32.mrb[70].mxu1 }
 0x1a4   : > { %1966 = vst.msk [vmem:[%s2967_s8 + $0x84] sm:$0xf] %vm1932_vm1, %v2308_v45  ;;  %v1494_v57 = vadd.f32 %v2411_v19, %v1205_v3  ;;  %v1208_v15 = vadd.f32 %v2951_v53, %v1207_v31  ;;  %v1209_v61 = vpop.f32.mrb[71].mxu0  ;;  %v1504_v43 = vpop.f32.mrb[71].mxu1  ;;  %v1261_v3 = vadd.f32 %v2951_v53, %v2890_v52 }
 0x1a6   : > { %v1646_v35 = vmax.f32 %v1494_v57, 0.0  ;;  %v1497_v1 = vadd.f32 %v2412_v58, %v1208_v15 }
 0x1a8   : > { %v2309_v2 = vpack.c.bf16 %v1646_v35, %v1646_v35  ;;  %v1647_v49 = vmax.f32 %v1497_v1, 0.0 }
 0x1a9   : > { %v1212_v5 = vpop.f32.mrb[72].mxu0  ;;  %v3095_v14 = vpop.f32.mrb[72].mxu1 }
 0x1aa   : > { %1967 = vst.msk [vmem:[%s2967_s8 + $0x88] sm:$0xf] %vm1932_vm1, %v2309_v2  ;;  %v2310_v7 = vpack.c.bf16 %v1647_v49, %v1647_v49  ;;  %v1213_v6 = vadd.f32 %v2951_v53, %v1212_v5  ;;  %v1214_v47 = vpop.f32.mrb[73].mxu0  ;;  %v1517_v9 = vpop.f32.mrb[73].mxu1 }
 0x1ab   : > { %v1215_v13 = vpop.f32.mrb[74].mxu0  ;;  %v3100_v62 = vpop.f32.mrb[74].mxu1 }
 0x1ac   : > { %1968 = vst.msk [vmem:[%s2967_s8 + $0x8c] sm:$0xf] %vm1932_vm1, %v2310_v7  ;;  %v1502_v59 = vadd.f32 %v1501_v50, %v1213_v6  ;;  %v1216_v17 = vadd.f32 %v2951_v53, %v1215_v13  ;;  %v1217_v51 = vpop.f32.mrb[75].mxu0  ;;  %v1520_v39 = vpop.f32.mrb[75].mxu1 }
 0x1ae   : > { %v1648_v63 = vmax.f32 %v1502_v59, 0.0  ;;  %v1505_v21 = vadd.f32 %v1504_v43, %v1216_v17 }
 0x1b0   : > { %v2311_v18 = vpack.c.bf16 %v1648_v63, %v1648_v63  ;;  %v1649_v27 = vmax.f32 %v1505_v21, 0.0 }
 0x1b1   : > { %v1220_v19 = vpop.f32.mrb[76].mxu0  ;;  %v3105_v22 = vpop.f32.mrb[76].mxu1 }
 0x1b2   : > { %1969 = vst.msk [vmem:[%s2967_s8 + $0x90] sm:$0xf] %vm1932_vm1, %v2311_v18  ;;  %v2312_v25 = vpack.c.bf16 %v1649_v27, %v1649_v27  ;;  %v1221_v26 = vadd.f32 %v2951_v53, %v1220_v19  ;;  %v1222_v29 = vpop.f32.mrb[77].mxu0  ;;  %v3110_v34 = vpop.f32.mrb[77].mxu1  ;;  %v1277_v19 = vadd.f32 %v2951_v53, %v2902_v4  ;;  %v1280_v4 = vadd.f32 %v2951_v53, %v2906_v8 }
 0x1b3   : > { %v1223_v58 = vpop.f32.mrb[78].mxu0  ;;  %v3112_v30 = vpop.f32.mrb[78].mxu1  ;;  %v1288_v29 = vadd.f32 %v2951_v53, %v2914_v16 }
 0x1b4   : > { %1970 = vst.msk [vmem:[%s2967_s8 + $0x94] sm:$0xf] %vm1932_vm1, %v2312_v25  ;;  %v1510_v33 = vadd.f32 %v2415_v11, %v1221_v26  ;;  %v1224_v55 = vadd.f32 %v2951_v53, %v1223_v58  ;;  %v1225_v37 = vpop.f32.mrb[79].mxu0  ;;  %v3117_v38 = vpop.f32.mrb[79].mxu1  ;;  %v1272_v11 = vadd.f32 %v2951_v53, %v2898_v0 }
 0x1b6   : > { %v1650_v41 = vmax.f32 %v1510_v33, 0.0  ;;  %v1513_v46 = vadd.f32 %v2416_v54, %v1224_v55 }
 0x1b8   : > { %v2313_v42 = vpack.c.bf16 %v1650_v41, %v1650_v41  ;;  %v1651_v45 = vmax.f32 %v1513_v46, 0.0 }
 0x1b9   : > { %v1228_v10 = vpop.f32.mrb[80].mxu0  ;;  %v2427_v50 = vpop.f32.mrb[80].mxu1 }
 0x1ba   : > { %1971 = vst.msk [vmem:[%s2967_s8 + $0x98] sm:$0xf] %vm1932_vm1, %v2313_v42  ;;  %v2314_v31 = vpack.c.bf16 %v1651_v45, %v1651_v45  ;;  %v1229_v57 = vadd.f32 %v2951_v53, %v1228_v10  ;;  %v1558_v54 = vadd.f32 %v2427_v50, %v1269_v23  ;;  %v1230_v15 = vpop.f32.mrb[81].mxu0  ;;  %v1549_v61 = vpop.f32.mrb[81].mxu1 }
 0x1bb   : > { %v1550_v43 = vadd.f32 %v1549_v61, %v1261_v3  ;;  %v1231_v35 = vpop.f32.mrb[82].mxu0  ;;  %v2428_v1 = vpop.f32.mrb[82].mxu1 }
 0x1bc   : > { %1972 = vst.msk [vmem:[%s2967_s8 + $0x9c] sm:$0xf] %vm1932_vm1, %v2314_v31  ;;  %v1518_v52 = vadd.f32 %v1517_v9, %v1229_v57  ;;  %v1662_v2 = vmax.f32 %v1558_v54, 0.0  ;;  %v1232_v0 = vadd.f32 %v2951_v53, %v1231_v35  ;;  %v1561_v49 = vadd.f32 %v2428_v1, %v1272_v11  ;;  %v1233_v5 = vpop.f32.mrb[83].mxu0  ;;  %v1552_v7 = vpop.f32.mrb[83].mxu1 }
 0x1bd   : > { %v1660_v6 = vmax.f32 %v1550_v43, 0.0  ;;  %v1553_v47 = vadd.f32 %v1552_v7, %v1264_v60  ;;  %v1285_v9 = vadd.f32 %v2951_v53, %v2910_v12 }
 0x1be   : > { %v1652_v13 = vmax.f32 %v1518_v52, 0.0  ;;  %v2325_v59 = vpack.c.bf16 %v1662_v2, %v1662_v2  ;;  %v1521_v56 = vadd.f32 %v1520_v39, %v1232_v0  ;;  %v1663_v17 = vmax.f32 %v1561_v49, 0.0 }
 0x1bf   : > { %v2323_v51 = vpack.c.bf16 %v1660_v6, %v1660_v6  ;;  %v1661_v63 = vmax.f32 %v1553_v47, 0.0  ;;  %v1293_v52 = vadd.f32 %v2951_v53, %v2918_v20  ;;  %v1304_v49 = vadd.f32 %v2951_v53, %v2930_v32 }
 0x1c0   : > { %v2315_v21 = vpack.c.bf16 %v1652_v13, %v1652_v13  ;;  %1983 = vst.msk [vmem:[%s2967_s8 + $0xc8] sm:$0xf] %vm1932_vm1, %v2325_v59  ;;  %v1653_v18 = vmax.f32 %v1521_v56, 0.0  ;;  %v2326_v27 = vpack.c.bf16 %v1663_v17, %v1663_v17  ;;  %v1296_v20 = vadd.f32 %v2951_v53, %v2922_v24 }
 0x1c1   : > { %1981 = vst.msk [vmem:[%s2967_s8 + $0xc0] sm:$0xf] %vm1932_vm1, %v2323_v51  ;;  %v2324_v25 = vpack.c.bf16 %v1661_v63, %v1661_v63  ;;  %v1236_v39 = vpop.f32.mrb[84].mxu0  ;;  %v2431_v26 = vpop.f32.mrb[84].mxu1 }
 0x1c2   : > { %1973 = vst.msk [vmem:[%s2967_s8 + $0xa0] sm:$0xf] %vm1932_vm1, %v2315_v21  ;;  %v2316_v12 = vpack.c.bf16 %v1653_v18, %v1653_v18  ;;  %1984 = vst.msk [vmem:[%s2967_s8 + $0xcc] sm:$0xf] %vm1932_vm1, %v2326_v27  ;;  %v1237_v58 = vadd.f32 %v2951_v53, %v1236_v39  ;;  %v1574_v33 = vadd.f32 %v2431_v26, %v1285_v9  ;;  %v1238_v55 = vpop.f32.mrb[85].mxu0  ;;  %v1565_v37 = vpop.f32.mrb[85].mxu1 }
 0x1c3   : > { %1982 = vst.msk [vmem:[%s2967_s8 + $0xc4] sm:$0xf] %vm1932_vm1, %v2324_v25  ;;  %v1566_v41 = vadd.f32 %v1565_v37, %v1277_v19  ;;  %v1239_v46 = vpop.f32.mrb[86].mxu0  ;;  %v2432_v23 = vpop.f32.mrb[86].mxu1  ;;  %v1309_v55 = vadd.f32 %v2951_v53, %v2934_v36  ;;  %v1312_v36 = vadd.f32 %v2951_v53, %v2938_v40 }
 0x1c4   : > { %1974 = vst.msk [vmem:[%s2967_s8 + $0xa4] sm:$0xf] %vm1932_vm1, %v2316_v12  ;;  %v1526_v16 = vadd.f32 %v3095_v14, %v1237_v58  ;;  %v1666_v42 = vmax.f32 %v1574_v33, 0.0  ;;  %v1240_v45 = vadd.f32 %v2951_v53, %v1239_v46  ;;  %v1577_v3 = vadd.f32 %v2432_v23, %v1288_v29  ;;  %v1241_v10 = vpop.f32.mrb[87].mxu0  ;;  %v1568_v50 = vpop.f32.mrb[87].mxu1 }
 0x1c5   : > { %v1664_v11 = vmax.f32 %v1566_v41, 0.0  ;;  %v1569_v31 = vadd.f32 %v1568_v50, %v1280_v4  ;;  %v1301_v14 = vadd.f32 %v2951_v53, %v2926_v28  ;;  %v1320_v41 = vadd.f32 %v2951_v53, %v2946_v48 }
 0x1c6   : > { %v1654_v8 = vmax.f32 %v1526_v16, 0.0  ;;  %v2329_v57 = vpack.c.bf16 %v1666_v42, %v1666_v42  ;;  %v1529_v54 = vadd.f32 %v3100_v62, %v1240_v45  ;;  %v1667_v15 = vmax.f32 %v1577_v3, 0.0 }
 0x1c7   : > { %v2327_v61 = vpack.c.bf16 %v1664_v11, %v1664_v11  ;;  %v1665_v60 = vmax.f32 %v1569_v31, 0.0 }
 0x1c8   : > { %v2317_v43 = vpack.c.bf16 %v1654_v8, %v1654_v8  ;;  %1987 = vst.msk [vmem:[%s2967_s8 + $0xd8] sm:$0xf] %vm1932_vm1, %v2329_v57  ;;  %v1655_v35 = vmax.f32 %v1529_v54, 0.0  ;;  %v2330_v1 = vpack.c.bf16 %v1667_v15, %v1667_v15 }
 0x1c9   : > { %1985 = vst.msk [vmem:[%s2967_s8 + $0xd0] sm:$0xf] %vm1932_vm1, %v2327_v61  ;;  %v2328_v2 = vpack.c.bf16 %v1665_v60, %v1665_v60  ;;  %v1244_v62 = vpop.f32.mrb[88].mxu0  ;;  %v2435_v0 = vpop.f32.mrb[88].mxu1 }
 0x1ca   : > { %1975 = vst.msk [vmem:[%s2967_s8 + $0xa8] sm:$0xf] %vm1932_vm1, %v2317_v43  ;;  %v2318_v28 = vpack.c.bf16 %v1655_v35, %v1655_v35  ;;  %1988 = vst.msk [vmem:[%s2967_s8 + $0xdc] sm:$0xf] %vm1932_vm1, %v2330_v1  ;;  %v1245_v5 = vadd.f32 %v2951_v53, %v1244_v62  ;;  %v1590_v7 = vadd.f32 %v2435_v0, %v1301_v14  ;;  %v1246_v6 = vpop.f32.mrb[89].mxu0  ;;  %v1581_v47 = vpop.f32.mrb[89].mxu1 }
 0x1cb   : > { %1986 = vst.msk [vmem:[%s2967_s8 + $0xd4] sm:$0xf] %vm1932_vm1, %v2328_v2  ;;  %v1582_v13 = vadd.f32 %v1581_v47, %v1293_v52  ;;  %v1247_v59 = vpop.f32.mrb[90].mxu0  ;;  %v2436_v56 = vpop.f32.mrb[90].mxu1 }
 0x1cc   : > { %1976 = vst.msk [vmem:[%s2967_s8 + $0xac] sm:$0xf] %vm1932_vm1, %v2318_v28  ;;  %v1534_v32 = vadd.f32 %v3110_v34, %v1245_v5  ;;  %v1670_v17 = vmax.f32 %v1590_v7, 0.0  ;;  %v1248_v51 = vadd.f32 %v2951_v53, %v1247_v59  ;;  %v1593_v63 = vadd.f32 %v2436_v56, %v1304_v49  ;;  %v1249_v9 = vpop.f32.mrb[91].mxu0  ;;  %v1584_v21 = vpop.f32.mrb[91].mxu1 }
 0x1cd   : > { %v1668_v18 = vmax.f32 %v1582_v13, 0.0  ;;  %v1585_v27 = vadd.f32 %v1584_v21, %v1296_v20  ;;  %v1317_v34 = vadd.f32 %v2951_v53, %v2942_v44 }
 0x1ce   : > { %v1656_v24 = vmax.f32 %v1534_v32, 0.0  ;;  %v2333_v19 = vpack.c.bf16 %v1670_v17, %v1670_v17  ;;  %v1537_v25 = vadd.f32 %v3117_v38, %v1248_v51  ;;  %v1671_v39 = vmax.f32 %v1593_v63, 0.0 }
 0x1cf   : > { %v2331_v26 = vpack.c.bf16 %v1668_v18, %v1668_v18  ;;  %v1669_v29 = vmax.f32 %v1585_v27, 0.0 }
 0x1d0   : > { %v2319_v12 = vpack.c.bf16 %v1656_v24, %v1656_v24  ;;  %1991 = vst.msk [vmem:[%s2967_s8 + $0xe8] sm:$0xf] %vm1932_vm1, %v2333_v19  ;;  %v1657_v58 = vmax.f32 %v1537_v25, 0.0  ;;  %v2334_v33 = vpack.c.bf16 %v1671_v39, %v1671_v39 }
 0x1d1   : > { %1989 = vst.msk [vmem:[%s2967_s8 + $0xe0] sm:$0xf] %vm1932_vm1, %v2331_v26  ;;  %v2332_v37 = vpack.c.bf16 %v1669_v29, %v1669_v29  ;;  %v1252_v38 = vpop.f32.mrb[92].mxu0  ;;  %v2439_v4 = vpop.f32.mrb[92].mxu1 }
 0x1d2   : > { %1977 = vst.msk [vmem:[%s2967_s8 + $0xb0] sm:$0xf] %vm1932_vm1, %v2319_v12  ;;  %v2320_v44 = vpack.c.bf16 %v1657_v58, %v1657_v58  ;;  %1992 = vst.msk [vmem:[%s2967_s8 + $0xec] sm:$0xf] %vm1932_vm1, %v2334_v33  ;;  %v1253_v46 = vadd.f32 %v2951_v53, %v1252_v38  ;;  %v1606_v23 = vadd.f32 %v2439_v4, %v1317_v34  ;;  %v1254_v16 = vpop.f32.mrb[93].mxu0  ;;  %v1597_v42 = vpop.f32.mrb[93].mxu1 }
 0x1d3   : > { %1990 = vst.msk [vmem:[%s2967_s8 + $0xe4] sm:$0xf] %vm1932_vm1, %v2332_v37  ;;  %v1598_v45 = vadd.f32 %v1597_v42, %v1309_v55  ;;  %v1255_v3 = vpop.f32.mrb[94].mxu0  ;;  %v2440_v10 = vpop.f32.mrb[94].mxu1 }
 0x1d4   : > { %1978 = vst.msk [vmem:[%s2967_s8 + $0xb4] sm:$0xf] %vm1932_vm1, %v2320_v44  ;;  %v1542_v48 = vadd.f32 %v3105_v22, %v1253_v46  ;;  %v1674_v50 = vmax.f32 %v1606_v23, 0.0  ;;  %v1256_v11 = vadd.f32 %v2951_v53, %v1255_v3  ;;  %v1609_v31 = vadd.f32 %v2440_v10, %v1320_v41  ;;  %v1257_v8 = vpop.f32.mrb[95].mxu0  ;;  %v1600_v57 = vpop.f32.mrb[95].mxu1 }
 0x1d5   : > { %v1672_v54 = vmax.f32 %v1598_v45, 0.0  ;;  %v1601_v40 = vadd.f32 %v1600_v57, %v1312_v36 }
 0x1d6   : > { %v1658_v15 = vmax.f32 %v1542_v48, 0.0  ;;  %v2337_v61 = vpack.c.bf16 %v1674_v50, %v1674_v50  ;;  %v1545_v60 = vadd.f32 %v3112_v30, %v1256_v11  ;;  %v1675_v14 = vmax.f32 %v1609_v31, 0.0 }
 0x1d7   : > { %v2335_v43 = vpack.c.bf16 %v1672_v54, %v1672_v54  ;;  %v1673_v22 = vmax.f32 %v1601_v40, 0.0 }
 0x1d8   : > { %v2321_v35 = vpack.c.bf16 %v1658_v15, %v1658_v15  ;;  %1995 = vst.msk [vmem:[%s2967_s8 + $0xf8] sm:$0xf] %vm1932_vm1, %v2337_v61  ;;  %v1659_v53 = vmax.f32 %v1545_v60, 0.0  ;;  %v2338_v1 = vpack.c.bf16 %v1675_v14, %v1675_v14 }
 0x1d9   : > { %1993 = vst.msk [vmem:[%s2967_s8 + $0xf0] sm:$0xf] %vm1932_vm1, %v2335_v43  ;;  %v2336_v52 = vpack.c.bf16 %v1673_v22, %v1673_v22 }
 0x1da   : > { %1979 = vst.msk [vmem:[%s2967_s8 + $0xb8] sm:$0xf] %vm1932_vm1, %v2321_v35  ;;  %v2322_v2 = vpack.c.bf16 %v1659_v53, %v1659_v53  ;;  %1996 = vst.msk [vmem:[%s2967_s8 + $0xfc] sm:$0xf] %vm1932_vm1, %v2338_v1 }
 0x1db   : > { %1994 = vst.msk [vmem:[%s2967_s8 + $0xf4] sm:$0xf] %vm1932_vm1, %v2336_v52 }
 0x1dc   : > { %1980 = vst.msk [vmem:[%s2967_s8 + $0xbc] sm:$0xf] %vm1932_vm1, %v2322_v2 }
 0x1dd PF: > { %s13_s12 = sadd.s32 1, %s2635_s12  }
 0x1de   : > { %p10_p4 = scmp.ge.s32.totalorder %s13_s12, 6  }
 0x1e0   :  { %12 = sbr.rel (!%p10_p4) target bundleno = 1 (0x1), region = 62 }

// kernel: _lambda_.11
= control target key start
LH: loop header
LB: loop body
LE: loop exit
PB: predicated region body
PF: predicated region fallthrough
CT: control target
= control target key end

     0   :  { %s3078_s15 = smov 0   ;;  %s3784_s0 = inlined_call_operand.vmem [shape: bf16[2048,288], index: 0, kind: input, shape index: {}]   ;;  %s3785_s1 = inlined_call_operand.vmem [shape: bf16[288,32], index: 1, kind: input, shape index: {}]   ;;  %s3786_s2 = inlined_call_operand.vmem [shape: f32[1,32], index: 2, kind: input, shape index: {}]   ;;  %s3787_s3 = inlined_call_operand.vmem [shape: bf16[2048,32], index: 3, kind: input, shape index: {}]   ;;  %s3788_s4 = inlined_call_operand.vmem [shape: bf16[2048,32], index: 4, kind: output, shape index: {}]  }
   0x1 LB: > { %s2306_s16 = sadd.s32 4294967295, %s3050_s15   ;;  %p2310_p0 = scmp.ge.s32.totalorder %s3050_s15, 1  ;;  %s3050_s15 = sphi %s3078_s15, %s14_s15  }
   0x2   : > { %p175_p1 = scmp.lt.s32.totalorder %s3050_s15, 5 }
   0x4   : > { %p176_p2 = pnand %p2310_p0, %p175_p1 }
   0x5   : > { %v2897_v0 = vld [vmem:[%s3785_s1] sm:$0xff] (!%p176_p2)   ;;  %v3052_v1 = vmov (!%p176_p2), 0   ;;  %s2311_s19 = sshll.u32 (!%p176_p2), %s2306_s16, 6  ;;  %v2898_v2 = vld [vmem:[%s3785_s1 + $0x8] sm:$0xff] (!%p176_p2)   ;;  %v2899_v3 = vld [vmem:[%s3785_s1 + $0x10] sm:$0xff] (!%p176_p2)   ;;  %vm986_vm0 = vcmask (!%p176_p2), 261120  }
   0x6   : > { %179 = sbr.rel (%p176_p2) target bundleno = 479 (0x1df), region = 36  ;;  %1083 = vmatprep.subr.bf16.mxu0 (!%p176_p2), %v3052_v1  ;;  %2855 = vmatprep.subr.bf16.mxu1 (!%p176_p2), %v3052_v1  ;;  %p208_p3 = scmp.lt.s32.totalorder (!%p176_p2), %s2311_s19, 255  ;;  %v2900_v4 = vld [vmem:[%s3785_s1 + $0x18] sm:$0xff] (!%p176_p2)   ;;  %v2901_v5 = vld [vmem:[%s3785_s1 + $0x20] sm:$0xff] (!%p176_p2)   ;;  %v2902_v7 = vld [vmem:[%s3785_s1 + $0x28] sm:$0xff] (!%p176_p2)   ;;  %vm2173_vm1 = vcmask (!%p176_p2), 257024  }
   0x7   : > { %1084 = vmatpush1.bf16.msra.mxu0 (!%p176_p2), %v2897_v0  ;;  %2871 = vmatpush1.bf16.msra.mxu1 (!%p176_p2), %v2897_v0  ;;  %v2903_v9 = vld [vmem:[%s3785_s1 + $0x30] sm:$0xff] (!%p176_p2)   ;;  %v2904_v10 = vld [vmem:[%s3785_s1 + $0x38] sm:$0xff] (!%p176_p2)   ;;  %v2905_v11 = vld [vmem:[%s3785_s1 + $0x40] sm:$0xff] (!%p176_p2)  }
   0x8   : > { %1085 = vmatprep.subr.bf16.mxu0 (!%p176_p2), %v3052_v1  ;;  %2856 = vmatprep.subr.bf16.mxu1 (!%p176_p2), %v3052_v1  ;;  %v2906_v12 = vld [vmem:[%s3785_s1 + $0x48] sm:$0xff] (!%p176_p2)   ;;  %v2907_v13 = vld [vmem:[%s3785_s1 + $0x50] sm:$0xff] (!%p176_p2)   ;;  %v2908_v14 = vld [vmem:[%s3785_s1 + $0x58] sm:$0xff] (!%p176_p2)  }
   0x9   : > { %v2909_v15 = vld [vmem:[%s3785_s1 + $0x60] sm:$0xff] (!%p176_p2)   ;;  %v2910_v16 = vld [vmem:[%s3785_s1 + $0x68] sm:$0xff] (!%p176_p2)   ;;  %v2911_v17 = vld [vmem:[%s3785_s1 + $0x70] sm:$0xff] (!%p176_p2)  }
   0xa   : > { %v2912_v18 = vld [vmem:[%s3785_s1 + $0x78] sm:$0xff] (!%p176_p2)   ;;  %v2919_v19 = vld [vmem:[%s3785_s1 + $0x80] sm:$0xff] (!%p176_p2)   ;;  %v2944_v24 = vld [vmem:[%s3785_s1 + $0x88] sm:$0xff] (!%p176_p2)  }
   0xb   : > { %1086 = vmatpush1.bf16.msra.mxu0 (!%p176_p2), %v2898_v2  ;;  %2872 = vmatpush1.bf16.msra.mxu1 (!%p176_p2), %v2898_v2 }
   0xc   : > { %1087 = vmatprep.subr.bf16.mxu0 (!%p176_p2), %v3052_v1  ;;  %2857 = vmatprep.subr.bf16.mxu1 (!%p176_p2), %v3052_v1 }
   0xd   : > { %s3790_s19 = smov (!%p208_p3, %s2311_s19), 255 }
   0xe   : > { %s2887_s26 = smul.u32 12, %s3790_s19 }
   0xf   : > { %1088 = vmatpush1.bf16.msra.mxu0 %v2899_v3  ;;  %2873 = vmatpush1.bf16.msra.mxu1 %v2899_v3 }
  0x10   : > { %1089 = vmatprep.subr.bf16.mxu0 %v3052_v1  ;;  %2858 = vmatprep.subr.bf16.mxu1 %v3052_v1  ;;  %s3115_s5 = scalar_lea.vmem %s3784_s0, %s2887_s26 }
  0x11   : > { %v2915_v6 = vld [vmem:[%s3115_s5 + $0x4] ss:$12 sps:$4 sm:$0xff]   ;;  %v2913_v20 = vld [vmem:[%s3115_s5] ss:$12 sps:$4 sm:$0xff]   ;;  %v2920_v22 = vld [vmem:[%s3115_s5 + $0x1c] ss:$12 sps:$4 sm:$0xff]  }
  0x12   : > { %v2918_v8 = vld [vmem:[%s3115_s5 + $0x244] ss:$12 sps:$4 sm:$0xff]   ;;  %1115 = vmatprep.mubr.bf16.mxu0 %v2915_v6  ;;  %v2916_v21 = vld [vmem:[%s3115_s5 + $0x240] ss:$12 sps:$4 sm:$0xff]   ;;  %v2922_v23 = vld [vmem:[%s3115_s5 + $0x25c] ss:$12 sps:$4 sm:$0xff]  }
  0x13   : > { %1090 = vmatpush1.bf16.msra.mxu0 %v2900_v4  ;;  %2874 = vmatpush1.bf16.msra.mxu1 %v2900_v4  ;;  %v2924_v25 = vld [vmem:[%s3115_s5 + $0x18] ss:$12 sps:$4 sm:$0xff]   ;;  %v2926_v27 = vld [vmem:[%s3115_s5 + $0x34] ss:$12 sps:$4 sm:$0xff]   ;;  %v2930_v29 = vld [vmem:[%s3115_s5 + $0x30] ss:$12 sps:$4 sm:$0xff]  }
  0x14   : > { %1091 = vmatprep.subr.bf16.mxu0 %v3052_v1  ;;  %2859 = vmatprep.subr.bf16.mxu1 %v3052_v1  ;;  %v2925_v26 = vld [vmem:[%s3115_s5 + $0x258] ss:$12 sps:$4 sm:$0xff]   ;;  %v2928_v28 = vld [vmem:[%s3115_s5 + $0x274] ss:$12 sps:$4 sm:$0xff]   ;;  %v2931_v30 = vld [vmem:[%s3115_s5 + $0x270] ss:$12 sps:$4 sm:$0xff]  }
  0x15   : > { %1307 = vmatprep.mubr.bf16.mxu1 %v2918_v8  ;;  %v2932_v31 = vld [vmem:[%s3115_s5 + $0x4c] ss:$12 sps:$4 sm:$0xff]   ;;  %v2936_v33 = vld [vmem:[%s3115_s5 + $0x48] ss:$12 sps:$4 sm:$0xff]   ;;  %v2938_v35 = vld [vmem:[%s3115_s5 + $0x64] ss:$12 sps:$4 sm:$0xff]  }
  0x16   : > { %v2934_v32 = vld [vmem:[%s3115_s5 + $0x28c] ss:$12 sps:$4 sm:$0xff]   ;;  %v2937_v34 = vld [vmem:[%s3115_s5 + $0x288] ss:$12 sps:$4 sm:$0xff]   ;;  %v2940_v36 = vld [vmem:[%s3115_s5 + $0x2a4] ss:$12 sps:$4 sm:$0xff]  }
  0x17   : > { %1092 = vmatpush1.bf16.msra.mxu0 %v2901_v5  ;;  %2875 = vmatpush1.bf16.msra.mxu1 %v2901_v5  ;;  %v2942_v37 = vld [vmem:[%s3115_s5 + $0x60] ss:$12 sps:$4 sm:$0xff]   ;;  %v2945_v39 = vld [vmem:[%s3115_s5 + $0x7c] ss:$12 sps:$4 sm:$0xff]   ;;  %v2949_v41 = vld [vmem:[%s3115_s5 + $0x78] ss:$12 sps:$4 sm:$0xff]  }
  0x18   : > { %1093 = vmatprep.subr.bf16.mxu0 %v3052_v1  ;;  %2860 = vmatprep.subr.bf16.mxu1 %v3052_v1  ;;  %v2943_v38 = vld [vmem:[%s3115_s5 + $0x2a0] ss:$12 sps:$4 sm:$0xff]   ;;  %v2947_v40 = vld [vmem:[%s3115_s5 + $0x2bc] ss:$12 sps:$4 sm:$0xff]   ;;  %v2950_v42 = vld [vmem:[%s3115_s5 + $0x2b8] ss:$12 sps:$4 sm:$0xff]  }
  0x19   : > { %v2951_v43 = vld [vmem:[%s3115_s5 + $0x94] ss:$12 sps:$4 sm:$0xff]   ;;  %v2955_v45 = vld [vmem:[%s3115_s5 + $0x90] ss:$12 sps:$4 sm:$0xff]   ;;  %v2957_v47 = vld [vmem:[%s3115_s5 + $0xac] ss:$12 sps:$4 sm:$0xff]  }
  0x1a   : > { %v2953_v44 = vld [vmem:[%s3115_s5 + $0x2d4] ss:$12 sps:$4 sm:$0xff]   ;;  %v2956_v46 = vld [vmem:[%s3115_s5 + $0x2d0] ss:$12 sps:$4 sm:$0xff]   ;;  %v2959_v48 = vld [vmem:[%s3115_s5 + $0x2ec] ss:$12 sps:$4 sm:$0xff]  }
  0x1b   : > { %1094 = vmatpush1.bf16.msra.mxu0 %v2902_v7  ;;  %2876 = vmatpush1.bf16.msra.mxu1 %v2902_v7  ;;  %v2961_v49 = vld [vmem:[%s3115_s5 + $0xa8] ss:$12 sps:$4 sm:$0xff]   ;;  %v2963_v51 = vld [vmem:[%s3115_s5 + $0xc4] ss:$12 sps:$4 sm:$0xff]   ;;  %v2966_v53 = vld [vmem:[%s3115_s5 + $0xc0] ss:$12 sps:$4 sm:$0xff]  }
  0x1c   : > { %1095 = vmatprep.subr.bf16.mxu0 %v3052_v1  ;;  %2861 = vmatprep.subr.bf16.mxu1 %v3052_v1  ;;  %v2962_v50 = vld [vmem:[%s3115_s5 + $0x2e8] ss:$12 sps:$4 sm:$0xff]   ;;  %v2967_v54 = vld [vmem:[%s3115_s5 + $0x20] ss:$12 sps:$4 sm:$0xff]   ;;  %v2970_v56 = vld [vmem:[%s3115_s5 + $0x38] ss:$12 sps:$4 sm:$0xff]  }
  0x1d   : > { %v2965_v52 = vld [vmem:[%s3115_s5 + $0x8] ss:$12 sps:$4 sm:$0xff]   ;;  %v2971_v57 = vld [vmem:[%s3115_s5 + $0xd8] ss:$12 sps:$4 sm:$0xff]   ;;  %v2972_v58 = vld [vmem:[%s3115_s5 + $0x50] ss:$12 sps:$4 sm:$0xff]  }
  0x1e   : > { %v2968_v55 = vld [vmem:[%s3115_s5 + $0xdc] ss:$12 sps:$4 sm:$0xff]   ;;  %v2973_v59 = vld [vmem:[%s3115_s5 + $0xf4] ss:$12 sps:$4 sm:$0xff]   ;;  %v2978_v63 = vld [vmem:[%s3115_s5 + $0x10c] ss:$12 sps:$4 sm:$0xff]  }
  0x1f   : > { %1096 = vmatpush1.bf16.msra.mxu0 %v2903_v9  ;;  %2877 = vmatpush1.bf16.msra.mxu1 %v2903_v9  ;;  %v2975_v60 = vld [vmem:[%s3115_s5 + $0x68] ss:$12 sps:$4 sm:$0xff]   ;;  %v2976_v61 = vld [vmem:[%s3115_s5 + $0xf0] ss:$12 sps:$4 sm:$0xff]   ;;  %v2977_v62 = vld [vmem:[%s3115_s5 + $0x80] ss:$12 sps:$4 sm:$0xff]  }
  0x20   : > { %1097 = vmatprep.subr.bf16.mxu0 %v3052_v1  ;;  %2862 = vmatprep.subr.bf16.mxu1 %v3052_v1  ;;  %v2980_v0 = vld [vmem:[%s3115_s5 + $0x98] ss:$12 sps:$4 sm:$0xff]   ;;  %v2982_v2 = vld [vmem:[%s3115_s5 + $0xb0] ss:$12 sps:$4 sm:$0xff]   ;;  %v2985_v4 = vld [vmem:[%s3115_s5 + $0xc8] ss:$12 sps:$4 sm:$0xff]  }
  0x21   : > { %v2983_v3 = vld [vmem:[%s3115_s5 + $0x124] ss:$12 sps:$4 sm:$0xff]   ;;  %v2986_v5 = vld [vmem:[%s3115_s5 + $0x120] ss:$12 sps:$4 sm:$0xff]   ;;  %v2988_v7 = vld [vmem:[%s3115_s5 + $0x13c] ss:$12 sps:$4 sm:$0xff]  }
  0x22   : > { %v2987_v6 = vld [vmem:[%s3115_s5 + $0xe0] ss:$12 sps:$4 sm:$0xff]   ;;  %v2990_v8 = vld [vmem:[%s3115_s5 + $0xf8] ss:$12 sps:$4 sm:$0xff]  }
  0x23   : > { %1098 = vmatpush1.bf16.msra.mxu0 %v2904_v10  ;;  %2878 = vmatpush1.bf16.msra.mxu1 %v2904_v10  ;;  %v2991_v9 = vld [vmem:[%s3115_s5 + $0x138] ss:$12 sps:$4 sm:$0xff]   ;;  %v2992_v10 = vld [vmem:[%s3115_s5 + $0x110] ss:$12 sps:$4 sm:$0xff]  }
  0x24   : > { %1099 = vmatprep.subr.bf16.mxu0 %v3052_v1  ;;  %2863 = vmatprep.subr.bf16.mxu1 %v3052_v1 }
  0x27   : > { %1100 = vmatpush1.bf16.msra.mxu0 %v2905_v11  ;;  %2879 = vmatpush1.bf16.msra.mxu1 %v2905_v11  ;;  %v2993_v11 = vld [vmem:[%s3115_s5 + $0x154] ss:$12 sps:$4 sm:$0xff]  }
  0x28   : > { %1101 = vmatprep.subr.bf16.mxu0 %v3052_v1  ;;  %2864 = vmatprep.subr.bf16.mxu1 %v3052_v1 }
  0x2b   : > { %1102 = vmatpush1.bf16.msra.mxu0 %v2906_v12  ;;  %2880 = vmatpush1.bf16.msra.mxu1 %v2906_v12  ;;  %v2995_v12 = vld [vmem:[%s3115_s5 + $0x128] ss:$12 sps:$4 sm:$0xff]  }
  0x2c   : > { %1103 = vmatprep.subr.bf16.mxu0 %v3052_v1  ;;  %2865 = vmatprep.subr.bf16.mxu1 %v3052_v1 }
  0x2f   : > { %1104 = vmatpush1.bf16.msra.mxu0 %v2907_v13  ;;  %2881 = vmatpush1.bf16.msra.mxu1 %v2907_v13  ;;  %v2996_v13 = vld [vmem:[%s3115_s5 + $0x150] ss:$12 sps:$4 sm:$0xff]  }
  0x30   : > { %1105 = vmatprep.subr.bf16.mxu0 %v3052_v1  ;;  %2866 = vmatprep.subr.bf16.mxu1 %v3052_v1 }
  0x33   : > { %1106 = vmatpush1.bf16.msra.mxu0 %v2908_v14  ;;  %2882 = vmatpush1.bf16.msra.mxu1 %v2908_v14  ;;  %v2997_v14 = vld [vmem:[%s3115_s5 + $0x140] ss:$12 sps:$4 sm:$0xff]  }
  0x34   : > { %1107 = vmatprep.subr.bf16.mxu0 %v3052_v1  ;;  %2867 = vmatprep.subr.bf16.mxu1 %v3052_v1 }
  0x37   : > { %1108 = vmatpush1.bf16.msra.mxu0 %v2909_v15  ;;  %2883 = vmatpush1.bf16.msra.mxu1 %v2909_v15  ;;  %v2998_v15 = vld [vmem:[%s3115_s5 + $0x16c] ss:$12 sps:$4 sm:$0xff]  }
  0x38   : > { %1109 = vmatprep.subr.bf16.mxu0 %v3052_v1  ;;  %2868 = vmatprep.subr.bf16.mxu1 %v3052_v1 }
  0x3b   : > { %1110 = vmatpush1.bf16.msra.mxu0 %v2910_v16  ;;  %2884 = vmatpush1.bf16.msra.mxu1 %v2910_v16  ;;  %v3000_v16 = vld [vmem:[%s3115_s5 + $0x158] ss:$12 sps:$4 sm:$0xff]  }
  0x3c   : > { %1111 = vmatprep.subr.bf16.mxu0 %v3052_v1  ;;  %2869 = vmatprep.subr.bf16.mxu1 %v3052_v1 }
  0x3f   : > { %1112 = vmatpush1.bf16.msra.mxu0 %v2911_v17  ;;  %2885 = vmatpush1.bf16.msra.mxu1 %v2911_v17  ;;  %v3001_v17 = vld [vmem:[%s3115_s5 + $0x168] ss:$12 sps:$4 sm:$0xff]  }
  0x40   : > { %1113 = vmatprep.subr.bf16.mxu0 %v3052_v1  ;;  %2870 = vmatprep.subr.bf16.mxu1 %v3052_v1  ;;  %v2981_v1 = vld [vmem:[%s3115_s5 + $0x108] ss:$12 sps:$4 sm:$0xff]  }
  0x43   : > { %1114 = vmatpush1.bf16.msra.mxu0 %v2912_v18  ;;  %2886 = vmatpush1.bf16.msra.mxu1 %v2912_v18  ;;  %v3002_v18 = vld [vmem:[%s3115_s5 + $0x170] ss:$12 sps:$4 sm:$0xff]  }
  0x44   : > { %2787 = vmatprep.subr.bf16.mxu1 %v2919_v19 }
  0x46   : > { %1116 = vmatmul.mubr.bf16.vlgmr.msra.gmra.mrb[0].mxu0 %v2913_v20  ;;  %1308 = vmatmul.mubr.bf16.vlgmr.msra.gmra.mrb[0].mxu1 %v2916_v21  ;;  %v3005_v20 = vld [vmem:[%s3115_s5 + $0x188] ss:$12 sps:$4 sm:$0xff]   ;;  %v3006_v21 = vld [vmem:[%s3115_s5 + $0x180] ss:$12 sps:$4 sm:$0xff]  }
  0x47   : > { %2788 = vmatpush3.bf16.msra.mxu1 %v2919_v19  ;;  %1123 = vmatprep.mubr.bf16.mxu0 %v2920_v22  ;;  %v3003_v19 = vld [vmem:[%s3115_s5 + $0x184] ss:$12 sps:$4 sm:$0xff]   ;;  %v3007_v22 = vld [vmem:[%s3115_s5 + $0x1a0] ss:$12 sps:$4 sm:$0xff]  }
  0x48   : > { %1315 = vmatprep.mubr.bf16.mxu1 %v2922_v23  ;;  %2789 = vmatprep.subr.bf16.mxu1 %v2944_v24  ;;  %v3008_v23 = vld [vmem:[%s3115_s5 + $0x19c] ss:$12 sps:$4 sm:$0xff]  }
  0x4b   : > { %2790 = vmatpush3.bf16.msra.mxu1 %v2944_v24  ;;  %v3010_v24 = vld [vmem:[%s3115_s5 + $0x1b8] ss:$12 sps:$4 sm:$0xff]  }
  0x4e   : > { %1124 = vmatmul.mubr.bf16.gmra.mrb[4].mxu0 %v2924_v25  ;;  %1316 = vmatmul.mubr.bf16.gmra.mrb[4].mxu1 %v2925_v26  ;;  %v3011_v25 = vld [vmem:[%s3115_s5 + $0x198] ss:$12 sps:$4 sm:$0xff]   ;;  %v3012_v26 = vld [vmem:[%s3115_s5 + $0x1d0] ss:$12 sps:$4 sm:$0xff]  }
  0x4f   : > { %1131 = vmatprep.mubr.bf16.mxu0 %v2926_v27  ;;  %1323 = vmatprep.mubr.bf16.mxu1 %v2928_v28  ;;  %v3013_v27 = vld [vmem:[%s3115_s5 + $0x1b4] ss:$12 sps:$4 sm:$0xff]  }
  0x50   : > { %v3015_v28 = vld [vmem:[%s3115_s5 + $0x1e8] ss:$12 sps:$4 sm:$0xff]  }
  0x56   : > { %1132 = vmatmul.mubr.bf16.gmra.mrb[8].mxu0 %v2930_v29  ;;  %1324 = vmatmul.mubr.bf16.gmra.mrb[8].mxu1 %v2931_v30  ;;  %v3016_v29 = vld [vmem:[%s3115_s5 + $0x1b0] ss:$12 sps:$4 sm:$0xff]   ;;  %v3017_v30 = vld [vmem:[%s3115_s5 + $0x200] ss:$12 sps:$4 sm:$0xff]  }
  0x57   : > { %1139 = vmatprep.mubr.bf16.mxu0 %v2932_v31  ;;  %1331 = vmatprep.mubr.bf16.mxu1 %v2934_v32  ;;  %v3018_v31 = vld [vmem:[%s3115_s5 + $0x1cc] ss:$12 sps:$4 sm:$0xff]  }
  0x58   : > { %v3020_v32 = vld [vmem:[%s3115_s5 + $0x218] ss:$12 sps:$4 sm:$0xff]  }
  0x5e   : > { %1140 = vmatmul.mubr.bf16.gmra.mrb[12].mxu0 %v2936_v33  ;;  %1332 = vmatmul.mubr.bf16.gmra.mrb[12].mxu1 %v2937_v34  ;;  %v3021_v33 = vld [vmem:[%s3115_s5 + $0x1c8] ss:$12 sps:$4 sm:$0xff]   ;;  %v3022_v34 = vld [vmem:[%s3115_s5 + $0x230] ss:$12 sps:$4 sm:$0xff]  }
  0x5f   : > { %1147 = vmatprep.mubr.bf16.mxu0 %v2938_v35  ;;  %1339 = vmatprep.mubr.bf16.mxu1 %v2940_v36  ;;  %v3023_v35 = vld [vmem:[%s3115_s5 + $0x1e4] ss:$12 sps:$4 sm:$0xff]   ;;  %v3025_v36 = vld [vmem:[%s3115_s5 + $0x248] ss:$12 sps:$4 sm:$0xff]  }
  0x66   : > { %1148 = vmatmul.mubr.bf16.gmra.mrb[16].mxu0 %v2942_v37  ;;  %1340 = vmatmul.mubr.bf16.gmra.mrb[16].mxu1 %v2943_v38  ;;  %v3026_v37 = vld [vmem:[%s3115_s5 + $0x1e0] ss:$12 sps:$4 sm:$0xff]  }
  0x67   : > { %1155 = vmatprep.mubr.bf16.mxu0 %v2945_v39  ;;  %1347 = vmatprep.mubr.bf16.mxu1 %v2947_v40  ;;  %v3027_v38 = vld [vmem:[%s3115_s5 + $0x260] ss:$12 sps:$4 sm:$0xff]   ;;  %v3028_v39 = vld [vmem:[%s3115_s5 + $0x1fc] ss:$12 sps:$4 sm:$0xff]   ;;  %v3030_v40 = vld [vmem:[%s3115_s5 + $0x278] ss:$12 sps:$4 sm:$0xff]  }
  0x6e   : > { %1156 = vmatmul.mubr.bf16.gmra.mrb[20].mxu0 %v2949_v41  ;;  %1348 = vmatmul.mubr.bf16.gmra.mrb[20].mxu1 %v2950_v42  ;;  %v3031_v41 = vld [vmem:[%s3115_s5 + $0x1f8] ss:$12 sps:$4 sm:$0xff]   ;;  %v3032_v42 = vld [vmem:[%s3115_s5 + $0x290] ss:$12 sps:$4 sm:$0xff]  }
  0x6f   : > { %1163 = vmatprep.mubr.bf16.mxu0 %v2951_v43  ;;  %1355 = vmatprep.mubr.bf16.mxu1 %v2953_v44  ;;  %v3033_v43 = vld [vmem:[%s3115_s5 + $0x214] ss:$12 sps:$4 sm:$0xff]  }
  0x70   : > { %v3035_v44 = vld [vmem:[%s3115_s5 + $0x2a8] ss:$12 sps:$4 sm:$0xff]  }
  0x76   : > { %1164 = vmatmul.mubr.bf16.gmra.mrb[24].mxu0 %v2955_v45  ;;  %1356 = vmatmul.mubr.bf16.gmra.mrb[24].mxu1 %v2956_v46  ;;  %v3036_v45 = vld [vmem:[%s3115_s5 + $0x210] ss:$12 sps:$4 sm:$0xff]   ;;  %v3037_v46 = vld [vmem:[%s3115_s5 + $0x2c0] ss:$12 sps:$4 sm:$0xff]  }
  0x77   : > { %1171 = vmatprep.mubr.bf16.mxu0 %v2957_v47  ;;  %1363 = vmatprep.mubr.bf16.mxu1 %v2959_v48  ;;  %v3038_v47 = vld [vmem:[%s3115_s5 + $0x22c] ss:$12 sps:$4 sm:$0xff]  }
  0x78   : > { %v3040_v48 = vld [vmem:[%s3115_s5 + $0x2d8] ss:$12 sps:$4 sm:$0xff]  }
  0x7e   : > { %1172 = vmatmul.mubr.bf16.gmra.mrb[28].mxu0 %v2961_v49  ;;  %1364 = vmatmul.mubr.bf16.gmra.mrb[28].mxu1 %v2962_v50  ;;  %v3041_v49 = vld [vmem:[%s3115_s5 + $0x228] ss:$12 sps:$4 sm:$0xff]   ;;  %v3042_v50 = vld [vmem:[%s3115_s5 + $0x2f0] ss:$12 sps:$4 sm:$0xff]   ;;  %s2314_s5 = sshll.u32 %s3790_s19, 2 }
  0x7f   : > { %1179 = vmatprep.mubr.bf16.mxu0 %v2963_v51  ;;  %2791 = vmatprep.mubr.msk.bf16.mxu1 %vm986_vm0, %v2965_v52  ;;  %s3372_s11 = scalar_lea.vmem %s3787_s3, %s2314_s5  ;;  %s3403_s17 = scalar_lea.vmem %s3788_s4, %s2314_s5 }
  0x86   : > { %1180 = vmatmul.mubr.bf16.gmra.mrb[32].mxu0 %v2966_v53  ;;  %2792 = vmatmul.mubr.msk.bf16.vlgmr.msra.gmra.mrb[32].mxu1 %vm986_vm0, %v2967_v54 }
  0x87   : > { %1187 = vmatprep.mubr.bf16.mxu0 %v2968_v55  ;;  %2795 = vmatprep.mubr.msk.bf16.mxu1 %vm986_vm0, %v2970_v56 }
  0x8e   : > { %1188 = vmatmul.mubr.bf16.gmra.mrb[36].mxu0 %v2971_v57  ;;  %2796 = vmatmul.mubr.msk.bf16.gmra.mrb[36].mxu1 %vm986_vm0, %v2972_v58 }
  0x8f   : > { %1195 = vmatprep.mubr.bf16.mxu0 %v2973_v59  ;;  %2799 = vmatprep.mubr.msk.bf16.mxu1 %vm986_vm0, %v2975_v60 }
  0x96   : > { %1196 = vmatmul.mubr.bf16.gmra.mrb[40].mxu0 %v2976_v61  ;;  %2800 = vmatmul.mubr.msk.bf16.gmra.mrb[40].mxu1 %vm986_vm0, %v2977_v62 }
  0x97   : > { %1203 = vmatprep.mubr.bf16.mxu0 %v2978_v63  ;;  %2803 = vmatprep.mubr.msk.bf16.mxu1 %vm986_vm0, %v2980_v0 }
  0x9e   : > { %1204 = vmatmul.mubr.bf16.gmra.mrb[44].mxu0 %v2981_v1  ;;  %2804 = vmatmul.mubr.msk.bf16.gmra.mrb[44].mxu1 %vm986_vm0, %v2982_v2 }
  0x9f   : > { %1211 = vmatprep.mubr.bf16.mxu0 %v2983_v3  ;;  %2807 = vmatprep.mubr.msk.bf16.mxu1 %vm986_vm0, %v2985_v4 }
  0xa6   : > { %1212 = vmatmul.mubr.bf16.gmra.mrb[48].mxu0 %v2986_v5  ;;  %2808 = vmatmul.mubr.msk.bf16.gmra.mrb[48].mxu1 %vm986_vm0, %v2987_v6 }
  0xa7   : > { %1219 = vmatprep.mubr.bf16.mxu0 %v2988_v7  ;;  %2811 = vmatprep.mubr.msk.bf16.mxu1 %vm986_vm0, %v2990_v8 }
  0xae   : > { %1220 = vmatmul.mubr.bf16.gmra.mrb[52].mxu0 %v2991_v9  ;;  %2812 = vmatmul.mubr.msk.bf16.gmra.mrb[52].mxu1 %vm986_vm0, %v2992_v10 }
  0xaf   : > { %1227 = vmatprep.mubr.bf16.mxu0 %v2993_v11  ;;  %2815 = vmatprep.mubr.msk.bf16.mxu1 %vm986_vm0, %v2995_v12 }
  0xb6   : > { %1228 = vmatmul.mubr.bf16.gmra.mrb[56].mxu0 %v2996_v13  ;;  %2816 = vmatmul.mubr.msk.bf16.gmra.mrb[56].mxu1 %vm986_vm0, %v2997_v14 }
  0xb7   : > { %1235 = vmatprep.mubr.bf16.mxu0 %v2998_v15  ;;  %2819 = vmatprep.mubr.msk.bf16.mxu1 %vm986_vm0, %v3000_v16 }
  0xbe   : > { %1236 = vmatmul.mubr.bf16.gmra.mrb[60].mxu0 %v3001_v17  ;;  %2820 = vmatmul.mubr.msk.bf16.gmra.mrb[60].mxu1 %vm986_vm0, %v3002_v18 }
  0xbf   : > { %1243 = vmatprep.mubr.bf16.mxu0 %v3003_v19  ;;  %2823 = vmatprep.mubr.msk.bf16.mxu1 %vm986_vm0, %v3005_v20 }
  0xc6   : > { %1244 = vmatmul.mubr.bf16.gmra.mrb[64].mxu0 %v3006_v21  ;;  %2824 = vmatmul.mubr.msk.bf16.gmra.mrb[64].mxu1 %vm986_vm0, %v3007_v22 }
  0xc7   : > { %1251 = vmatprep.mubr.bf16.mxu0 %v3008_v23  ;;  %2827 = vmatprep.mubr.msk.bf16.mxu1 %vm986_vm0, %v3010_v24 }
  0xce   : > { %1252 = vmatmul.mubr.bf16.gmra.mrb[68].mxu0 %v3011_v25  ;;  %2828 = vmatmul.mubr.msk.bf16.gmra.mrb[68].mxu1 %vm986_vm0, %v3012_v26 }
  0xcf   : > { %1259 = vmatprep.mubr.bf16.mxu0 %v3013_v27  ;;  %2831 = vmatprep.mubr.msk.bf16.mxu1 %vm986_vm0, %v3015_v28 }
  0xd6   : > { %1260 = vmatmul.mubr.bf16.gmra.mrb[72].mxu0 %v3016_v29  ;;  %2832 = vmatmul.mubr.msk.bf16.gmra.mrb[72].mxu1 %vm986_vm0, %v3017_v30 }
  0xd7   : > { %1267 = vmatprep.mubr.bf16.mxu0 %v3018_v31  ;;  %2835 = vmatprep.mubr.msk.bf16.mxu1 %vm986_vm0, %v3020_v32 }
  0xde   : > { %1268 = vmatmul.mubr.bf16.gmra.mrb[76].mxu0 %v3021_v33  ;;  %2836 = vmatmul.mubr.msk.bf16.gmra.mrb[76].mxu1 %vm986_vm0, %v3022_v34 }
  0xdf   : > { %1275 = vmatprep.mubr.bf16.mxu0 %v3023_v35  ;;  %2839 = vmatprep.mubr.msk.bf16.mxu1 %vm986_vm0, %v3025_v36 }
  0xe6   : > { %1276 = vmatmul.mubr.bf16.gmra.mrb[80].mxu0 %v3026_v37  ;;  %2840 = vmatmul.mubr.msk.bf16.gmra.mrb[80].mxu1 %vm986_vm0, %v3027_v38 }
  0xe7   : > { %1283 = vmatprep.mubr.bf16.mxu0 %v3028_v39  ;;  %2843 = vmatprep.mubr.msk.bf16.mxu1 %vm986_vm0, %v3030_v40 }
  0xee   : > { %1284 = vmatmul.mubr.bf16.gmra.mrb[84].mxu0 %v3031_v41  ;;  %2844 = vmatmul.mubr.msk.bf16.gmra.mrb[84].mxu1 %vm986_vm0, %v3032_v42 }
  0xef   : > { %1291 = vmatprep.mubr.bf16.mxu0 %v3033_v43  ;;  %2847 = vmatprep.mubr.msk.bf16.mxu1 %vm986_vm0, %v3035_v44 }
  0xf6   : > { %1292 = vmatmul.mubr.bf16.gmra.mrb[88].mxu0 %v3036_v45  ;;  %2848 = vmatmul.mubr.msk.bf16.gmra.mrb[88].mxu1 %vm986_vm0, %v3037_v46 }
  0xf7   : > { %1299 = vmatprep.mubr.bf16.mxu0 %v3038_v47  ;;  %2851 = vmatprep.mubr.msk.bf16.mxu1 %vm986_vm0, %v3040_v48 }
  0xfe   : > { %1300 = vmatmul.mubr.bf16.gmra.mrb[92].mxu0 %v3041_v49  ;;  %2852 = vmatmul.mubr.msk.bf16.gmra.mrb[92].mxu1 %vm986_vm0, %v3042_v50 }
 0x119   : > { %v3308_v51 = vpop.f32.mrb[0].mxu0  ;;  %v3310_v52 = vpop.f32.mrb[0].mxu1 }
 0x11a   : > { %v1119_v53 = vpop.f32.mrb[1].mxu0  ;;  %v1311_v54 = vpop.f32.mrb[1].mxu1 }
 0x11b   : > { %v3312_v55 = vpop.f32.mrb[2].mxu0  ;;  %v3314_v56 = vpop.f32.mrb[2].mxu1  ;;  %v2722_v53 = vld [vmem:[%s3372_s11 + $0x8] sm:$0xff]   ;;  %v3382_v54 = vld [vmem:[%s3786_s2] ss:$0 sm:$0xff] }
 0x11c   : > { %v1122_v57 = vpop.f32.mrb[3].mxu0  ;;  %v1314_v58 = vpop.f32.mrb[3].mxu1 }
 0x11d   : > { %v2595_v57 = vld [vmem:[%s3372_s11] sm:$0xff]  }
 0x121   : > { %v1125_v59 = vpop.f32.mrb[4].mxu0  ;;  %v3316_v60 = vpop.f32.mrb[4].mxu1 }
 0x122   : > { %v1127_v61 = vpop.f32.mrb[5].mxu0  ;;  %v1319_v62 = vpop.f32.mrb[5].mxu1  ;;  %v1126_v58 = vadd.f32 %v3382_v54, %v1125_v59  ;;  %v1121_v59 = vadd.f32 %v3382_v54, %v3312_v55 }
 0x123   : > { %v3318_v63 = vpop.f32.mrb[6].mxu0  ;;  %v3320_v0 = vpop.f32.mrb[6].mxu1  ;;  %v2600_v61 = vunpack.c.l.bf16 %v2722_v53  ;;  %v1118_v62 = vadd.f32 %v3382_v54, %v3308_v51 }
 0x124   : > { %v1130_v1 = vpop.f32.mrb[7].mxu0  ;;  %v1322_v2 = vpop.f32.mrb[7].mxu1 }
 0x129   : > { %v3322_v3 = vpop.f32.mrb[8].mxu0  ;;  %v3324_v4 = vpop.f32.mrb[8].mxu1 }
 0x12a   : > { %v1135_v5 = vpop.f32.mrb[9].mxu0  ;;  %v1327_v6 = vpop.f32.mrb[9].mxu1 }
 0x12b   : > { %v3326_v7 = vpop.f32.mrb[10].mxu0  ;;  %v3328_v8 = vpop.f32.mrb[10].mxu1  ;;  %v2596_v5 = vunpack.c.l.bf16 %v2595_v57  ;;  %v1129_v6 = vadd.f32 %v3382_v54, %v3318_v63 }
 0x12c   : > { %v1138_v9 = vpop.f32.mrb[11].mxu0  ;;  %v1330_v10 = vpop.f32.mrb[11].mxu1 }
 0x131   : > { %v3330_v11 = vpop.f32.mrb[12].mxu0  ;;  %v3332_v12 = vpop.f32.mrb[12].mxu1 }
 0x132   : > { %v1143_v13 = vpop.f32.mrb[13].mxu0  ;;  %v1335_v14 = vpop.f32.mrb[13].mxu1 }
 0x133   : > { %v3334_v15 = vpop.f32.mrb[14].mxu0  ;;  %v3336_v16 = vpop.f32.mrb[14].mxu1  ;;  %v2601_v14 = vunpack.c.h.bf16 %v2722_v53 }
 0x134   : > { %v1146_v17 = vpop.f32.mrb[15].mxu0  ;;  %v1338_v18 = vpop.f32.mrb[15].mxu1 }
 0x139   : > { %v3338_v19 = vpop.f32.mrb[16].mxu0  ;;  %v3340_v20 = vpop.f32.mrb[16].mxu1 }
 0x13a   : > { %v1151_v21 = vpop.f32.mrb[17].mxu0  ;;  %v1343_v22 = vpop.f32.mrb[17].mxu1 }
 0x13b   : > { %v3342_v23 = vpop.f32.mrb[18].mxu0  ;;  %v3344_v24 = vpop.f32.mrb[18].mxu1  ;;  %v2597_v21 = vunpack.c.h.bf16 %v2595_v57 }
 0x13c   : > { %v1154_v25 = vpop.f32.mrb[19].mxu0  ;;  %v1346_v26 = vpop.f32.mrb[19].mxu1 }
 0x141   : > { %v3346_v27 = vpop.f32.mrb[20].mxu0  ;;  %v3348_v28 = vpop.f32.mrb[20].mxu1 }
 0x142   : > { %v1159_v29 = vpop.f32.mrb[21].mxu0  ;;  %v1351_v30 = vpop.f32.mrb[21].mxu1 }
 0x143   : > { %v3350_v31 = vpop.f32.mrb[22].mxu0  ;;  %v3352_v32 = vpop.f32.mrb[22].mxu1 }
 0x144   : > { %v1162_v33 = vpop.f32.mrb[23].mxu0  ;;  %v1354_v34 = vpop.f32.mrb[23].mxu1 }
 0x145   : > { %v2724_v33 = vld [vmem:[%s3372_s11 + $0x18] sm:$0xff]  }
 0x149   : > { %v3354_v35 = vpop.f32.mrb[24].mxu0  ;;  %v3356_v36 = vpop.f32.mrb[24].mxu1 }
 0x14a   : > { %v1167_v37 = vpop.f32.mrb[25].mxu0  ;;  %v1359_v38 = vpop.f32.mrb[25].mxu1 }
 0x14b   : > { %v3358_v39 = vpop.f32.mrb[26].mxu0  ;;  %v3360_v40 = vpop.f32.mrb[26].mxu1  ;;  %v2723_v38 = vld [vmem:[%s3372_s11 + $0x10] sm:$0xff]  }
 0x14c   : > { %v1170_v41 = vpop.f32.mrb[27].mxu0  ;;  %v1362_v42 = vpop.f32.mrb[27].mxu1 }
 0x14d   : > { %v1142_v42 = vadd.f32 %v3382_v54, %v3330_v11 }
 0x151   : > { %v3363_v43 = vpop.f32.mrb[28].mxu0  ;;  %v3365_v44 = vpop.f32.mrb[28].mxu1 }
 0x152   : > { %v1175_v45 = vpop.f32.mrb[29].mxu0  ;;  %v1367_v46 = vpop.f32.mrb[29].mxu1 }
 0x153   : > { %v3374_v47 = vpop.f32.mrb[30].mxu0  ;;  %v3376_v48 = vpop.f32.mrb[30].mxu1 }
 0x154   : > { %v1178_v49 = vpop.f32.mrb[31].mxu0  ;;  %v1370_v50 = vpop.f32.mrb[31].mxu1 }
 0x155   : > { %v2608_v49 = vunpack.c.l.bf16 %v2724_v33  ;;  %v1134_v50 = vadd.f32 %v3382_v54, %v3322_v3  ;;  %v1137_v3 = vadd.f32 %v3382_v54, %v3326_v7  ;;  %v2726_v7 = vld [vmem:[%s3372_s11 + $0x28] sm:$0xff]  }
 0x159   : > { %v3388_v1 = vpop.f32.mrb[32].mxu0  ;;  %v2793_v2 = vpop.f32.mrb[32].mxu1 }
 0x15a   : > { %v1415_v9 = vadd.f32 %v2793_v2, %v1126_v58  ;;  %v1183_v10 = vpop.f32.mrb[33].mxu0  ;;  %v1406_v13 = vpop.f32.mrb[33].mxu1  ;;  %v1145_v2 = vadd.f32 %v3382_v54, %v3334_v15 }
 0x15b   : > { %v1407_v17 = vadd.f32 %v1406_v13, %v1118_v62  ;;  %v3394_v18 = vpop.f32.mrb[34].mxu0  ;;  %v2794_v51 = vpop.f32.mrb[34].mxu1  ;;  %v2604_v62 = vunpack.c.l.bf16 %v2723_v38  ;;  %v2609_v10 = vunpack.c.h.bf16 %v2724_v33  ;;  %v2725_v33 = vld [vmem:[%s3372_s11 + $0x20] sm:$0xff]  }
 0x15c   : > { %v1791_v22 = vadd.f32 %v2600_v61, %v1415_v9  ;;  %v1418_v25 = vadd.f32 %v2794_v51, %v1129_v6  ;;  %v1186_v26 = vpop.f32.mrb[35].mxu0  ;;  %v1409_v29 = vpop.f32.mrb[35].mxu1 }
 0x15d   : > { %v1789_v63 = vadd.f32 %v2596_v5, %v1407_v17  ;;  %v1410_v30 = vadd.f32 %v1409_v29, %v1121_v59  ;;  %v2605_v17 = vunpack.c.h.bf16 %v2723_v38  ;;  %v1158_v38 = vadd.f32 %v3382_v54, %v3346_v27 }
 0x15e   : > { %v1855_v34 = vmax.f32 %v1791_v22, 0.0  ;;  %v1792_v37 = vadd.f32 %v2601_v14, %v1418_v25 }
 0x15f   : > { %v1853_v55 = vmax.f32 %v1789_v63, 0.0  ;;  %v1790_v41 = vadd.f32 %v2597_v21, %v1410_v30 }
 0x160   : > { %v2532_v45 = vpack.c.bf16 %v1855_v34, %v1855_v34  ;;  %v1856_v46 = vmax.f32 %v1792_v37, 0.0 }
 0x161   : > { %v2530_v53 = vpack.c.bf16 %v1853_v55, %v1853_v55  ;;  %v1854_v57 = vmax.f32 %v1790_v41, 0.0  ;;  %v3409_v58 = vpop.f32.mrb[36].mxu0  ;;  %v2797_v61 = vpop.f32.mrb[36].mxu1 }
 0x162   : > { %2176 = vst.msk [vmem:[%s3403_s17 + $0x8] sm:$0xf] %vm2173_vm1, %v2532_v45  ;;  %v2533_v11 = vpack.c.bf16 %v1856_v46, %v1856_v46  ;;  %v1431_v5 = vadd.f32 %v2797_v61, %v1142_v42  ;;  %v1191_v6 = vpop.f32.mrb[37].mxu0  ;;  %v1422_v9 = vpop.f32.mrb[37].mxu1  ;;  %v2616_v42 = vunpack.c.l.bf16 %v2726_v7  ;;  %v1150_v45 = vadd.f32 %v3382_v54, %v3338_v19 }
 0x163   : > { %2174 = vst.msk [vmem:[%s3403_s17] sm:$0xf] %vm2173_vm1, %v2530_v53  ;;  %v2531_v13 = vpack.c.bf16 %v1854_v57, %v1854_v57  ;;  %v1423_v14 = vadd.f32 %v1422_v9, %v1134_v50  ;;  %v3419_v59 = vpop.f32.mrb[38].mxu0  ;;  %v2798_v15 = vpop.f32.mrb[38].mxu1  ;;  %v2612_v57 = vunpack.c.l.bf16 %v2725_v33  ;;  %v1161_v61 = vadd.f32 %v3382_v54, %v3350_v31 }
 0x164   : > { %2177 = vst.msk [vmem:[%s3403_s17 + $0xc] sm:$0xf] %vm2173_vm1, %v2533_v11  ;;  %v1795_v51 = vadd.f32 %v2608_v49, %v1431_v5  ;;  %v1434_v21 = vadd.f32 %v2798_v15, %v1145_v2  ;;  %v1194_v22 = vpop.f32.mrb[39].mxu0  ;;  %v1425_v25 = vpop.f32.mrb[39].mxu1  ;;  %v2617_v5 = vunpack.c.h.bf16 %v2726_v7  ;;  %v1153_v19 = vadd.f32 %v3382_v54, %v3342_v23  ;;  %v2728_v23 = vld [vmem:[%s3372_s11 + $0x38] sm:$0xff]  }
 0x165   : > { %2175 = vst.msk [vmem:[%s3403_s17 + $0x4] sm:$0xf] %vm2173_vm1, %v2531_v13  ;;  %v1793_v26 = vadd.f32 %v2604_v62, %v1423_v14  ;;  %v1426_v29 = vadd.f32 %v1425_v25, %v1137_v3  ;;  %v2613_v3 = vunpack.c.h.bf16 %v2725_v33 }
 0x166   : > { %v1859_v63 = vmax.f32 %v1795_v51, 0.0  ;;  %v1796_v30 = vadd.f32 %v2609_v10, %v1434_v21 }
 0x167   : > { %v1857_v34 = vmax.f32 %v1793_v26, 0.0  ;;  %v1794_v37 = vadd.f32 %v2605_v17, %v1426_v29  ;;  %v2727_v26 = vld [vmem:[%s3372_s11 + $0x30] sm:$0xff]  }
 0x168   : > { %v2536_v55 = vpack.c.bf16 %v1859_v63, %v1859_v63  ;;  %v1860_v41 = vmax.f32 %v1796_v30, 0.0  ;;  %v1174_v63 = vadd.f32 %v3382_v54, %v3363_v43 }
 0x169   : > { %v2534_v46 = vpack.c.bf16 %v1857_v34, %v1857_v34  ;;  %v1858_v49 = vmax.f32 %v1794_v37, 0.0  ;;  %v3431_v50 = vpop.f32.mrb[40].mxu0  ;;  %v2801_v53 = vpop.f32.mrb[40].mxu1  ;;  %v2624_v34 = vunpack.c.l.bf16 %v2728_v23  ;;  %v1166_v37 = vadd.f32 %v3382_v54, %v3354_v35 }
 0x16a   : > { %2180 = vst.msk [vmem:[%s3403_s17 + $0x18] sm:$0xf] %vm2173_vm1, %v2536_v55  ;;  %v2537_v27 = vpack.c.bf16 %v1860_v41, %v1860_v41  ;;  %v1447_v62 = vadd.f32 %v2801_v53, %v1158_v38  ;;  %v1199_v2 = vpop.f32.mrb[41].mxu0  ;;  %v1438_v11 = vpop.f32.mrb[41].mxu1  ;;  %v1169_v35 = vadd.f32 %v3382_v54, %v3358_v39  ;;  %v2730_v39 = vld [vmem:[%s3372_s11 + $0x48] sm:$0xff]  }
 0x16b   : > { %2178 = vst.msk [vmem:[%s3403_s17 + $0x10] sm:$0xf] %vm2173_vm1, %v2534_v46  ;;  %v2535_v6 = vpack.c.bf16 %v1858_v49, %v1858_v49  ;;  %v1439_v9 = vadd.f32 %v1438_v11, %v1150_v45  ;;  %v3441_v10 = vpop.f32.mrb[42].mxu0  ;;  %v2802_v31 = vpop.f32.mrb[42].mxu1  ;;  %v2620_v45 = vunpack.c.l.bf16 %v2727_v26  ;;  %v1177_v46 = vadd.f32 %v3382_v54, %v3374_v47 }
 0x16c   : > { %2181 = vst.msk [vmem:[%s3403_s17 + $0x1c] sm:$0xf] %vm2173_vm1, %v2537_v27  ;;  %v1799_v13 = vadd.f32 %v2616_v42, %v1447_v62  ;;  %v1450_v14 = vadd.f32 %v2802_v31, %v1161_v61  ;;  %v1202_v15 = vpop.f32.mrb[43].mxu0  ;;  %v1441_v17 = vpop.f32.mrb[43].mxu1  ;;  %v2625_v61 = vunpack.c.h.bf16 %v2728_v23  ;;  %v2621_v11 = vunpack.c.h.bf16 %v2727_v26 }
 0x16d   : > { %2179 = vst.msk [vmem:[%s3403_s17 + $0x14] sm:$0xf] %vm2173_vm1, %v2535_v6  ;;  %v1797_v51 = vadd.f32 %v2612_v57, %v1439_v9  ;;  %v1442_v21 = vadd.f32 %v1441_v17, %v1153_v19  ;;  %v2729_v15 = vld [vmem:[%s3372_s11 + $0x40] sm:$0xff]   ;;  %v1182_v26 = vadd.f32 %v3382_v54, %v3388_v1  ;;  %v1185_v1 = vadd.f32 %v3382_v54, %v3394_v18  ;;  %v2732_v18 = vld [vmem:[%s3372_s11 + $0x58] sm:$0xff]  }
 0x16e   : > { %v1863_v22 = vmax.f32 %v1799_v13, 0.0  ;;  %v1800_v25 = vadd.f32 %v2617_v5, %v1450_v14 }
 0x16f   : > { %v1861_v29 = vmax.f32 %v1797_v51, 0.0  ;;  %v1798_v7 = vadd.f32 %v2613_v3, %v1442_v21  ;;  %v1190_v21 = vadd.f32 %v3382_v54, %v3409_v58 }
 0x170   : > { %v2540_v30 = vpack.c.bf16 %v1863_v22, %v1863_v22  ;;  %v1864_v33 = vmax.f32 %v1800_v25, 0.0  ;;  %v2632_v25 = vunpack.c.l.bf16 %v2730_v39 }
 0x171   : > { %v2538_v38 = vpack.c.bf16 %v1861_v29, %v1861_v29  ;;  %v1862_v55 = vmax.f32 %v1798_v7, 0.0  ;;  %v3453_v41 = vpop.f32.mrb[44].mxu0  ;;  %v2805_v42 = vpop.f32.mrb[44].mxu1 }
 0x172   : > { %2184 = vst.msk [vmem:[%s3403_s17 + $0x28] sm:$0xf] %vm2173_vm1, %v2540_v30  ;;  %v2541_v43 = vpack.c.bf16 %v1864_v33, %v1864_v33  ;;  %v1463_v49 = vadd.f32 %v2805_v42, %v1174_v63  ;;  %v1207_v53 = vpop.f32.mrb[45].mxu0  ;;  %v1454_v57 = vpop.f32.mrb[45].mxu1  ;;  %v2628_v33 = vunpack.c.l.bf16 %v2729_v15  ;;  %v2633_v42 = vunpack.c.h.bf16 %v2730_v39 }
 0x173   : > { %2182 = vst.msk [vmem:[%s3403_s17 + $0x20] sm:$0xf] %vm2173_vm1, %v2538_v38  ;;  %v2539_v27 = vpack.c.bf16 %v1862_v55, %v1862_v55  ;;  %v1455_v62 = vadd.f32 %v1454_v57, %v1166_v37  ;;  %v3463_v2 = vpop.f32.mrb[46].mxu0  ;;  %v2806_v47 = vpop.f32.mrb[46].mxu1  ;;  %v2640_v39 = vunpack.c.l.bf16 %v2732_v18 }
 0x174   : > { %2185 = vst.msk [vmem:[%s3403_s17 + $0x2c] sm:$0xf] %vm2173_vm1, %v2541_v43  ;;  %v1803_v5 = vadd.f32 %v2624_v34, %v1463_v49  ;;  %v1466_v19 = vadd.f32 %v2806_v47, %v1177_v46  ;;  %v1210_v6 = vpop.f32.mrb[47].mxu0  ;;  %v1457_v9 = vpop.f32.mrb[47].mxu1  ;;  %v1193_v34 = vadd.f32 %v3382_v54, %v3419_v59  ;;  %v2629_v49 = vunpack.c.h.bf16 %v2729_v15 }
 0x175   : > { %2183 = vst.msk [vmem:[%s3403_s17 + $0x24] sm:$0xf] %vm2173_vm1, %v2539_v27  ;;  %v1801_v31 = vadd.f32 %v2620_v45, %v1455_v62  ;;  %v1458_v3 = vadd.f32 %v1457_v9, %v1169_v35  ;;  %v1206_v9 = vadd.f32 %v3382_v54, %v3453_v41 }
 0x176   : > { %v1867_v13 = vmax.f32 %v1803_v5, 0.0  ;;  %v1804_v14 = vadd.f32 %v2625_v61, %v1466_v19  ;;  %v2731_v5 = vld [vmem:[%s3372_s11 + $0x50] sm:$0xff]  }
 0x177   : > { %v1865_v17 = vmax.f32 %v1801_v31, 0.0  ;;  %v1802_v51 = vadd.f32 %v2621_v11, %v1458_v3 }
 0x178   : > { %v2544_v23 = vpack.c.bf16 %v1867_v13, %v1867_v13  ;;  %v1868_v22 = vmax.f32 %v1804_v14, 0.0  ;;  %v1198_v13 = vadd.f32 %v3382_v54, %v3431_v50  ;;  %v1201_v50 = vadd.f32 %v3382_v54, %v3441_v10 }
 0x179   : > { %v2542_v29 = vpack.c.bf16 %v1865_v17, %v1865_v17  ;;  %v1866_v7 = vmax.f32 %v1802_v51, 0.0  ;;  %v3475_v63 = vpop.f32.mrb[48].mxu0  ;;  %v2809_v30 = vpop.f32.mrb[48].mxu1 }
 0x17a   : > { %2188 = vst.msk [vmem:[%s3403_s17 + $0x38] sm:$0xf] %vm2173_vm1, %v2544_v23  ;;  %v2545_v58 = vpack.c.bf16 %v1868_v22, %v1868_v22  ;;  %v1479_v37 = vadd.f32 %v2809_v30, %v1190_v21  ;;  %v1215_v38 = vpop.f32.mrb[49].mxu0  ;;  %v1470_v55 = vpop.f32.mrb[49].mxu1  ;;  %v2636_v21 = vunpack.c.l.bf16 %v2731_v5  ;;  %v1209_v23 = vadd.f32 %v3382_v54, %v3463_v2 }
 0x17b   : > { %2186 = vst.msk [vmem:[%s3403_s17 + $0x30] sm:$0xf] %vm2173_vm1, %v2542_v29  ;;  %v2543_v45 = vpack.c.bf16 %v1866_v7, %v1866_v7  ;;  %v1471_v46 = vadd.f32 %v1470_v55, %v1182_v26  ;;  %v3485_v43 = vpop.f32.mrb[50].mxu0  ;;  %v2810_v59 = vpop.f32.mrb[50].mxu1  ;;  %v2641_v29 = vunpack.c.h.bf16 %v2732_v18  ;;  %v2637_v2 = vunpack.c.h.bf16 %v2731_v5 }
 0x17c   : > { %2189 = vst.msk [vmem:[%s3403_s17 + $0x3c] sm:$0xf] %vm2173_vm1, %v2545_v58  ;;  %v1807_v53 = vadd.f32 %v2632_v25, %v1479_v37  ;;  %v1482_v57 = vadd.f32 %v2810_v59, %v1193_v34  ;;  %v1218_v61 = vpop.f32.mrb[51].mxu0  ;;  %v1473_v35 = vpop.f32.mrb[51].mxu1  ;;  %v2733_v59 = vld [vmem:[%s3372_s11 + $0x60] sm:$0xff]  }
 0x17d   : > { %2187 = vst.msk [vmem:[%s3403_s17 + $0x34] sm:$0xf] %vm2173_vm1, %v2543_v45  ;;  %v1805_v27 = vadd.f32 %v2628_v33, %v1471_v46  ;;  %v1474_v62 = vadd.f32 %v1473_v35, %v1185_v1  ;;  %v2734_v45 = vld [vmem:[%s3372_s11 + $0x68] sm:$0xff]  }
 0x17e   : > { %v1871_v47 = vmax.f32 %v1807_v53, 0.0  ;;  %v1808_v11 = vadd.f32 %v2633_v42, %v1482_v57 }
 0x17f   : > { %v1869_v19 = vmax.f32 %v1805_v27, 0.0  ;;  %v1806_v6 = vadd.f32 %v2629_v49, %v1474_v62  ;;  %v2648_v27 = vunpack.c.l.bf16 %v2734_v45  ;;  %v1214_v62 = vadd.f32 %v3382_v54, %v3475_v63 }
 0x180   : > { %v2548_v31 = vpack.c.bf16 %v1871_v47, %v1871_v47  ;;  %v1872_v3 = vmax.f32 %v1808_v11, 0.0 }
 0x181   : > { %v2546_v14 = vpack.c.bf16 %v1869_v19, %v1869_v19  ;;  %v1870_v15 = vmax.f32 %v1806_v6, 0.0  ;;  %v1221_v17 = vpop.f32.mrb[52].mxu0  ;;  %v2813_v51 = vpop.f32.mrb[52].mxu1  ;;  %v2644_v19 = vunpack.c.l.bf16 %v2733_v59 }
 0x182   : > { %2192 = vst.msk [vmem:[%s3403_s17 + $0x48] sm:$0xf] %vm2173_vm1, %v2548_v31  ;;  %v2549_v22 = vpack.c.bf16 %v1872_v3, %v1872_v3  ;;  %v1495_v41 = vadd.f32 %v2813_v51, %v1206_v9  ;;  %v1223_v25 = vpop.f32.mrb[53].mxu0  ;;  %v1486_v26 = vpop.f32.mrb[53].mxu1  ;;  %v1222_v57 = vadd.f32 %v3382_v54, %v1221_v17 }
 0x183   : > { %2190 = vst.msk [vmem:[%s3403_s17 + $0x40] sm:$0xf] %vm2173_vm1, %v2546_v14  ;;  %v2547_v7 = vpack.c.bf16 %v1870_v15, %v1870_v15  ;;  %v1487_v30 = vadd.f32 %v1486_v26, %v1198_v13  ;;  %v1224_v33 = vpop.f32.mrb[54].mxu0  ;;  %v2814_v34 = vpop.f32.mrb[54].mxu1  ;;  %v2649_v13 = vunpack.c.h.bf16 %v2734_v45  ;;  %v1217_v14 = vadd.f32 %v3382_v54, %v3485_v43 }
 0x184   : > { %2193 = vst.msk [vmem:[%s3403_s17 + $0x4c] sm:$0xf] %vm2173_vm1, %v2549_v22  ;;  %v1811_v58 = vadd.f32 %v2640_v39, %v1495_v41  ;;  %v1498_v37 = vadd.f32 %v2814_v34, %v1209_v23  ;;  %v1226_v38 = vpop.f32.mrb[55].mxu0  ;;  %v1489_v55 = vpop.f32.mrb[55].mxu1  ;;  %v1225_v6 = vadd.f32 %v3382_v54, %v1224_v33  ;;  %v2736_v34 = vld [vmem:[%s3372_s11 + $0x78] sm:$0xff]  }
 0x185   : > { %2191 = vst.msk [vmem:[%s3403_s17 + $0x44] sm:$0xf] %vm2173_vm1, %v2547_v7  ;;  %v1809_v42 = vadd.f32 %v2636_v21, %v1487_v30  ;;  %v1490_v1 = vadd.f32 %v1489_v55, %v1201_v50  ;;  %v2645_v21 = vunpack.c.h.bf16 %v2733_v59  ;;  %v2735_v7 = vld [vmem:[%s3372_s11 + $0x70] sm:$0xff]   ;;  %v2656_v59 = vunpack.c.l.bf16 %v2736_v34 }
 0x186   : > { %v1875_v10 = vmax.f32 %v1811_v58, 0.0  ;;  %v1812_v46 = vadd.f32 %v2641_v29, %v1498_v37  ;;  %v2652_v45 = vunpack.c.l.bf16 %v2735_v7 }
 0x187   : > { %v1873_v49 = vmax.f32 %v1809_v42, 0.0  ;;  %v1810_v53 = vadd.f32 %v2637_v2, %v1490_v1 }
 0x188   : > { %v2552_v61 = vpack.c.bf16 %v1875_v10, %v1875_v10  ;;  %v1876_v35 = vmax.f32 %v1812_v46, 0.0 }
 0x189   : > { %v2550_v18 = vpack.c.bf16 %v1873_v49, %v1873_v49  ;;  %v1874_v47 = vmax.f32 %v1810_v53, 0.0  ;;  %v1229_v11 = vpop.f32.mrb[56].mxu0  ;;  %v2817_v5 = vpop.f32.mrb[56].mxu1 }
 0x18a   : > { %2196 = vst.msk [vmem:[%s3403_s17 + $0x58] sm:$0xf] %vm2173_vm1, %v2552_v61  ;;  %v2553_v9 = vpack.c.bf16 %v1876_v35, %v1876_v35  ;;  %v1511_v31 = vadd.f32 %v2817_v5, %v1222_v57  ;;  %v1231_v3 = vpop.f32.mrb[57].mxu0  ;;  %v1502_v39 = vpop.f32.mrb[57].mxu1  ;;  %v1230_v37 = vadd.f32 %v3382_v54, %v1229_v11  ;;  %v2657_v5 = vunpack.c.h.bf16 %v2736_v34 }
 0x18b   : > { %2194 = vst.msk [vmem:[%s3403_s17 + $0x50] sm:$0xf] %vm2173_vm1, %v2550_v18  ;;  %v2551_v63 = vpack.c.bf16 %v1874_v47, %v1874_v47  ;;  %v1503_v15 = vadd.f32 %v1502_v39, %v1214_v62  ;;  %v1232_v17 = vpop.f32.mrb[58].mxu0  ;;  %v2818_v51 = vpop.f32.mrb[58].mxu1  ;;  %v2653_v18 = vunpack.c.h.bf16 %v2735_v7 }
 0x18c   : > { %2197 = vst.msk [vmem:[%s3403_s17 + $0x5c] sm:$0xf] %vm2173_vm1, %v2553_v9  ;;  %v1815_v23 = vadd.f32 %v2648_v27, %v1511_v31  ;;  %v1514_v22 = vadd.f32 %v2818_v51, %v1225_v6  ;;  %v1234_v41 = vpop.f32.mrb[59].mxu0  ;;  %v1505_v25 = vpop.f32.mrb[59].mxu1  ;;  %v1233_v57 = vadd.f32 %v3382_v54, %v1232_v17 }
 0x18d   : > { %2195 = vst.msk [vmem:[%s3403_s17 + $0x54] sm:$0xf] %vm2173_vm1, %v2551_v63  ;;  %v1813_v26 = vadd.f32 %v2644_v19, %v1503_v15  ;;  %v1506_v43 = vadd.f32 %v1505_v25, %v1217_v14  ;;  %v2737_v63 = vld [vmem:[%s3372_s11 + $0x80] sm:$0xff]  }
 0x18e   : > { %v1879_v29 = vmax.f32 %v1815_v23, 0.0  ;;  %v1816_v50 = vadd.f32 %v2649_v13, %v1514_v22 }
 0x18f   : > { %v1877_v30 = vmax.f32 %v1813_v26, 0.0  ;;  %v1814_v33 = vadd.f32 %v2645_v21, %v1506_v43 }
 0x190   : > { %v2556_v2 = vpack.c.bf16 %v1879_v29, %v1879_v29  ;;  %v1880_v58 = vmax.f32 %v1816_v50, 0.0  ;;  %v2660_v50 = vunpack.c.l.bf16 %v2737_v63 }
 0x191   : > { %v2554_v38 = vpack.c.bf16 %v1877_v30, %v1877_v30  ;;  %v1878_v55 = vmax.f32 %v1814_v33, 0.0  ;;  %v1237_v42 = vpop.f32.mrb[60].mxu0  ;;  %v2821_v1 = vpop.f32.mrb[60].mxu1 }
 0x192   : > { %2200 = vst.msk [vmem:[%s3403_s17 + $0x68] sm:$0xf] %vm2173_vm1, %v2556_v2  ;;  %v2557_v10 = vpack.c.bf16 %v1880_v58, %v1880_v58  ;;  %v1238_v46 = vadd.f32 %v3382_v54, %v1237_v42  ;;  %v1239_v49 = vpop.f32.mrb[61].mxu0  ;;  %v1518_v53 = vpop.f32.mrb[61].mxu1 }
 0x193   : > { %2198 = vst.msk [vmem:[%s3403_s17 + $0x60] sm:$0xf] %vm2173_vm1, %v2554_v38  ;;  %v2555_v61 = vpack.c.bf16 %v1878_v55, %v1878_v55  ;;  %v1519_v35 = vadd.f32 %v1518_v53, %v1230_v37  ;;  %v1240_v27 = vpop.f32.mrb[62].mxu0  ;;  %v2822_v62 = vpop.f32.mrb[62].mxu1  ;;  %v2661_v55 = vunpack.c.h.bf16 %v2737_v63 }
 0x194   : > { %2201 = vst.msk [vmem:[%s3403_s17 + $0x6c] sm:$0xf] %vm2173_vm1, %v2557_v10  ;;  %v1527_v47 = vadd.f32 %v2821_v1, %v1238_v46  ;;  %v1241_v11 = vadd.f32 %v3382_v54, %v1240_v27  ;;  %v1242_v19 = vpop.f32.mrb[63].mxu0  ;;  %v1521_v6 = vpop.f32.mrb[63].mxu1 }
 0x195   : > { %2199 = vst.msk [vmem:[%s3403_s17 + $0x64] sm:$0xf] %vm2173_vm1, %v2555_v61  ;;  %v1817_v9 = vadd.f32 %v2652_v45, %v1519_v35  ;;  %v1522_v31 = vadd.f32 %v1521_v6, %v1233_v57  ;;  %v2738_v45 = vld [vmem:[%s3372_s11 + $0x88] sm:$0xff]  }
 0x196   : > { %v1819_v3 = vadd.f32 %v2656_v59, %v1527_v47  ;;  %v1530_v39 = vadd.f32 %v2822_v62, %v1241_v11  ;;  %v2664_v35 = vunpack.c.l.bf16 %v2738_v45  ;;  %v2665_v6 = vunpack.c.h.bf16 %v2738_v45 }
 0x197   : > { %v1881_v13 = vmax.f32 %v1817_v9, 0.0  ;;  %v1818_v14 = vadd.f32 %v2653_v18, %v1522_v31 }
 0x198   : > { %v1883_v15 = vmax.f32 %v1819_v3, 0.0  ;;  %v1820_v17 = vadd.f32 %v2657_v5, %v1530_v39 }
 0x199   : > { %v2558_v51 = vpack.c.bf16 %v1881_v13, %v1881_v13  ;;  %v1882_v21 = vmax.f32 %v1818_v14, 0.0  ;;  %v1245_v23 = vpop.f32.mrb[64].mxu0  ;;  %v2825_v22 = vpop.f32.mrb[64].mxu1  ;;  %v2739_v13 = vld [vmem:[%s3372_s11 + $0x90] sm:$0xff]  }
 0x19a   : > { %v2560_v41 = vpack.c.bf16 %v1883_v15, %v1883_v15  ;;  %v1884_v25 = vmax.f32 %v1820_v17, 0.0  ;;  %v1246_v26 = vadd.f32 %v3382_v54, %v1245_v23  ;;  %v1247_v43 = vpop.f32.mrb[65].mxu0  ;;  %v1534_v29 = vpop.f32.mrb[65].mxu1 }
 0x19b   : > { %2202 = vst.msk [vmem:[%s3403_s17 + $0x70] sm:$0xf] %vm2173_vm1, %v2558_v51  ;;  %v2559_v7 = vpack.c.bf16 %v1882_v21, %v1882_v21  ;;  %v1248_v30 = vpop.f32.mrb[66].mxu0  ;;  %v2826_v33 = vpop.f32.mrb[66].mxu1 }
 0x19c   : > { %2204 = vst.msk [vmem:[%s3403_s17 + $0x78] sm:$0xf] %vm2173_vm1, %v2560_v41  ;;  %v2561_v34 = vpack.c.bf16 %v1884_v25, %v1884_v25  ;;  %v1535_v2 = vadd.f32 %v1534_v29, %v1246_v26  ;;  %v1249_v58 = vadd.f32 %v3382_v54, %v1248_v30  ;;  %v1250_v37 = vpop.f32.mrb[67].mxu0  ;;  %v1537_v38 = vpop.f32.mrb[67].mxu1  ;;  %v2669_v30 = vunpack.c.h.bf16 %v2739_v13 }
 0x19d   : > { %2203 = vst.msk [vmem:[%s3403_s17 + $0x74] sm:$0xf] %vm2173_vm1, %v2559_v7  ;;  %v2740_v37 = vld [vmem:[%s3372_s11 + $0x98] sm:$0xff]  }
 0x19e   : > { %2205 = vst.msk [vmem:[%s3403_s17 + $0x7c] sm:$0xf] %vm2173_vm1, %v2561_v34  ;;  %v1821_v42 = vadd.f32 %v2660_v50, %v1535_v2  ;;  %v1538_v1 = vadd.f32 %v1537_v38, %v1249_v58 }
 0x1a0   : > { %v1885_v10 = vmax.f32 %v1821_v42, 0.0  ;;  %v1822_v46 = vadd.f32 %v2661_v55, %v1538_v1 }
 0x1a1   : > { %v1253_v59 = vpop.f32.mrb[68].mxu0  ;;  %v2829_v49 = vpop.f32.mrb[68].mxu1 }
 0x1a2   : > { %v2562_v53 = vpack.c.bf16 %v1885_v10, %v1885_v10  ;;  %v1886_v57 = vmax.f32 %v1822_v46, 0.0  ;;  %v1254_v61 = vadd.f32 %v3382_v54, %v1253_v59  ;;  %v1255_v27 = vpop.f32.mrb[69].mxu0  ;;  %v1550_v62 = vpop.f32.mrb[69].mxu1  ;;  %v2672_v59 = vunpack.c.l.bf16 %v2740_v37 }
 0x1a3   : > { %v1256_v18 = vpop.f32.mrb[70].mxu0  ;;  %v3552_v47 = vpop.f32.mrb[70].mxu1  ;;  %v1318_v27 = vadd.f32 %v3382_v54, %v3316_v60  ;;  %v1321_v60 = vadd.f32 %v3382_v54, %v3320_v0  ;;  %v3618_v0 = vadd.f32 %v3382_v54, %v3340_v20 }
 0x1a4   : > { %2206 = vst.msk [vmem:[%s3403_s17 + $0x80] sm:$0xf] %vm2173_vm1, %v2562_v53  ;;  %v2563_v11 = vpack.c.bf16 %v1886_v57, %v1886_v57  ;;  %v1543_v5 = vadd.f32 %v2825_v22, %v1254_v61  ;;  %v1257_v19 = vadd.f32 %v3382_v54, %v1256_v18  ;;  %v1258_v9 = vpop.f32.mrb[71].mxu0  ;;  %v1553_v31 = vpop.f32.mrb[71].mxu1  ;;  %v2668_v22 = vunpack.c.l.bf16 %v2739_v13 }
 0x1a5   : > { %v1310_v61 = vadd.f32 %v3382_v54, %v3310_v52  ;;  %v3610_v13 = vadd.f32 %v3382_v54, %v3332_v12  ;;  %v3628_v12 = vadd.f32 %v3382_v54, %v3344_v24  ;;  %v3644_v24 = vadd.f32 %v3382_v54, %v3352_v32 }
 0x1a6   : > { %2207 = vst.msk [vmem:[%s3403_s17 + $0x84] sm:$0xf] %vm2173_vm1, %v2563_v11  ;;  %v1823_v3 = vadd.f32 %v2664_v35, %v1543_v5  ;;  %v1546_v39 = vadd.f32 %v2826_v33, %v1257_v19  ;;  %v1313_v35 = vadd.f32 %v3382_v54, %v3314_v56  ;;  %v2746_v56 = vld [vmem:[%s3372_s11 + $0xc8] sm:$0xff]  }
 0x1a8   : > { %v1887_v14 = vmax.f32 %v1823_v3, 0.0  ;;  %v1824_v63 = vadd.f32 %v2665_v6, %v1546_v39  ;;  %v2673_v6 = vunpack.c.h.bf16 %v2740_v37  ;;  %v2745_v3 = vld [vmem:[%s3372_s11 + $0xc0] sm:$0xff]   ;;  %v3602_v39 = vadd.f32 %v3382_v54, %v3324_v4 }
 0x1a9   : > { %v1261_v15 = vpop.f32.mrb[72].mxu0  ;;  %v3560_v17 = vpop.f32.mrb[72].mxu1 }
 0x1aa   : > { %v2564_v51 = vpack.c.bf16 %v1887_v14, %v1887_v14  ;;  %v1888_v21 = vmax.f32 %v1824_v63, 0.0  ;;  %v1262_v23 = vadd.f32 %v3382_v54, %v1261_v15  ;;  %v1263_v41 = vpop.f32.mrb[73].mxu0  ;;  %v3563_v25 = vpop.f32.mrb[73].mxu1  ;;  %v3614_v14 = vadd.f32 %v3382_v54, %v3336_v16  ;;  %v3624_v63 = vld [vmem:[%s3372_s11 + $0xd8] sm:$0xff]  }
 0x1ab   : > { %v1264_v26 = vpop.f32.mrb[74].mxu0  ;;  %v3565_v43 = vpop.f32.mrb[74].mxu1  ;;  %v2692_v16 = vunpack.c.l.bf16 %v2745_v3  ;;  %v3633_v41 = vld [vmem:[%s3372_s11 + $0xa8] sm:$0xff]  }
 0x1ac   : > { %2208 = vst.msk [vmem:[%s3403_s17 + $0x88] sm:$0xf] %vm2173_vm1, %v2564_v51  ;;  %v2565_v29 = vpack.c.bf16 %v1888_v21, %v1888_v21  ;;  %v1551_v50 = vadd.f32 %v1550_v62, %v1262_v23  ;;  %v1265_v7 = vadd.f32 %v3382_v54, %v1264_v26  ;;  %v1266_v33 = vpop.f32.mrb[75].mxu0  ;;  %v3570_v34 = vpop.f32.mrb[75].mxu1  ;;  %v2696_v51 = vunpack.c.l.bf16 %v2746_v56  ;;  %v3636_v26 = vld [vmem:[%s3372_s11 + $0xd0] sm:$0xff]  }
 0x1ad   : > { %v2680_v32 = vunpack.c.l.bf16 %v3633_v41 }
 0x1ae   : > { %2209 = vst.msk [vmem:[%s3403_s17 + $0x8c] sm:$0xf] %vm2173_vm1, %v2565_v29  ;;  %v1825_v2 = vadd.f32 %v2668_v22, %v1551_v50  ;;  %v1554_v58 = vadd.f32 %v1553_v31, %v1265_v7  ;;  %v3594_v31 = vld [vmem:[%s3372_s11 + $0xa0] sm:$0xff]   ;;  %v2697_v22 = vunpack.c.h.bf16 %v2746_v56  ;;  %v2693_v7 = vunpack.c.h.bf16 %v2745_v3 }
 0x1af   : > { %v2676_v15 = vunpack.c.l.bf16 %v3594_v31  ;;  %v2677_v20 = vunpack.c.h.bf16 %v3594_v31  ;;  %v3657_v31 = vld [vmem:[%s3372_s11 + $0xe8] sm:$0xff]  }
 0x1b0   : > { %v1889_v38 = vmax.f32 %v1825_v2, 0.0  ;;  %v1826_v55 = vadd.f32 %v2669_v30, %v1554_v58  ;;  %v2704_v30 = vunpack.c.l.bf16 %v3624_v63 }
 0x1b1   : > { %v1269_v42 = vpop.f32.mrb[76].mxu0  ;;  %v3575_v1 = vpop.f32.mrb[76].mxu1 }
 0x1b2   : > { %v2566_v45 = vpack.c.bf16 %v1889_v38, %v1889_v38  ;;  %v1890_v10 = vmax.f32 %v1826_v55, 0.0  ;;  %v1270_v46 = vadd.f32 %v3382_v54, %v1269_v42  ;;  %v1271_v53 = vpop.f32.mrb[77].mxu0  ;;  %v3578_v57 = vpop.f32.mrb[77].mxu1 }
 0x1b3   : > { %v1272_v62 = vpop.f32.mrb[78].mxu0  ;;  %v3586_v18 = vpop.f32.mrb[78].mxu1 }
 0x1b4   : > { %2210 = vst.msk [vmem:[%s3403_s17 + $0x90] sm:$0xf] %vm2173_vm1, %v2566_v45  ;;  %v2567_v11 = vpack.c.bf16 %v1890_v10, %v1890_v10  ;;  %v1559_v5 = vadd.f32 %v2829_v49, %v1270_v46  ;;  %v1273_v19 = vadd.f32 %v3382_v54, %v1272_v62  ;;  %v1274_v9 = vpop.f32.mrb[79].mxu0  ;;  %v3591_v52 = vpop.f32.mrb[79].mxu1  ;;  %v3606_v49 = vadd.f32 %v3382_v54, %v3328_v8 }
 0x1b5   : > { %v2700_v10 = vunpack.c.l.bf16 %v3636_v26  ;;  %v2705_v46 = vunpack.c.h.bf16 %v3624_v63  ;;  %v2701_v9 = vunpack.c.h.bf16 %v3636_v26  ;;  %v2712_v26 = vunpack.c.l.bf16 %v3657_v31 }
 0x1b6   : > { %2211 = vst.msk [vmem:[%s3403_s17 + $0x94] sm:$0xf] %vm2173_vm1, %v2567_v11  ;;  %v1827_v4 = vadd.f32 %v2672_v59, %v1559_v5  ;;  %v1562_v8 = vadd.f32 %v3552_v47, %v1273_v19  ;;  %v3640_v47 = vadd.f32 %v3382_v54, %v3348_v28 }
 0x1b8   : > { %v1891_v21 = vmax.f32 %v1827_v4, 0.0  ;;  %v1828_v23 = vadd.f32 %v2673_v6, %v1562_v8  ;;  %v3665_v8 = vadd.f32 %v3382_v54, %v3356_v36 }
 0x1b9   : > { %v1277_v29 = vpop.f32.mrb[80].mxu0  ;;  %v2841_v50 = vpop.f32.mrb[80].mxu1 }
 0x1ba   : > { %v2568_v33 = vpack.c.bf16 %v1891_v21, %v1891_v21  ;;  %v1892_v2 = vmax.f32 %v1828_v23, 0.0  ;;  %v1278_v58 = vadd.f32 %v3382_v54, %v1277_v29  ;;  %v1607_v37 = vadd.f32 %v2841_v50, %v1318_v27  ;;  %v1279_v38 = vpop.f32.mrb[81].mxu0  ;;  %v1598_v55 = vpop.f32.mrb[81].mxu1 }
 0x1bb   : > { %v1599_v42 = vadd.f32 %v1598_v55, %v1310_v61  ;;  %v1280_v28 = vpop.f32.mrb[82].mxu0  ;;  %v2842_v45 = vpop.f32.mrb[82].mxu1  ;;  %v3680_v55 = vld [vmem:[%s3372_s11 + $0xb0] sm:$0xff]  }
 0x1bc   : > { %2212 = vst.msk [vmem:[%s3403_s17 + $0x98] sm:$0xf] %vm2173_vm1, %v2568_v33  ;;  %v2569_v59 = vpack.c.bf16 %v1892_v2, %v1892_v2  ;;  %v1567_v53 = vadd.f32 %v3563_v25, %v1278_v58  ;;  %v1839_v62 = vadd.f32 %v2696_v51, %v1607_v37  ;;  %v1281_v27 = vadd.f32 %v3382_v54, %v1280_v28  ;;  %v1282_v11 = vpop.f32.mrb[83].mxu0  ;;  %v1601_v61 = vpop.f32.mrb[83].mxu1 }
 0x1bd   : > { %v1837_v5 = vadd.f32 %v2692_v16, %v1599_v42  ;;  %v1610_v19 = vadd.f32 %v2842_v45, %v1321_v60  ;;  %v1602_v6 = vadd.f32 %v1601_v61, %v1313_v35  ;;  %v2681_v25 = vunpack.c.h.bf16 %v3633_v41  ;;  %v3710_v41 = vld [vmem:[%s3372_s11 + $0xf8] sm:$0xff]  }
 0x1be   : > { %2213 = vst.msk [vmem:[%s3403_s17 + $0x9c] sm:$0xf] %vm2173_vm1, %v2569_v59  ;;  %v1829_v56 = vadd.f32 %v2676_v15, %v1567_v53  ;;  %v1903_v3 = vmax.f32 %v1839_v62, 0.0  ;;  %v1570_v4 = vadd.f32 %v3570_v34, %v1281_v27  ;;  %v3669_v15 = vld [vmem:[%s3372_s11 + $0xe0] sm:$0xff]   ;;  %v3673_v34 = vadd.f32 %v3382_v54, %v3360_v40 }
 0x1bf   : > { %v1901_v60 = vmax.f32 %v1837_v5, 0.0  ;;  %v1840_v35 = vadd.f32 %v2697_v22, %v1610_v19  ;;  %v1838_v51 = vadd.f32 %v2693_v7, %v1602_v6  ;;  %v2708_v53 = vunpack.c.l.bf16 %v3669_v15 }
 0x1c0   : > { %v1893_v16 = vmax.f32 %v1829_v56, 0.0  ;;  %v2580_v21 = vpack.c.bf16 %v1903_v3, %v1903_v3  ;;  %v1830_v23 = vadd.f32 %v2677_v20, %v1570_v4  ;;  %v2684_v56 = vunpack.c.l.bf16 %v3680_v55 }
 0x1c1   : > { %v2578_v29 = vpack.c.bf16 %v1901_v60, %v1901_v60  ;;  %v1904_v36 = vmax.f32 %v1840_v35, 0.0  ;;  %v1902_v50 = vmax.f32 %v1838_v51, 0.0  ;;  %v1285_v33 = vpop.f32.mrb[84].mxu0  ;;  %v2845_v2 = vpop.f32.mrb[84].mxu1  ;;  %v2713_v4 = vunpack.c.h.bf16 %v3657_v31 }
 0x1c2   : > { %v2570_v22 = vpack.c.bf16 %v1893_v16, %v1893_v16  ;;  %2224 = vst.msk [vmem:[%s3403_s17 + $0xc8] sm:$0xf] %vm2173_vm1, %v2580_v21  ;;  %v1894_v20 = vmax.f32 %v1830_v23, 0.0  ;;  %v1286_v7 = vadd.f32 %v3382_v54, %v1285_v33  ;;  %v1623_v58 = vadd.f32 %v2845_v2, %v3610_v13  ;;  %v1287_v37 = vpop.f32.mrb[85].mxu0  ;;  %v1614_v38 = vpop.f32.mrb[85].mxu1 }
 0x1c3   : > { %2222 = vst.msk [vmem:[%s3403_s17 + $0xc0] sm:$0xf] %vm2173_vm1, %v2578_v29  ;;  %v2581_v40 = vpack.c.bf16 %v1904_v36, %v1904_v36  ;;  %v2579_v42 = vpack.c.bf16 %v1902_v50, %v1902_v50  ;;  %v1615_v28 = vadd.f32 %v1614_v38, %v3602_v39  ;;  %v1288_v45 = vpop.f32.mrb[86].mxu0  ;;  %v2846_v59 = vpop.f32.mrb[86].mxu1  ;;  %v2685_v21 = vunpack.c.h.bf16 %v3680_v55  ;;  %v3728_v37 = vld [vmem:[%s3372_s11 + $0xf0] sm:$0xff]  }
 0x1c4   : > { %2214 = vst.msk [vmem:[%s3403_s17 + $0xa0] sm:$0xf] %vm2173_vm1, %v2570_v22  ;;  %v2571_v13 = vpack.c.bf16 %v1894_v20, %v1894_v20  ;;  %v1575_v62 = vadd.f32 %v3560_v17, %v1286_v7  ;;  %v1843_v27 = vadd.f32 %v2704_v30, %v1623_v58  ;;  %v1289_v11 = vadd.f32 %v3382_v54, %v1288_v45  ;;  %v1290_v61 = vpop.f32.mrb[87].mxu0  ;;  %v1617_v5 = vpop.f32.mrb[87].mxu1 }
 0x1c5   : > { %2225 = vst.msk [vmem:[%s3403_s17 + $0xcc] sm:$0xf] %vm2173_vm1, %v2581_v40  ;;  %2223 = vst.msk [vmem:[%s3403_s17 + $0xc4] sm:$0xf] %vm2173_vm1, %v2579_v42  ;;  %v1841_v39 = vadd.f32 %v2700_v10, %v1615_v28  ;;  %v1626_v19 = vadd.f32 %v2846_v59, %v3614_v14  ;;  %v1618_v6 = vadd.f32 %v1617_v5, %v3606_v49  ;;  %v2709_v49 = vunpack.c.h.bf16 %v3669_v15 }
 0x1c6   : > { %2215 = vst.msk [vmem:[%s3403_s17 + $0xa4] sm:$0xf] %vm2173_vm1, %v2571_v13  ;;  %v1831_v17 = vadd.f32 %v2680_v32, %v1575_v62  ;;  %v1907_v30 = vmax.f32 %v1843_v27, 0.0  ;;  %v1578_v3 = vadd.f32 %v3565_v43, %v1289_v11  ;;  %v1366_v43 = vadd.f32 %v3382_v54, %v3365_v44 }
 0x1c7   : > { %v1905_v60 = vmax.f32 %v1841_v39, 0.0  ;;  %v1844_v14 = vadd.f32 %v2705_v46, %v1626_v19  ;;  %v1842_v10 = vadd.f32 %v2701_v9, %v1618_v6  ;;  %v2720_v58 = vunpack.c.l.bf16 %v3710_v41 }
 0x1c8   : > { %v1895_v35 = vmax.f32 %v1831_v17, 0.0  ;;  %v2584_v51 = vpack.c.bf16 %v1907_v30, %v1907_v30  ;;  %v1832_v16 = vadd.f32 %v2681_v25, %v1578_v3  ;;  %v3719_v25 = vld [vmem:[%s3786_s2] ss:$0 sm:$0xff]  ;;  %v2716_v27 = vunpack.c.l.bf16 %v3728_v37 }
 0x1c9   : > { %v2582_v32 = vpack.c.bf16 %v1905_v60, %v1905_v60  ;;  %v1908_v23 = vmax.f32 %v1844_v14, 0.0  ;;  %v1906_v29 = vmax.f32 %v1842_v10, 0.0  ;;  %v1293_v63 = vpop.f32.mrb[88].mxu0  ;;  %v2849_v36 = vpop.f32.mrb[88].mxu1  ;;  %v1369_v45 = vadd.f32 %v3719_v25, %v3376_v48 }
 0x1ca   : > { %v2572_v46 = vpack.c.bf16 %v1895_v35, %v1895_v35  ;;  %2228 = vst.msk [vmem:[%s3403_s17 + $0xd8] sm:$0xf] %vm2173_vm1, %v2584_v51  ;;  %v1896_v9 = vmax.f32 %v1832_v16, 0.0  ;;  %v1294_v15 = vadd.f32 %v3719_v25, %v1293_v63  ;;  %v1639_v44 = vadd.f32 %v2849_v36, %v3640_v47  ;;  %v1295_v54 = vpop.f32.mrb[89].mxu0  ;;  %v1630_v50 = vpop.f32.mrb[89].mxu1 }
 0x1cb   : > { %2226 = vst.msk [vmem:[%s3403_s17 + $0xd0] sm:$0xf] %vm2173_vm1, %v2582_v32  ;;  %v2585_v33 = vpack.c.bf16 %v1908_v23, %v1908_v23  ;;  %v2583_v2 = vpack.c.bf16 %v1906_v29, %v1906_v29  ;;  %v1631_v22 = vadd.f32 %v1630_v50, %v3618_v0  ;;  %v1296_v20 = vpop.f32.mrb[90].mxu0  ;;  %v2850_v7 = vpop.f32.mrb[90].mxu1  ;;  %v2744_v0 = vld [vmem:[%s3372_s11 + $0xb8] sm:$0xff]  }
 0x1cc   : > { %2216 = vst.msk [vmem:[%s3403_s17 + $0xa8] sm:$0xf] %vm2173_vm1, %v2572_v46  ;;  %v2573_v47 = vpack.c.bf16 %v1896_v9, %v1896_v9  ;;  %v1583_v38 = vadd.f32 %v3578_v57, %v1294_v15  ;;  %v1847_v55 = vadd.f32 %v2712_v26, %v1639_v44  ;;  %v1297_v40 = vadd.f32 %v3719_v25, %v1296_v20  ;;  %v1298_v42 = vpop.f32.mrb[91].mxu0  ;;  %v1633_v28 = vpop.f32.mrb[91].mxu1 }
 0x1cd   : > { %2229 = vst.msk [vmem:[%s3403_s17 + $0xdc] sm:$0xf] %vm2173_vm1, %v2585_v33  ;;  %2227 = vst.msk [vmem:[%s3403_s17 + $0xd4] sm:$0xf] %vm2173_vm1, %v2583_v2  ;;  %v1845_v59 = vadd.f32 %v2708_v53, %v1631_v22  ;;  %v1642_v13 = vadd.f32 %v2850_v7, %v3644_v24  ;;  %v1634_v57 = vadd.f32 %v1633_v28, %v3628_v12  ;;  %v2688_v5 = vunpack.c.l.bf16 %v2744_v0 }
 0x1ce   : > { %2217 = vst.msk [vmem:[%s3403_s17 + $0xac] sm:$0xf] %vm2173_vm1, %v2573_v47  ;;  %v1833_v31 = vadd.f32 %v2684_v56, %v1583_v38  ;;  %v1911_v26 = vmax.f32 %v1847_v55, 0.0  ;;  %v1586_v62 = vadd.f32 %v3591_v52, %v1297_v40  ;;  %v2721_v24 = vunpack.c.h.bf16 %v3710_v41 }
 0x1cf   : > { %v1909_v11 = vmax.f32 %v1845_v59, 0.0  ;;  %v1848_v48 = vadd.f32 %v2713_v4, %v1642_v13  ;;  %v1846_v61 = vadd.f32 %v2709_v49, %v1634_v57  ;;  %v2717_v52 = vunpack.c.h.bf16 %v3728_v37 }
 0x1d0   : > { %v1897_v39 = vmax.f32 %v1833_v31, 0.0  ;;  %v2588_v19 = vpack.c.bf16 %v1911_v26, %v1911_v26  ;;  %v1834_v53 = vadd.f32 %v2685_v21, %v1586_v62  ;;  %v2689_v41 = vunpack.c.h.bf16 %v2744_v0 }
 0x1d1   : > { %v2586_v12 = vpack.c.bf16 %v1909_v11, %v1909_v11  ;;  %v1912_v6 = vmax.f32 %v1848_v48, 0.0  ;;  %v1910_v17 = vmax.f32 %v1846_v61, 0.0  ;;  %v1301_v56 = vpop.f32.mrb[92].mxu0  ;;  %v2853_v30 = vpop.f32.mrb[92].mxu1 }
 0x1d2   : > { %v2574_v3 = vpack.c.bf16 %v1897_v39, %v1897_v39  ;;  %2232 = vst.msk [vmem:[%s3403_s17 + $0xe8] sm:$0xf] %vm2173_vm1, %v2588_v19  ;;  %v1898_v4 = vmax.f32 %v1834_v53, 0.0  ;;  %v1302_v60 = vadd.f32 %v3719_v25, %v1301_v56  ;;  %v1655_v14 = vadd.f32 %v2853_v30, %v1366_v43  ;;  %v1303_v10 = vpop.f32.mrb[93].mxu0  ;;  %v1646_v49 = vpop.f32.mrb[93].mxu1 }
 0x1d3   : > { %2230 = vst.msk [vmem:[%s3403_s17 + $0xe0] sm:$0xf] %vm2173_vm1, %v2586_v12  ;;  %v2589_v35 = vpack.c.bf16 %v1912_v6, %v1912_v6  ;;  %v2587_v51 = vpack.c.bf16 %v1910_v17, %v1910_v17  ;;  %v1647_v16 = vadd.f32 %v1646_v49, %v3665_v8  ;;  %v1304_v21 = vpop.f32.mrb[94].mxu0  ;;  %v2854_v32 = vpop.f32.mrb[94].mxu1 }
 0x1d4   : > { %2218 = vst.msk [vmem:[%s3403_s17 + $0xb0] sm:$0xf] %vm2173_vm1, %v2574_v3  ;;  %v2575_v23 = vpack.c.bf16 %v1898_v4, %v1898_v4  ;;  %v1591_v29 = vadd.f32 %v3575_v1, %v1302_v60  ;;  %v1851_v43 = vadd.f32 %v2720_v58, %v1655_v14  ;;  %v1305_v63 = vadd.f32 %v3719_v25, %v1304_v21  ;;  %v1306_v36 = vpop.f32.mrb[95].mxu0  ;;  %v1649_v46 = vpop.f32.mrb[95].mxu1 }
 0x1d5   : > { %2233 = vst.msk [vmem:[%s3403_s17 + $0xec] sm:$0xf] %vm2173_vm1, %v2589_v35  ;;  %2231 = vst.msk [vmem:[%s3403_s17 + $0xe4] sm:$0xf] %vm2173_vm1, %v2587_v51  ;;  %v1849_v9 = vadd.f32 %v2716_v27, %v1647_v16  ;;  %v1658_v8 = vadd.f32 %v2854_v32, %v1369_v45  ;;  %v1650_v15 = vadd.f32 %v1649_v46, %v3673_v34 }
 0x1d6   : > { %2219 = vst.msk [vmem:[%s3403_s17 + $0xb4] sm:$0xf] %vm2173_vm1, %v2575_v23  ;;  %v1835_v44 = vadd.f32 %v2688_v5, %v1591_v29  ;;  %v1915_v54 = vmax.f32 %v1851_v43, 0.0  ;;  %v1594_v1 = vadd.f32 %v3586_v18, %v1305_v63 }
 0x1d7   : > { %v1913_v25 = vmax.f32 %v1849_v9, 0.0  ;;  %v1852_v50 = vadd.f32 %v2721_v24, %v1658_v8  ;;  %v1850_v33 = vadd.f32 %v2717_v52, %v1650_v15 }
 0x1d8   : > { %v1899_v2 = vmax.f32 %v1835_v44, 0.0  ;;  %v2592_v22 = vpack.c.bf16 %v1915_v54, %v1915_v54  ;;  %v1836_v20 = vadd.f32 %v2689_v41, %v1594_v1 }
 0x1d9   : > { %v2590_v7 = vpack.c.bf16 %v1913_v25, %v1913_v25  ;;  %v1916_v58 = vmax.f32 %v1852_v50, 0.0  ;;  %v1914_v34 = vmax.f32 %v1850_v33, 0.0 }
 0x1da   : > { %v2576_v37 = vpack.c.bf16 %v1899_v2, %v1899_v2  ;;  %2236 = vst.msk [vmem:[%s3403_s17 + $0xf8] sm:$0xf] %vm2173_vm1, %v2592_v22  ;;  %v1900_v47 = vmax.f32 %v1836_v20, 0.0 }
 0x1db   : > { %2234 = vst.msk [vmem:[%s3403_s17 + $0xf0] sm:$0xf] %vm2173_vm1, %v2590_v7  ;;  %v2593_v18 = vpack.c.bf16 %v1916_v58, %v1916_v58  ;;  %v2591_v38 = vpack.c.bf16 %v1914_v34, %v1914_v34 }
 0x1dc   : > { %2220 = vst.msk [vmem:[%s3403_s17 + $0xb8] sm:$0xf] %vm2173_vm1, %v2576_v37  ;;  %v2577_v55 = vpack.c.bf16 %v1900_v47, %v1900_v47 }
 0x1dd   : > { %2237 = vst.msk [vmem:[%s3403_s17 + $0xfc] sm:$0xf] %vm2173_vm1, %v2593_v18  ;;  %2235 = vst.msk [vmem:[%s3403_s17 + $0xf4] sm:$0xf] %vm2173_vm1, %v2591_v38 }
 0x1de   : > { %2221 = vst.msk [vmem:[%s3403_s17 + $0xbc] sm:$0xf] %vm2173_vm1, %v2577_v55 }
 0x1df PF: > { %s14_s15 = sadd.s32 1, %s3050_s15  }
 0x1e0   : > { %p11_p4 = scmp.ge.s32.totalorder %s14_s15, 6  }
 0x1e2   :  { %13 = sbr.rel (!%p11_p4) target bundleno = 1 (0x1), region = 69 }

// kernel: _lambda_.12
= control target key start
LH: loop header
LB: loop body
LE: loop exit
PB: predicated region body
PF: predicated region fallthrough
CT: control target
= control target key end

     0   :  { %v2394_v0 = vmov 0   ;;  %vm774_vm0 = vcmask 261120   ;;  %vm1769_vm1 = vcmask 519168   ;;  %s3272_s1 = inlined_call_operand.vmem [shape: bf16[288,64], index: 1, kind: input, shape index: {}]   ;;  %s3273_s0 = inlined_call_operand.vmem [shape: bf16[512,288], index: 0, kind: input, shape index: {}]   ;;  %s3274_s2 = inlined_call_operand.vmem [shape: f32[1,64], index: 2, kind: input, shape index: {}]   ;;  %s3275_s3 = inlined_call_operand.vmem [shape: bf16[512,64], index: 3, kind: output, shape index: {}]  }
   0x1   :  { %871 = vmatprep.subr.bf16.mxu0 %v2394_v0  ;;  %2215 = vmatprep.subr.bf16.mxu1 %v2394_v0  ;;  %v2248_v1 = vld [vmem:[%s3272_s1] sm:$0xff]   ;;  %v2249_v2 = vld [vmem:[%s3272_s1 + $0x8] sm:$0xff]   ;;  %v2250_v3 = vld [vmem:[%s3272_s1 + $0x10] sm:$0xff]  }
   0x2   :  { %872 = vmatpush1.bf16.msra.mxu0 %v2248_v1  ;;  %2231 = vmatpush1.bf16.msra.mxu1 %v2248_v1  ;;  %v2251_v4 = vld [vmem:[%s3272_s1 + $0x18] sm:$0xff]   ;;  %v2252_v5 = vld [vmem:[%s3272_s1 + $0x20] sm:$0xff]   ;;  %v2253_v7 = vld [vmem:[%s3272_s1 + $0x28] sm:$0xff]  }
   0x3   :  { %873 = vmatprep.subr.bf16.mxu0 %v2394_v0  ;;  %2216 = vmatprep.subr.bf16.mxu1 %v2394_v0  ;;  %v2266_v6 = vld [vmem:[%s3273_s0 + $0x4] ss:$12 sps:$4 sm:$0xff]   ;;  %v2255_v10 = vld [vmem:[%s3272_s1 + $0x38] sm:$0xff]   ;;  %v2257_v12 = vld [vmem:[%s3272_s1 + $0x48] sm:$0xff]  }
   0x4   :  { %v2269_v8 = vld [vmem:[%s3273_s0 + $0x244] ss:$12 sps:$4 sm:$0xff]   ;;  %903 = vmatprep.mubr.bf16.mxu0 %v2266_v6  ;;  %v2259_v14 = vld [vmem:[%s3272_s1 + $0x58] sm:$0xff]   ;;  %v2261_v16 = vld [vmem:[%s3272_s1 + $0x68] sm:$0xff]  }
   0x5   :  { %1095 = vmatprep.mubr.bf16.mxu1 %v2269_v8  ;;  %v2254_v9 = vld [vmem:[%s3272_s1 + $0x30] sm:$0xff]   ;;  %v2256_v11 = vld [vmem:[%s3272_s1 + $0x40] sm:$0xff]   ;;  %v2263_v18 = vld [vmem:[%s3272_s1 + $0x78] sm:$0xff]  }
   0x6   :  { %874 = vmatpush1.bf16.msra.mxu0 %v2249_v2  ;;  %2232 = vmatpush1.bf16.msra.mxu1 %v2249_v2  ;;  %v2258_v13 = vld [vmem:[%s3272_s1 + $0x50] sm:$0xff]   ;;  %v2260_v15 = vld [vmem:[%s3272_s1 + $0x60] sm:$0xff]   ;;  %v2271_v22 = vld [vmem:[%s3273_s0 + $0x1c] ss:$12 sps:$4 sm:$0xff]  }
   0x7   :  { %875 = vmatprep.subr.bf16.mxu0 %v2394_v0  ;;  %2217 = vmatprep.subr.bf16.mxu1 %v2394_v0  ;;  %v2262_v17 = vld [vmem:[%s3272_s1 + $0x70] sm:$0xff]   ;;  %v2270_v19 = vld [vmem:[%s3272_s1 + $0x80] sm:$0xff]   ;;  %v2273_v23 = vld [vmem:[%s3273_s0 + $0x25c] ss:$12 sps:$4 sm:$0xff]  }
   0x8   :  { %v2264_v20 = vld [vmem:[%s3273_s0] ss:$12 sps:$4 sm:$0xff]   ;;  %v2275_v25 = vld [vmem:[%s3273_s0 + $0x18] ss:$12 sps:$4 sm:$0xff]   ;;  %v2281_v29 = vld [vmem:[%s3273_s0 + $0x30] ss:$12 sps:$4 sm:$0xff]  }
   0x9   :  { %v2267_v21 = vld [vmem:[%s3273_s0 + $0x240] ss:$12 sps:$4 sm:$0xff]   ;;  %v2276_v26 = vld [vmem:[%s3273_s0 + $0x258] ss:$12 sps:$4 sm:$0xff]   ;;  %v2282_v30 = vld [vmem:[%s3273_s0 + $0x270] ss:$12 sps:$4 sm:$0xff]  }
   0xa   :  { %876 = vmatpush1.bf16.msra.mxu0 %v2250_v3  ;;  %2233 = vmatpush1.bf16.msra.mxu1 %v2250_v3  ;;  %v2295_v24 = vld [vmem:[%s3272_s1 + $0x88] sm:$0xff]   ;;  %v2277_v27 = vld [vmem:[%s3273_s0 + $0x34] ss:$12 sps:$4 sm:$0xff]   ;;  %v2289_v35 = vld [vmem:[%s3273_s0 + $0x64] ss:$12 sps:$4 sm:$0xff]  }
   0xb   :  { %877 = vmatprep.subr.bf16.mxu0 %v2394_v0  ;;  %2218 = vmatprep.subr.bf16.mxu1 %v2394_v0  ;;  %v2279_v28 = vld [vmem:[%s3273_s0 + $0x274] ss:$12 sps:$4 sm:$0xff]   ;;  %v2283_v31 = vld [vmem:[%s3273_s0 + $0x4c] ss:$12 sps:$4 sm:$0xff]   ;;  %v2291_v36 = vld [vmem:[%s3273_s0 + $0x2a4] ss:$12 sps:$4 sm:$0xff]  }
   0xc   :  { %v2285_v32 = vld [vmem:[%s3273_s0 + $0x28c] ss:$12 sps:$4 sm:$0xff]   ;;  %v2287_v33 = vld [vmem:[%s3273_s0 + $0x48] ss:$12 sps:$4 sm:$0xff]   ;;  %v2306_v45 = vld [vmem:[%s3273_s0 + $0x90] ss:$12 sps:$4 sm:$0xff]  }
   0xd   :  { %v2288_v34 = vld [vmem:[%s3273_s0 + $0x288] ss:$12 sps:$4 sm:$0xff]   ;;  %v2293_v37 = vld [vmem:[%s3273_s0 + $0x60] ss:$12 sps:$4 sm:$0xff]   ;;  %v2300_v41 = vld [vmem:[%s3273_s0 + $0x78] ss:$12 sps:$4 sm:$0xff]  }
   0xe   :  { %878 = vmatpush1.bf16.msra.mxu0 %v2251_v4  ;;  %2234 = vmatpush1.bf16.msra.mxu1 %v2251_v4  ;;  %v2294_v38 = vld [vmem:[%s3273_s0 + $0x2a0] ss:$12 sps:$4 sm:$0xff]   ;;  %v2296_v39 = vld [vmem:[%s3273_s0 + $0x7c] ss:$12 sps:$4 sm:$0xff]   ;;  %v2301_v42 = vld [vmem:[%s3273_s0 + $0x2b8] ss:$12 sps:$4 sm:$0xff]  }
   0xf   :  { %879 = vmatprep.subr.bf16.mxu0 %v2394_v0  ;;  %2219 = vmatprep.subr.bf16.mxu1 %v2394_v0  ;;  %v2298_v40 = vld [vmem:[%s3273_s0 + $0x2bc] ss:$12 sps:$4 sm:$0xff]   ;;  %v2302_v43 = vld [vmem:[%s3273_s0 + $0x94] ss:$12 sps:$4 sm:$0xff]   ;;  %v2308_v47 = vld [vmem:[%s3273_s0 + $0xac] ss:$12 sps:$4 sm:$0xff]  }
  0x10   :  { %v2304_v44 = vld [vmem:[%s3273_s0 + $0x2d4] ss:$12 sps:$4 sm:$0xff]   ;;  %v2307_v46 = vld [vmem:[%s3273_s0 + $0x2d0] ss:$12 sps:$4 sm:$0xff]   ;;  %v2310_v48 = vld [vmem:[%s3273_s0 + $0x2ec] ss:$12 sps:$4 sm:$0xff]  }
  0x11   :  { %v2312_v49 = vld [vmem:[%s3273_s0 + $0xa8] ss:$12 sps:$4 sm:$0xff]   ;;  %v2314_v51 = vld [vmem:[%s3273_s0 + $0xc4] ss:$12 sps:$4 sm:$0xff]   ;;  %v2317_v53 = vld [vmem:[%s3273_s0 + $0xc0] ss:$12 sps:$4 sm:$0xff]  }
  0x12   :  { %880 = vmatpush1.bf16.msra.mxu0 %v2252_v5  ;;  %2235 = vmatpush1.bf16.msra.mxu1 %v2252_v5  ;;  %v2313_v50 = vld [vmem:[%s3273_s0 + $0x2e8] ss:$12 sps:$4 sm:$0xff]   ;;  %v2318_v54 = vld [vmem:[%s3273_s0 + $0x20] ss:$12 sps:$4 sm:$0xff]   ;;  %v2321_v56 = vld [vmem:[%s3273_s0 + $0x38] ss:$12 sps:$4 sm:$0xff]  }
  0x13   :  { %881 = vmatprep.subr.bf16.mxu0 %v2394_v0  ;;  %2220 = vmatprep.subr.bf16.mxu1 %v2394_v0  ;;  %v2316_v52 = vld [vmem:[%s3273_s0 + $0x8] ss:$12 sps:$4 sm:$0xff]   ;;  %v2322_v57 = vld [vmem:[%s3273_s0 + $0xd8] ss:$12 sps:$4 sm:$0xff]   ;;  %v2323_v58 = vld [vmem:[%s3273_s0 + $0x50] ss:$12 sps:$4 sm:$0xff]  }
  0x14   :  { %v2319_v55 = vld [vmem:[%s3273_s0 + $0xdc] ss:$12 sps:$4 sm:$0xff]   ;;  %v2324_v59 = vld [vmem:[%s3273_s0 + $0xf4] ss:$12 sps:$4 sm:$0xff]   ;;  %v2329_v63 = vld [vmem:[%s3273_s0 + $0x10c] ss:$12 sps:$4 sm:$0xff]  }
  0x15   :  { %v2326_v60 = vld [vmem:[%s3273_s0 + $0x68] ss:$12 sps:$4 sm:$0xff]   ;;  %v2327_v61 = vld [vmem:[%s3273_s0 + $0xf0] ss:$12 sps:$4 sm:$0xff]   ;;  %v2328_v62 = vld [vmem:[%s3273_s0 + $0x80] ss:$12 sps:$4 sm:$0xff]  }
  0x16   :  { %882 = vmatpush1.bf16.msra.mxu0 %v2253_v7  ;;  %2236 = vmatpush1.bf16.msra.mxu1 %v2253_v7  ;;  %v2332_v1 = vld [vmem:[%s3273_s0 + $0x108] ss:$12 sps:$4 sm:$0xff]   ;;  %v2333_v2 = vld [vmem:[%s3273_s0 + $0xb0] ss:$12 sps:$4 sm:$0xff]   ;;  %v2337_v5 = vld [vmem:[%s3273_s0 + $0x120] ss:$12 sps:$4 sm:$0xff]  }
  0x17   :  { %883 = vmatprep.subr.bf16.mxu0 %v2394_v0  ;;  %2221 = vmatprep.subr.bf16.mxu1 %v2394_v0  ;;  %v2334_v3 = vld [vmem:[%s3273_s0 + $0x124] ss:$12 sps:$4 sm:$0xff]   ;;  %v2336_v4 = vld [vmem:[%s3273_s0 + $0xc8] ss:$12 sps:$4 sm:$0xff]   ;;  %v2338_v6 = vld [vmem:[%s3273_s0 + $0xe0] ss:$12 sps:$4 sm:$0xff]  }
  0x18   :  { %v2339_v7 = vld [vmem:[%s3273_s0 + $0x13c] ss:$12 sps:$4 sm:$0xff]   ;;  %v2341_v8 = vld [vmem:[%s3273_s0 + $0xf8] ss:$12 sps:$4 sm:$0xff]  }
  0x1a   :  { %884 = vmatpush1.bf16.msra.mxu0 %v2254_v9  ;;  %2237 = vmatpush1.bf16.msra.mxu1 %v2254_v9  ;;  %v2342_v9 = vld [vmem:[%s3273_s0 + $0x138] ss:$12 sps:$4 sm:$0xff]  }
  0x1b   :  { %885 = vmatprep.subr.bf16.mxu0 %v2394_v0  ;;  %2222 = vmatprep.subr.bf16.mxu1 %v2394_v0 }
  0x1e   :  { %886 = vmatpush1.bf16.msra.mxu0 %v2255_v10  ;;  %2238 = vmatpush1.bf16.msra.mxu1 %v2255_v10  ;;  %v2343_v10 = vld [vmem:[%s3273_s0 + $0x110] ss:$12 sps:$4 sm:$0xff]  }
  0x1f   :  { %887 = vmatprep.subr.bf16.mxu0 %v2394_v0  ;;  %2223 = vmatprep.subr.bf16.mxu1 %v2394_v0 }
  0x22   :  { %888 = vmatpush1.bf16.msra.mxu0 %v2256_v11  ;;  %2239 = vmatpush1.bf16.msra.mxu1 %v2256_v11  ;;  %v2344_v11 = vld [vmem:[%s3273_s0 + $0x154] ss:$12 sps:$4 sm:$0xff]  }
  0x23   :  { %889 = vmatprep.subr.bf16.mxu0 %v2394_v0  ;;  %2224 = vmatprep.subr.bf16.mxu1 %v2394_v0 }
  0x26   :  { %890 = vmatpush1.bf16.msra.mxu0 %v2257_v12  ;;  %2240 = vmatpush1.bf16.msra.mxu1 %v2257_v12  ;;  %v2346_v12 = vld [vmem:[%s3273_s0 + $0x128] ss:$12 sps:$4 sm:$0xff]  }
  0x27   :  { %891 = vmatprep.subr.bf16.mxu0 %v2394_v0  ;;  %2225 = vmatprep.subr.bf16.mxu1 %v2394_v0 }
  0x2a   :  { %892 = vmatpush1.bf16.msra.mxu0 %v2258_v13  ;;  %2241 = vmatpush1.bf16.msra.mxu1 %v2258_v13  ;;  %v2347_v13 = vld [vmem:[%s3273_s0 + $0x150] ss:$12 sps:$4 sm:$0xff]  }
  0x2b   :  { %893 = vmatprep.subr.bf16.mxu0 %v2394_v0  ;;  %2226 = vmatprep.subr.bf16.mxu1 %v2394_v0 }
  0x2e   :  { %894 = vmatpush1.bf16.msra.mxu0 %v2259_v14  ;;  %2242 = vmatpush1.bf16.msra.mxu1 %v2259_v14  ;;  %v2348_v14 = vld [vmem:[%s3273_s0 + $0x140] ss:$12 sps:$4 sm:$0xff]  }
  0x2f   :  { %895 = vmatprep.subr.bf16.mxu0 %v2394_v0  ;;  %2227 = vmatprep.subr.bf16.mxu1 %v2394_v0 }
  0x32   :  { %896 = vmatpush1.bf16.msra.mxu0 %v2260_v15  ;;  %2243 = vmatpush1.bf16.msra.mxu1 %v2260_v15  ;;  %v2349_v15 = vld [vmem:[%s3273_s0 + $0x16c] ss:$12 sps:$4 sm:$0xff]  }
  0x33   :  { %897 = vmatprep.subr.bf16.mxu0 %v2394_v0  ;;  %2228 = vmatprep.subr.bf16.mxu1 %v2394_v0 }
  0x36   :  { %898 = vmatpush1.bf16.msra.mxu0 %v2261_v16  ;;  %2244 = vmatpush1.bf16.msra.mxu1 %v2261_v16  ;;  %v2351_v16 = vld [vmem:[%s3273_s0 + $0x158] ss:$12 sps:$4 sm:$0xff]  }
  0x37   :  { %899 = vmatprep.subr.bf16.mxu0 %v2394_v0  ;;  %2229 = vmatprep.subr.bf16.mxu1 %v2394_v0 }
  0x3a   :  { %900 = vmatpush1.bf16.msra.mxu0 %v2262_v17  ;;  %2245 = vmatpush1.bf16.msra.mxu1 %v2262_v17  ;;  %v2352_v17 = vld [vmem:[%s3273_s0 + $0x168] ss:$12 sps:$4 sm:$0xff]  }
  0x3b   :  { %901 = vmatprep.subr.bf16.mxu0 %v2394_v0  ;;  %2230 = vmatprep.subr.bf16.mxu1 %v2394_v0  ;;  %v2331_v0 = vld [vmem:[%s3273_s0 + $0x98] ss:$12 sps:$4 sm:$0xff]  }
  0x3e   :  { %902 = vmatpush1.bf16.msra.mxu0 %v2263_v18  ;;  %2246 = vmatpush1.bf16.msra.mxu1 %v2263_v18  ;;  %v2353_v18 = vld [vmem:[%s3273_s0 + $0x170] ss:$12 sps:$4 sm:$0xff]  }
  0x3f   :  { %2147 = vmatprep.subr.bf16.mxu1 %v2270_v19 }
  0x41   :  { %904 = vmatmul.mubr.bf16.vlgmr.msra.gmra.mrb[0].mxu0 %v2264_v20  ;;  %1096 = vmatmul.mubr.bf16.vlgmr.msra.gmra.mrb[0].mxu1 %v2267_v21  ;;  %v2356_v20 = vld [vmem:[%s3273_s0 + $0x188] ss:$12 sps:$4 sm:$0xff]   ;;  %v2357_v21 = vld [vmem:[%s3273_s0 + $0x180] ss:$12 sps:$4 sm:$0xff]  }
  0x42   :  { %2148 = vmatpush3.bf16.msra.mxu1 %v2270_v19  ;;  %911 = vmatprep.mubr.bf16.mxu0 %v2271_v22  ;;  %v2354_v19 = vld [vmem:[%s3273_s0 + $0x184] ss:$12 sps:$4 sm:$0xff]   ;;  %v2358_v22 = vld [vmem:[%s3273_s0 + $0x1a0] ss:$12 sps:$4 sm:$0xff]  }
  0x43   :  { %1103 = vmatprep.mubr.bf16.mxu1 %v2273_v23  ;;  %2149 = vmatprep.subr.bf16.mxu1 %v2295_v24  ;;  %v2359_v23 = vld [vmem:[%s3273_s0 + $0x19c] ss:$12 sps:$4 sm:$0xff]  }
  0x46   :  { %2150 = vmatpush3.bf16.msra.mxu1 %v2295_v24  ;;  %v2361_v24 = vld [vmem:[%s3273_s0 + $0x1b8] ss:$12 sps:$4 sm:$0xff]  }
  0x49   :  { %912 = vmatmul.mubr.bf16.gmra.mrb[4].mxu0 %v2275_v25  ;;  %1104 = vmatmul.mubr.bf16.gmra.mrb[4].mxu1 %v2276_v26  ;;  %v2362_v25 = vld [vmem:[%s3273_s0 + $0x198] ss:$12 sps:$4 sm:$0xff]   ;;  %v2363_v26 = vld [vmem:[%s3273_s0 + $0x1d0] ss:$12 sps:$4 sm:$0xff]  }
  0x4a   :  { %919 = vmatprep.mubr.bf16.mxu0 %v2277_v27  ;;  %1111 = vmatprep.mubr.bf16.mxu1 %v2279_v28  ;;  %v2364_v27 = vld [vmem:[%s3273_s0 + $0x1b4] ss:$12 sps:$4 sm:$0xff]  }
  0x4b   :  { %v2366_v28 = vld [vmem:[%s3273_s0 + $0x1e8] ss:$12 sps:$4 sm:$0xff]  }
  0x51   :  { %920 = vmatmul.mubr.bf16.gmra.mrb[8].mxu0 %v2281_v29  ;;  %1112 = vmatmul.mubr.bf16.gmra.mrb[8].mxu1 %v2282_v30  ;;  %v2367_v29 = vld [vmem:[%s3273_s0 + $0x1b0] ss:$12 sps:$4 sm:$0xff]   ;;  %v2368_v30 = vld [vmem:[%s3273_s0 + $0x200] ss:$12 sps:$4 sm:$0xff]  }
  0x52   :  { %927 = vmatprep.mubr.bf16.mxu0 %v2283_v31  ;;  %1119 = vmatprep.mubr.bf16.mxu1 %v2285_v32  ;;  %v2369_v31 = vld [vmem:[%s3273_s0 + $0x1cc] ss:$12 sps:$4 sm:$0xff]  }
  0x53   :  { %v2371_v32 = vld [vmem:[%s3273_s0 + $0x218] ss:$12 sps:$4 sm:$0xff]  }
  0x59   :  { %928 = vmatmul.mubr.bf16.gmra.mrb[12].mxu0 %v2287_v33  ;;  %1120 = vmatmul.mubr.bf16.gmra.mrb[12].mxu1 %v2288_v34  ;;  %v2372_v33 = vld [vmem:[%s3273_s0 + $0x1c8] ss:$12 sps:$4 sm:$0xff]   ;;  %v2373_v34 = vld [vmem:[%s3273_s0 + $0x230] ss:$12 sps:$4 sm:$0xff]  }
  0x5a   :  { %935 = vmatprep.mubr.bf16.mxu0 %v2289_v35  ;;  %1127 = vmatprep.mubr.bf16.mxu1 %v2291_v36  ;;  %v2374_v35 = vld [vmem:[%s3273_s0 + $0x1e4] ss:$12 sps:$4 sm:$0xff]   ;;  %v2376_v36 = vld [vmem:[%s3273_s0 + $0x248] ss:$12 sps:$4 sm:$0xff]  }
  0x61   :  { %936 = vmatmul.mubr.bf16.gmra.mrb[16].mxu0 %v2293_v37  ;;  %1128 = vmatmul.mubr.bf16.gmra.mrb[16].mxu1 %v2294_v38  ;;  %v2377_v37 = vld [vmem:[%s3273_s0 + $0x1e0] ss:$12 sps:$4 sm:$0xff]  }
  0x62   :  { %943 = vmatprep.mubr.bf16.mxu0 %v2296_v39  ;;  %1135 = vmatprep.mubr.bf16.mxu1 %v2298_v40  ;;  %v2378_v38 = vld [vmem:[%s3273_s0 + $0x260] ss:$12 sps:$4 sm:$0xff]   ;;  %v2379_v39 = vld [vmem:[%s3273_s0 + $0x1fc] ss:$12 sps:$4 sm:$0xff]   ;;  %v2381_v40 = vld [vmem:[%s3273_s0 + $0x278] ss:$12 sps:$4 sm:$0xff]  }
  0x69   :  { %944 = vmatmul.mubr.bf16.gmra.mrb[20].mxu0 %v2300_v41  ;;  %1136 = vmatmul.mubr.bf16.gmra.mrb[20].mxu1 %v2301_v42  ;;  %v2382_v41 = vld [vmem:[%s3273_s0 + $0x1f8] ss:$12 sps:$4 sm:$0xff]   ;;  %v2383_v42 = vld [vmem:[%s3273_s0 + $0x290] ss:$12 sps:$4 sm:$0xff]  }
  0x6a   :  { %951 = vmatprep.mubr.bf16.mxu0 %v2302_v43  ;;  %1143 = vmatprep.mubr.bf16.mxu1 %v2304_v44  ;;  %v2384_v43 = vld [vmem:[%s3273_s0 + $0x214] ss:$12 sps:$4 sm:$0xff]  }
  0x6b   :  { %v2386_v44 = vld [vmem:[%s3273_s0 + $0x2a8] ss:$12 sps:$4 sm:$0xff]  }
  0x71   :  { %952 = vmatmul.mubr.bf16.gmra.mrb[24].mxu0 %v2306_v45  ;;  %1144 = vmatmul.mubr.bf16.gmra.mrb[24].mxu1 %v2307_v46  ;;  %v2387_v45 = vld [vmem:[%s3273_s0 + $0x210] ss:$12 sps:$4 sm:$0xff]   ;;  %v2388_v46 = vld [vmem:[%s3273_s0 + $0x2c0] ss:$12 sps:$4 sm:$0xff]  }
  0x72   :  { %959 = vmatprep.mubr.bf16.mxu0 %v2308_v47  ;;  %1151 = vmatprep.mubr.bf16.mxu1 %v2310_v48  ;;  %v2389_v47 = vld [vmem:[%s3273_s0 + $0x22c] ss:$12 sps:$4 sm:$0xff]  }
  0x73   :  { %v2391_v48 = vld [vmem:[%s3273_s0 + $0x2d8] ss:$12 sps:$4 sm:$0xff]  }
  0x79   :  { %960 = vmatmul.mubr.bf16.gmra.mrb[28].mxu0 %v2312_v49  ;;  %1152 = vmatmul.mubr.bf16.gmra.mrb[28].mxu1 %v2313_v50  ;;  %v2392_v49 = vld [vmem:[%s3273_s0 + $0x228] ss:$12 sps:$4 sm:$0xff]   ;;  %v2393_v50 = vld [vmem:[%s3273_s0 + $0x2f0] ss:$12 sps:$4 sm:$0xff]  }
  0x7a   :  { %967 = vmatprep.mubr.bf16.mxu0 %v2314_v51  ;;  %2151 = vmatprep.mubr.msk.bf16.mxu1 %vm774_vm0, %v2316_v52 }
  0x81   :  { %968 = vmatmul.mubr.bf16.gmra.mrb[32].mxu0 %v2317_v53  ;;  %2152 = vmatmul.mubr.msk.bf16.vlgmr.msra.gmra.mrb[32].mxu1 %vm774_vm0, %v2318_v54 }
  0x82   :  { %975 = vmatprep.mubr.bf16.mxu0 %v2319_v55  ;;  %2155 = vmatprep.mubr.msk.bf16.mxu1 %vm774_vm0, %v2321_v56 }
  0x89   :  { %976 = vmatmul.mubr.bf16.gmra.mrb[36].mxu0 %v2322_v57  ;;  %2156 = vmatmul.mubr.msk.bf16.gmra.mrb[36].mxu1 %vm774_vm0, %v2323_v58 }
  0x8a   :  { %983 = vmatprep.mubr.bf16.mxu0 %v2324_v59  ;;  %2159 = vmatprep.mubr.msk.bf16.mxu1 %vm774_vm0, %v2326_v60 }
  0x91   :  { %984 = vmatmul.mubr.bf16.gmra.mrb[40].mxu0 %v2327_v61  ;;  %2160 = vmatmul.mubr.msk.bf16.gmra.mrb[40].mxu1 %vm774_vm0, %v2328_v62 }
  0x92   :  { %991 = vmatprep.mubr.bf16.mxu0 %v2329_v63  ;;  %2163 = vmatprep.mubr.msk.bf16.mxu1 %vm774_vm0, %v2331_v0 }
  0x99   :  { %992 = vmatmul.mubr.bf16.gmra.mrb[44].mxu0 %v2332_v1  ;;  %2164 = vmatmul.mubr.msk.bf16.gmra.mrb[44].mxu1 %vm774_vm0, %v2333_v2 }
  0x9a   :  { %999 = vmatprep.mubr.bf16.mxu0 %v2334_v3  ;;  %2167 = vmatprep.mubr.msk.bf16.mxu1 %vm774_vm0, %v2336_v4 }
  0xa1   :  { %1000 = vmatmul.mubr.bf16.gmra.mrb[48].mxu0 %v2337_v5  ;;  %2168 = vmatmul.mubr.msk.bf16.gmra.mrb[48].mxu1 %vm774_vm0, %v2338_v6 }
  0xa2   :  { %1007 = vmatprep.mubr.bf16.mxu0 %v2339_v7  ;;  %2171 = vmatprep.mubr.msk.bf16.mxu1 %vm774_vm0, %v2341_v8 }
  0xa9   :  { %1008 = vmatmul.mubr.bf16.gmra.mrb[52].mxu0 %v2342_v9  ;;  %2172 = vmatmul.mubr.msk.bf16.gmra.mrb[52].mxu1 %vm774_vm0, %v2343_v10 }
  0xaa   :  { %1015 = vmatprep.mubr.bf16.mxu0 %v2344_v11  ;;  %2175 = vmatprep.mubr.msk.bf16.mxu1 %vm774_vm0, %v2346_v12 }
  0xb1   :  { %1016 = vmatmul.mubr.bf16.gmra.mrb[56].mxu0 %v2347_v13  ;;  %2176 = vmatmul.mubr.msk.bf16.gmra.mrb[56].mxu1 %vm774_vm0, %v2348_v14 }
  0xb2   :  { %1023 = vmatprep.mubr.bf16.mxu0 %v2349_v15  ;;  %2179 = vmatprep.mubr.msk.bf16.mxu1 %vm774_vm0, %v2351_v16 }
  0xb9   :  { %1024 = vmatmul.mubr.bf16.gmra.mrb[60].mxu0 %v2352_v17  ;;  %2180 = vmatmul.mubr.msk.bf16.gmra.mrb[60].mxu1 %vm774_vm0, %v2353_v18 }
  0xba   :  { %1031 = vmatprep.mubr.bf16.mxu0 %v2354_v19  ;;  %2183 = vmatprep.mubr.msk.bf16.mxu1 %vm774_vm0, %v2356_v20 }
  0xc1   :  { %1032 = vmatmul.mubr.bf16.gmra.mrb[64].mxu0 %v2357_v21  ;;  %2184 = vmatmul.mubr.msk.bf16.gmra.mrb[64].mxu1 %vm774_vm0, %v2358_v22 }
  0xc2   :  { %1039 = vmatprep.mubr.bf16.mxu0 %v2359_v23  ;;  %2187 = vmatprep.mubr.msk.bf16.mxu1 %vm774_vm0, %v2361_v24 }
  0xc9   :  { %1040 = vmatmul.mubr.bf16.gmra.mrb[68].mxu0 %v2362_v25  ;;  %2188 = vmatmul.mubr.msk.bf16.gmra.mrb[68].mxu1 %vm774_vm0, %v2363_v26 }
  0xca   :  { %1047 = vmatprep.mubr.bf16.mxu0 %v2364_v27  ;;  %2191 = vmatprep.mubr.msk.bf16.mxu1 %vm774_vm0, %v2366_v28 }
  0xd1   :  { %1048 = vmatmul.mubr.bf16.gmra.mrb[72].mxu0 %v2367_v29  ;;  %2192 = vmatmul.mubr.msk.bf16.gmra.mrb[72].mxu1 %vm774_vm0, %v2368_v30 }
  0xd2   :  { %1055 = vmatprep.mubr.bf16.mxu0 %v2369_v31  ;;  %2195 = vmatprep.mubr.msk.bf16.mxu1 %vm774_vm0, %v2371_v32 }
  0xd9   :  { %1056 = vmatmul.mubr.bf16.gmra.mrb[76].mxu0 %v2372_v33  ;;  %2196 = vmatmul.mubr.msk.bf16.gmra.mrb[76].mxu1 %vm774_vm0, %v2373_v34 }
  0xda   :  { %1063 = vmatprep.mubr.bf16.mxu0 %v2374_v35  ;;  %2199 = vmatprep.mubr.msk.bf16.mxu1 %vm774_vm0, %v2376_v36 }
  0xe1   :  { %1064 = vmatmul.mubr.bf16.gmra.mrb[80].mxu0 %v2377_v37  ;;  %2200 = vmatmul.mubr.msk.bf16.gmra.mrb[80].mxu1 %vm774_vm0, %v2378_v38 }
  0xe2   :  { %1071 = vmatprep.mubr.bf16.mxu0 %v2379_v39  ;;  %2203 = vmatprep.mubr.msk.bf16.mxu1 %vm774_vm0, %v2381_v40 }
  0xe9   :  { %1072 = vmatmul.mubr.bf16.gmra.mrb[84].mxu0 %v2382_v41  ;;  %2204 = vmatmul.mubr.msk.bf16.gmra.mrb[84].mxu1 %vm774_vm0, %v2383_v42 }
  0xea   :  { %1079 = vmatprep.mubr.bf16.mxu0 %v2384_v43  ;;  %2207 = vmatprep.mubr.msk.bf16.mxu1 %vm774_vm0, %v2386_v44 }
  0xf1   :  { %1080 = vmatmul.mubr.bf16.gmra.mrb[88].mxu0 %v2387_v45  ;;  %2208 = vmatmul.mubr.msk.bf16.gmra.mrb[88].mxu1 %vm774_vm0, %v2388_v46 }
  0xf2   :  { %1087 = vmatprep.mubr.bf16.mxu0 %v2389_v47  ;;  %2211 = vmatprep.mubr.msk.bf16.mxu1 %vm774_vm0, %v2391_v48 }
  0xf9   :  { %1088 = vmatmul.mubr.bf16.gmra.mrb[92].mxu0 %v2392_v49  ;;  %2212 = vmatmul.mubr.msk.bf16.gmra.mrb[92].mxu1 %vm774_vm0, %v2393_v50 }
 0x114   :  { %v2821_v51 = vpop.f32.mrb[0].mxu0  ;;  %v2823_v52 = vpop.f32.mrb[0].mxu1 }
 0x115   :  { %v907_v53 = vpop.f32.mrb[1].mxu0  ;;  %v1099_v54 = vpop.f32.mrb[1].mxu1 }
 0x116   :  { %v2825_v55 = vpop.f32.mrb[2].mxu0  ;;  %v2827_v56 = vpop.f32.mrb[2].mxu1  ;;  %v2884_v53 = vld [vmem:[%s3274_s2] ss:$0 sm:$0xff] }
 0x117   :  { %v910_v57 = vpop.f32.mrb[3].mxu0  ;;  %v1102_v58 = vpop.f32.mrb[3].mxu1 }
 0x118   :  { %v906_v57 = vadd.f32 %v2884_v53, %v2821_v51 }
 0x11c   :  { %v913_v59 = vpop.f32.mrb[4].mxu0  ;;  %v2829_v60 = vpop.f32.mrb[4].mxu1 }
 0x11d   :  { %v915_v61 = vpop.f32.mrb[5].mxu0  ;;  %v1107_v62 = vpop.f32.mrb[5].mxu1  ;;  %v914_v54 = vadd.f32 %v2884_v53, %v913_v59 }
 0x11e   :  { %v916_v63 = vpop.f32.mrb[6].mxu0  ;;  %v2831_v0 = vpop.f32.mrb[6].mxu1 }
 0x11f   :  { %v918_v1 = vpop.f32.mrb[7].mxu0  ;;  %v1110_v2 = vpop.f32.mrb[7].mxu1  ;;  %v917_v62 = vadd.f32 %v2884_v53, %v916_v63 }
 0x124   :  { %v2833_v3 = vpop.f32.mrb[8].mxu0  ;;  %v2835_v4 = vpop.f32.mrb[8].mxu1 }
 0x125   :  { %v923_v5 = vpop.f32.mrb[9].mxu0  ;;  %v1115_v6 = vpop.f32.mrb[9].mxu1 }
 0x126   :  { %v2837_v7 = vpop.f32.mrb[10].mxu0  ;;  %v2839_v8 = vpop.f32.mrb[10].mxu1  ;;  %v909_v6 = vadd.f32 %v2884_v53, %v2825_v55 }
 0x127   :  { %v926_v9 = vpop.f32.mrb[11].mxu0  ;;  %v1118_v10 = vpop.f32.mrb[11].mxu1 }
 0x12c   :  { %v2841_v11 = vpop.f32.mrb[12].mxu0  ;;  %v2843_v12 = vpop.f32.mrb[12].mxu1 }
 0x12d   :  { %v931_v13 = vpop.f32.mrb[13].mxu0  ;;  %v1123_v14 = vpop.f32.mrb[13].mxu1 }
 0x12e   :  { %v2845_v15 = vpop.f32.mrb[14].mxu0  ;;  %v2847_v16 = vpop.f32.mrb[14].mxu1 }
 0x12f   :  { %v934_v17 = vpop.f32.mrb[15].mxu0  ;;  %v1126_v18 = vpop.f32.mrb[15].mxu1 }
 0x134   :  { %v2849_v19 = vpop.f32.mrb[16].mxu0  ;;  %v2851_v20 = vpop.f32.mrb[16].mxu1 }
 0x135   :  { %v939_v21 = vpop.f32.mrb[17].mxu0  ;;  %v1131_v22 = vpop.f32.mrb[17].mxu1 }
 0x136   :  { %v2853_v23 = vpop.f32.mrb[18].mxu0  ;;  %v2855_v24 = vpop.f32.mrb[18].mxu1 }
 0x137   :  { %v942_v25 = vpop.f32.mrb[19].mxu0  ;;  %v1134_v26 = vpop.f32.mrb[19].mxu1 }
 0x13c   :  { %v2857_v27 = vpop.f32.mrb[20].mxu0  ;;  %v2859_v28 = vpop.f32.mrb[20].mxu1 }
 0x13d   :  { %v947_v29 = vpop.f32.mrb[21].mxu0  ;;  %v1139_v30 = vpop.f32.mrb[21].mxu1 }
 0x13e   :  { %v2861_v31 = vpop.f32.mrb[22].mxu0  ;;  %v2863_v32 = vpop.f32.mrb[22].mxu1  ;;  %v930_v29 = vadd.f32 %v2884_v53, %v2841_v11  ;;  %v922_v30 = vadd.f32 %v2884_v53, %v2833_v3  ;;  %v933_v11 = vadd.f32 %v2884_v53, %v2845_v15 }
 0x13f   :  { %v950_v33 = vpop.f32.mrb[23].mxu0  ;;  %v1142_v34 = vpop.f32.mrb[23].mxu1 }
 0x144   :  { %v2865_v35 = vpop.f32.mrb[24].mxu0  ;;  %v2867_v36 = vpop.f32.mrb[24].mxu1 }
 0x145   :  { %v955_v37 = vpop.f32.mrb[25].mxu0  ;;  %v1147_v38 = vpop.f32.mrb[25].mxu1 }
 0x146   :  { %v2869_v39 = vpop.f32.mrb[26].mxu0  ;;  %v2871_v40 = vpop.f32.mrb[26].mxu1 }
 0x147   :  { %v958_v41 = vpop.f32.mrb[27].mxu0  ;;  %v1150_v42 = vpop.f32.mrb[27].mxu1 }
 0x148   :  { %v925_v42 = vadd.f32 %v2884_v53, %v2837_v7  ;;  %v946_v7 = vadd.f32 %v2884_v53, %v2857_v27  ;;  %v949_v27 = vadd.f32 %v2884_v53, %v2861_v31 }
 0x14c   :  { %v2873_v43 = vpop.f32.mrb[28].mxu0  ;;  %v2875_v44 = vpop.f32.mrb[28].mxu1 }
 0x14d   :  { %v963_v45 = vpop.f32.mrb[29].mxu0  ;;  %v1155_v46 = vpop.f32.mrb[29].mxu1 }
 0x14e   :  { %v2877_v47 = vpop.f32.mrb[30].mxu0  ;;  %v2879_v48 = vpop.f32.mrb[30].mxu1 }
 0x14f   :  { %v966_v49 = vpop.f32.mrb[31].mxu0  ;;  %v1158_v50 = vpop.f32.mrb[31].mxu1 }
 0x154   :  { %v2889_v58 = vpop.f32.mrb[32].mxu0  ;;  %v2153_v61 = vpop.f32.mrb[32].mxu1 }
 0x155   :  { %v1203_v1 = vadd.f32 %v2153_v61, %v914_v54  ;;  %v971_v2 = vpop.f32.mrb[33].mxu0  ;;  %v1194_v5 = vpop.f32.mrb[33].mxu1 }
 0x156   :  { %v1195_v9 = vadd.f32 %v1194_v5, %v906_v57  ;;  %v2894_v10 = vpop.f32.mrb[34].mxu0  ;;  %v2154_v13 = vpop.f32.mrb[34].mxu1 }
 0x157   :  { %v1451_v14 = vmax.f32 %v1203_v1, 0.0  ;;  %v1206_v59 = vadd.f32 %v2154_v13, %v917_v62  ;;  %v974_v17 = vpop.f32.mrb[35].mxu0  ;;  %v1197_v18 = vpop.f32.mrb[35].mxu1  ;;  %v938_v13 = vadd.f32 %v2884_v53, %v2849_v19 }
 0x158   :  { %v1449_v51 = vmax.f32 %v1195_v9, 0.0  ;;  %v1198_v21 = vadd.f32 %v1197_v18, %v909_v6 }
 0x159   :  { %v2051_v22 = vpack.c.bf16 %v1451_v14, %v1451_v14  ;;  %v1452_v25 = vmax.f32 %v1206_v59, 0.0 }
 0x15a   :  { %v2049_v63 = vpack.c.bf16 %v1449_v51, %v1449_v51  ;;  %v1450_v26 = vmax.f32 %v1198_v21, 0.0  ;;  %v941_v21 = vadd.f32 %v2884_v53, %v2853_v23  ;;  %v962_v23 = vadd.f32 %v2884_v53, %v2873_v43 }
 0x15b   :  { %1772 = vst.msk [vmem:[%s3275_s3 + $0x8] sm:$0xf] %vm1769_vm1, %v2051_v22  ;;  %v2052_v55 = vpack.c.bf16 %v1452_v25, %v1452_v25  ;;  %v965_v43 = vadd.f32 %v2884_v53, %v2877_v47 }
 0x15c   :  { %1770 = vst.msk [vmem:[%s3275_s3] sm:$0xf] %vm1769_vm1, %v2049_v63  ;;  %v2050_v33 = vpack.c.bf16 %v1450_v26, %v1450_v26  ;;  %v2908_v34 = vpop.f32.mrb[36].mxu0  ;;  %v2157_v37 = vpop.f32.mrb[36].mxu1 }
 0x15d   :  { %1773 = vst.msk [vmem:[%s3275_s3 + $0xc] sm:$0xf] %vm1769_vm1, %v2052_v55  ;;  %v1219_v38 = vadd.f32 %v2157_v37, %v930_v29  ;;  %v979_v41 = vpop.f32.mrb[37].mxu0  ;;  %v1210_v3 = vpop.f32.mrb[37].mxu1 }
 0x15e   :  { %1771 = vst.msk [vmem:[%s3275_s3 + $0x4] sm:$0xf] %vm1769_vm1, %v2050_v33  ;;  %v1211_v45 = vadd.f32 %v1210_v3, %v922_v30  ;;  %v2922_v46 = vpop.f32.mrb[38].mxu0  ;;  %v2158_v15 = vpop.f32.mrb[38].mxu1 }
 0x15f   :  { %v1455_v49 = vmax.f32 %v1219_v38, 0.0  ;;  %v1222_v50 = vadd.f32 %v2158_v15, %v933_v11  ;;  %v982_v54 = vpop.f32.mrb[39].mxu0  ;;  %v1213_v57 = vpop.f32.mrb[39].mxu1 }
 0x160   :  { %v1453_v61 = vmax.f32 %v1211_v45, 0.0  ;;  %v1214_v62 = vadd.f32 %v1213_v57, %v925_v42  ;;  %v954_v42 = vadd.f32 %v2884_v53, %v2865_v35  ;;  %v957_v35 = vadd.f32 %v2884_v53, %v2869_v39 }
 0x161   :  { %v2055_v1 = vpack.c.bf16 %v1455_v49, %v1455_v49  ;;  %v1456_v2 = vmax.f32 %v1222_v50, 0.0  ;;  %v978_v39 = vadd.f32 %v2884_v53, %v2908_v34  ;;  %v981_v34 = vadd.f32 %v2884_v53, %v2922_v46 }
 0x162   :  { %v2053_v5 = vpack.c.bf16 %v1453_v61, %v1453_v61  ;;  %v1454_v6 = vmax.f32 %v1214_v62, 0.0 }
 0x163   :  { %1776 = vst.msk [vmem:[%s3275_s3 + $0x18] sm:$0xf] %vm1769_vm1, %v2055_v1  ;;  %v2056_v9 = vpack.c.bf16 %v1456_v2, %v1456_v2 }
 0x164   :  { %1774 = vst.msk [vmem:[%s3275_s3 + $0x10] sm:$0xf] %vm1769_vm1, %v2053_v5  ;;  %v2054_v14 = vpack.c.bf16 %v1454_v6, %v1454_v6  ;;  %v2936_v59 = vpop.f32.mrb[40].mxu0  ;;  %v2161_v17 = vpop.f32.mrb[40].mxu1 }
 0x165   :  { %1777 = vst.msk [vmem:[%s3275_s3 + $0x1c] sm:$0xf] %vm1769_vm1, %v2056_v9  ;;  %v1235_v18 = vadd.f32 %v2161_v17, %v946_v7  ;;  %v987_v51 = vpop.f32.mrb[41].mxu0  ;;  %v1226_v19 = vpop.f32.mrb[41].mxu1 }
 0x166   :  { %1775 = vst.msk [vmem:[%s3275_s3 + $0x14] sm:$0xf] %vm1769_vm1, %v2054_v14  ;;  %v1227_v22 = vadd.f32 %v1226_v19, %v938_v13  ;;  %v2950_v25 = vpop.f32.mrb[42].mxu0  ;;  %v2162_v31 = vpop.f32.mrb[42].mxu1  ;;  %v970_v51 = vadd.f32 %v2884_v53, %v2889_v58  ;;  %v973_v58 = vadd.f32 %v2884_v53, %v2894_v10 }
 0x167   :  { %v1459_v63 = vmax.f32 %v1235_v18, 0.0  ;;  %v1238_v26 = vadd.f32 %v2162_v31, %v949_v27  ;;  %v990_v29 = vpop.f32.mrb[43].mxu0  ;;  %v1229_v55 = vpop.f32.mrb[43].mxu1 }
 0x168   :  { %v1457_v30 = vmax.f32 %v1227_v22, 0.0  ;;  %v1230_v33 = vadd.f32 %v1229_v55, %v941_v21 }
 0x169   :  { %v2059_v37 = vpack.c.bf16 %v1459_v63, %v1459_v63  ;;  %v1460_v11 = vmax.f32 %v1238_v26, 0.0 }
 0x16a   :  { %v2057_v38 = vpack.c.bf16 %v1457_v30, %v1457_v30  ;;  %v1458_v41 = vmax.f32 %v1230_v33, 0.0 }
 0x16b   :  { %1780 = vst.msk [vmem:[%s3275_s3 + $0x28] sm:$0xf] %vm1769_vm1, %v2059_v37  ;;  %v2060_v3 = vpack.c.bf16 %v1460_v11, %v1460_v11 }
 0x16c   :  { %1778 = vst.msk [vmem:[%s3275_s3 + $0x20] sm:$0xf] %vm1769_vm1, %v2057_v38  ;;  %v2058_v45 = vpack.c.bf16 %v1458_v41, %v1458_v41  ;;  %v993_v15 = vpop.f32.mrb[44].mxu0  ;;  %v2165_v49 = vpop.f32.mrb[44].mxu1 }
 0x16d   :  { %1781 = vst.msk [vmem:[%s3275_s3 + $0x2c] sm:$0xf] %vm1769_vm1, %v2060_v3  ;;  %v1251_v50 = vadd.f32 %v2165_v49, %v962_v23  ;;  %v995_v54 = vpop.f32.mrb[45].mxu0  ;;  %v1242_v57 = vpop.f32.mrb[45].mxu1  ;;  %v994_v10 = vadd.f32 %v2884_v53, %v993_v15 }
 0x16e   :  { %1779 = vst.msk [vmem:[%s3275_s3 + $0x24] sm:$0xf] %vm1769_vm1, %v2058_v45  ;;  %v1243_v61 = vadd.f32 %v1242_v57, %v954_v42  ;;  %v996_v62 = vpop.f32.mrb[46].mxu0  ;;  %v2166_v1 = vpop.f32.mrb[46].mxu1 }
 0x16f   :  { %v1463_v47 = vmax.f32 %v1251_v50, 0.0  ;;  %v1254_v2 = vadd.f32 %v2166_v1, %v965_v43  ;;  %v998_v5 = vpop.f32.mrb[47].mxu0  ;;  %v1245_v6 = vpop.f32.mrb[47].mxu1  ;;  %v986_v43 = vadd.f32 %v2884_v53, %v2936_v59  ;;  %v989_v59 = vadd.f32 %v2884_v53, %v2950_v25 }
 0x170   :  { %v1461_v7 = vmax.f32 %v1243_v61, 0.0  ;;  %v1246_v9 = vadd.f32 %v1245_v6, %v957_v35  ;;  %v997_v35 = vadd.f32 %v2884_v53, %v996_v62 }
 0x171   :  { %v2063_v13 = vpack.c.bf16 %v1463_v47, %v1463_v47  ;;  %v1464_v14 = vmax.f32 %v1254_v2, 0.0 }
 0x172   :  { %v2061_v17 = vpack.c.bf16 %v1461_v7, %v1461_v7  ;;  %v1462_v27 = vmax.f32 %v1246_v9, 0.0 }
 0x173   :  { %1784 = vst.msk [vmem:[%s3275_s3 + $0x38] sm:$0xf] %vm1769_vm1, %v2063_v13  ;;  %v2064_v18 = vpack.c.bf16 %v1464_v14, %v1464_v14 }
 0x174   :  { %1782 = vst.msk [vmem:[%s3275_s3 + $0x30] sm:$0xf] %vm1769_vm1, %v2061_v17  ;;  %v2062_v19 = vpack.c.bf16 %v1462_v27, %v1462_v27  ;;  %v1001_v21 = vpop.f32.mrb[48].mxu0  ;;  %v2169_v22 = vpop.f32.mrb[48].mxu1 }
 0x175   :  { %1785 = vst.msk [vmem:[%s3275_s3 + $0x3c] sm:$0xf] %vm1769_vm1, %v2064_v18  ;;  %v1267_v31 = vadd.f32 %v2169_v22, %v978_v39  ;;  %v1003_v63 = vpop.f32.mrb[49].mxu0  ;;  %v1258_v26 = vpop.f32.mrb[49].mxu1 }
 0x176   :  { %1783 = vst.msk [vmem:[%s3275_s3 + $0x34] sm:$0xf] %vm1769_vm1, %v2062_v19  ;;  %v1259_v29 = vadd.f32 %v1258_v26, %v970_v51  ;;  %v1004_v55 = vpop.f32.mrb[50].mxu0  ;;  %v2170_v30 = vpop.f32.mrb[50].mxu1  ;;  %v1002_v19 = vadd.f32 %v2884_v53, %v1001_v21 }
 0x177   :  { %v1467_v46 = vmax.f32 %v1267_v31, 0.0  ;;  %v1270_v33 = vadd.f32 %v2170_v30, %v981_v34  ;;  %v1006_v37 = vpop.f32.mrb[51].mxu0  ;;  %v1261_v11 = vpop.f32.mrb[51].mxu1  ;;  %v1005_v21 = vadd.f32 %v2884_v53, %v1004_v55 }
 0x178   :  { %v1465_v38 = vmax.f32 %v1259_v29, 0.0  ;;  %v1262_v41 = vadd.f32 %v1261_v11, %v973_v58 }
 0x179   :  { %v2067_v23 = vpack.c.bf16 %v1467_v46, %v1467_v46  ;;  %v1468_v3 = vmax.f32 %v1270_v33, 0.0 }
 0x17a   :  { %v2065_v42 = vpack.c.bf16 %v1465_v38, %v1465_v38  ;;  %v1466_v45 = vmax.f32 %v1262_v41, 0.0 }
 0x17b   :  { %1788 = vst.msk [vmem:[%s3275_s3 + $0x48] sm:$0xf] %vm1769_vm1, %v2067_v23  ;;  %v2068_v49 = vpack.c.bf16 %v1468_v3, %v1468_v3 }
 0x17c   :  { %1786 = vst.msk [vmem:[%s3275_s3 + $0x40] sm:$0xf] %vm1769_vm1, %v2065_v42  ;;  %v2066_v50 = vpack.c.bf16 %v1466_v45, %v1466_v45  ;;  %v1009_v54 = vpop.f32.mrb[52].mxu0  ;;  %v2173_v57 = vpop.f32.mrb[52].mxu1 }
 0x17d   :  { %1789 = vst.msk [vmem:[%s3275_s3 + $0x4c] sm:$0xf] %vm1769_vm1, %v2068_v49  ;;  %v1283_v15 = vadd.f32 %v2173_v57, %v994_v10  ;;  %v1011_v61 = vpop.f32.mrb[53].mxu0  ;;  %v1274_v1 = vpop.f32.mrb[53].mxu1  ;;  %v1010_v25 = vadd.f32 %v2884_v53, %v1009_v54 }
 0x17e   :  { %1787 = vst.msk [vmem:[%s3275_s3 + $0x44] sm:$0xf] %vm1769_vm1, %v2066_v50  ;;  %v1275_v47 = vadd.f32 %v1274_v1, %v986_v43  ;;  %v1012_v2 = vpop.f32.mrb[54].mxu0  ;;  %v2174_v5 = vpop.f32.mrb[54].mxu1 }
 0x17f   :  { %v1471_v62 = vmax.f32 %v1283_v15, 0.0  ;;  %v1286_v6 = vadd.f32 %v2174_v5, %v997_v35  ;;  %v1014_v7 = vpop.f32.mrb[55].mxu0  ;;  %v1277_v9 = vpop.f32.mrb[55].mxu1  ;;  %v1013_v63 = vadd.f32 %v2884_v53, %v1012_v2 }
 0x180   :  { %v1469_v13 = vmax.f32 %v1275_v47, 0.0  ;;  %v1278_v14 = vadd.f32 %v1277_v9, %v989_v59 }
 0x181   :  { %v2071_v17 = vpack.c.bf16 %v1471_v62, %v1471_v62  ;;  %v1472_v27 = vmax.f32 %v1286_v6, 0.0 }
 0x182   :  { %v2069_v39 = vpack.c.bf16 %v1469_v13, %v1469_v13  ;;  %v1470_v18 = vmax.f32 %v1278_v14, 0.0 }
 0x183   :  { %1792 = vst.msk [vmem:[%s3275_s3 + $0x58] sm:$0xf] %vm1769_vm1, %v2071_v17  ;;  %v2072_v51 = vpack.c.bf16 %v1472_v27, %v1472_v27 }
 0x184   :  { %1790 = vst.msk [vmem:[%s3275_s3 + $0x50] sm:$0xf] %vm1769_vm1, %v2069_v39  ;;  %v2070_v22 = vpack.c.bf16 %v1470_v18, %v1470_v18  ;;  %v1017_v34 = vpop.f32.mrb[56].mxu0  ;;  %v2177_v31 = vpop.f32.mrb[56].mxu1 }
 0x185   :  { %1793 = vst.msk [vmem:[%s3275_s3 + $0x5c] sm:$0xf] %vm1769_vm1, %v2072_v51  ;;  %v1299_v26 = vadd.f32 %v2177_v31, %v1010_v25  ;;  %v1019_v58 = vpop.f32.mrb[57].mxu0  ;;  %v1290_v29 = vpop.f32.mrb[57].mxu1  ;;  %v1018_v43 = vadd.f32 %v2884_v53, %v1017_v34 }
 0x186   :  { %1791 = vst.msk [vmem:[%s3275_s3 + $0x54] sm:$0xf] %vm1769_vm1, %v2070_v22  ;;  %v1291_v30 = vadd.f32 %v1290_v29, %v1002_v19  ;;  %v1020_v46 = vpop.f32.mrb[58].mxu0  ;;  %v2178_v33 = vpop.f32.mrb[58].mxu1 }
 0x187   :  { %v1475_v37 = vmax.f32 %v1299_v26, 0.0  ;;  %v1302_v11 = vadd.f32 %v2178_v33, %v1013_v63  ;;  %v1022_v38 = vpop.f32.mrb[59].mxu0  ;;  %v1293_v41 = vpop.f32.mrb[59].mxu1  ;;  %v1021_v1 = vadd.f32 %v2884_v53, %v1020_v46 }
 0x188   :  { %v1473_v23 = vmax.f32 %v1291_v30, 0.0  ;;  %v1294_v3 = vadd.f32 %v1293_v41, %v1005_v21 }
 0x189   :  { %v2075_v42 = vpack.c.bf16 %v1475_v37, %v1475_v37  ;;  %v1476_v45 = vmax.f32 %v1302_v11, 0.0 }
 0x18a   :  { %v2073_v10 = vpack.c.bf16 %v1473_v23, %v1473_v23  ;;  %v1474_v49 = vmax.f32 %v1294_v3, 0.0 }
 0x18b   :  { %1796 = vst.msk [vmem:[%s3275_s3 + $0x68] sm:$0xf] %vm1769_vm1, %v2075_v42  ;;  %v2076_v55 = vpack.c.bf16 %v1476_v45, %v1476_v45 }
 0x18c   :  { %1794 = vst.msk [vmem:[%s3275_s3 + $0x60] sm:$0xf] %vm1769_vm1, %v2073_v10  ;;  %v2074_v50 = vpack.c.bf16 %v1474_v49, %v1474_v49  ;;  %v1025_v54 = vpop.f32.mrb[60].mxu0  ;;  %v2181_v57 = vpop.f32.mrb[60].mxu1 }
 0x18d   :  { %1797 = vst.msk [vmem:[%s3275_s3 + $0x6c] sm:$0xf] %vm1769_vm1, %v2076_v55  ;;  %v1026_v35 = vadd.f32 %v2884_v53, %v1025_v54  ;;  %v1027_v15 = vpop.f32.mrb[61].mxu0  ;;  %v1306_v61 = vpop.f32.mrb[61].mxu1 }
 0x18e   :  { %1795 = vst.msk [vmem:[%s3275_s3 + $0x64] sm:$0xf] %vm1769_vm1, %v2074_v50  ;;  %v1307_v59 = vadd.f32 %v1306_v61, %v1018_v43  ;;  %v1028_v47 = vpop.f32.mrb[62].mxu0  ;;  %v2182_v2 = vpop.f32.mrb[62].mxu1 }
 0x18f   :  { %v1315_v5 = vadd.f32 %v2181_v57, %v1026_v35  ;;  %v1029_v62 = vadd.f32 %v2884_v53, %v1028_v47  ;;  %v1030_v6 = vpop.f32.mrb[63].mxu0  ;;  %v1309_v7 = vpop.f32.mrb[63].mxu1 }
 0x190   :  { %v1477_v9 = vmax.f32 %v1307_v59, 0.0  ;;  %v1310_v13 = vadd.f32 %v1309_v7, %v1021_v1 }
 0x191   :  { %v1479_v14 = vmax.f32 %v1315_v5, 0.0  ;;  %v1318_v17 = vadd.f32 %v2182_v2, %v1029_v62 }
 0x192   :  { %v2077_v27 = vpack.c.bf16 %v1477_v9, %v1477_v9  ;;  %v1478_v39 = vmax.f32 %v1310_v13, 0.0 }
 0x193   :  { %v2079_v18 = vpack.c.bf16 %v1479_v14, %v1479_v14  ;;  %v1480_v25 = vmax.f32 %v1318_v17, 0.0 }
 0x194   :  { %1798 = vst.msk [vmem:[%s3275_s3 + $0x70] sm:$0xf] %vm1769_vm1, %v2077_v27  ;;  %v2078_v51 = vpack.c.bf16 %v1478_v39, %v1478_v39  ;;  %v1033_v19 = vpop.f32.mrb[64].mxu0  ;;  %v2185_v22 = vpop.f32.mrb[64].mxu1 }
 0x195   :  { %1800 = vst.msk [vmem:[%s3275_s3 + $0x78] sm:$0xf] %vm1769_vm1, %v2079_v18  ;;  %v2080_v34 = vpack.c.bf16 %v1480_v25, %v1480_v25  ;;  %v1034_v31 = vadd.f32 %v2884_v53, %v1033_v19  ;;  %v1035_v63 = vpop.f32.mrb[65].mxu0  ;;  %v1322_v26 = vpop.f32.mrb[65].mxu1 }
 0x196   :  { %1799 = vst.msk [vmem:[%s3275_s3 + $0x74] sm:$0xf] %vm1769_vm1, %v2078_v51  ;;  %v1036_v58 = vpop.f32.mrb[66].mxu0  ;;  %v2186_v29 = vpop.f32.mrb[66].mxu1 }
 0x197   :  { %1801 = vst.msk [vmem:[%s3275_s3 + $0x7c] sm:$0xf] %vm1769_vm1, %v2080_v34  ;;  %v1323_v21 = vadd.f32 %v1322_v26, %v1034_v31  ;;  %v1037_v30 = vadd.f32 %v2884_v53, %v1036_v58  ;;  %v1038_v46 = vpop.f32.mrb[67].mxu0  ;;  %v1325_v33 = vpop.f32.mrb[67].mxu1 }
 0x199   :  { %v1481_v37 = vmax.f32 %v1323_v21, 0.0  ;;  %v1326_v11 = vadd.f32 %v1325_v33, %v1037_v30 }
 0x19b   :  { %v2081_v38 = vpack.c.bf16 %v1481_v37, %v1481_v37  ;;  %v1482_v41 = vmax.f32 %v1326_v11, 0.0 }
 0x19c   :  { %v1041_v23 = vpop.f32.mrb[68].mxu0  ;;  %v2189_v3 = vpop.f32.mrb[68].mxu1 }
 0x19d   :  { %1802 = vst.msk [vmem:[%s3275_s3 + $0x80] sm:$0xf] %vm1769_vm1, %v2081_v38  ;;  %v2082_v42 = vpack.c.bf16 %v1482_v41, %v1482_v41  ;;  %v1042_v45 = vadd.f32 %v2884_v53, %v1041_v23  ;;  %v1043_v10 = vpop.f32.mrb[69].mxu0  ;;  %v1338_v49 = vpop.f32.mrb[69].mxu1  ;;  %v1106_v41 = vadd.f32 %v2884_v53, %v2829_v60 }
 0x19e   :  { %v1044_v55 = vpop.f32.mrb[70].mxu0  ;;  %v2190_v43 = vpop.f32.mrb[70].mxu1 }
 0x19f   :  { %1803 = vst.msk [vmem:[%s3275_s3 + $0x84] sm:$0xf] %vm1769_vm1, %v2082_v42  ;;  %v1331_v50 = vadd.f32 %v2185_v22, %v1042_v45  ;;  %v1045_v54 = vadd.f32 %v2884_v53, %v1044_v55  ;;  %v1046_v57 = vpop.f32.mrb[71].mxu0  ;;  %v1341_v35 = vpop.f32.mrb[71].mxu1  ;;  %v1098_v45 = vadd.f32 %v2884_v53, %v2823_v52 }
 0x1a0   :  { %v1101_v57 = vadd.f32 %v2884_v53, %v2827_v56 }
 0x1a1   :  { %v1483_v15 = vmax.f32 %v1331_v50, 0.0  ;;  %v1334_v61 = vadd.f32 %v2186_v29, %v1045_v54 }
 0x1a3   :  { %v2083_v1 = vpack.c.bf16 %v1483_v15, %v1483_v15  ;;  %v1484_v59 = vmax.f32 %v1334_v61, 0.0 }
 0x1a4   :  { %v1049_v47 = vpop.f32.mrb[72].mxu0  ;;  %v3090_v2 = vpop.f32.mrb[72].mxu1 }
 0x1a5   :  { %1804 = vst.msk [vmem:[%s3275_s3 + $0x88] sm:$0xf] %vm1769_vm1, %v2083_v1  ;;  %v2084_v5 = vpack.c.bf16 %v1484_v59, %v1484_v59  ;;  %v1050_v62 = vadd.f32 %v2884_v53, %v1049_v47  ;;  %v1051_v6 = vpop.f32.mrb[73].mxu0  ;;  %v1354_v7 = vpop.f32.mrb[73].mxu1 }
 0x1a6   :  { %v1052_v9 = vpop.f32.mrb[74].mxu0  ;;  %v3097_v13 = vpop.f32.mrb[74].mxu1 }
 0x1a7   :  { %1805 = vst.msk [vmem:[%s3275_s3 + $0x8c] sm:$0xf] %vm1769_vm1, %v2084_v5  ;;  %v1339_v14 = vadd.f32 %v1338_v49, %v1050_v62  ;;  %v1053_v17 = vadd.f32 %v2884_v53, %v1052_v9  ;;  %v1054_v27 = vpop.f32.mrb[75].mxu0  ;;  %v1357_v39 = vpop.f32.mrb[75].mxu1 }
 0x1a9   :  { %v1485_v18 = vmax.f32 %v1339_v14, 0.0  ;;  %v1342_v25 = vadd.f32 %v1341_v35, %v1053_v17 }
 0x1ab   :  { %v2085_v51 = vpack.c.bf16 %v1485_v18, %v1485_v18  ;;  %v1486_v19 = vmax.f32 %v1342_v25, 0.0  ;;  %v1122_v25 = vadd.f32 %v2884_v53, %v2843_v12  ;;  %v1125_v12 = vadd.f32 %v2884_v53, %v2847_v16 }
 0x1ac   :  { %v1057_v22 = vpop.f32.mrb[76].mxu0  ;;  %v3104_v34 = vpop.f32.mrb[76].mxu1 }
 0x1ad   :  { %1806 = vst.msk [vmem:[%s3275_s3 + $0x90] sm:$0xf] %vm1769_vm1, %v2085_v51  ;;  %v2086_v31 = vpack.c.bf16 %v1486_v19, %v1486_v19  ;;  %v1058_v63 = vadd.f32 %v2884_v53, %v1057_v22  ;;  %v1059_v26 = vpop.f32.mrb[77].mxu0  ;;  %v3111_v58 = vpop.f32.mrb[77].mxu1  ;;  %v1114_v22 = vadd.f32 %v2884_v53, %v2835_v4 }
 0x1ae   :  { %v1060_v29 = vpop.f32.mrb[78].mxu0  ;;  %v3113_v21 = vpop.f32.mrb[78].mxu1 }
 0x1af   :  { %1807 = vst.msk [vmem:[%s3275_s3 + $0x94] sm:$0xf] %vm1769_vm1, %v2086_v31  ;;  %v1347_v30 = vadd.f32 %v2189_v3, %v1058_v63  ;;  %v1061_v46 = vadd.f32 %v2884_v53, %v1060_v29  ;;  %v1062_v33 = vpop.f32.mrb[79].mxu0  ;;  %v3120_v37 = vpop.f32.mrb[79].mxu1  ;;  %v1109_v3 = vadd.f32 %v2884_v53, %v2831_v0 }
 0x1b0   :  { %v1117_v33 = vadd.f32 %v2884_v53, %v2839_v8 }
 0x1b1   :  { %v1487_v11 = vmax.f32 %v1347_v30, 0.0  ;;  %v1350_v38 = vadd.f32 %v2190_v43, %v1061_v46 }
 0x1b3   :  { %v2087_v23 = vpack.c.bf16 %v1487_v11, %v1487_v11  ;;  %v1488_v42 = vmax.f32 %v1350_v38, 0.0 }
 0x1b4   :  { %v1065_v10 = vpop.f32.mrb[80].mxu0  ;;  %v2201_v49 = vpop.f32.mrb[80].mxu1 }
 0x1b5   :  { %1808 = vst.msk [vmem:[%s3275_s3 + $0x98] sm:$0xf] %vm1769_vm1, %v2087_v23  ;;  %v2088_v55 = vpack.c.bf16 %v1488_v42, %v1488_v42  ;;  %v1066_v43 = vadd.f32 %v2884_v53, %v1065_v10  ;;  %v1395_v50 = vadd.f32 %v2201_v49, %v1106_v41  ;;  %v1067_v60 = vpop.f32.mrb[81].mxu0  ;;  %v1386_v54 = vpop.f32.mrb[81].mxu1 }
 0x1b6   :  { %v1387_v52 = vadd.f32 %v1386_v54, %v1098_v45  ;;  %v1068_v35 = vpop.f32.mrb[82].mxu0  ;;  %v2202_v15 = vpop.f32.mrb[82].mxu1 }
 0x1b7   :  { %1809 = vst.msk [vmem:[%s3275_s3 + $0x9c] sm:$0xf] %vm1769_vm1, %v2088_v55  ;;  %v1355_v0 = vadd.f32 %v1354_v7, %v1066_v43  ;;  %v1499_v61 = vmax.f32 %v1395_v50, 0.0  ;;  %v1069_v1 = vadd.f32 %v2884_v53, %v1068_v35  ;;  %v1398_v59 = vadd.f32 %v2202_v15, %v1109_v3  ;;  %v1070_v47 = vpop.f32.mrb[83].mxu0  ;;  %v1389_v5 = vpop.f32.mrb[83].mxu1 }
 0x1b8   :  { %v1497_v62 = vmax.f32 %v1387_v52, 0.0  ;;  %v1390_v6 = vadd.f32 %v1389_v5, %v1101_v57  ;;  %v1138_v52 = vadd.f32 %v2884_v53, %v2859_v28  ;;  %v1141_v28 = vadd.f32 %v2884_v53, %v2863_v32 }
 0x1b9   :  { %v1489_v9 = vmax.f32 %v1355_v0, 0.0  ;;  %v2099_v14 = vpack.c.bf16 %v1499_v61, %v1499_v61  ;;  %v1358_v56 = vadd.f32 %v1357_v39, %v1069_v1  ;;  %v1500_v17 = vmax.f32 %v1398_v59, 0.0 }
 0x1ba   :  { %v2097_v27 = vpack.c.bf16 %v1497_v62, %v1497_v62  ;;  %v1498_v18 = vmax.f32 %v1390_v6, 0.0  ;;  %v1130_v0 = vadd.f32 %v2884_v53, %v2851_v20  ;;  %v1133_v6 = vadd.f32 %v2884_v53, %v2855_v24 }
 0x1bb   :  { %v2089_v51 = vpack.c.bf16 %v1489_v9, %v1489_v9  ;;  %1820 = vst.msk [vmem:[%s3275_s3 + $0xc8] sm:$0xf] %vm1769_vm1, %v2099_v14  ;;  %v1490_v7 = vmax.f32 %v1358_v56, 0.0  ;;  %v2100_v19 = vpack.c.bf16 %v1500_v17, %v1500_v17 }
 0x1bc   :  { %1818 = vst.msk [vmem:[%s3275_s3 + $0xc0] sm:$0xf] %vm1769_vm1, %v2097_v27  ;;  %v2098_v39 = vpack.c.bf16 %v1498_v18, %v1498_v18  ;;  %v1073_v31 = vpop.f32.mrb[84].mxu0  ;;  %v2205_v63 = vpop.f32.mrb[84].mxu1 }
 0x1bd   :  { %1810 = vst.msk [vmem:[%s3275_s3 + $0xa0] sm:$0xf] %vm1769_vm1, %v2089_v51  ;;  %v2090_v26 = vpack.c.bf16 %v1490_v7, %v1490_v7  ;;  %1821 = vst.msk [vmem:[%s3275_s3 + $0xcc] sm:$0xf] %vm1769_vm1, %v2100_v19  ;;  %v1074_v4 = vadd.f32 %v2884_v53, %v1073_v31  ;;  %v1411_v29 = vadd.f32 %v2205_v63, %v1122_v25  ;;  %v1075_v30 = vpop.f32.mrb[85].mxu0  ;;  %v1402_v46 = vpop.f32.mrb[85].mxu1 }
 0x1be   :  { %1819 = vst.msk [vmem:[%s3275_s3 + $0xc4] sm:$0xf] %vm1769_vm1, %v2098_v39  ;;  %v1403_v16 = vadd.f32 %v1402_v46, %v1114_v22  ;;  %v1076_v11 = vpop.f32.mrb[86].mxu0  ;;  %v2206_v38 = vpop.f32.mrb[86].mxu1  ;;  %v1146_v30 = vadd.f32 %v2884_v53, %v2867_v36 }
 0x1bf   :  { %1811 = vst.msk [vmem:[%s3275_s3 + $0xa4] sm:$0xf] %vm1769_vm1, %v2090_v26  ;;  %v1363_v41 = vadd.f32 %v3090_v2, %v1074_v4  ;;  %v1503_v23 = vmax.f32 %v1411_v29, 0.0  ;;  %v1077_v42 = vadd.f32 %v2884_v53, %v1076_v11  ;;  %v1414_v45 = vadd.f32 %v2206_v38, %v1125_v12  ;;  %v1078_v8 = vpop.f32.mrb[87].mxu0  ;;  %v1405_v10 = vpop.f32.mrb[87].mxu1 }
 0x1c0   :  { %v1501_v49 = vmax.f32 %v1403_v16, 0.0  ;;  %v1406_v3 = vadd.f32 %v1405_v10, %v1117_v33  ;;  %v1154_v26 = vadd.f32 %v2884_v53, %v2875_v44  ;;  %v1157_v44 = vadd.f32 %v2884_v53, %v2879_v48 }
 0x1c1   :  { %v1491_v55 = vmax.f32 %v1363_v41, 0.0  ;;  %v2103_v43 = vpack.c.bf16 %v1503_v23, %v1503_v23  ;;  %v1366_v50 = vadd.f32 %v3097_v13, %v1077_v42  ;;  %v1504_v60 = vmax.f32 %v1414_v45, 0.0 }
 0x1c2   :  { %v2101_v54 = vpack.c.bf16 %v1501_v49, %v1501_v49  ;;  %v1502_v57 = vmax.f32 %v1406_v3, 0.0  ;;  %v1149_v23 = vadd.f32 %v2884_v53, %v2871_v40 }
 0x1c3   :  { %v2091_v35 = vpack.c.bf16 %v1491_v55, %v1491_v55  ;;  %1824 = vst.msk [vmem:[%s3275_s3 + $0xd8] sm:$0xf] %vm1769_vm1, %v2103_v43  ;;  %v1492_v2 = vmax.f32 %v1366_v50, 0.0  ;;  %v2104_v15 = vpack.c.bf16 %v1504_v60, %v1504_v60 }
 0x1c4   :  { %1822 = vst.msk [vmem:[%s3275_s3 + $0xd0] sm:$0xf] %vm1769_vm1, %v2101_v54  ;;  %v2102_v13 = vpack.c.bf16 %v1502_v57, %v1502_v57  ;;  %v1081_v61 = vpop.f32.mrb[88].mxu0  ;;  %v2209_v1 = vpop.f32.mrb[88].mxu1 }
 0x1c5   :  { %1812 = vst.msk [vmem:[%s3275_s3 + $0xa8] sm:$0xf] %vm1769_vm1, %v2091_v35  ;;  %v2092_v59 = vpack.c.bf16 %v1492_v2, %v1492_v2  ;;  %1825 = vst.msk [vmem:[%s3275_s3 + $0xdc] sm:$0xf] %vm1769_vm1, %v2104_v15  ;;  %v1082_v20 = vadd.f32 %v2884_v53, %v1081_v61  ;;  %v1427_v47 = vadd.f32 %v2209_v1, %v1138_v52  ;;  %v1083_v5 = vpop.f32.mrb[89].mxu0  ;;  %v1418_v62 = vpop.f32.mrb[89].mxu1 }
 0x1c6   :  { %1823 = vst.msk [vmem:[%s3275_s3 + $0xd4] sm:$0xf] %vm1769_vm1, %v2102_v13  ;;  %v1419_v32 = vadd.f32 %v1418_v62, %v1130_v0  ;;  %v1084_v9 = vpop.f32.mrb[90].mxu0  ;;  %v2210_v14 = vpop.f32.mrb[90].mxu1 }
 0x1c7   :  { %1813 = vst.msk [vmem:[%s3275_s3 + $0xac] sm:$0xf] %vm1769_vm1, %v2092_v59  ;;  %v1371_v56 = vadd.f32 %v3111_v58, %v1082_v20  ;;  %v1507_v17 = vmax.f32 %v1427_v47, 0.0  ;;  %v1085_v27 = vadd.f32 %v2884_v53, %v1084_v9  ;;  %v1430_v18 = vadd.f32 %v2210_v14, %v1141_v28  ;;  %v1086_v24 = vpop.f32.mrb[91].mxu0  ;;  %v1421_v25 = vpop.f32.mrb[91].mxu1 }
 0x1c8   :  { %v1505_v51 = vmax.f32 %v1419_v32, 0.0  ;;  %v1422_v7 = vadd.f32 %v1421_v25, %v1133_v6 }
 0x1c9   :  { %v1493_v19 = vmax.f32 %v1371_v56, 0.0  ;;  %v2107_v22 = vpack.c.bf16 %v1507_v17, %v1507_v17  ;;  %v1374_v39 = vadd.f32 %v3120_v37, %v1085_v27  ;;  %v1508_v31 = vmax.f32 %v1430_v18, 0.0 }
 0x1ca   :  { %v2105_v63 = vpack.c.bf16 %v1505_v51, %v1505_v51  ;;  %v1506_v12 = vmax.f32 %v1422_v7, 0.0 }
 0x1cb   :  { %v2093_v4 = vpack.c.bf16 %v1493_v19, %v1493_v19  ;;  %1828 = vst.msk [vmem:[%s3275_s3 + $0xe8] sm:$0xf] %vm1769_vm1, %v2107_v22  ;;  %v1494_v58 = vmax.f32 %v1374_v39, 0.0  ;;  %v2108_v29 = vpack.c.bf16 %v1508_v31, %v1508_v31 }
 0x1cc   :  { %1826 = vst.msk [vmem:[%s3275_s3 + $0xe0] sm:$0xf] %vm1769_vm1, %v2105_v63  ;;  %v2106_v37 = vpack.c.bf16 %v1506_v12, %v1506_v12  ;;  %v1089_v46 = vpop.f32.mrb[92].mxu0  ;;  %v2213_v33 = vpop.f32.mrb[92].mxu1 }
 0x1cd   :  { %1814 = vst.msk [vmem:[%s3275_s3 + $0xb0] sm:$0xf] %vm1769_vm1, %v2093_v4  ;;  %v2094_v16 = vpack.c.bf16 %v1494_v58, %v1494_v58  ;;  %1829 = vst.msk [vmem:[%s3275_s3 + $0xec] sm:$0xf] %vm1769_vm1, %v2108_v29  ;;  %v1090_v36 = vadd.f32 %v2884_v53, %v1089_v46  ;;  %v1443_v11 = vadd.f32 %v2213_v33, %v1154_v26  ;;  %v1091_v38 = vpop.f32.mrb[93].mxu0  ;;  %v1434_v41 = vpop.f32.mrb[93].mxu1 }
 0x1ce   :  { %1827 = vst.msk [vmem:[%s3275_s3 + $0xe4] sm:$0xf] %vm1769_vm1, %v2106_v37  ;;  %v1435_v48 = vadd.f32 %v1434_v41, %v1146_v30  ;;  %v1092_v42 = vpop.f32.mrb[94].mxu0  ;;  %v2214_v45 = vpop.f32.mrb[94].mxu1 }
 0x1cf   :  { %1815 = vst.msk [vmem:[%s3275_s3 + $0xb4] sm:$0xf] %vm1769_vm1, %v2094_v16  ;;  %v1379_v8 = vadd.f32 %v3104_v34, %v1090_v36  ;;  %v1511_v10 = vmax.f32 %v1443_v11, 0.0  ;;  %v1093_v49 = vadd.f32 %v2884_v53, %v1092_v42  ;;  %v1446_v3 = vadd.f32 %v2214_v45, %v1157_v44  ;;  %v1094_v40 = vpop.f32.mrb[95].mxu0  ;;  %v1437_v55 = vpop.f32.mrb[95].mxu1 }
 0x1d0   :  { %v1509_v43 = vmax.f32 %v1435_v48, 0.0  ;;  %v1438_v50 = vadd.f32 %v1437_v55, %v1149_v23 }
 0x1d1   :  { %v1495_v60 = vmax.f32 %v1379_v8, 0.0  ;;  %v2111_v54 = vpack.c.bf16 %v1511_v10, %v1511_v10  ;;  %v1382_v57 = vadd.f32 %v3113_v21, %v1093_v49  ;;  %v1512_v52 = vmax.f32 %v1446_v3, 0.0 }
 0x1d2   :  { %v2109_v35 = vpack.c.bf16 %v1509_v43, %v1509_v43  ;;  %v1510_v2 = vmax.f32 %v1438_v50, 0.0 }
 0x1d3   :  { %v2095_v15 = vpack.c.bf16 %v1495_v60, %v1495_v60  ;;  %1832 = vst.msk [vmem:[%s3275_s3 + $0xf8] sm:$0xf] %vm1769_vm1, %v2111_v54  ;;  %v1496_v34 = vmax.f32 %v1382_v57, 0.0  ;;  %v2112_v53 = vpack.c.bf16 %v1512_v52, %v1512_v52 }
 0x1d4   :  { %1830 = vst.msk [vmem:[%s3275_s3 + $0xf0] sm:$0xf] %vm1769_vm1, %v2109_v35  ;;  %v2110_v0 = vpack.c.bf16 %v1510_v2, %v1510_v2 }
 0x1d5   :  { %1816 = vst.msk [vmem:[%s3275_s3 + $0xb8] sm:$0xf] %vm1769_vm1, %v2095_v15  ;;  %v2096_v21 = vpack.c.bf16 %v1496_v34, %v1496_v34  ;;  %1833 = vst.msk [vmem:[%s3275_s3 + $0xfc] sm:$0xf] %vm1769_vm1, %v2112_v53 }
 0x1d6   :  { %1831 = vst.msk [vmem:[%s3275_s3 + $0xf4] sm:$0xf] %vm1769_vm1, %v2110_v0 }
 0x1d7   :  { %1817 = vst.msk [vmem:[%s3275_s3 + $0xbc] sm:$0xf] %vm1769_vm1, %v2096_v21 }

// kernel: _lambda_.13
= control target key start
LH: loop header
LB: loop body
LE: loop exit
PB: predicated region body
PF: predicated region fallthrough
CT: control target
= control target key end

     0   :  { %v4472_v0 = vmov 0   ;;  %vm1308_vm0 = vcmask 523264   ;;  %vm2512_vm1 = vcmask 261120   ;;  %vm3282_vm2 = vcmask 519168   ;;  %s6041_s1 = inlined_call_operand.vmem [shape: bf16[576,64], index: 1, kind: input, shape index: {}]   ;;  %s6042_s0 = inlined_call_operand.vmem [shape: bf16[512,576], index: 0, kind: input, shape index: {}]   ;;  %s6043_s4 = inlined_call_operand.vmem [shape: bf16[32,64], index: 4, kind: input, shape index: {}]   ;;  %s6044_s3 = inlined_call_operand.vmem [shape: bf16[512,32], index: 3, kind: input, shape index: {}]   ;;  %s6045_s2 = inlined_call_operand.vmem [shape: f32[1,64], index: 2, kind: input, shape index: {}]   ;;  %s6046_s5 = inlined_call_operand.vmem [shape: bf16[512,64], index: 5, kind: output, shape index: {}]  }
   0x1   :  { %1405 = vmatprep.subr.bf16.mxu0 %v4472_v0  ;;  %3984 = vmatprep.subr.bf16.mxu1 %v4472_v0  ;;  %v4177_v1 = vld [vmem:[%s6041_s1] sm:$0xff]   ;;  %v4178_v2 = vld [vmem:[%s6041_s1 + $0x8] sm:$0xff]   ;;  %v4179_v3 = vld [vmem:[%s6041_s1 + $0x10] sm:$0xff]  }
   0x2   :  { %1406 = vmatpush1.bf16.msra.mxu0 %v4177_v1  ;;  %4000 = vmatpush1.bf16.msra.mxu1 %v4177_v1  ;;  %v4180_v4 = vld [vmem:[%s6041_s1 + $0x18] sm:$0xff]   ;;  %v4181_v5 = vld [vmem:[%s6041_s1 + $0x20] sm:$0xff]   ;;  %v4182_v7 = vld [vmem:[%s6041_s1 + $0x28] sm:$0xff]  }
   0x3   :  { %1407 = vmatprep.subr.bf16.mxu0 %v4472_v0  ;;  %3985 = vmatprep.subr.bf16.mxu1 %v4472_v0  ;;  %v4195_v6 = vld [vmem:[%s6042_s0 + $0x4] ss:$20 sps:$4 sm:$0xff]   ;;  %v4183_v9 = vld [vmem:[%s6041_s1 + $0x30] sm:$0xff]   ;;  %v4186_v12 = vld [vmem:[%s6041_s1 + $0x48] sm:$0xff]  }
   0x4   :  { %v4198_v8 = vld [vmem:[%s6042_s0 + $0x284] ss:$20 sps:$4 sm:$0xff]   ;;  %1437 = vmatprep.mubr.bf16.mxu0 %v4195_v6  ;;  %v4187_v13 = vld [vmem:[%s6041_s1 + $0x50] sm:$0xff]   ;;  %v4190_v16 = vld [vmem:[%s6041_s1 + $0x68] sm:$0xff]  }
   0x5   :  { %1565 = vmatprep.mubr.bf16.mxu1 %v4198_v8  ;;  %v4184_v10 = vld [vmem:[%s6041_s1 + $0x38] sm:$0xff]   ;;  %v4185_v11 = vld [vmem:[%s6041_s1 + $0x40] sm:$0xff]   ;;  %v4191_v17 = vld [vmem:[%s6041_s1 + $0x70] sm:$0xff]  }
   0x6   :  { %1408 = vmatpush1.bf16.msra.mxu0 %v4178_v2  ;;  %4001 = vmatpush1.bf16.msra.mxu1 %v4178_v2  ;;  %v4188_v14 = vld [vmem:[%s6041_s1 + $0x58] sm:$0xff]   ;;  %v4189_v15 = vld [vmem:[%s6041_s1 + $0x60] sm:$0xff]   ;;  %v4229_v25 = vld [vmem:[%s6041_s1 + $0x108] sm:$0xff]  }
   0x7   :  { %1409 = vmatprep.subr.bf16.mxu0 %v4472_v0  ;;  %3986 = vmatprep.subr.bf16.mxu1 %v4472_v0  ;;  %v4192_v18 = vld [vmem:[%s6041_s1 + $0x78] sm:$0xff]   ;;  %v4200_v19 = vld [vmem:[%s6041_s1 + $0x100] sm:$0xff]   ;;  %v4207_v26 = vld [vmem:[%s6041_s1 + $0x88] sm:$0xff]  }
   0x8   :  { %v4193_v20 = vld [vmem:[%s6042_s0] ss:$20 sps:$4 sm:$0xff]   ;;  %v4205_v28 = vld [vmem:[%s6042_s0 + $0x28] ss:$20 sps:$4 sm:$0xff]   ;;  %v4212_v35 = vld [vmem:[%s6042_s0 + $0x50] ss:$20 sps:$4 sm:$0xff]  }
   0x9   :  { %v4196_v21 = vld [vmem:[%s6042_s0 + $0x280] ss:$20 sps:$4 sm:$0xff]   ;;  %v4206_v29 = vld [vmem:[%s6042_s0 + $0x2a8] ss:$20 sps:$4 sm:$0xff]   ;;  %v4213_v36 = vld [vmem:[%s6042_s0 + $0x2d0] ss:$20 sps:$4 sm:$0xff]  }
   0xa   :  { %1410 = vmatpush1.bf16.msra.mxu0 %v4179_v3  ;;  %4002 = vmatpush1.bf16.msra.mxu1 %v4179_v3  ;;  %v4199_v22 = vld [vmem:[%s6041_s1 + $0x80] sm:$0xff]   ;;  %v4258_v27 = vld [vmem:[%s6041_s1 + $0x110] sm:$0xff]   ;;  %v4287_v33 = vld [vmem:[%s6041_s1 + $0x118] sm:$0xff]  }
   0xb   :  { %1411 = vmatprep.subr.bf16.mxu0 %v4472_v0  ;;  %3987 = vmatprep.subr.bf16.mxu1 %v4472_v0  ;;  %v4201_v23 = vld [vmem:[%s6042_s0 + $0x2c] ss:$20 sps:$4 sm:$0xff]   ;;  %v4208_v30 = vld [vmem:[%s6042_s0 + $0x54] ss:$20 sps:$4 sm:$0xff]   ;;  %v4221_v34 = vld [vmem:[%s6041_s1 + $0x98] sm:$0xff]  }
   0xc   :  { %v4203_v24 = vld [vmem:[%s6042_s0 + $0x2ac] ss:$20 sps:$4 sm:$0xff]   ;;  %v4210_v31 = vld [vmem:[%s6042_s0 + $0x2d4] ss:$20 sps:$4 sm:$0xff]   ;;  %v4215_v37 = vld [vmem:[%s6042_s0 + $0x7c] ss:$20 sps:$4 sm:$0xff]  }
   0xd   :  { %v4214_v32 = vld [vmem:[%s6041_s1 + $0x90] sm:$0xff]   ;;  %v4228_v39 = vld [vmem:[%s6041_s1 + $0xa0] sm:$0xff]   ;;  %v4219_v41 = vld [vmem:[%s6042_s0 + $0x78] ss:$20 sps:$4 sm:$0xff]  }
   0xe   :  { %1412 = vmatpush1.bf16.msra.mxu0 %v4180_v4  ;;  %4003 = vmatpush1.bf16.msra.mxu1 %v4180_v4  ;;  %v4217_v38 = vld [vmem:[%s6042_s0 + $0x2fc] ss:$20 sps:$4 sm:$0xff]   ;;  %v4660_v40 = vld [vmem:[%s6043_s4] sm:$0xff]   ;;  %v4236_v42 = vld [vmem:[%s6041_s1 + $0xa8] sm:$0xff]  }
   0xf   :  { %1413 = vmatprep.subr.bf16.mxu0 %v4472_v0  ;;  %3988 = vmatprep.subr.bf16.mxu1 %v4472_v0  ;;  %v4220_v43 = vld [vmem:[%s6042_s0 + $0x2f8] ss:$20 sps:$4 sm:$0xff]   ;;  %v4243_v46 = vld [vmem:[%s6041_s1 + $0xb0] sm:$0xff]   ;;  %v4257_v52 = vld [vmem:[%s6041_s1 + $0xc0] sm:$0xff]  }
  0x10   :  { %v4222_v44 = vld [vmem:[%s6042_s0 + $0xa4] ss:$20 sps:$4 sm:$0xff]   ;;  %v4226_v47 = vld [vmem:[%s6042_s0 + $0xa0] ss:$20 sps:$4 sm:$0xff]   ;;  %v4265_v53 = vld [vmem:[%s6041_s1 + $0xc8] sm:$0xff]  }
  0x11   :  { %v4224_v45 = vld [vmem:[%s6042_s0 + $0x324] ss:$20 sps:$4 sm:$0xff]   ;;  %v4227_v49 = vld [vmem:[%s6042_s0 + $0x320] ss:$20 sps:$4 sm:$0xff]   ;;  %v4234_v54 = vld [vmem:[%s6042_s0 + $0xc8] ss:$20 sps:$4 sm:$0xff]  }
  0x12   :  { %1414 = vmatpush1.bf16.msra.mxu0 %v4181_v5  ;;  %4004 = vmatpush1.bf16.msra.mxu1 %v4181_v5  ;;  %v4250_v48 = vld [vmem:[%s6041_s1 + $0xb8] sm:$0xff]   ;;  %v4230_v50 = vld [vmem:[%s6042_s0 + $0xcc] ss:$20 sps:$4 sm:$0xff]   ;;  %v4237_v56 = vld [vmem:[%s6042_s0 + $0xf4] ss:$20 sps:$4 sm:$0xff]  }
  0x13   :  { %1415 = vmatprep.subr.bf16.mxu0 %v4472_v0  ;;  %3989 = vmatprep.subr.bf16.mxu1 %v4472_v0  ;;  %v4232_v51 = vld [vmem:[%s6042_s0 + $0x34c] ss:$20 sps:$4 sm:$0xff]   ;;  %v4235_v55 = vld [vmem:[%s6042_s0 + $0x348] ss:$20 sps:$4 sm:$0xff]   ;;  %v4272_v58 = vld [vmem:[%s6041_s1 + $0xd0] sm:$0xff]  }
  0x14   :  { %v4239_v57 = vld [vmem:[%s6042_s0 + $0x374] ss:$20 sps:$4 sm:$0xff]   ;;  %v4279_v59 = vld [vmem:[%s6041_s1 + $0xd8] sm:$0xff]   ;;  %v4241_v60 = vld [vmem:[%s6042_s0 + $0xf0] ss:$20 sps:$4 sm:$0xff]  }
  0x15   :  { %v4242_v61 = vld [vmem:[%s6042_s0 + $0x370] ss:$20 sps:$4 sm:$0xff]   ;;  %v4294_v2 = vld [vmem:[%s6041_s1 + $0xe8] sm:$0xff]   ;;  %v4308_v8 = vld [vmem:[%s6041_s1 + $0xf8] sm:$0xff]  }
  0x16   :  { %1416 = vmatpush1.bf16.msra.mxu0 %v4182_v7  ;;  %4005 = vmatpush1.bf16.msra.mxu1 %v4182_v7  ;;  %v4244_v62 = vld [vmem:[%s6042_s0 + $0x11c] ss:$20 sps:$4 sm:$0xff]   ;;  %v4286_v1 = vld [vmem:[%s6041_s1 + $0xe0] sm:$0xff]   ;;  %v4248_v3 = vld [vmem:[%s6042_s0 + $0x118] ss:$20 sps:$4 sm:$0xff]  }
  0x17   :  { %1417 = vmatprep.subr.bf16.mxu0 %v4472_v0  ;;  %3990 = vmatprep.subr.bf16.mxu1 %v4472_v0  ;;  %v4246_v63 = vld [vmem:[%s6042_s0 + $0x39c] ss:$20 sps:$4 sm:$0xff]   ;;  %v4249_v4 = vld [vmem:[%s6042_s0 + $0x398] ss:$20 sps:$4 sm:$0xff]  }
  0x18   :  { %v4251_v5 = vld [vmem:[%s6042_s0 + $0x144] ss:$20 sps:$4 sm:$0xff]   ;;  %v4301_v7 = vld [vmem:[%s6041_s1 + $0xf0] sm:$0xff]  }
  0x19   :  { %v4253_v6 = vld [vmem:[%s6042_s0 + $0x3c4] ss:$20 sps:$4 sm:$0xff]  }
  0x1a   :  { %1418 = vmatpush1.bf16.msra.mxu0 %v4183_v9  ;;  %4006 = vmatpush1.bf16.msra.mxu1 %v4183_v9  ;;  %v4255_v9 = vld [vmem:[%s6042_s0 + $0x140] ss:$20 sps:$4 sm:$0xff]  }
  0x1b   :  { %1419 = vmatprep.subr.bf16.mxu0 %v4472_v0  ;;  %3991 = vmatprep.subr.bf16.mxu1 %v4472_v0 }
  0x1e   :  { %1420 = vmatpush1.bf16.msra.mxu0 %v4184_v10  ;;  %4007 = vmatpush1.bf16.msra.mxu1 %v4184_v10  ;;  %v4256_v10 = vld [vmem:[%s6042_s0 + $0x3c0] ss:$20 sps:$4 sm:$0xff]  }
  0x1f   :  { %1421 = vmatprep.subr.bf16.mxu0 %v4472_v0  ;;  %3992 = vmatprep.subr.bf16.mxu1 %v4472_v0 }
  0x22   :  { %1422 = vmatpush1.bf16.msra.mxu0 %v4185_v11  ;;  %4008 = vmatpush1.bf16.msra.mxu1 %v4185_v11  ;;  %v4259_v11 = vld [vmem:[%s6042_s0 + $0x16c] ss:$20 sps:$4 sm:$0xff]  }
  0x23   :  { %1423 = vmatprep.subr.bf16.mxu0 %v4472_v0  ;;  %3993 = vmatprep.subr.bf16.mxu1 %v4472_v0 }
  0x26   :  { %1424 = vmatpush1.bf16.msra.mxu0 %v4186_v12  ;;  %4009 = vmatpush1.bf16.msra.mxu1 %v4186_v12  ;;  %v4261_v12 = vld [vmem:[%s6042_s0 + $0x3ec] ss:$20 sps:$4 sm:$0xff]  }
  0x27   :  { %1425 = vmatprep.subr.bf16.mxu0 %v4472_v0  ;;  %3994 = vmatprep.subr.bf16.mxu1 %v4472_v0 }
  0x2a   :  { %1426 = vmatpush1.bf16.msra.mxu0 %v4187_v13  ;;  %4010 = vmatpush1.bf16.msra.mxu1 %v4187_v13  ;;  %v4263_v13 = vld [vmem:[%s6042_s0 + $0x168] ss:$20 sps:$4 sm:$0xff]  }
  0x2b   :  { %1427 = vmatprep.subr.bf16.mxu0 %v4472_v0  ;;  %3995 = vmatprep.subr.bf16.mxu1 %v4472_v0 }
  0x2e   :  { %1428 = vmatpush1.bf16.msra.mxu0 %v4188_v14  ;;  %4011 = vmatpush1.bf16.msra.mxu1 %v4188_v14  ;;  %v4264_v14 = vld [vmem:[%s6042_s0 + $0x3e8] ss:$20 sps:$4 sm:$0xff]  }
  0x2f   :  { %1429 = vmatprep.subr.bf16.mxu0 %v4472_v0  ;;  %3996 = vmatprep.subr.bf16.mxu1 %v4472_v0 }
  0x32   :  { %1430 = vmatpush1.bf16.msra.mxu0 %v4189_v15  ;;  %4012 = vmatpush1.bf16.msra.mxu1 %v4189_v15  ;;  %v4266_v15 = vld [vmem:[%s6042_s0 + $0x194] ss:$20 sps:$4 sm:$0xff]  }
  0x33   :  { %1431 = vmatprep.subr.bf16.mxu0 %v4472_v0  ;;  %3997 = vmatprep.subr.bf16.mxu1 %v4472_v0 }
  0x36   :  { %1432 = vmatpush1.bf16.msra.mxu0 %v4190_v16  ;;  %4013 = vmatpush1.bf16.msra.mxu1 %v4190_v16  ;;  %v4270_v16 = vld [vmem:[%s6042_s0 + $0x190] ss:$20 sps:$4 sm:$0xff]  }
  0x37   :  { %1433 = vmatprep.subr.bf16.mxu0 %v4472_v0  ;;  %3998 = vmatprep.subr.bf16.mxu1 %v4472_v0 }
  0x3a   :  { %1434 = vmatpush1.bf16.msra.mxu0 %v4191_v17  ;;  %4014 = vmatpush1.bf16.msra.mxu1 %v4191_v17  ;;  %v4271_v17 = vld [vmem:[%s6042_s0 + $0x410] ss:$20 sps:$4 sm:$0xff]  }
  0x3b   :  { %1435 = vmatprep.subr.bf16.mxu0 %v4472_v0  ;;  %3999 = vmatprep.subr.bf16.mxu1 %v4472_v0 }
  0x3e   :  { %1436 = vmatpush1.bf16.msra.mxu0 %v4192_v18  ;;  %4015 = vmatpush1.bf16.msra.mxu1 %v4192_v18  ;;  %v4273_v18 = vld [vmem:[%s6042_s0 + $0x1bc] ss:$20 sps:$4 sm:$0xff]  }
  0x3f   :  { %1694 = vmatprep.subr.bf16.mxu0 %v4472_v0  ;;  %3844 = vmatprep.subr.bf16.mxu1 %v4200_v19 }
  0x41   :  { %1438 = vmatmul.mubr.bf16.vlgmr.msra.gmra.mrb[0].mxu0 %v4193_v20  ;;  %1566 = vmatmul.mubr.bf16.vlgmr.msra.gmra.mrb[0].mxu1 %v4196_v21  ;;  %v4277_v20 = vld [vmem:[%s6042_s0 + $0x1b8] ss:$20 sps:$4 sm:$0xff]  }
  0x42   :  { %1695 = vmatpush1.bf16.msra.mxu0 %v4199_v22  ;;  %3845 = vmatpush3.bf16.msra.mxu1 %v4200_v19  ;;  %v4275_v19 = vld [vmem:[%s6042_s0 + $0x43c] ss:$20 sps:$4 sm:$0xff]   ;;  %v4278_v21 = vld [vmem:[%s6042_s0 + $0x438] ss:$20 sps:$4 sm:$0xff]  }
  0x43   :  { %1445 = vmatprep.mubr.bf16.mxu0 %v4201_v23  ;;  %1573 = vmatprep.mubr.bf16.mxu1 %v4203_v24  ;;  %v4280_v22 = vld [vmem:[%s6042_s0 + $0x1e4] ss:$20 sps:$4 sm:$0xff]   ;;  %v4284_v24 = vld [vmem:[%s6042_s0 + $0x1e0] ss:$20 sps:$4 sm:$0xff]  }
  0x44   :  { %1696 = vmatprep.subr.bf16.mxu0 %v4472_v0  ;;  %3846 = vmatprep.subr.bf16.mxu1 %v4229_v25  ;;  %v4282_v23 = vld [vmem:[%s6042_s0 + $0x464] ss:$20 sps:$4 sm:$0xff]  }
  0x46   :  { %1697 = vmatpush1.bf16.msra.mxu0 %v4207_v26  ;;  %3847 = vmatpush3.bf16.msra.mxu1 %v4229_v25  ;;  %v4285_v25 = vld [vmem:[%s6042_s0 + $0x460] ss:$20 sps:$4 sm:$0xff]  }
  0x47   :  { %1698 = vmatprep.subr.bf16.mxu0 %v4472_v0  ;;  %3848 = vmatprep.subr.bf16.mxu1 %v4258_v27  ;;  %v4288_v26 = vld [vmem:[%s6042_s0 + $0x20c] ss:$20 sps:$4 sm:$0xff]  }
  0x49   :  { %1446 = vmatmul.mubr.bf16.gmra.mrb[4].mxu0 %v4205_v28  ;;  %1574 = vmatmul.mubr.bf16.gmra.mrb[4].mxu1 %v4206_v29  ;;  %v4292_v28 = vld [vmem:[%s6042_s0 + $0x208] ss:$20 sps:$4 sm:$0xff]  }
  0x4a   :  { %1453 = vmatprep.mubr.bf16.mxu0 %v4208_v30  ;;  %1581 = vmatprep.mubr.bf16.mxu1 %v4210_v31  ;;  %v4293_v29 = vld [vmem:[%s6042_s0 + $0x488] ss:$20 sps:$4 sm:$0xff]  }
  0x4b   :  { %1699 = vmatpush1.bf16.msra.mxu0 %v4214_v32  ;;  %3849 = vmatpush3.bf16.msra.mxu1 %v4258_v27  ;;  %v4290_v27 = vld [vmem:[%s6042_s0 + $0x48c] ss:$20 sps:$4 sm:$0xff]   ;;  %v4295_v30 = vld [vmem:[%s6042_s0 + $0x234] ss:$20 sps:$4 sm:$0xff]   ;;  %v4299_v32 = vld [vmem:[%s6042_s0 + $0x230] ss:$20 sps:$4 sm:$0xff]  }
  0x4c   :  { %1700 = vmatprep.subr.bf16.mxu0 %v4472_v0  ;;  %3850 = vmatprep.subr.bf16.mxu1 %v4287_v33  ;;  %v4297_v31 = vld [vmem:[%s6042_s0 + $0x4b4] ss:$20 sps:$4 sm:$0xff]  }
  0x4f   :  { %1701 = vmatpush1.bf16.msra.mxu0 %v4221_v34  ;;  %3851 = vmatpush3.bf16.msra.mxu1 %v4287_v33  ;;  %v4300_v33 = vld [vmem:[%s6042_s0 + $0x4b0] ss:$20 sps:$4 sm:$0xff]  }
  0x50   :  { %1702 = vmatprep.subr.bf16.mxu0 %v4472_v0  ;;  %3916 = vmatprep.subr.bf16.mxu1 %v4660_v40  ;;  %v4302_v34 = vld [vmem:[%s6042_s0 + $0x25c] ss:$20 sps:$4 sm:$0xff]  }
  0x51   :  { %1454 = vmatmul.mubr.bf16.gmra.mrb[8].mxu0 %v4212_v35  ;;  %1582 = vmatmul.mubr.bf16.gmra.mrb[8].mxu1 %v4213_v36  ;;  %v4304_v35 = vld [vmem:[%s6042_s0 + $0x4dc] ss:$20 sps:$4 sm:$0xff]   ;;  %v4306_v36 = vld [vmem:[%s6042_s0 + $0x258] ss:$20 sps:$4 sm:$0xff]  }
  0x52   :  { %1461 = vmatprep.mubr.bf16.mxu0 %v4215_v37  ;;  %1589 = vmatprep.mubr.bf16.mxu1 %v4217_v38  ;;  %v4307_v37 = vld [vmem:[%s6042_s0 + $0x4d8] ss:$20 sps:$4 sm:$0xff]  }
  0x53   :  { %1703 = vmatpush1.bf16.msra.mxu0 %v4228_v39  ;;  %v4311_v38 = vld [vmem:[%s6042_s0 + $0xc] ss:$20 sps:$4 sm:$0xff]   ;;  %v4312_v39 = vld [vmem:[%s6042_s0 + $0x10] ss:$20 sps:$4 sm:$0xff]  }
  0x54   :  { %1704 = vmatprep.subr.bf16.mxu0 %v4472_v0 }
  0x57   :  { %1705 = vmatpush1.bf16.msra.mxu0 %v4236_v42  ;;  %v4313_v42 = vld [vmem:[%s6042_s0 + $0x38] ss:$20 sps:$4 sm:$0xff]  }
  0x58   :  { %1706 = vmatprep.subr.bf16.mxu0 %v4472_v0 }
  0x59   :  { %1462 = vmatmul.mubr.bf16.gmra.mrb[12].mxu0 %v4219_v41  ;;  %1590 = vmatmul.mubr.bf16.gmra.mrb[12].mxu1 %v4220_v43  ;;  %v4309_v41 = vld [vmem:[%s6042_s0 + $0x8] ss:$20 sps:$4 sm:$0xff]  }
  0x5a   :  { %1469 = vmatprep.mubr.bf16.mxu0 %v4222_v44  ;;  %1597 = vmatprep.mubr.bf16.mxu1 %v4224_v45  ;;  %v4315_v43 = vld [vmem:[%s6042_s0 + $0x34] ss:$20 sps:$4 sm:$0xff]  }
  0x5b   :  { %1707 = vmatpush1.bf16.msra.mxu0 %v4243_v46  ;;  %v4317_v44 = vld [vmem:[%s6042_s0 + $0x60] ss:$20 sps:$4 sm:$0xff]   ;;  %v4355_v45 = vld [vmem:[%s6043_s4 + $0x8] sm:$0xff]   ;;  %v4318_v46 = vld [vmem:[%s6042_s0 + $0x30] ss:$20 sps:$4 sm:$0xff]  }
  0x5c   :  { %1708 = vmatprep.subr.bf16.mxu0 %v4472_v0 }
  0x5f   :  { %1709 = vmatpush1.bf16.msra.mxu0 %v4250_v48  ;;  %v4320_v48 = vld [vmem:[%s6042_s0 + $0x5c] ss:$20 sps:$4 sm:$0xff]  }
  0x60   :  { %1710 = vmatprep.subr.bf16.mxu0 %v4472_v0 }
  0x61   :  { %1470 = vmatmul.mubr.bf16.gmra.mrb[16].mxu0 %v4226_v47  ;;  %1598 = vmatmul.mubr.bf16.gmra.mrb[16].mxu1 %v4227_v49  ;;  %v4319_v47 = vld [vmem:[%s6042_s0 + $0x88] ss:$20 sps:$4 sm:$0xff]   ;;  %v4323_v49 = vld [vmem:[%s6042_s0 + $0x58] ss:$20 sps:$4 sm:$0xff]  }
  0x62   :  { %1477 = vmatprep.mubr.bf16.mxu0 %v4230_v50  ;;  %1605 = vmatprep.mubr.bf16.mxu1 %v4232_v51  ;;  %v4324_v50 = vld [vmem:[%s6042_s0 + $0xd8] ss:$20 sps:$4 sm:$0xff]  }
  0x63   :  { %1711 = vmatpush1.bf16.msra.mxu0 %v4257_v52  ;;  %v4325_v51 = vld [vmem:[%s6042_s0 + $0x84] ss:$20 sps:$4 sm:$0xff]   ;;  %v4327_v52 = vld [vmem:[%s6042_s0 + $0x100] ss:$20 sps:$4 sm:$0xff]  }
  0x64   :  { %1712 = vmatprep.subr.bf16.mxu0 %v4472_v0 }
  0x67   :  { %1713 = vmatpush1.bf16.msra.mxu0 %v4265_v53  ;;  %v4328_v53 = vld [vmem:[%s6042_s0 + $0x80] ss:$20 sps:$4 sm:$0xff]  }
  0x68   :  { %1714 = vmatprep.subr.bf16.mxu0 %v4472_v0 }
  0x69   :  { %1478 = vmatmul.mubr.bf16.gmra.mrb[20].mxu0 %v4234_v54  ;;  %1606 = vmatmul.mubr.bf16.gmra.mrb[20].mxu1 %v4235_v55  ;;  %v4329_v54 = vld [vmem:[%s6042_s0 + $0x128] ss:$20 sps:$4 sm:$0xff]   ;;  %v4330_v55 = vld [vmem:[%s6042_s0 + $0xac] ss:$20 sps:$4 sm:$0xff]  }
  0x6a   :  { %1485 = vmatprep.mubr.bf16.mxu0 %v4237_v56  ;;  %1613 = vmatprep.mubr.bf16.mxu1 %v4239_v57  ;;  %v4332_v56 = vld [vmem:[%s6042_s0 + $0x150] ss:$20 sps:$4 sm:$0xff]   ;;  %v4333_v57 = vld [vmem:[%s6042_s0 + $0xa8] ss:$20 sps:$4 sm:$0xff]  }
  0x6b   :  { %1715 = vmatpush1.bf16.msra.mxu0 %v4272_v58  ;;  %v4334_v58 = vld [vmem:[%s6042_s0 + $0x178] ss:$20 sps:$4 sm:$0xff]  }
  0x6c   :  { %1716 = vmatprep.subr.bf16.mxu0 %v4472_v0 }
  0x6f   :  { %1717 = vmatpush1.bf16.msra.mxu0 %v4279_v59  ;;  %v4335_v59 = vld [vmem:[%s6042_s0 + $0xd4] ss:$20 sps:$4 sm:$0xff]  }
  0x70   :  { %1718 = vmatprep.subr.bf16.mxu0 %v4472_v0 }
  0x71   :  { %1486 = vmatmul.mubr.bf16.gmra.mrb[24].mxu0 %v4241_v60  ;;  %1614 = vmatmul.mubr.bf16.gmra.mrb[24].mxu1 %v4242_v61  ;;  %v4337_v60 = vld [vmem:[%s6042_s0 + $0x1a0] ss:$20 sps:$4 sm:$0xff]   ;;  %v4338_v61 = vld [vmem:[%s6042_s0 + $0xd0] ss:$20 sps:$4 sm:$0xff]  }
  0x72   :  { %1493 = vmatprep.mubr.bf16.mxu0 %v4244_v62  ;;  %1621 = vmatprep.mubr.bf16.mxu1 %v4246_v63  ;;  %v4339_v62 = vld [vmem:[%s6042_s0 + $0x1c8] ss:$20 sps:$4 sm:$0xff]  }
  0x73   :  { %1719 = vmatpush1.bf16.msra.mxu0 %v4286_v1  ;;  %v4340_v63 = vld [vmem:[%s6042_s0 + $0xfc] ss:$20 sps:$4 sm:$0xff]  }
  0x74   :  { %1720 = vmatprep.subr.bf16.mxu0 %v4472_v0  ;;  %v4342_v1 = vld [vmem:[%s6042_s0 + $0x1f0] ss:$20 sps:$4 sm:$0xff]  }
  0x77   :  { %1721 = vmatpush1.bf16.msra.mxu0 %v4294_v2  ;;  %v4343_v2 = vld [vmem:[%s6042_s0 + $0xf8] ss:$20 sps:$4 sm:$0xff]  }
  0x78   :  { %1722 = vmatprep.subr.bf16.mxu0 %v4472_v0 }
  0x79   :  { %1494 = vmatmul.mubr.bf16.gmra.mrb[28].mxu0 %v4248_v3  ;;  %1622 = vmatmul.mubr.bf16.gmra.mrb[28].mxu1 %v4249_v4  ;;  %v4344_v3 = vld [vmem:[%s6042_s0 + $0x218] ss:$20 sps:$4 sm:$0xff]  }
  0x7a   :  { %1501 = vmatprep.mubr.bf16.mxu0 %v4251_v5  ;;  %1629 = vmatprep.mubr.bf16.mxu1 %v4253_v6  ;;  %v4345_v4 = vld [vmem:[%s6042_s0 + $0x124] ss:$20 sps:$4 sm:$0xff]   ;;  %v4347_v5 = vld [vmem:[%s6042_s0 + $0x240] ss:$20 sps:$4 sm:$0xff]  }
  0x7b   :  { %1723 = vmatpush1.bf16.msra.mxu0 %v4301_v7  ;;  %v4348_v6 = vld [vmem:[%s6042_s0 + $0x120] ss:$20 sps:$4 sm:$0xff]   ;;  %v4349_v7 = vld [vmem:[%s6042_s0 + $0x268] ss:$20 sps:$4 sm:$0xff]  }
  0x7c   :  { %1724 = vmatprep.subr.bf16.mxu0 %v4472_v0  ;;  %v4268_v0 = vld [vmem:[%s6042_s0 + $0x414] ss:$20 sps:$4 sm:$0xff]  }
  0x7f   :  { %1725 = vmatpush1.bf16.msra.mxu0 %v4308_v8  ;;  %v4350_v8 = vld [vmem:[%s6042_s0 + $0x14c] ss:$20 sps:$4 sm:$0xff]  }
  0x81   :  { %1502 = vmatmul.mubr.bf16.gmra.mrb[32].mxu0 %v4255_v9  ;;  %1630 = vmatmul.mubr.bf16.gmra.mrb[32].mxu1 %v4256_v10  ;;  %v4352_v9 = vld [vmem:[%s6042_s0 + $0x290] ss:$20 sps:$4 sm:$0xff]   ;;  %v4353_v10 = vld [vmem:[%s6042_s0 + $0x148] ss:$20 sps:$4 sm:$0xff]  }
  0x82   :  { %1509 = vmatprep.mubr.bf16.mxu0 %v4259_v11  ;;  %1637 = vmatprep.mubr.bf16.mxu1 %v4261_v12  ;;  %v4354_v11 = vld [vmem:[%s6042_s0 + $0x2b8] ss:$20 sps:$4 sm:$0xff]   ;;  %v4356_v12 = vld [vmem:[%s6042_s0 + $0x174] ss:$20 sps:$4 sm:$0xff]  }
  0x89   :  { %1510 = vmatmul.mubr.bf16.gmra.mrb[36].mxu0 %v4263_v13  ;;  %1638 = vmatmul.mubr.bf16.gmra.mrb[36].mxu1 %v4264_v14  ;;  %v4358_v13 = vld [vmem:[%s6042_s0 + $0x2e0] ss:$20 sps:$4 sm:$0xff]   ;;  %v4359_v14 = vld [vmem:[%s6042_s0 + $0x170] ss:$20 sps:$4 sm:$0xff]  }
  0x8a   :  { %1517 = vmatprep.mubr.bf16.mxu0 %v4266_v15  ;;  %1645 = vmatprep.mubr.bf16.mxu1 %v4268_v0  ;;  %v4360_v15 = vld [vmem:[%s6042_s0 + $0x308] ss:$20 sps:$4 sm:$0xff]  }
  0x8b   :  { %v4361_v0 = vld [vmem:[%s6042_s0 + $0x19c] ss:$20 sps:$4 sm:$0xff]  }
  0x91   :  { %1518 = vmatmul.mubr.bf16.gmra.mrb[40].mxu0 %v4270_v16  ;;  %1646 = vmatmul.mubr.bf16.gmra.mrb[40].mxu1 %v4271_v17  ;;  %v4363_v16 = vld [vmem:[%s6042_s0 + $0x330] ss:$20 sps:$4 sm:$0xff]   ;;  %v4364_v17 = vld [vmem:[%s6042_s0 + $0x198] ss:$20 sps:$4 sm:$0xff]  }
  0x92   :  { %1525 = vmatprep.mubr.bf16.mxu0 %v4273_v18  ;;  %1653 = vmatprep.mubr.bf16.mxu1 %v4275_v19  ;;  %v4365_v18 = vld [vmem:[%s6042_s0 + $0x358] ss:$20 sps:$4 sm:$0xff]  }
  0x93   :  { %v4366_v19 = vld [vmem:[%s6042_s0 + $0x1c4] ss:$20 sps:$4 sm:$0xff]  }
  0x99   :  { %1526 = vmatmul.mubr.bf16.gmra.mrb[44].mxu0 %v4277_v20  ;;  %1654 = vmatmul.mubr.bf16.gmra.mrb[44].mxu1 %v4278_v21  ;;  %v4368_v20 = vld [vmem:[%s6042_s0 + $0x380] ss:$20 sps:$4 sm:$0xff]  }
  0x9a   :  { %1533 = vmatprep.mubr.bf16.mxu0 %v4280_v22  ;;  %1661 = vmatprep.mubr.bf16.mxu1 %v4282_v23  ;;  %v4369_v23 = vld [vmem:[%s6042_s0 + $0x1c0] ss:$20 sps:$4 sm:$0xff]  }
  0xa1   :  { %1534 = vmatmul.mubr.bf16.gmra.mrb[48].mxu0 %v4284_v24  ;;  %1662 = vmatmul.mubr.bf16.gmra.mrb[48].mxu1 %v4285_v25  ;;  %v4370_v24 = vld [vmem:[%s6042_s0 + $0x3a8] ss:$20 sps:$4 sm:$0xff]  }
  0xa2   :  { %1541 = vmatprep.mubr.bf16.mxu0 %v4288_v26  ;;  %1669 = vmatprep.mubr.bf16.mxu1 %v4290_v27  ;;  %v4371_v26 = vld [vmem:[%s6042_s0 + $0x1ec] ss:$20 sps:$4 sm:$0xff]   ;;  %v4373_v27 = vld [vmem:[%s6042_s0 + $0x3d0] ss:$20 sps:$4 sm:$0xff]  }
  0xa9   :  { %1542 = vmatmul.mubr.bf16.gmra.mrb[52].mxu0 %v4292_v28  ;;  %1670 = vmatmul.mubr.bf16.gmra.mrb[52].mxu1 %v4293_v29 }
  0xaa   :  { %1549 = vmatprep.mubr.bf16.mxu0 %v4295_v30  ;;  %1677 = vmatprep.mubr.bf16.mxu1 %v4297_v31  ;;  %v4374_v31 = vld [vmem:[%s6042_s0 + $0x1e8] ss:$20 sps:$4 sm:$0xff]  }
  0xb1   :  { %1550 = vmatmul.mubr.bf16.gmra.mrb[56].mxu0 %v4299_v32  ;;  %1678 = vmatmul.mubr.bf16.gmra.mrb[56].mxu1 %v4300_v33  ;;  %v4375_v32 = vld [vmem:[%s6042_s0 + $0x3f8] ss:$20 sps:$4 sm:$0xff]  }
  0xb2   :  { %1557 = vmatprep.mubr.bf16.mxu0 %v4302_v34  ;;  %1685 = vmatprep.mubr.bf16.mxu1 %v4304_v35  ;;  %v4376_v34 = vld [vmem:[%s6042_s0 + $0x214] ss:$20 sps:$4 sm:$0xff]  }
  0xb3   :  { %v4378_v35 = vld [vmem:[%s6042_s0 + $0x420] ss:$20 sps:$4 sm:$0xff]  }
  0xb9   :  { %1558 = vmatmul.mubr.bf16.gmra.mrb[60].mxu0 %v4306_v36  ;;  %1686 = vmatmul.mubr.bf16.gmra.mrb[60].mxu1 %v4307_v37 }
  0xba   :  { %1726 = vmatprep.mubr.bf16.mxu0 %v4311_v38  ;;  %3852 = vmatprep.mubr.msk.bf16.mxu1 %vm1308_vm0, %v4312_v39  ;;  %v4379_v39 = vld [vmem:[%s6042_s0 + $0x210] ss:$20 sps:$4 sm:$0xff]  }
  0xc1   :  { %1727 = vmatmul.mubr.bf16.vlgmr.msra.gmra.mrb[0].mxu0 %v4309_v41  ;;  %3853 = vmatmul.mubr.msk.bf16.vlgmr.msra.gmra.mrb[64].mxu1 %vm1308_vm0, %v4313_v42  ;;  %v4380_v41 = vld [vmem:[%s6042_s0 + $0x448] ss:$20 sps:$4 sm:$0xff]  }
  0xc2   :  { %3917 = vmatpush3.bf16.msra.mxu1 %v4660_v40  ;;  %1734 = vmatprep.mubr.bf16.mxu0 %v4315_v43  ;;  %v4322_v40 = vld [vmem:[%s6042_s0 + $0xb0] ss:$20 sps:$4 sm:$0xff]  }
  0xc3   :  { %3856 = vmatprep.mubr.msk.bf16.mxu1 %vm1308_vm0, %v4317_v44  ;;  %3918 = vmatprep.subr.bf16.mxu1 %v4355_v45  ;;  %v4381_v43 = vld [vmem:[%s6042_s0 + $0x23c] ss:$20 sps:$4 sm:$0xff]  }
  0xc4   :  { %v4383_v44 = vld [vmem:[%s6042_s0 + $0x470] ss:$20 sps:$4 sm:$0xff]  }
  0xc6   :  { %3919 = vmatpush3.bf16.msra.mxu1 %v4355_v45 }
  0xc9   :  { %1735 = vmatmul.mubr.bf16.gmra.mrb[4].mxu0 %v4318_v46  ;;  %3857 = vmatmul.mubr.msk.bf16.gmra.mrb[68].mxu1 %vm1308_vm0, %v4319_v47 }
  0xca   :  { %1742 = vmatprep.mubr.bf16.mxu0 %v4320_v48  ;;  %3860 = vmatprep.mubr.msk.bf16.mxu1 %vm1308_vm0, %v4322_v40  ;;  %v4384_v48 = vld [vmem:[%s6042_s0 + $0x238] ss:$20 sps:$4 sm:$0xff]  }
  0xcb   :  { %v4385_v40 = vld [vmem:[%s6042_s0 + $0x498] ss:$20 sps:$4 sm:$0xff]  }
  0xd1   :  { %1743 = vmatmul.mubr.bf16.gmra.mrb[8].mxu0 %v4323_v49  ;;  %3861 = vmatmul.mubr.msk.bf16.gmra.mrb[72].mxu1 %vm1308_vm0, %v4324_v50  ;;  %v4386_v50 = vld [vmem:[%s6042_s0 + $0x264] ss:$20 sps:$4 sm:$0xff]  }
  0xd2   :  { %1750 = vmatprep.mubr.bf16.mxu0 %v4325_v51  ;;  %3864 = vmatprep.mubr.msk.bf16.mxu1 %vm1308_vm0, %v4327_v52  ;;  %v4388_v51 = vld [vmem:[%s6042_s0 + $0x4c0] ss:$20 sps:$4 sm:$0xff]  }
  0xd9   :  { %1751 = vmatmul.mubr.bf16.gmra.mrb[12].mxu0 %v4328_v53  ;;  %3865 = vmatmul.mubr.msk.bf16.gmra.mrb[76].mxu1 %vm1308_vm0, %v4329_v54 }
  0xda   :  { %1758 = vmatprep.mubr.bf16.mxu0 %v4330_v55  ;;  %3868 = vmatprep.mubr.msk.bf16.mxu1 %vm1308_vm0, %v4332_v56  ;;  %v4389_v55 = vld [vmem:[%s6042_s0 + $0x260] ss:$20 sps:$4 sm:$0xff]   ;;  %v4390_v56 = vld [vmem:[%s6042_s0 + $0x4e8] ss:$20 sps:$4 sm:$0xff]  }
  0xe1   :  { %1759 = vmatmul.mubr.bf16.gmra.mrb[16].mxu0 %v4333_v57  ;;  %3869 = vmatmul.mubr.msk.bf16.gmra.mrb[80].mxu1 %vm1308_vm0, %v4334_v58  ;;  %v4391_v58 = vld [vmem:[%s6042_s0 + $0x28c] ss:$20 sps:$4 sm:$0xff]  }
  0xe2   :  { %1766 = vmatprep.mubr.bf16.mxu0 %v4335_v59  ;;  %3872 = vmatprep.mubr.msk.bf16.mxu1 %vm1308_vm0, %v4337_v60  ;;  %v4393_v59 = vld [vmem:[%s6044_s3] sm:$0xff]  }
  0xe9   :  { %1767 = vmatmul.mubr.bf16.gmra.mrb[20].mxu0 %v4338_v61  ;;  %3873 = vmatmul.mubr.msk.bf16.gmra.mrb[84].mxu1 %vm1308_vm0, %v4339_v62 }
  0xea   :  { %1774 = vmatprep.mubr.bf16.mxu0 %v4340_v63  ;;  %3876 = vmatprep.mubr.msk.bf16.mxu1 %vm1308_vm0, %v4342_v1  ;;  %v4394_v63 = vld [vmem:[%s6042_s0 + $0x288] ss:$20 sps:$4 sm:$0xff]  }
  0xeb   :  { %v4395_v1 = vld [vmem:[%s6044_s3 + $0x8] sm:$0xff]  }
  0xf1   :  { %1775 = vmatmul.mubr.bf16.gmra.mrb[24].mxu0 %v4343_v2  ;;  %3877 = vmatmul.mubr.msk.bf16.gmra.mrb[88].mxu1 %vm1308_vm0, %v4344_v3  ;;  %v4396_v3 = vld [vmem:[%s6042_s0 + $0x2b4] ss:$20 sps:$4 sm:$0xff]  }
  0xf2   :  { %1782 = vmatprep.mubr.bf16.mxu0 %v4345_v4  ;;  %3880 = vmatprep.mubr.msk.bf16.mxu1 %vm1308_vm0, %v4347_v5  ;;  %v4398_v4 = vld [vmem:[%s6044_s3 + $0x10] sm:$0xff]  }
  0xf9   :  { %1783 = vmatmul.mubr.bf16.gmra.mrb[28].mxu0 %v4348_v6  ;;  %3881 = vmatmul.mubr.msk.bf16.gmra.mrb[92].mxu1 %vm1308_vm0, %v4349_v7 }
  0xfa   :  { %1790 = vmatprep.mubr.bf16.mxu0 %v4350_v8  ;;  %3884 = vmatprep.mubr.msk.bf16.mxu1 %vm1308_vm0, %v4352_v9  ;;  %v4399_v8 = vld [vmem:[%s6042_s0 + $0x2b0] ss:$20 sps:$4 sm:$0xff]   ;;  %v4400_v9 = vld [vmem:[%s6044_s3 + $0x18] sm:$0xff]  }
 0x101   :  { %1791 = vmatmul.mubr.bf16.gmra.mrb[32].mxu0 %v4353_v10  ;;  %3885 = vmatmul.mubr.msk.bf16.gmra.mrb[96].mxu1 %vm1308_vm0, %v4354_v11  ;;  %v4401_v11 = vld [vmem:[%s6042_s0 + $0x2dc] ss:$20 sps:$4 sm:$0xff]  }
 0x102   :  { %1798 = vmatprep.mubr.bf16.mxu0 %v4356_v12  ;;  %3888 = vmatprep.mubr.msk.bf16.mxu1 %vm1308_vm0, %v4358_v13  ;;  %v4403_v12 = vld [vmem:[%s6044_s3 + $0x20] sm:$0xff]  }
 0x109   :  { %1799 = vmatmul.mubr.bf16.gmra.mrb[36].mxu0 %v4359_v14  ;;  %3889 = vmatmul.mubr.msk.bf16.gmra.mrb[100].mxu1 %vm1308_vm0, %v4360_v15 }
 0x10a   :  { %1806 = vmatprep.mubr.bf16.mxu0 %v4361_v0  ;;  %3892 = vmatprep.mubr.msk.bf16.mxu1 %vm1308_vm0, %v4363_v16  ;;  %v4404_v0 = vld [vmem:[%s6042_s0 + $0x2d8] ss:$20 sps:$4 sm:$0xff]  }
 0x10b   :  { %v4405_v16 = vld [vmem:[%s6044_s3 + $0x28] sm:$0xff]  }
 0x111   :  { %1807 = vmatmul.mubr.bf16.gmra.mrb[40].mxu0 %v4364_v17  ;;  %3893 = vmatmul.mubr.msk.bf16.gmra.mrb[104].mxu1 %vm1308_vm0, %v4365_v18  ;;  %v4406_v18 = vld [vmem:[%s6042_s0 + $0x304] ss:$20 sps:$4 sm:$0xff]  }
 0x112   :  { %1814 = vmatprep.mubr.bf16.mxu0 %v4366_v19  ;;  %3896 = vmatprep.mubr.msk.bf16.mxu1 %vm1308_vm0, %v4368_v20  ;;  %v4408_v19 = vld [vmem:[%s6044_s3 + $0x30] sm:$0xff]  }
 0x114   :  { %v5022_v21 = vpop.f32.mrb[0].mxu1 }
 0x115   :  { %v1569_v22 = vpop.f32.mrb[1].mxu1 }
 0x116   :  { %v5030_v25 = vpop.f32.mrb[2].mxu1 }
 0x117   :  { %v1572_v28 = vpop.f32.mrb[3].mxu1 }
 0x118   :  { %v4411_v28 = vld [vmem:[%s6042_s0 + $0x32c] ss:$20 sps:$4 sm:$0xff]  }
 0x119   :  { %1815 = vmatmul.mubr.bf16.gmra.mrb[44].mxu0 %v4369_v23  ;;  %3897 = vmatmul.mubr.msk.bf16.gmra.mrb[108].mxu1 %vm1308_vm0, %v4370_v24  ;;  %v4409_v24 = vld [vmem:[%s6042_s0 + $0x300] ss:$20 sps:$4 sm:$0xff]  }
 0x11a   :  { %1822 = vmatprep.mubr.bf16.mxu0 %v4371_v26  ;;  %3900 = vmatprep.mubr.msk.bf16.mxu1 %vm1308_vm0, %v4373_v27  ;;  %v4410_v26 = vld [vmem:[%s6044_s3 + $0x38] sm:$0xff]  }
 0x11c   :  { %v5040_v29 = vpop.f32.mrb[4].mxu1 }
 0x11d   :  { %v1577_v30 = vpop.f32.mrb[5].mxu1 }
 0x11e   :  { %v5048_v33 = vpop.f32.mrb[6].mxu1  ;;  %v4413_v30 = vld [vmem:[%s6044_s3 + $0x40] sm:$0xff]  }
 0x11f   :  { %v1580_v36 = vpop.f32.mrb[7].mxu1 }
 0x120   :  { %v4415_v36 = vld [vmem:[%s6044_s3 + $0x48] sm:$0xff]  }
 0x121   :  { %1823 = vmatmul.mubr.bf16.gmra.mrb[48].mxu0 %v4374_v31  ;;  %3901 = vmatmul.mubr.msk.bf16.gmra.mrb[112].mxu1 %vm1308_vm0, %v4375_v32 }
 0x122   :  { %1830 = vmatprep.mubr.bf16.mxu0 %v4376_v34  ;;  %3904 = vmatprep.mubr.msk.bf16.mxu1 %vm1308_vm0, %v4378_v35  ;;  %v4414_v35 = vld [vmem:[%s6042_s0 + $0x328] ss:$20 sps:$4 sm:$0xff]  }
 0x124   :  { %v5058_v37 = vpop.f32.mrb[8].mxu1 }
 0x125   :  { %v1585_v38 = vpop.f32.mrb[9].mxu1 }
 0x126   :  { %v5066_v42 = vpop.f32.mrb[10].mxu1 }
 0x127   :  { %v1588_v45 = vpop.f32.mrb[11].mxu1 }
 0x129   :  { %1831 = vmatmul.mubr.bf16.gmra.mrb[52].mxu0 %v4379_v39  ;;  %3905 = vmatmul.mubr.msk.bf16.gmra.mrb[116].mxu1 %vm1308_vm0, %v4380_v41  ;;  %v4416_v39 = vld [vmem:[%s6042_s0 + $0x354] ss:$20 sps:$4 sm:$0xff]  }
 0x12a   :  { %1838 = vmatprep.mubr.bf16.mxu0 %v4381_v43  ;;  %3908 = vmatprep.mubr.msk.bf16.mxu1 %vm1308_vm0, %v4383_v44  ;;  %v4418_v41 = vld [vmem:[%s6044_s3 + $0x50] sm:$0xff]  }
 0x12c   :  { %v5076_v46 = vpop.f32.mrb[12].mxu1 }
 0x12d   :  { %v1593_v47 = vpop.f32.mrb[13].mxu1 }
 0x12e   :  { %v5084_v49 = vpop.f32.mrb[14].mxu1  ;;  %v4419_v47 = vld [vmem:[%s6042_s0 + $0x350] ss:$20 sps:$4 sm:$0xff]  }
 0x12f   :  { %v1596_v52 = vpop.f32.mrb[15].mxu1 }
 0x131   :  { %1839 = vmatmul.mubr.bf16.gmra.mrb[56].mxu0 %v4384_v48  ;;  %3909 = vmatmul.mubr.msk.bf16.gmra.mrb[120].mxu1 %vm1308_vm0, %v4385_v40  ;;  %v4420_v48 = vld [vmem:[%s6044_s3 + $0x58] sm:$0xff]  }
 0x132   :  { %1846 = vmatprep.mubr.bf16.mxu0 %v4386_v50  ;;  %3912 = vmatprep.mubr.msk.bf16.mxu1 %vm1308_vm0, %v4388_v51  ;;  %v4421_v50 = vld [vmem:[%s6042_s0 + $0x37c] ss:$20 sps:$4 sm:$0xff]   ;;  %v4423_v51 = vld [vmem:[%s6044_s3 + $0x60] sm:$0xff]  }
 0x134   :  { %v5094_v53 = vpop.f32.mrb[16].mxu1 }
 0x135   :  { %v1601_v54 = vpop.f32.mrb[17].mxu1 }
 0x136   :  { %v5102_v57 = vpop.f32.mrb[18].mxu1 }
 0x137   :  { %v1604_v60 = vpop.f32.mrb[19].mxu1 }
 0x138   :  { %v4426_v60 = vld [vmem:[%s6042_s0 + $0x3a4] ss:$20 sps:$4 sm:$0xff]  }
 0x139   :  { %1847 = vmatmul.mubr.bf16.gmra.mrb[60].mxu0 %v4389_v55  ;;  %3913 = vmatmul.mubr.msk.bf16.gmra.mrb[124].mxu1 %vm1308_vm0, %v4390_v56  ;;  %v4424_v56 = vld [vmem:[%s6042_s0 + $0x378] ss:$20 sps:$4 sm:$0xff]  }
 0x13a   :  { %1854 = vmatprep.mubr.bf16.mxu0 %v4391_v58  ;;  %3920 = vmatprep.mubr.msk.bf16.mxu1 %vm2512_vm1, %v4393_v59  ;;  %v4425_v58 = vld [vmem:[%s6044_s3 + $0x68] sm:$0xff]  }
 0x13c   :  { %v5112_v61 = vpop.f32.mrb[20].mxu1 }
 0x13d   :  { %6047 = vst [vmem:[#allocation2_spill] sm:$0xff] %v5112_v61  ;;  %v1609_v62 = vpop.f32.mrb[21].mxu1 }
 0x13e   :  { %v5120_v2 = vpop.f32.mrb[22].mxu1  ;;  %v4428_v62 = vld [vmem:[%s6044_s3 + $0x70] sm:$0xff]  }
 0x13f   :  { %6048 = vst [vmem:[#allocation3_spill] sm:$0xff] %v5120_v2  ;;  %v1612_v5 = vpop.f32.mrb[23].mxu1 }
 0x140   :  { %v4430_v5 = vld [vmem:[%s6044_s3 + $0x78] sm:$0xff]  }
 0x141   :  { %1855 = vmatmul.mubr.bf16.gmra.mrb[64].mxu0 %v4394_v63  ;;  %3921 = vmatmul.mubr.msk.bf16.vlgmr.msra.gmra.mrb[128].mxu1 %vm2512_vm1, %v4395_v1 }
 0x142   :  { %1862 = vmatprep.mubr.bf16.mxu0 %v4396_v3  ;;  %3924 = vmatprep.mubr.msk.bf16.mxu1 %vm2512_vm1, %v4398_v4  ;;  %v4429_v4 = vld [vmem:[%s6042_s0 + $0x3a0] ss:$20 sps:$4 sm:$0xff]  }
 0x144   :  { %v5130_v6 = vpop.f32.mrb[24].mxu1 }
 0x145   :  { %6049 = vst [vmem:[#allocation4_spill] sm:$0xff] %v5130_v6  ;;  %v1617_v7 = vpop.f32.mrb[25].mxu1 }
 0x146   :  { %v5138_v10 = vpop.f32.mrb[26].mxu1 }
 0x147   :  { %6050 = vst [vmem:[#allocation5_spill] sm:$0xff] %v5138_v10  ;;  %v1620_v13 = vpop.f32.mrb[27].mxu1 }
 0x149   :  { %1863 = vmatmul.mubr.bf16.gmra.mrb[68].mxu0 %v4399_v8  ;;  %3925 = vmatmul.mubr.msk.bf16.gmra.mrb[132].mxu1 %vm2512_vm1, %v4400_v9  ;;  %v4431_v8 = vld [vmem:[%s6042_s0 + $0x3cc] ss:$20 sps:$4 sm:$0xff]  }
 0x14a   :  { %1870 = vmatprep.mubr.bf16.mxu0 %v4401_v11  ;;  %3928 = vmatprep.mubr.msk.bf16.mxu1 %vm2512_vm1, %v4403_v12  ;;  %v4433_v9 = vld [vmem:[%s6044_s3 + $0x80] sm:$0xff]  }
 0x14c   :  { %v5148_v14 = vpop.f32.mrb[28].mxu1 }
 0x14d   :  { %6051 = vst [vmem:[#allocation6_spill] sm:$0xff] %v5148_v14  ;;  %v1625_v15 = vpop.f32.mrb[29].mxu1 }
 0x14e   :  { %v5156_v17 = vpop.f32.mrb[30].mxu1  ;;  %v4434_v15 = vld [vmem:[%s6042_s0 + $0x3c8] ss:$20 sps:$4 sm:$0xff]  }
 0x14f   :  { %6052 = vst [vmem:[#allocation7_spill] sm:$0xff] %v5156_v17  ;;  %v1628_v20 = vpop.f32.mrb[31].mxu1 }
 0x151   :  { %1871 = vmatmul.mubr.bf16.gmra.mrb[72].mxu0 %v4404_v0  ;;  %3929 = vmatmul.mubr.msk.bf16.gmra.mrb[136].mxu1 %vm2512_vm1, %v4405_v16  ;;  %v4435_v0 = vld [vmem:[%s6044_s3 + $0x88] sm:$0xff]  }
 0x152   :  { %1878 = vmatprep.mubr.bf16.mxu0 %v4406_v18  ;;  %3932 = vmatprep.mubr.msk.bf16.mxu1 %vm2512_vm1, %v4408_v19  ;;  %v4436_v18 = vld [vmem:[%s6042_s0 + $0x3f4] ss:$20 sps:$4 sm:$0xff]  }
 0x153   :  { %v4438_v19 = vld [vmem:[%s6044_s3 + $0x90] sm:$0xff]  }
 0x154   :  { %v5166_v22 = vpop.f32.mrb[32].mxu1 }
 0x155   :  { %6053 = vst [vmem:[#allocation8_spill] sm:$0xff] %v5166_v22  ;;  %v1633_v23 = vpop.f32.mrb[33].mxu1 }
 0x156   :  { %v5174_v27 = vpop.f32.mrb[34].mxu1 }
 0x157   :  { %6054 = vst [vmem:[#allocation9_spill] sm:$0xff] %v5174_v27  ;;  %v1636_v31 = vpop.f32.mrb[35].mxu1 }
 0x158   :  { %v4441_v31 = vld [vmem:[%s6042_s0 + $0x41c] ss:$20 sps:$4 sm:$0xff]  }
 0x159   :  { %1879 = vmatmul.mubr.bf16.gmra.mrb[76].mxu0 %v4409_v24  ;;  %3933 = vmatmul.mubr.msk.bf16.gmra.mrb[140].mxu1 %vm2512_vm1, %v4410_v26  ;;  %v4439_v26 = vld [vmem:[%s6042_s0 + $0x3f0] ss:$20 sps:$4 sm:$0xff]  }
 0x15a   :  { %1886 = vmatprep.mubr.bf16.mxu0 %v4411_v28  ;;  %3936 = vmatprep.mubr.msk.bf16.mxu1 %vm2512_vm1, %v4413_v30  ;;  %v4440_v28 = vld [vmem:[%s6044_s3 + $0x98] sm:$0xff]  }
 0x15c   :  { %v5184_v32 = vpop.f32.mrb[36].mxu1 }
 0x15d   :  { %6055 = vst [vmem:[#allocation10_spill] sm:$0xff] %v5184_v32  ;;  %v1641_v34 = vpop.f32.mrb[37].mxu1 }
 0x15e   :  { %v5192_v38 = vpop.f32.mrb[38].mxu1  ;;  %v4443_v34 = vld [vmem:[%s6044_s3 + $0xa0] sm:$0xff]  }
 0x15f   :  { %6056 = vst [vmem:[#allocation11_spill] sm:$0xff] %v5192_v38  ;;  %v1644_v43 = vpop.f32.mrb[39].mxu1 }
 0x160   :  { %v4445_v43 = vld [vmem:[%s6044_s3 + $0xa8] sm:$0xff]  }
 0x161   :  { %1887 = vmatmul.mubr.bf16.gmra.mrb[80].mxu0 %v4414_v35  ;;  %3937 = vmatmul.mubr.msk.bf16.gmra.mrb[144].mxu1 %vm2512_vm1, %v4415_v36 }
 0x162   :  { %1894 = vmatprep.mubr.bf16.mxu0 %v4416_v39  ;;  %3940 = vmatprep.mubr.msk.bf16.mxu1 %vm2512_vm1, %v4418_v41  ;;  %v4444_v41 = vld [vmem:[%s6042_s0 + $0x418] ss:$20 sps:$4 sm:$0xff]  }
 0x164   :  { %v5202_v44 = vpop.f32.mrb[40].mxu1 }
 0x165   :  { %6057 = vst [vmem:[#allocation12_spill] sm:$0xff] %v5202_v44  ;;  %v1649_v45 = vpop.f32.mrb[41].mxu1 }
 0x166   :  { %v5210_v40 = vpop.f32.mrb[42].mxu1 }
 0x167   :  { %6058 = vst [vmem:[#allocation13_spill] sm:$0xff] %v5210_v40  ;;  %v1652_v52 = vpop.f32.mrb[43].mxu1 }
 0x169   :  { %1895 = vmatmul.mubr.bf16.gmra.mrb[84].mxu0 %v4419_v47  ;;  %3941 = vmatmul.mubr.msk.bf16.gmra.mrb[148].mxu1 %vm2512_vm1, %v4420_v48  ;;  %v4446_v47 = vld [vmem:[%s6042_s0 + $0x444] ss:$20 sps:$4 sm:$0xff]   ;;  %v4448_v48 = vld [vmem:[%s6044_s3 + $0xb0] sm:$0xff]  }
 0x16a   :  { %1902 = vmatprep.mubr.bf16.mxu0 %v4421_v50  ;;  %3944 = vmatprep.mubr.msk.bf16.mxu1 %vm2512_vm1, %v4423_v51  ;;  %v5313_v51 = vld [vmem:[%s6045_s2] ss:$0 sm:$0xff] }
 0x16c   :  { %v5220_v54 = vpop.f32.mrb[44].mxu1 }
 0x16d   :  { %6059 = vst [vmem:[#allocation14_spill] sm:$0xff] %v5220_v54  ;;  %v1657_v55 = vpop.f32.mrb[45].mxu1 }
 0x16e   :  { %v5228_v59 = vpop.f32.mrb[46].mxu1 }
 0x16f   :  { %6060 = vst [vmem:[#allocation15_spill] sm:$0xff] %v5228_v59  ;;  %v1660_v63 = vpop.f32.mrb[47].mxu1 }
 0x170   :  { %v4450_v63 = vld [vmem:[%s6044_s3 + $0xb8] sm:$0xff]  }
 0x171   :  { %1903 = vmatmul.mubr.bf16.gmra.mrb[88].mxu0 %v4424_v56  ;;  %3945 = vmatmul.mubr.msk.bf16.gmra.mrb[152].mxu1 %vm2512_vm1, %v4425_v58 }
 0x172   :  { %1910 = vmatprep.mubr.bf16.mxu0 %v4426_v60  ;;  %3948 = vmatprep.mubr.msk.bf16.mxu1 %vm2512_vm1, %v4428_v62  ;;  %v4449_v62 = vld [vmem:[%s6042_s0 + $0x440] ss:$20 sps:$4 sm:$0xff]  }
 0x174   :  { %v5238_v1 = vpop.f32.mrb[48].mxu1 }
 0x175   :  { %6061 = vst [vmem:[#allocation16_spill] sm:$0xff] %v5238_v1  ;;  %v1665_v3 = vpop.f32.mrb[49].mxu1 }
 0x176   :  { %v5246_v7 = vpop.f32.mrb[50].mxu1 }
 0x177   :  { %6062 = vst [vmem:[#allocation17_spill] sm:$0xff] %v5246_v7  ;;  %v1668_v11 = vpop.f32.mrb[51].mxu1 }
 0x179   :  { %1911 = vmatmul.mubr.bf16.gmra.mrb[92].mxu0 %v4429_v4  ;;  %3949 = vmatmul.mubr.msk.bf16.gmra.mrb[156].mxu1 %vm2512_vm1, %v4430_v5  ;;  %v4451_v5 = vld [vmem:[%s6042_s0 + $0x46c] ss:$20 sps:$4 sm:$0xff]  }
 0x17a   :  { %1918 = vmatprep.mubr.bf16.mxu0 %v4431_v8  ;;  %3952 = vmatprep.mubr.msk.bf16.mxu1 %vm2512_vm1, %v4433_v9  ;;  %v4453_v8 = vld [vmem:[%s6044_s3 + $0xc0] sm:$0xff]  }
 0x17c   :  { %v5256_v12 = vpop.f32.mrb[52].mxu1 }
 0x17d   :  { %6063 = vst [vmem:[#allocation18_spill] sm:$0xff] %v5256_v12  ;;  %v1673_v13 = vpop.f32.mrb[53].mxu1 }
 0x17e   :  { %v5264_v16 = vpop.f32.mrb[54].mxu1 }
 0x17f   :  { %6064 = vst [vmem:[#allocation19_spill] sm:$0xff] %v5264_v16  ;;  %v1676_v20 = vpop.f32.mrb[55].mxu1 }
 0x181   :  { %1919 = vmatmul.mubr.bf16.gmra.mrb[96].mxu0 %v4434_v15  ;;  %3953 = vmatmul.mubr.msk.bf16.gmra.mrb[160].mxu1 %vm2512_vm1, %v4435_v0 }
 0x182   :  { %1926 = vmatprep.mubr.bf16.mxu0 %v4436_v18  ;;  %3956 = vmatprep.mubr.msk.bf16.mxu1 %vm2512_vm1, %v4438_v19 }
 0x184   :  { %v5274_v23 = vpop.f32.mrb[56].mxu1 }
 0x185   :  { %6065 = vst [vmem:[#allocation20_spill] sm:$0xff] %v5274_v23  ;;  %v1681_v24 = vpop.f32.mrb[57].mxu1 }
 0x186   :  { %v5282_v30 = vpop.f32.mrb[58].mxu1 }
 0x187   :  { %6066 = vst [vmem:[#allocation21_spill] sm:$0xff] %v5282_v30  ;;  %v1684_v35 = vpop.f32.mrb[59].mxu1 }
 0x189   :  { %1927 = vmatmul.mubr.bf16.gmra.mrb[100].mxu0 %v4439_v26  ;;  %3957 = vmatmul.mubr.msk.bf16.gmra.mrb[164].mxu1 %vm2512_vm1, %v4440_v28  ;;  %v4454_v28 = vld [vmem:[%s6042_s0 + $0x468] ss:$20 sps:$4 sm:$0xff]  }
 0x18a   :  { %1934 = vmatprep.mubr.bf16.mxu0 %v4441_v31  ;;  %3960 = vmatprep.mubr.msk.bf16.mxu1 %vm2512_vm1, %v4443_v34  ;;  %v4455_v31 = vld [vmem:[%s6044_s3 + $0xc8] sm:$0xff]  }
 0x18c   :  { %v5292_v36 = vpop.f32.mrb[60].mxu1 }
 0x18d   :  { %6067 = vst [vmem:[#allocation22_spill] sm:$0xff] %v5292_v36  ;;  %v1689_v39 = vpop.f32.mrb[61].mxu1 }
 0x18e   :  { %v5300_v45 = vpop.f32.mrb[62].mxu1  ;;  %v4456_v39 = vld [vmem:[%s6042_s0 + $0x494] ss:$20 sps:$4 sm:$0xff]  }
 0x18f   :  { %6068 = vst [vmem:[#allocation23_spill] sm:$0xff] %v5300_v45  ;;  %v1692_v50 = vpop.f32.mrb[63].mxu1 }
 0x191   :  { %1935 = vmatmul.mubr.bf16.gmra.mrb[104].mxu0 %v4444_v41  ;;  %3961 = vmatmul.mubr.msk.bf16.gmra.mrb[168].mxu1 %vm2512_vm1, %v4445_v43  ;;  %v4458_v41 = vld [vmem:[%s6044_s3 + $0xd0] sm:$0xff]  }
 0x192   :  { %1942 = vmatprep.mubr.bf16.mxu0 %v4446_v47  ;;  %3964 = vmatprep.mubr.msk.bf16.mxu1 %vm2512_vm1, %v4448_v48 }
 0x194   :  { %v1728_v52 = vpop.f32.mrb[0].mxu0  ;;  %v3854_v55 = vpop.f32.mrb[64].mxu1 }
 0x195   :  { %v4016_v56 = vadd.f32 %v5313_v51, %v1728_v52  ;;  %v1730_v58 = vpop.f32.mrb[1].mxu0  ;;  %v2017_v60 = vpop.f32.mrb[65].mxu1 }
 0x196   :  { %v1731_v3 = vpop.f32.mrb[2].mxu0  ;;  %v3855_v4 = vpop.f32.mrb[66].mxu1 }
 0x197   :  { %v4017_v9 = vadd.f32 %v5313_v51, %v1731_v3  ;;  %v5329_v11 = vadd.f32 %v4016_v56, %v2017_v60  ;;  %v1733_v13 = vpop.f32.mrb[3].mxu0  ;;  %v2020_v15 = vpop.f32.mrb[67].mxu1  ;;  %v4460_v3 = vld [vmem:[%s6044_s3 + $0xd8] sm:$0xff]  }
 0x199   :  { %v5331_v0 = vadd.f32 %v4017_v9, %v2020_v15  ;;  %1943 = vmatmul.mubr.bf16.gmra.mrb[108].mxu0 %v4449_v62  ;;  %3965 = vmatmul.mubr.msk.bf16.gmra.mrb[172].mxu1 %vm2512_vm1, %v4450_v63  ;;  %v4463_v9 = vld [vmem:[%s6044_s3 + $0xe0] sm:$0xff]  }
 0x19a   :  { %1950 = vmatprep.mubr.bf16.mxu0 %v4451_v5  ;;  %3968 = vmatprep.mubr.msk.bf16.mxu1 %vm2512_vm1, %v4453_v8  ;;  %v4461_v8 = vld [vmem:[%s6042_s0 + $0x4bc] ss:$20 sps:$4 sm:$0xff]  }
 0x19c   :  { %v1736_v18 = vpop.f32.mrb[4].mxu0  ;;  %v3858_v19 = vpop.f32.mrb[68].mxu1 }
 0x19d   :  { %v4018_v20 = vadd.f32 %v5313_v51, %v1736_v18  ;;  %v1738_v24 = vpop.f32.mrb[5].mxu0  ;;  %v2033_v26 = vpop.f32.mrb[69].mxu1 }
 0x19e   :  { %v1739_v34 = vpop.f32.mrb[6].mxu0  ;;  %v3859_v35 = vpop.f32.mrb[70].mxu1 }
 0x19f   :  { %v4019_v43 = vadd.f32 %v5313_v51, %v1739_v34  ;;  %v1741_v47 = vpop.f32.mrb[7].mxu0  ;;  %v2036_v48 = vpop.f32.mrb[71].mxu1  ;;  %v5349_v50 = vadd.f32 %v4018_v20, %v3854_v55  ;;  %v4459_v55 = vld [vmem:[%s6042_s0 + $0x490] ss:$20 sps:$4 sm:$0xff]  }
 0x1a1   :  { %1951 = vmatmul.mubr.bf16.gmra.mrb[112].mxu0 %v4454_v28  ;;  %3969 = vmatmul.mubr.msk.bf16.gmra.mrb[176].mxu1 %vm2512_vm1, %v4455_v31  ;;  %v5352_v52 = vadd.f32 %v4019_v43, %v3855_v4  ;;  %v4465_v43 = vld [vmem:[%s6044_s3 + $0xe8] sm:$0xff]  }
 0x1a2   :  { %1958 = vmatprep.mubr.bf16.mxu0 %v4456_v39  ;;  %3972 = vmatprep.mubr.msk.bf16.mxu1 %vm2512_vm1, %v4458_v41 }
 0x1a4   :  { %v1744_v56 = vpop.f32.mrb[8].mxu0  ;;  %v5355_v58 = vpop.f32.mrb[72].mxu1 }
 0x1a5   :  { %v4020_v60 = vadd.f32 %v5313_v51, %v1744_v56  ;;  %v1746_v62 = vpop.f32.mrb[9].mxu0  ;;  %v2049_v63 = vpop.f32.mrb[73].mxu1  ;;  %v4466_v56 = vld [vmem:[%s6042_s0 + $0x4e4] ss:$20 sps:$4 sm:$0xff]  }
 0x1a6   :  { %v1747_v4 = vpop.f32.mrb[10].mxu0  ;;  %v3863_v5 = vpop.f32.mrb[74].mxu1 }
 0x1a7   :  { %v4021_v13 = vadd.f32 %v5313_v51, %v1747_v4  ;;  %v1749_v15 = vpop.f32.mrb[11].mxu0  ;;  %v2052_v18 = vpop.f32.mrb[75].mxu1  ;;  %v5371_v20 = vadd.f32 %v4020_v60, %v2033_v26  ;;  %v4464_v26 = vld [vmem:[%s6042_s0 + $0x4b8] ss:$20 sps:$4 sm:$0xff]   ;;  %v4468_v60 = vld [vmem:[%s6044_s3 + $0xf0] sm:$0xff]  }
 0x1a9   :  { %1959 = vmatmul.mubr.bf16.gmra.mrb[116].mxu0 %v4459_v55  ;;  %3973 = vmatmul.mubr.msk.bf16.gmra.mrb[180].mxu1 %vm2512_vm1, %v4460_v3  ;;  %v5374_v24 = vadd.f32 %v4021_v13, %v2036_v48 }
 0x1aa   :  { %1966 = vmatprep.mubr.bf16.mxu0 %v4461_v8  ;;  %3976 = vmatprep.mubr.msk.bf16.mxu1 %vm2512_vm1, %v4463_v9 }
 0x1ac   :  { %v1752_v28 = vpop.f32.mrb[12].mxu0  ;;  %v5377_v31 = vpop.f32.mrb[76].mxu1 }
 0x1ad   :  { %v4022_v34 = vadd.f32 %v5313_v51, %v1752_v28  ;;  %v1754_v39 = vpop.f32.mrb[13].mxu0  ;;  %v2065_v41 = vpop.f32.mrb[77].mxu1 }
 0x1ae   :  { %v1755_v47 = vpop.f32.mrb[14].mxu0  ;;  %v5386_v48 = vpop.f32.mrb[78].mxu1 }
 0x1af   :  { %v4023_v62 = vadd.f32 %v5313_v51, %v1755_v47  ;;  %v1757_v55 = vpop.f32.mrb[15].mxu0  ;;  %v2068_v3 = vpop.f32.mrb[79].mxu1  ;;  %v5395_v4 = vadd.f32 %v4022_v34, %v3858_v19  ;;  %v4469_v19 = vld [vmem:[%s6042_s0 + $0x4e0] ss:$20 sps:$4 sm:$0xff]   ;;  %v4470_v34 = vld [vmem:[%s6044_s3 + $0xf8] sm:$0xff]  }
 0x1b1   :  { %1967 = vmatmul.mubr.bf16.gmra.mrb[120].mxu0 %v4464_v26  ;;  %3977 = vmatmul.mubr.msk.bf16.gmra.mrb[184].mxu1 %vm2512_vm1, %v4465_v43  ;;  %v5398_v8 = vadd.f32 %v4023_v62, %v3859_v35 }
 0x1b2   :  { %1974 = vmatprep.mubr.bf16.mxu0 %v4466_v56  ;;  %3980 = vmatprep.mubr.msk.bf16.mxu1 %vm2512_vm1, %v4468_v60 }
 0x1b4   :  { %v1760_v9 = vpop.f32.mrb[16].mxu0  ;;  %v5401_v13 = vpop.f32.mrb[80].mxu1 }
 0x1b5   :  { %v4024_v15 = vadd.f32 %v5313_v51, %v1760_v9  ;;  %v1762_v28 = vpop.f32.mrb[17].mxu0  ;;  %v2081_v39 = vpop.f32.mrb[81].mxu1 }
 0x1b6   :  { %v1763_v35 = vpop.f32.mrb[18].mxu0  ;;  %v5410_v26 = vpop.f32.mrb[82].mxu1 }
 0x1b7   :  { %v4025_v43 = vadd.f32 %v5313_v51, %v1763_v35  ;;  %v1765_v47 = vpop.f32.mrb[19].mxu0  ;;  %v2084_v56 = vpop.f32.mrb[83].mxu1  ;;  %v5413_v60 = vadd.f32 %v4024_v15, %v2049_v63 }
 0x1b9   :  { %1975 = vmatmul.mubr.bf16.gmra.mrb[124].mxu0 %v4469_v19  ;;  %3981 = vmatmul.mubr.msk.bf16.gmra.mrb[188].mxu1 %vm2512_vm1, %v4470_v34  ;;  %v5416_v62 = vadd.f32 %v4025_v43, %v2052_v18 }
 0x1bc   :  { %v1768_v55 = vpop.f32.mrb[20].mxu0  ;;  %v5418_v9 = vpop.f32.mrb[84].mxu1 }
 0x1bd   :  { %v4026_v28 = vadd.f32 %v5313_v51, %v1768_v55  ;;  %v1770_v45 = vpop.f32.mrb[21].mxu0  ;;  %v5421_v36 = vpop.f32.mrb[85].mxu1 }
 0x1be   :  { %v1771_v30 = vpop.f32.mrb[22].mxu0  ;;  %v5423_v23 = vpop.f32.mrb[86].mxu1 }
 0x1bf   :  { %v4027_v35 = vadd.f32 %v5313_v51, %v1771_v30  ;;  %v1773_v63 = vpop.f32.mrb[23].mxu0  ;;  %v2100_v15 = vpop.f32.mrb[87].mxu1  ;;  %v5427_v19 = vadd.f32 %v4026_v28, %v5355_v58 }
 0x1c1   :  { %v5429_v18 = vadd.f32 %v4027_v35, %v3863_v5 }
 0x1c4   :  { %v1776_v34 = vpop.f32.mrb[24].mxu0  ;;  %v5431_v43 = vpop.f32.mrb[88].mxu1 }
 0x1c5   :  { %v4028_v47 = vadd.f32 %v5313_v51, %v1776_v34  ;;  %v1778_v45 = vpop.f32.mrb[25].mxu0  ;;  %v5434_v55 = vpop.f32.mrb[89].mxu1 }
 0x1c6   :  { %v1779_v16 = vpop.f32.mrb[26].mxu0  ;;  %v5436_v12 = vpop.f32.mrb[90].mxu1 }
 0x1c7   :  { %v4029_v30 = vadd.f32 %v5313_v51, %v1779_v16  ;;  %v1781_v63 = vpop.f32.mrb[27].mxu0  ;;  %v5439_v7 = vpop.f32.mrb[91].mxu1  ;;  %v5441_v58 = vadd.f32 %v4028_v47, %v2065_v41 }
 0x1c9   :  { %v5443_v5 = vadd.f32 %v4029_v30, %v2068_v3 }
 0x1cc   :  { %v1784_v28 = vpop.f32.mrb[28].mxu0  ;;  %v5445_v35 = vpop.f32.mrb[92].mxu1 }
 0x1cd   :  { %v4030_v34 = vadd.f32 %v5313_v51, %v1784_v28  ;;  %v1786_v45 = vpop.f32.mrb[29].mxu0  ;;  %v5448_v1 = vpop.f32.mrb[93].mxu1 }
 0x1ce   :  { %v1787_v59 = vpop.f32.mrb[30].mxu0  ;;  %v5450_v54 = vpop.f32.mrb[94].mxu1 }
 0x1cf   :  { %v4031_v16 = vadd.f32 %v5313_v51, %v1787_v59  ;;  %v1789_v63 = vpop.f32.mrb[31].mxu0  ;;  %v5453_v40 = vpop.f32.mrb[95].mxu1  ;;  %v5456_v41 = vadd.f32 %v4030_v34, %v5377_v31 }
 0x1d1   :  { %v5459_v3 = vadd.f32 %v4031_v16, %v5386_v48 }
 0x1d4   :  { %v1792_v47 = vpop.f32.mrb[32].mxu0  ;;  %v5461_v30 = vpop.f32.mrb[96].mxu1 }
 0x1d5   :  { %v4032_v28 = vadd.f32 %v5313_v51, %v1792_v47  ;;  %v1794_v45 = vpop.f32.mrb[33].mxu0  ;;  %v5464_v44 = vpop.f32.mrb[97].mxu1 }
 0x1d6   :  { %v1795_v38 = vpop.f32.mrb[34].mxu0  ;;  %v5466_v32 = vpop.f32.mrb[98].mxu1 }
 0x1d7   :  { %v4033_v59 = vadd.f32 %v5313_v51, %v1795_v38  ;;  %v1797_v63 = vpop.f32.mrb[35].mxu0  ;;  %v5469_v27 = vpop.f32.mrb[99].mxu1  ;;  %v5471_v31 = vadd.f32 %v4032_v28, %v2081_v39 }
 0x1d9   :  { %v5473_v48 = vadd.f32 %v4033_v59, %v2084_v56 }
 0x1db   :  { %6069 = vst [vmem:[#allocation24_spill] sm:$0xff] %v5473_v48 }
 0x1dc   :  { %v1800_v34 = vpop.f32.mrb[36].mxu0  ;;  %v5475_v16 = vpop.f32.mrb[100].mxu1 }
 0x1dd   :  { %v4034_v47 = vadd.f32 %v5313_v51, %v1800_v34  ;;  %v1802_v45 = vpop.f32.mrb[37].mxu0  ;;  %v5478_v22 = vpop.f32.mrb[101].mxu1 }
 0x1de   :  { %v1803_v17 = vpop.f32.mrb[38].mxu0  ;;  %v5480_v14 = vpop.f32.mrb[102].mxu1 }
 0x1df   :  { %v4035_v38 = vadd.f32 %v5313_v51, %v1803_v17  ;;  %v1805_v63 = vpop.f32.mrb[39].mxu0  ;;  %v5483_v10 = vpop.f32.mrb[103].mxu1  ;;  %v5486_v39 = vadd.f32 %v4034_v47, %v5401_v13 }
 0x1e1   :  { %v5489_v56 = vadd.f32 %v4035_v38, %v5410_v26 }
 0x1e4   :  { %v1808_v28 = vpop.f32.mrb[40].mxu0  ;;  %v5491_v59 = vpop.f32.mrb[104].mxu1 }
 0x1e5   :  { %6070 = vst [vmem:[#allocation25_spill] sm:$0xff] %v5491_v59  ;;  %v4036_v34 = vadd.f32 %v5313_v51, %v1808_v28  ;;  %v1810_v45 = vpop.f32.mrb[41].mxu0  ;;  %v5494_v6 = vpop.f32.mrb[105].mxu1 }
 0x1e6   :  { %6071 = vst [vmem:[#allocation26_spill] sm:$0xff] %v5494_v6  ;;  %v1811_v2 = vpop.f32.mrb[42].mxu0  ;;  %v5496_v61 = vpop.f32.mrb[106].mxu1 }
 0x1e7   :  { %6072 = vst [vmem:[#allocation27_spill] sm:$0xff] %v5496_v61  ;;  %v4037_v17 = vadd.f32 %v5313_v51, %v1811_v2  ;;  %v1813_v63 = vpop.f32.mrb[43].mxu0  ;;  %v5499_v48 = vpop.f32.mrb[107].mxu1  ;;  %v5502_v13 = vadd.f32 %v4036_v34, %v5421_v36 }
 0x1e8   :  { %6073 = vst [vmem:[#allocation28_spill] sm:$0xff] %v5499_v48 }
 0x1e9   :  { %v5504_v26 = vadd.f32 %v4037_v17, %v2100_v15 }
 0x1ec   :  { %v1816_v47 = vpop.f32.mrb[44].mxu0  ;;  %v5506_v38 = vpop.f32.mrb[108].mxu1 }
 0x1ed   :  { %6074 = vst [vmem:[#allocation29_spill] sm:$0xff] %v5506_v38  ;;  %v4038_v28 = vadd.f32 %v5313_v51, %v1816_v47  ;;  %v1818_v45 = vpop.f32.mrb[45].mxu0  ;;  %v5509_v59 = vpop.f32.mrb[109].mxu1 }
 0x1ee   :  { %6075 = vst [vmem:[#allocation30_spill] sm:$0xff] %v5509_v59  ;;  %v1819_v6 = vpop.f32.mrb[46].mxu0  ;;  %v5511_v61 = vpop.f32.mrb[110].mxu1 }
 0x1ef   :  { %6076 = vst [vmem:[#allocation31_spill] sm:$0xff] %v5511_v61  ;;  %v4039_v2 = vadd.f32 %v5313_v51, %v1819_v6  ;;  %v1821_v63 = vpop.f32.mrb[47].mxu0  ;;  %v5514_v48 = vpop.f32.mrb[111].mxu1  ;;  %v5517_v36 = vadd.f32 %v4038_v28, %v5418_v9 }
 0x1f0   :  { %6077 = vst [vmem:[#allocation32_spill] sm:$0xff] %v5514_v48 }
 0x1f1   :  { %v5520_v15 = vadd.f32 %v4039_v2, %v5423_v23 }
 0x1f4   :  { %v1824_v34 = vpop.f32.mrb[48].mxu0  ;;  %v5522_v17 = vpop.f32.mrb[112].mxu1 }
 0x1f5   :  { %6078 = vst [vmem:[#allocation33_spill] sm:$0xff] %v5522_v17  ;;  %v4040_v47 = vadd.f32 %v5313_v51, %v1824_v34  ;;  %v1826_v45 = vpop.f32.mrb[49].mxu0  ;;  %v5525_v38 = vpop.f32.mrb[113].mxu1 }
 0x1f6   :  { %6079 = vst [vmem:[#allocation34_spill] sm:$0xff] %v5525_v38  ;;  %v1827_v61 = vpop.f32.mrb[50].mxu0  ;;  %v5527_v59 = vpop.f32.mrb[114].mxu1 }
 0x1f7   :  { %6080 = vst [vmem:[#allocation35_spill] sm:$0xff] %v5527_v59  ;;  %v4041_v6 = vadd.f32 %v5313_v51, %v1827_v61  ;;  %v1829_v63 = vpop.f32.mrb[51].mxu0  ;;  %v5530_v48 = vpop.f32.mrb[115].mxu1  ;;  %v5533_v9 = vadd.f32 %v4040_v47, %v5434_v55 }
 0x1f8   :  { %6081 = vst [vmem:[#allocation36_spill] sm:$0xff] %v5530_v48 }
 0x1f9   :  { %v5536_v23 = vadd.f32 %v4041_v6, %v5439_v7 }
 0x1fc   :  { %v1832_v28 = vpop.f32.mrb[52].mxu0  ;;  %v5538_v2 = vpop.f32.mrb[116].mxu1 }
 0x1fd   :  { %6082 = vst [vmem:[#allocation37_spill] sm:$0xff] %v5538_v2  ;;  %v4042_v34 = vadd.f32 %v5313_v51, %v1832_v28  ;;  %v1834_v45 = vpop.f32.mrb[53].mxu0  ;;  %v5541_v17 = vpop.f32.mrb[117].mxu1 }
 0x1fe   :  { %6083 = vst [vmem:[#allocation38_spill] sm:$0xff] %v5541_v17  ;;  %v1835_v59 = vpop.f32.mrb[54].mxu0  ;;  %v5543_v38 = vpop.f32.mrb[118].mxu1 }
 0x1ff   :  { %6084 = vst [vmem:[#allocation39_spill] sm:$0xff] %v5543_v38  ;;  %v4043_v61 = vadd.f32 %v5313_v51, %v1835_v59  ;;  %v1837_v63 = vpop.f32.mrb[55].mxu0  ;;  %v5546_v48 = vpop.f32.mrb[119].mxu1  ;;  %v5549_v55 = vadd.f32 %v4042_v34, %v5431_v43 }
 0x200   :  { %6085 = vst [vmem:[#allocation40_spill] sm:$0xff] %v5546_v48 }
 0x201   :  { %v5552_v7 = vadd.f32 %v4043_v61, %v5436_v12 }
 0x204   :  { %v1840_v47 = vpop.f32.mrb[56].mxu0  ;;  %v5554_v6 = vpop.f32.mrb[120].mxu1 }
 0x205   :  { %6086 = vst [vmem:[#allocation41_spill] sm:$0xff] %v5554_v6  ;;  %v4044_v28 = vadd.f32 %v5313_v51, %v1840_v47  ;;  %v1842_v45 = vpop.f32.mrb[57].mxu0  ;;  %v5557_v2 = vpop.f32.mrb[121].mxu1 }
 0x206   :  { %6087 = vst [vmem:[#allocation42_spill] sm:$0xff] %v5557_v2  ;;  %v1843_v38 = vpop.f32.mrb[58].mxu0  ;;  %v5559_v17 = vpop.f32.mrb[122].mxu1 }
 0x207   :  { %6088 = vst [vmem:[#allocation43_spill] sm:$0xff] %v5559_v17  ;;  %v4045_v59 = vadd.f32 %v5313_v51, %v1843_v38  ;;  %v1845_v63 = vpop.f32.mrb[59].mxu0  ;;  %v5562_v48 = vpop.f32.mrb[123].mxu1  ;;  %v5565_v43 = vadd.f32 %v4044_v28, %v5448_v1  ;;  %v1568_v28 = vadd.f32 %v5313_v51, %v5022_v21 }
 0x208   :  { %6089 = vst [vmem:[#allocation44_spill] sm:$0xff] %v5562_v48 }
 0x209   :  { %v5568_v12 = vadd.f32 %v4045_v59, %v5453_v40 }
 0x20b   :  { %6090 = vst [vmem:[#allocation45_spill] sm:$0xff] %v5568_v12 }
 0x20c   :  { %v1848_v34 = vpop.f32.mrb[60].mxu0  ;;  %v5570_v61 = vpop.f32.mrb[124].mxu1 }
 0x20d   :  { %6091 = vst [vmem:[#allocation46_spill] sm:$0xff] %v5570_v61  ;;  %v4046_v47 = vadd.f32 %v5313_v51, %v1848_v34  ;;  %v1850_v45 = vpop.f32.mrb[61].mxu0  ;;  %v5573_v6 = vpop.f32.mrb[125].mxu1 }
 0x20e   :  { %6092 = vst [vmem:[#allocation47_spill] sm:$0xff] %v5573_v6  ;;  %v1851_v17 = vpop.f32.mrb[62].mxu0  ;;  %v5575_v2 = vpop.f32.mrb[126].mxu1  ;;  %v1571_v45 = vadd.f32 %v5313_v51, %v5030_v25 }
 0x20f   :  { %6093 = vst [vmem:[#allocation48_spill] sm:$0xff] %v5575_v2  ;;  %v4047_v38 = vadd.f32 %v5313_v51, %v1851_v17  ;;  %v1853_v63 = vpop.f32.mrb[63].mxu0  ;;  %v5578_v48 = vpop.f32.mrb[127].mxu1  ;;  %v5581_v1 = vadd.f32 %v4046_v47, %v5445_v35 }
 0x210   :  { %6094 = vst [vmem:[#allocation49_spill] sm:$0xff] %v5578_v48 }
 0x211   :  { %v5584_v40 = vadd.f32 %v4047_v38, %v5450_v54 }
 0x213   :  { %6095 = vst [vmem:[#allocation50_spill] sm:$0xff] %v5584_v40 }
 0x214   :  { %v1856_v59 = vpop.f32.mrb[64].mxu0  ;;  %v3922_v34 = vpop.f32.mrb[128].mxu1 }
 0x215   :  { %v1857_v2 = vadd.f32 %v1856_v59, %v1568_v28  ;;  %v2900_v17 = vadd.f32 %v3922_v34, %v5349_v50  ;;  %v1858_v63 = vpop.f32.mrb[65].mxu0  ;;  %v2643_v61 = vpop.f32.mrb[129].mxu1 }
 0x216   :  { %v2898_v48 = vadd.f32 %v2643_v61, %v5329_v11  ;;  %v1859_v35 = vpop.f32.mrb[66].mxu0  ;;  %v3923_v47 = vpop.f32.mrb[130].mxu1 }
 0x217   :  { %v2964_v6 = vmax.f32 %v2900_v17, 0.0  ;;  %v1860_v54 = vadd.f32 %v1859_v35, %v1571_v45  ;;  %v2901_v38 = vadd.f32 %v3923_v47, %v5352_v52  ;;  %v1861_v12 = vpop.f32.mrb[67].mxu0  ;;  %v2646_v21 = vpop.f32.mrb[131].mxu1  ;;  %v5594_v40 = vadd.f32 %v5464_v44, %v1857_v2 }
 0x218   :  { %v2962_v25 = vmax.f32 %v2898_v48, 0.0  ;;  %v2899_v28 = vadd.f32 %v2646_v21, %v5331_v0  ;;  %v1576_v45 = vadd.f32 %v5313_v51, %v5040_v29  ;;  %v1579_v48 = vadd.f32 %v5313_v51, %v5048_v33 }
 0x219   :  { %v3712_v50 = vpack.c.bf16 %v2964_v6, %v2964_v6  ;;  %v2965_v59 = vmax.f32 %v2901_v38, 0.0  ;;  %v5598_v34 = vadd.f32 %v5469_v27, %v1860_v54 }
 0x21a   :  { %v3710_v11 = vpack.c.bf16 %v2962_v25, %v2962_v25  ;;  %v2963_v61 = vmax.f32 %v2899_v28, 0.0 }
 0x21b   :  { %3285 = vst.msk [vmem:[%s6046_s5 + $0x8] sm:$0xf] %vm3282_vm2, %v3712_v50  ;;  %v3713_v44 = vpack.c.bf16 %v2965_v59, %v2965_v59 }
 0x21c   :  { %3283 = vst.msk [vmem:[%s6046_s5] sm:$0xf] %vm3282_vm2, %v3710_v11  ;;  %v3711_v0 = vpack.c.bf16 %v2963_v61, %v2963_v61  ;;  %v1864_v52 = vpop.f32.mrb[68].mxu0  ;;  %v3926_v27 = vpop.f32.mrb[132].mxu1 }
 0x21d   :  { %3286 = vst.msk [vmem:[%s6046_s5 + $0xc] sm:$0xf] %vm3282_vm2, %v3713_v44  ;;  %v1865_v29 = vadd.f32 %v1864_v52, %v1576_v45  ;;  %v2904_v2 = vadd.f32 %v3926_v27, %v5395_v4  ;;  %v1866_v6 = vpop.f32.mrb[69].mxu0  ;;  %v2659_v12 = vpop.f32.mrb[133].mxu1  ;;  %v1584_v45 = vadd.f32 %v5313_v51, %v5058_v37  ;;  %v1587_v44 = vadd.f32 %v5313_v51, %v5066_v42 }
 0x21e   :  { %3284 = vst.msk [vmem:[%s6046_s5 + $0x4] sm:$0xf] %vm3282_vm2, %v3711_v0  ;;  %v2902_v17 = vadd.f32 %v2659_v12, %v5371_v20  ;;  %v1867_v63 = vpop.f32.mrb[70].mxu0  ;;  %v3927_v35 = vpop.f32.mrb[134].mxu1 }
 0x21f   :  { %v2968_v33 = vmax.f32 %v2904_v2, 0.0  ;;  %v1868_v47 = vadd.f32 %v1867_v63, %v1579_v48  ;;  %v2905_v54 = vadd.f32 %v3927_v35, %v5398_v8  ;;  %v1869_v38 = vpop.f32.mrb[71].mxu0  ;;  %v2662_v21 = vpop.f32.mrb[135].mxu1  ;;  %v5624_v25 = vadd.f32 %v5461_v30, %v1865_v29 }
 0x220   :  { %v2966_v4 = vmax.f32 %v2902_v17, 0.0  ;;  %v2903_v28 = vadd.f32 %v2662_v21, %v5374_v24 }
 0x221   :  { %v3716_v50 = vpack.c.bf16 %v2968_v33, %v2968_v33  ;;  %v2969_v59 = vmax.f32 %v2905_v54, 0.0  ;;  %v5628_v11 = vadd.f32 %v5466_v32, %v1868_v47 }
 0x222   :  { %v3714_v20 = vpack.c.bf16 %v2966_v4, %v2966_v4  ;;  %v2967_v61 = vmax.f32 %v2903_v28, 0.0  ;;  %v1592_v4 = vadd.f32 %v5313_v51, %v5076_v46  ;;  %v1595_v28 = vadd.f32 %v5313_v51, %v5084_v49 }
 0x223   :  { %3289 = vst.msk [vmem:[%s6046_s5 + $0x18] sm:$0xf] %vm3282_vm2, %v3716_v50  ;;  %v3717_v8 = vpack.c.bf16 %v2969_v59, %v2969_v59 }
 0x224   :  { %3287 = vst.msk [vmem:[%s6046_s5 + $0x10] sm:$0xf] %vm3282_vm2, %v3714_v20  ;;  %v3715_v24 = vpack.c.bf16 %v2967_v61, %v2967_v61  ;;  %v1872_v30 = vpop.f32.mrb[72].mxu0  ;;  %v3930_v32 = vpop.f32.mrb[136].mxu1 }
 0x225   :  { %3290 = vst.msk [vmem:[%s6046_s5 + $0x1c] sm:$0xf] %vm3282_vm2, %v3717_v8  ;;  %v1873_v37 = vadd.f32 %v1872_v30, %v1584_v45  ;;  %v2908_v0 = vadd.f32 %v3930_v32, %v5427_v19  ;;  %v1874_v52 = vpop.f32.mrb[73].mxu0  ;;  %v2675_v27 = vpop.f32.mrb[137].mxu1 }
 0x226   :  { %3288 = vst.msk [vmem:[%s6046_s5 + $0x14] sm:$0xf] %vm3282_vm2, %v3715_v24  ;;  %v2906_v48 = vadd.f32 %v2675_v27, %v5413_v60  ;;  %v1875_v29 = vpop.f32.mrb[74].mxu0  ;;  %v3931_v2 = vpop.f32.mrb[138].mxu1 }
 0x227   :  { %v2972_v42 = vmax.f32 %v2908_v0, 0.0  ;;  %v1876_v6 = vadd.f32 %v1875_v29, %v1587_v44  ;;  %v2909_v12 = vadd.f32 %v3931_v2, %v5429_v18  ;;  %v1877_v17 = vpop.f32.mrb[75].mxu0  ;;  %v2678_v63 = vpop.f32.mrb[139].mxu1  ;;  %v5654_v35 = vadd.f32 %v5478_v22, %v1873_v37 }
 0x228   :  { %v2970_v19 = vmax.f32 %v2906_v48, 0.0  ;;  %v2907_v33 = vadd.f32 %v2678_v63, %v5416_v62  ;;  %v1600_v2 = vadd.f32 %v5313_v51, %v5094_v53 }
 0x229   :  { %v3720_v47 = vpack.c.bf16 %v2972_v42, %v2972_v42  ;;  %v2973_v54 = vmax.f32 %v2909_v12, 0.0  ;;  %v5658_v38 = vadd.f32 %v5483_v10, %v1876_v6  ;;  %v1603_v42 = vadd.f32 %v5313_v51, %v5102_v57 }
 0x22a   :  { %v3718_v60 = vpack.c.bf16 %v2970_v19, %v2970_v19  ;;  %v2971_v21 = vmax.f32 %v2907_v33, 0.0 }
 0x22b   :  { %3293 = vst.msk [vmem:[%s6046_s5 + $0x28] sm:$0xf] %vm3282_vm2, %v3720_v47  ;;  %v3721_v22 = vpack.c.bf16 %v2973_v54, %v2973_v54 }
 0x22c   :  { %3291 = vst.msk [vmem:[%s6046_s5 + $0x20] sm:$0xf] %vm3282_vm2, %v3718_v60  ;;  %v3719_v62 = vpack.c.bf16 %v2971_v21, %v2971_v21  ;;  %v1880_v18 = vpop.f32.mrb[76].mxu0  ;;  %v3934_v10 = vpop.f32.mrb[140].mxu1 }
 0x22d   :  { %3294 = vst.msk [vmem:[%s6046_s5 + $0x2c] sm:$0xf] %vm3282_vm2, %v3721_v22  ;;  %v1881_v46 = vadd.f32 %v1880_v18, %v1592_v4  ;;  %v2912_v50 = vadd.f32 %v3934_v10, %v5456_v41  ;;  %v1882_v59 = vpop.f32.mrb[77].mxu0  ;;  %v2691_v20 = vpop.f32.mrb[141].mxu1  ;;  %v6096_v4 = vld [vmem:[#allocation26_spill] sm:$0xff] }
 0x22e   :  { %3292 = vst.msk [vmem:[%s6046_s5 + $0x24] sm:$0xf] %vm3282_vm2, %v3719_v62  ;;  %v2910_v61 = vadd.f32 %v2691_v20, %v5441_v58  ;;  %v1883_v45 = vpop.f32.mrb[78].mxu0  ;;  %v3935_v8 = vpop.f32.mrb[142].mxu1  ;;  %v6097_v62 = vld [vmem:[#allocation24_spill] sm:$0xff]  ;;  %v6099_v20 = vld [vmem:[#allocation2_spill] sm:$0xff] }
 0x22f   :  { %v2976_v49 = vmax.f32 %v2912_v50, 0.0  ;;  %v1884_v24 = vadd.f32 %v1883_v45, %v1595_v28  ;;  %v2913_v30 = vadd.f32 %v3935_v8, %v5459_v3  ;;  %v1885_v32 = vpop.f32.mrb[79].mxu0  ;;  %v2694_v44 = vpop.f32.mrb[143].mxu1  ;;  %v5684_v37 = vadd.f32 %v5475_v16, %v1881_v46  ;;  %v6098_v46 = vld [vmem:[#allocation28_spill] sm:$0xff] }
 0x230   :  { %v2974_v41 = vmax.f32 %v2910_v61, 0.0  ;;  %v2911_v0 = vadd.f32 %v2694_v44, %v5443_v5  ;;  %v1608_v61 = vadd.f32 %v5313_v51, %v6099_v20 }
 0x231   :  { %v3724_v52 = vpack.c.bf16 %v2976_v49, %v2976_v49  ;;  %v2977_v27 = vmax.f32 %v2913_v30, 0.0  ;;  %v5688_v48 = vadd.f32 %v5480_v14, %v1884_v24  ;;  %v6100_v24 = vld [vmem:[#allocation3_spill] sm:$0xff] }
 0x232   :  { %v3722_v58 = vpack.c.bf16 %v2974_v41, %v2974_v41  ;;  %v2975_v29 = vmax.f32 %v2911_v0, 0.0  ;;  %v1611_v30 = vadd.f32 %v5313_v51, %v6100_v24 }
 0x233   :  { %3297 = vst.msk [vmem:[%s6046_s5 + $0x38] sm:$0xf] %vm3282_vm2, %v3724_v52  ;;  %v3725_v3 = vpack.c.bf16 %v2977_v27, %v2977_v27 }
 0x234   :  { %3295 = vst.msk [vmem:[%s6046_s5 + $0x30] sm:$0xf] %vm3282_vm2, %v3722_v58  ;;  %v3723_v5 = vpack.c.bf16 %v2975_v29, %v2975_v29  ;;  %v1888_v16 = vpop.f32.mrb[80].mxu0  ;;  %v3938_v14 = vpop.f32.mrb[144].mxu1 }
 0x235   :  { %3298 = vst.msk [vmem:[%s6046_s5 + $0x3c] sm:$0xf] %vm3282_vm2, %v3725_v3  ;;  %v1889_v53 = vadd.f32 %v1888_v16, %v1600_v2  ;;  %v2916_v6 = vadd.f32 %v3938_v14, %v5486_v39  ;;  %v1890_v12 = vpop.f32.mrb[81].mxu0  ;;  %v2707_v17 = vpop.f32.mrb[145].mxu1  ;;  %v6101_v14 = vld [vmem:[#allocation25_spill] sm:$0xff] }
 0x236   :  { %3296 = vst.msk [vmem:[%s6046_s5 + $0x34] sm:$0xf] %vm3282_vm2, %v3723_v5  ;;  %v2914_v63 = vadd.f32 %v2707_v17, %v5471_v31  ;;  %v1891_v19 = vpop.f32.mrb[82].mxu0  ;;  %v3939_v33 = vpop.f32.mrb[146].mxu1  ;;  %v6102_v17 = vld [vmem:[#allocation27_spill] sm:$0xff] }
 0x237   :  { %v2980_v57 = vmax.f32 %v2916_v6, 0.0  ;;  %v1892_v47 = vadd.f32 %v1891_v19, %v1603_v42  ;;  %v2917_v54 = vadd.f32 %v3939_v33, %v5489_v56  ;;  %v1893_v60 = vpop.f32.mrb[83].mxu0  ;;  %v2710_v21 = vpop.f32.mrb[147].mxu1  ;;  %v5714_v22 = vadd.f32 %v6096_v4, %v1889_v53  ;;  %v6103_v33 = vld [vmem:[#allocation4_spill] sm:$0xff] }
 0x238   :  { %v2978_v39 = vmax.f32 %v2914_v63, 0.0  ;;  %v2915_v18 = vadd.f32 %v2710_v21, %v6097_v62  ;;  %v6104_v60 = vld [vmem:[#allocation5_spill] sm:$0xff] }
 0x239   :  { %v3728_v10 = vpack.c.bf16 %v2980_v57, %v2980_v57  ;;  %v2981_v28 = vmax.f32 %v2917_v54, 0.0  ;;  %v5718_v50 = vadd.f32 %v6098_v46, %v1892_v47  ;;  %v1616_v57 = vadd.f32 %v5313_v51, %v6103_v33 }
 0x23a   :  { %v3726_v31 = vpack.c.bf16 %v2978_v39, %v2978_v39  ;;  %v2979_v59 = vmax.f32 %v2915_v18, 0.0  ;;  %v1619_v21 = vadd.f32 %v5313_v51, %v6104_v60 }
 0x23b   :  { %3301 = vst.msk [vmem:[%s6046_s5 + $0x48] sm:$0xf] %vm3282_vm2, %v3728_v10  ;;  %v3729_v56 = vpack.c.bf16 %v2981_v28, %v2981_v28 }
 0x23c   :  { %3299 = vst.msk [vmem:[%s6046_s5 + $0x40] sm:$0xf] %vm3282_vm2, %v3726_v31  ;;  %v3727_v45 = vpack.c.bf16 %v2979_v59, %v2979_v59  ;;  %v1896_v8 = vpop.f32.mrb[84].mxu0  ;;  %v3942_v49 = vpop.f32.mrb[148].mxu1 }
 0x23d   :  { %3302 = vst.msk [vmem:[%s6046_s5 + $0x4c] sm:$0xf] %vm3282_vm2, %v3729_v56  ;;  %v1897_v32 = vadd.f32 %v1896_v8, %v1608_v61  ;;  %v2920_v44 = vadd.f32 %v3942_v49, %v5517_v36  ;;  %v1898_v41 = vpop.f32.mrb[85].mxu0  ;;  %v2723_v0 = vpop.f32.mrb[149].mxu1 }
 0x23e   :  { %3300 = vst.msk [vmem:[%s6046_s5 + $0x44] sm:$0xf] %vm3282_vm2, %v3727_v45  ;;  %v2918_v52 = vadd.f32 %v2723_v0, %v5502_v13  ;;  %v1899_v27 = vpop.f32.mrb[86].mxu0  ;;  %v3943_v58 = vpop.f32.mrb[150].mxu1  ;;  %v6105_v45 = vld [vmem:[#allocation30_spill] sm:$0xff] }
 0x23f   :  { %v2984_v29 = vmax.f32 %v2920_v44, 0.0  ;;  %v1900_v2 = vadd.f32 %v1899_v27, %v1611_v30  ;;  %v2921_v3 = vadd.f32 %v3943_v58, %v5520_v15  ;;  %v1901_v5 = vpop.f32.mrb[87].mxu0  ;;  %v2726_v16 = vpop.f32.mrb[151].mxu1  ;;  %v5744_v42 = vadd.f32 %v6101_v14, %v1897_v32  ;;  %v6106_v32 = vld [vmem:[#allocation32_spill] sm:$0xff]  ;;  %v6107_v0 = vld [vmem:[#allocation6_spill] sm:$0xff] }
 0x240   :  { %v2982_v36 = vmax.f32 %v2918_v52, 0.0  ;;  %v2919_v53 = vadd.f32 %v2726_v16, %v5504_v26  ;;  %v1624_v52 = vadd.f32 %v5313_v51, %v6107_v0 }
 0x241   :  { %v3732_v6 = vpack.c.bf16 %v2984_v29, %v2984_v29  ;;  %v2985_v12 = vmax.f32 %v2921_v3, 0.0  ;;  %v5748_v63 = vadd.f32 %v6102_v17, %v1900_v2  ;;  %v6108_v29 = vld [vmem:[#allocation7_spill] sm:$0xff] }
 0x242   :  { %v3730_v13 = vpack.c.bf16 %v2982_v36, %v2982_v36  ;;  %v2983_v19 = vmax.f32 %v2919_v53, 0.0  ;;  %v1627_v2 = vadd.f32 %v5313_v51, %v6108_v29 }
 0x243   :  { %3305 = vst.msk [vmem:[%s6046_s5 + $0x58] sm:$0xf] %vm3282_vm2, %v3732_v6  ;;  %v3733_v15 = vpack.c.bf16 %v2985_v12, %v2985_v12 }
 0x244   :  { %3303 = vst.msk [vmem:[%s6046_s5 + $0x50] sm:$0xf] %vm3282_vm2, %v3730_v13  ;;  %v3731_v26 = vpack.c.bf16 %v2983_v19, %v2983_v19  ;;  %v1904_v47 = vpop.f32.mrb[88].mxu0  ;;  %v3946_v54 = vpop.f32.mrb[152].mxu1  ;;  %v6109_v13 = vld [vmem:[#allocation50_spill] sm:$0xff] }
 0x245   :  { %3306 = vst.msk [vmem:[%s6046_s5 + $0x5c] sm:$0xf] %vm3282_vm2, %v3733_v15  ;;  %v1905_v4 = vadd.f32 %v1904_v47, %v1616_v57  ;;  %v2924_v39 = vadd.f32 %v3946_v54, %v5549_v55  ;;  %v1906_v62 = vpop.f32.mrb[89].mxu0  ;;  %v2739_v18 = vpop.f32.mrb[153].mxu1  ;;  %v6110_v15 = vld [vmem:[#allocation29_spill] sm:$0xff] }
 0x246   :  { %3304 = vst.msk [vmem:[%s6046_s5 + $0x54] sm:$0xf] %vm3282_vm2, %v3731_v26  ;;  %v2922_v10 = vadd.f32 %v2739_v18, %v5533_v9  ;;  %v1907_v28 = vpop.f32.mrb[90].mxu0  ;;  %v3947_v46 = vpop.f32.mrb[154].mxu1  ;;  %v6111_v47 = vld [vmem:[#allocation45_spill] sm:$0xff]  ;;  %v6113_v18 = vld [vmem:[#allocation8_spill] sm:$0xff] }
 0x247   :  { %v2988_v31 = vmax.f32 %v2924_v39, 0.0  ;;  %v1908_v59 = vadd.f32 %v1907_v28, %v1619_v21  ;;  %v2925_v20 = vadd.f32 %v3947_v46, %v5552_v7  ;;  %v1909_v61 = vpop.f32.mrb[91].mxu0  ;;  %v2742_v56 = vpop.f32.mrb[155].mxu1  ;;  %v5774_v8 = vadd.f32 %v6105_v45, %v1905_v4  ;;  %v6112_v4 = vld [vmem:[#allocation31_spill] sm:$0xff] }
 0x248   :  { %v2986_v55 = vmax.f32 %v2922_v10, 0.0  ;;  %v2923_v49 = vadd.f32 %v2742_v56, %v5536_v23  ;;  %v1632_v10 = vadd.f32 %v5313_v51, %v6113_v18 }
 0x249   :  { %v3736_v24 = vpack.c.bf16 %v2988_v31, %v2988_v31  ;;  %v2989_v30 = vmax.f32 %v2925_v20, 0.0  ;;  %v5778_v44 = vadd.f32 %v6106_v32, %v1908_v59  ;;  %v6114_v20 = vld [vmem:[#allocation9_spill] sm:$0xff] }
 0x24a   :  { %v3734_v9 = vpack.c.bf16 %v2986_v55, %v2986_v55  ;;  %v2987_v41 = vmax.f32 %v2923_v49, 0.0  ;;  %v1635_v61 = vadd.f32 %v5313_v51, %v6114_v20  ;;  %v5873_v20 = vld [vmem:[%s6045_s2] ss:$0 sm:$0xff] }
 0x24b   :  { %3309 = vst.msk [vmem:[%s6046_s5 + $0x68] sm:$0xf] %vm3282_vm2, %v3736_v24  ;;  %v3737_v7 = vpack.c.bf16 %v2989_v30, %v2989_v30 }
 0x24c   :  { %3307 = vst.msk [vmem:[%s6046_s5 + $0x60] sm:$0xf] %vm3282_vm2, %v3734_v9  ;;  %v3735_v23 = vpack.c.bf16 %v2987_v41, %v2987_v41  ;;  %v1912_v27 = vpop.f32.mrb[92].mxu0  ;;  %v3950_v58 = vpop.f32.mrb[156].mxu1 }
 0x24d   :  { %3310 = vst.msk [vmem:[%s6046_s5 + $0x6c] sm:$0xf] %vm3282_vm2, %v3737_v7  ;;  %v1913_v3 = vadd.f32 %v1912_v27, %v1624_v52  ;;  %v2928_v5 = vadd.f32 %v3950_v58, %v5581_v1  ;;  %v1914_v16 = vpop.f32.mrb[93].mxu0  ;;  %v2755_v14 = vpop.f32.mrb[157].mxu1 }
 0x24e   :  { %3308 = vst.msk [vmem:[%s6046_s5 + $0x64] sm:$0xf] %vm3282_vm2, %v3735_v23  ;;  %v2926_v36 = vadd.f32 %v2755_v14, %v5565_v43  ;;  %v1915_v53 = vpop.f32.mrb[94].mxu0  ;;  %v3951_v6 = vpop.f32.mrb[158].mxu1  ;;  %v6115_v23 = vld [vmem:[#allocation34_spill] sm:$0xff] }
 0x24f   :  { %v2992_v12 = vmax.f32 %v2928_v5, 0.0  ;;  %v1916_v17 = vadd.f32 %v1915_v53, %v1627_v2  ;;  %v2929_v19 = vadd.f32 %v3951_v6, %v6109_v13  ;;  %v1917_v33 = vpop.f32.mrb[95].mxu0  ;;  %v2758_v57 = vpop.f32.mrb[159].mxu1  ;;  %v5804_v26 = vadd.f32 %v6110_v15, %v1913_v3  ;;  %v6116_v3 = vld [vmem:[#allocation36_spill] sm:$0xff]  ;;  %v6117_v14 = vld [vmem:[#allocation10_spill] sm:$0xff] }
 0x250   :  { %v2990_v1 = vmax.f32 %v2926_v36, 0.0  ;;  %v2927_v54 = vadd.f32 %v2758_v57, %v6111_v47  ;;  %v1640_v36 = vadd.f32 %v5313_v51, %v6117_v14 }
 0x251   :  { %v3740_v60 = vpack.c.bf16 %v2992_v12, %v2992_v12  ;;  %v2993_v21 = vmax.f32 %v2929_v19, 0.0  ;;  %v5808_v39 = vadd.f32 %v6112_v4, %v1916_v17  ;;  %v6118_v12 = vld [vmem:[#allocation11_spill] sm:$0xff] }
 0x252   :  { %v3738_v43 = vpack.c.bf16 %v2990_v1, %v2990_v1  ;;  %v2991_v62 = vmax.f32 %v2927_v54, 0.0  ;;  %v1643_v17 = vadd.f32 %v5313_v51, %v6118_v12 }
 0x253   :  { %3313 = vst.msk [vmem:[%s6046_s5 + $0x78] sm:$0xf] %vm3282_vm2, %v3740_v60  ;;  %v3741_v28 = vpack.c.bf16 %v2993_v21, %v2993_v21 }
 0x254   :  { %3311 = vst.msk [vmem:[%s6046_s5 + $0x70] sm:$0xf] %vm3282_vm2, %v3738_v43  ;;  %v3739_v46 = vpack.c.bf16 %v2991_v62, %v2991_v62  ;;  %v1920_v31 = vpop.f32.mrb[96].mxu0  ;;  %v3954_v59 = vpop.f32.mrb[160].mxu1  ;;  %v6119_v43 = vld [vmem:[#allocation33_spill] sm:$0xff] }
 0x255   :  { %3314 = vst.msk [vmem:[%s6046_s5 + $0x7c] sm:$0xf] %vm3282_vm2, %v3741_v28  ;;  %v1921_v56 = vadd.f32 %v1920_v31, %v1632_v10  ;;  %v2932_v45 = vadd.f32 %v3954_v59, %v5624_v25  ;;  %v1922_v55 = vpop.f32.mrb[97].mxu0  ;;  %v2771_v49 = vpop.f32.mrb[161].mxu1 }
 0x256   :  { %3312 = vst.msk [vmem:[%s6046_s5 + $0x74] sm:$0xf] %vm3282_vm2, %v3739_v46  ;;  %v2930_v24 = vadd.f32 %v2771_v49, %v5594_v40  ;;  %v1923_v30 = vpop.f32.mrb[98].mxu0  ;;  %v3955_v32 = vpop.f32.mrb[162].mxu1  ;;  %v6120_v46 = vld [vmem:[#allocation35_spill] sm:$0xff]  ;;  %v6122_v49 = vld [vmem:[#allocation13_spill] sm:$0xff] }
 0x257   :  { %v2996_v9 = vmax.f32 %v2932_v45, 0.0  ;;  %v1924_v41 = vadd.f32 %v1923_v30, %v1635_v61  ;;  %v2933_v0 = vadd.f32 %v3955_v32, %v5628_v11  ;;  %v1925_v52 = vpop.f32.mrb[99].mxu0  ;;  %v2774_v7 = vpop.f32.mrb[163].mxu1  ;;  %v5834_v27 = vadd.f32 %v6115_v23, %v1921_v56 }
 0x258   :  { %v2994_v25 = vmax.f32 %v2930_v24, 0.0  ;;  %v2931_v58 = vadd.f32 %v2774_v7, %v5598_v34  ;;  %v1651_v24 = vadd.f32 %v5873_v20, %v6122_v49 }
 0x259   :  { %v3744_v29 = vpack.c.bf16 %v2996_v9, %v2996_v9  ;;  %v2997_v2 = vmax.f32 %v2933_v0, 0.0  ;;  %v5838_v5 = vadd.f32 %v6116_v3, %v1924_v41  ;;  %v6123_v3 = vld [vmem:[#allocation38_spill] sm:$0xff] }
 0x25a   :  { %v3742_v40 = vpack.c.bf16 %v2994_v25, %v2994_v25  ;;  %v2995_v16 = vmax.f32 %v2931_v58, 0.0 }
 0x25b   :  { %3317 = vst.msk [vmem:[%s6046_s5 + $0x88] sm:$0xf] %vm3282_vm2, %v3744_v29  ;;  %v3745_v11 = vpack.c.bf16 %v2997_v2, %v2997_v2 }
 0x25c   :  { %3315 = vst.msk [vmem:[%s6046_s5 + $0x80] sm:$0xf] %vm3282_vm2, %v3742_v40  ;;  %v3743_v34 = vpack.c.bf16 %v2995_v16, %v2995_v16  ;;  %v1928_v53 = vpop.f32.mrb[100].mxu0  ;;  %v3958_v6 = vpop.f32.mrb[164].mxu1 }
 0x25d   :  { %3318 = vst.msk [vmem:[%s6046_s5 + $0x8c] sm:$0xf] %vm3282_vm2, %v3745_v11  ;;  %v1929_v13 = vadd.f32 %v1928_v53, %v1640_v36  ;;  %v2936_v19 = vadd.f32 %v3958_v6, %v5684_v37  ;;  %v1930_v33 = vpop.f32.mrb[101].mxu0  ;;  %v2787_v57 = vpop.f32.mrb[165].mxu1  ;;  %v6124_v11 = vld [vmem:[#allocation40_spill] sm:$0xff]  ;;  %v6125_v6 = vld [vmem:[#allocation14_spill] sm:$0xff] }
 0x25e   :  { %3316 = vst.msk [vmem:[%s6046_s5 + $0x84] sm:$0xf] %vm3282_vm2, %v3743_v34  ;;  %v2934_v15 = vadd.f32 %v2787_v57, %v5654_v35  ;;  %v1931_v1 = vpop.f32.mrb[102].mxu0  ;;  %v3959_v47 = vpop.f32.mrb[166].mxu1  ;;  %v1656_v12 = vadd.f32 %v5873_v20, %v6125_v6 }
 0x25f   :  { %v3000_v51 = vmax.f32 %v2936_v19, 0.0  ;;  %v1932_v54 = vadd.f32 %v1931_v1, %v1643_v17  ;;  %v2937_v60 = vadd.f32 %v3959_v47, %v5688_v48  ;;  %v1933_v21 = vpop.f32.mrb[103].mxu0  ;;  %v2790_v4 = vpop.f32.mrb[167].mxu1  ;;  %v5864_v62 = vadd.f32 %v6119_v43, %v1929_v13  ;;  %v6121_v48 = vld [vmem:[#allocation12_spill] sm:$0xff]  ;;  %v6126_v19 = vld [vmem:[#allocation15_spill] sm:$0xff] }
 0x260   :  { %v2998_v37 = vmax.f32 %v2934_v15, 0.0  ;;  %v2935_v18 = vadd.f32 %v2790_v4, %v5658_v38  ;;  %v1648_v61 = vadd.f32 %v5873_v20, %v6121_v48  ;;  %v1659_v33 = vadd.f32 %v5873_v20, %v6126_v19  ;;  %v6128_v48 = vld [vmem:[#allocation39_spill] sm:$0xff] }
 0x261   :  { %v3748_v10 = vpack.c.bf16 %v3000_v51, %v3000_v51  ;;  %v3001_v28 = vmax.f32 %v2937_v60, 0.0  ;;  %v5868_v31 = vadd.f32 %v6120_v46, %v1932_v54 }
 0x262   :  { %v3746_v35 = vpack.c.bf16 %v2998_v37, %v2998_v37  ;;  %v2999_v59 = vmax.f32 %v2935_v18, 0.0 }
 0x263   :  { %3321 = vst.msk [vmem:[%s6046_s5 + $0x98] sm:$0xf] %vm3282_vm2, %v3748_v10  ;;  %v3749_v38 = vpack.c.bf16 %v3001_v28, %v3001_v28  ;;  %v6127_v10 = vld [vmem:[#allocation37_spill] sm:$0xff] }
 0x264   :  { %3319 = vst.msk [vmem:[%s6046_s5 + $0x90] sm:$0xf] %vm3282_vm2, %v3746_v35  ;;  %v3747_v56 = vpack.c.bf16 %v2999_v59, %v2999_v59  ;;  %v1936_v45 = vpop.f32.mrb[104].mxu0  ;;  %v3962_v55 = vpop.f32.mrb[168].mxu1 }
 0x265   :  { %3322 = vst.msk [vmem:[%s6046_s5 + $0x9c] sm:$0xf] %vm3282_vm2, %v3749_v38  ;;  %v1937_v30 = vadd.f32 %v1936_v45, %v1648_v61  ;;  %v2940_v32 = vadd.f32 %v3962_v55, %v5744_v42  ;;  %v1938_v9 = vpop.f32.mrb[105].mxu0  ;;  %v2803_v41 = vpop.f32.mrb[169].mxu1 }
 0x266   :  { %3320 = vst.msk [vmem:[%s6046_s5 + $0x94] sm:$0xf] %vm3282_vm2, %v3747_v56  ;;  %v2938_v0 = vadd.f32 %v2803_v41, %v5714_v22  ;;  %v1939_v52 = vpop.f32.mrb[106].mxu0  ;;  %v3963_v7 = vpop.f32.mrb[170].mxu1 }
 0x267   :  { %v3004_v23 = vmax.f32 %v2940_v32, 0.0  ;;  %v1940_v25 = vadd.f32 %v1939_v52, %v1651_v24  ;;  %v2941_v58 = vadd.f32 %v3963_v7, %v5748_v63  ;;  %v1941_v29 = vpop.f32.mrb[107].mxu0  ;;  %v2806_v2 = vpop.f32.mrb[171].mxu1  ;;  %v5899_v40 = vadd.f32 %v6123_v3, %v1937_v30  ;;  %v6130_v24 = vld [vmem:[#allocation17_spill] sm:$0xff] }
 0x268   :  { %v3002_v42 = vmax.f32 %v2938_v0, 0.0  ;;  %v2939_v16 = vadd.f32 %v2806_v2, %v5718_v50  ;;  %v1667_v30 = vadd.f32 %v5873_v20, %v6130_v24 }
 0x269   :  { %v3752_v14 = vpack.c.bf16 %v3004_v23, %v3004_v23  ;;  %v3005_v36 = vmax.f32 %v2941_v58, 0.0  ;;  %v5903_v34 = vadd.f32 %v6124_v11, %v1940_v25 }
 0x26a   :  { %v3750_v22 = vpack.c.bf16 %v3002_v42, %v3002_v42  ;;  %v3003_v53 = vmax.f32 %v2939_v16, 0.0  ;;  %v6131_v42 = vld [vmem:[#allocation42_spill] sm:$0xff] }
 0x26b   :  { %3325 = vst.msk [vmem:[%s6046_s5 + $0xa8] sm:$0xf] %vm3282_vm2, %v3752_v14  ;;  %v3753_v63 = vpack.c.bf16 %v3005_v36, %v3005_v36 }
 0x26c   :  { %3323 = vst.msk [vmem:[%s6046_s5 + $0xa0] sm:$0xf] %vm3282_vm2, %v3750_v22  ;;  %v3751_v50 = vpack.c.bf16 %v3003_v53, %v3003_v53  ;;  %v1944_v17 = vpop.f32.mrb[108].mxu0  ;;  %v3966_v13 = vpop.f32.mrb[172].mxu1  ;;  %v6132_v22 = vld [vmem:[#allocation44_spill] sm:$0xff] }
 0x26d   :  { %3326 = vst.msk [vmem:[%s6046_s5 + $0xac] sm:$0xf] %vm3282_vm2, %v3753_v63  ;;  %v1945_v57 = vadd.f32 %v1944_v17, %v1656_v12  ;;  %v2944_v15 = vadd.f32 %v3966_v13, %v5804_v26  ;;  %v1946_v1 = vpop.f32.mrb[109].mxu0  ;;  %v2819_v47 = vpop.f32.mrb[173].mxu1  ;;  %v6134_v13 = vld [vmem:[#allocation19_spill] sm:$0xff] }
 0x26e   :  { %3324 = vst.msk [vmem:[%s6046_s5 + $0xa4] sm:$0xf] %vm3282_vm2, %v3751_v50  ;;  %v2942_v51 = vadd.f32 %v2819_v47, %v5774_v8  ;;  %v1947_v54 = vpop.f32.mrb[110].mxu0  ;;  %v3967_v60 = vpop.f32.mrb[174].mxu1  ;;  %v6129_v8 = vld [vmem:[#allocation16_spill] sm:$0xff]  ;;  %v1675_v19 = vadd.f32 %v5873_v20, %v6134_v13 }
 0x26f   :  { %v3008_v21 = vmax.f32 %v2944_v15, 0.0  ;;  %v1948_v4 = vadd.f32 %v1947_v54, %v1659_v33  ;;  %v2945_v43 = vadd.f32 %v3967_v60, %v5808_v39  ;;  %v1949_v37 = vpop.f32.mrb[111].mxu0  ;;  %v2822_v18 = vpop.f32.mrb[175].mxu1  ;;  %v2234_v28 = vadd.f32 %v6127_v10, %v1945_v57 }
 0x270   :  { %v3006_v26 = vmax.f32 %v2942_v51, 0.0  ;;  %v2943_v46 = vadd.f32 %v2822_v18, %v5778_v44  ;;  %v1664_v45 = vadd.f32 %v5873_v20, %v6129_v8  ;;  %v6135_v18 = vld [vmem:[#allocation41_spill] sm:$0xff]  ;;  %v6137_v8 = vld [vmem:[#allocation20_spill] sm:$0xff] }
 0x271   :  { %v3756_v35 = vpack.c.bf16 %v3008_v21, %v3008_v21  ;;  %v3009_v59 = vmax.f32 %v2945_v43, 0.0  ;;  %v2237_v61 = vadd.f32 %v6128_v48, %v1948_v4 }
 0x272   :  { %v3754_v38 = vpack.c.bf16 %v3006_v26, %v3006_v26  ;;  %v3007_v56 = vmax.f32 %v2943_v46, 0.0 }
 0x273   :  { %3329 = vst.msk [vmem:[%s6046_s5 + $0xb8] sm:$0xf] %vm3282_vm2, %v3756_v35  ;;  %v3757_v39 = vpack.c.bf16 %v3009_v59, %v3009_v59  ;;  %v6136_v59 = vld [vmem:[#allocation43_spill] sm:$0xff] }
 0x274   :  { %3327 = vst.msk [vmem:[%s6046_s5 + $0xb0] sm:$0xf] %vm3282_vm2, %v3754_v38  ;;  %v3755_v44 = vpack.c.bf16 %v3007_v56, %v3007_v56  ;;  %v1952_v55 = vpop.f32.mrb[112].mxu0  ;;  %v3970_v49 = vpop.f32.mrb[176].mxu1 }
 0x275   :  { %3330 = vst.msk [vmem:[%s6046_s5 + $0xbc] sm:$0xf] %vm3282_vm2, %v3757_v39  ;;  %v1953_v32 = vadd.f32 %v1952_v55, %v1664_v45  ;;  %v2948_v9 = vadd.f32 %v3970_v49, %v5864_v62  ;;  %v1954_v41 = vpop.f32.mrb[113].mxu0  ;;  %v2835_v0 = vpop.f32.mrb[177].mxu1 }
 0x276   :  { %3328 = vst.msk [vmem:[%s6046_s5 + $0xb4] sm:$0xf] %vm3282_vm2, %v3755_v44  ;;  %v2946_v52 = vadd.f32 %v2835_v0, %v5834_v27  ;;  %v1955_v7 = vpop.f32.mrb[114].mxu0  ;;  %v3971_v23 = vpop.f32.mrb[178].mxu1  ;;  %v6133_v27 = vld [vmem:[#allocation18_spill] sm:$0xff]  ;;  %v6138_v44 = vld [vmem:[#allocation21_spill] sm:$0xff] }
 0x277   :  { %v3012_v25 = vmax.f32 %v2948_v9, 0.0  ;;  %v1956_v58 = vadd.f32 %v1955_v7, %v1667_v30  ;;  %v2949_v29 = vadd.f32 %v3971_v23, %v5868_v31  ;;  %v1957_v2 = vpop.f32.mrb[115].mxu0  ;;  %v2838_v3 = vpop.f32.mrb[179].mxu1  ;;  %v2242_v16 = vadd.f32 %v6131_v42, %v1953_v32 }
 0x278   :  { %v3010_v62 = vmax.f32 %v2946_v52, 0.0  ;;  %v2947_v14 = vadd.f32 %v2838_v3, %v5838_v5  ;;  %v1672_v63 = vadd.f32 %v5873_v20, %v6133_v27  ;;  %v1683_v55 = vadd.f32 %v5873_v20, %v6138_v44 }
 0x279   :  { %v3760_v36 = vpack.c.bf16 %v3012_v25, %v3012_v25  ;;  %v3013_v11 = vmax.f32 %v2949_v29, 0.0  ;;  %v2245_v53 = vadd.f32 %v6132_v22, %v1956_v58  ;;  %v6139_v29 = vld [vmem:[#allocation47_spill] sm:$0xff] }
 0x27a   :  { %v3758_v6 = vpack.c.bf16 %v3010_v62, %v3010_v62  ;;  %v3011_v12 = vmax.f32 %v2947_v14, 0.0 }
 0x27b   :  { %3333 = vst.msk [vmem:[%s6046_s5 + $0xc8] sm:$0xf] %vm3282_vm2, %v3760_v36  ;;  %v3761_v31 = vpack.c.bf16 %v3013_v11, %v3013_v11  ;;  %v6140_v36 = vld [vmem:[#allocation49_spill] sm:$0xff] }
 0x27c   :  { %3331 = vst.msk [vmem:[%s6046_s5 + $0xc0] sm:$0xf] %vm3282_vm2, %v3758_v6  ;;  %v3759_v5 = vpack.c.bf16 %v3011_v12, %v3011_v12  ;;  %v1960_v50 = vpop.f32.mrb[116].mxu0  ;;  %v3974_v17 = vpop.f32.mrb[180].mxu1  ;;  %v6141_v12 = vld [vmem:[#allocation22_spill] sm:$0xff] }
 0x27d   :  { %3334 = vst.msk [vmem:[%s6046_s5 + $0xcc] sm:$0xf] %vm3282_vm2, %v3761_v31  ;;  %v1961_v33 = vadd.f32 %v1960_v50, %v1672_v63  ;;  %v2952_v57 = vadd.f32 %v3974_v17, %v2234_v28  ;;  %v1962_v15 = vpop.f32.mrb[117].mxu0  ;;  %v2851_v1 = vpop.f32.mrb[181].mxu1 }
 0x27e   :  { %3332 = vst.msk [vmem:[%s6046_s5 + $0xc4] sm:$0xf] %vm3282_vm2, %v3759_v5  ;;  %v2950_v47 = vadd.f32 %v2851_v1, %v5899_v40  ;;  %v1963_v51 = vpop.f32.mrb[118].mxu0  ;;  %v3975_v54 = vpop.f32.mrb[182].mxu1  ;;  %v1680_v40 = vadd.f32 %v5873_v20, %v6137_v8  ;;  %v6142_v5 = vld [vmem:[#allocation23_spill] sm:$0xff]  ;;  %v6143_v1 = vld [vmem:[#allocation46_spill] sm:$0xff] }
 0x27f   :  { %v3016_v60 = vmax.f32 %v2952_v57, 0.0  ;;  %v1964_v21 = vadd.f32 %v1963_v51, %v1675_v19  ;;  %v2953_v4 = vadd.f32 %v3975_v54, %v2237_v61  ;;  %v1965_v43 = vpop.f32.mrb[119].mxu0  ;;  %v2854_v37 = vpop.f32.mrb[183].mxu1  ;;  %v2250_v10 = vadd.f32 %v6135_v18, %v1961_v33 }
 0x280   :  { %v3014_v26 = vmax.f32 %v2950_v47, 0.0  ;;  %v2951_v28 = vadd.f32 %v2854_v37, %v5903_v34  ;;  %v1691_v50 = vadd.f32 %v5873_v20, %v6142_v5  ;;  %v6144_v43 = vld [vmem:[#allocation48_spill] sm:$0xff] }
 0x281   :  { %v3764_v46 = vpack.c.bf16 %v3016_v60, %v3016_v60  ;;  %v3017_v35 = vmax.f32 %v2953_v4, 0.0  ;;  %v2253_v48 = vadd.f32 %v6136_v59, %v1964_v21 }
 0x282   :  { %v3762_v38 = vpack.c.bf16 %v3014_v26, %v3014_v26  ;;  %v3015_v56 = vmax.f32 %v2951_v28, 0.0 }
 0x283   :  { %3337 = vst.msk [vmem:[%s6046_s5 + $0xd8] sm:$0xf] %vm3282_vm2, %v3764_v46  ;;  %v3765_v61 = vpack.c.bf16 %v3017_v35, %v3017_v35 }
 0x284   :  { %3335 = vst.msk [vmem:[%s6046_s5 + $0xd0] sm:$0xf] %vm3282_vm2, %v3762_v38  ;;  %v3763_v34 = vpack.c.bf16 %v3015_v56, %v3015_v56  ;;  %v1968_v45 = vpop.f32.mrb[120].mxu0  ;;  %v3978_v39 = vpop.f32.mrb[184].mxu1 }
 0x285   :  { %3338 = vst.msk [vmem:[%s6046_s5 + $0xdc] sm:$0xf] %vm3282_vm2, %v3765_v61  ;;  %v1969_v49 = vadd.f32 %v1968_v45, %v1680_v40  ;;  %v2956_v24 = vadd.f32 %v3978_v39, %v2250_v10  ;;  %v1970_v30 = vpop.f32.mrb[121].mxu0  ;;  %v2867_v32 = vpop.f32.mrb[185].mxu1 }
 0x286   :  { %3336 = vst.msk [vmem:[%s6046_s5 + $0xd4] sm:$0xf] %vm3282_vm2, %v3763_v34  ;;  %v2954_v9 = vadd.f32 %v2867_v32, %v2242_v16  ;;  %v1971_v41 = vpop.f32.mrb[122].mxu0  ;;  %v3979_v0 = vpop.f32.mrb[186].mxu1  ;;  %v1688_v16 = vadd.f32 %v5873_v20, %v6141_v12 }
 0x287   :  { %v3020_v52 = vmax.f32 %v2956_v24, 0.0  ;;  %v1972_v7 = vadd.f32 %v1971_v41, %v1683_v55  ;;  %v2957_v23 = vadd.f32 %v3979_v0, %v2253_v48  ;;  %v1973_v25 = vpop.f32.mrb[123].mxu0  ;;  %v2870_v58 = vpop.f32.mrb[187].mxu1  ;;  %v2258_v2 = vadd.f32 %v6139_v29, %v1969_v49 }
 0x288   :  { %v3018_v3 = vmax.f32 %v2954_v9, 0.0  ;;  %v2955_v42 = vadd.f32 %v2870_v58, %v2245_v53 }
 0x289   :  { %v3768_v62 = vpack.c.bf16 %v3020_v52, %v3020_v52  ;;  %v3021_v14 = vmax.f32 %v2957_v23, 0.0  ;;  %v2261_v11 = vadd.f32 %v6140_v36, %v1972_v7 }
 0x28a   :  { %v3766_v22 = vpack.c.bf16 %v3018_v3, %v3018_v3  ;;  %v3019_v6 = vmax.f32 %v2955_v42, 0.0 }
 0x28b   :  { %3341 = vst.msk [vmem:[%s6046_s5 + $0xe8] sm:$0xf] %vm3282_vm2, %v3768_v62  ;;  %v3769_v27 = vpack.c.bf16 %v3021_v14, %v3021_v14 }
 0x28c   :  { %3339 = vst.msk [vmem:[%s6046_s5 + $0xe0] sm:$0xf] %vm3282_vm2, %v3766_v22  ;;  %v3767_v53 = vpack.c.bf16 %v3019_v6, %v3019_v6  ;;  %v1976_v63 = vpop.f32.mrb[124].mxu0  ;;  %v3982_v31 = vpop.f32.mrb[188].mxu1 }
 0x28d   :  { %3342 = vst.msk [vmem:[%s6046_s5 + $0xec] sm:$0xf] %vm3282_vm2, %v3769_v27  ;;  %v1977_v17 = vadd.f32 %v1976_v63, %v1688_v16  ;;  %v1978_v13 = vpop.f32.mrb[125].mxu0  ;;  %v2883_v19 = vpop.f32.mrb[189].mxu1 }
 0x28e   :  { %3340 = vst.msk [vmem:[%s6046_s5 + $0xe4] sm:$0xf] %vm3282_vm2, %v3767_v53  ;;  %v2958_v33 = vadd.f32 %v2883_v19, %v2258_v2  ;;  %v1979_v57 = vpop.f32.mrb[126].mxu0  ;;  %v3983_v15 = vpop.f32.mrb[190].mxu1 }
 0x28f   :  { %v2266_v47 = vadd.f32 %v6143_v1, %v1977_v17  ;;  %v1980_v51 = vadd.f32 %v1979_v57, %v1691_v50  ;;  %v1981_v20 = vpop.f32.mrb[127].mxu0  ;;  %v2886_v54 = vpop.f32.mrb[191].mxu1 }
 0x290   :  { %v3022_v60 = vmax.f32 %v2958_v33, 0.0  ;;  %v2959_v21 = vadd.f32 %v2886_v54, %v2261_v11 }
 0x291   :  { %v2960_v4 = vadd.f32 %v3982_v31, %v2266_v47  ;;  %v2269_v37 = vadd.f32 %v6144_v43, %v1980_v51 }
 0x292   :  { %v3770_v18 = vpack.c.bf16 %v3022_v60, %v3022_v60  ;;  %v3023_v10 = vmax.f32 %v2959_v21, 0.0 }
 0x293   :  { %v3024_v26 = vmax.f32 %v2960_v4, 0.0  ;;  %v2961_v28 = vadd.f32 %v3983_v15, %v2269_v37 }
 0x294   :  { %3343 = vst.msk [vmem:[%s6046_s5 + $0xf0] sm:$0xf] %vm3282_vm2, %v3770_v18  ;;  %v3771_v46 = vpack.c.bf16 %v3023_v10, %v3023_v10 }
 0x295   :  { %v3772_v35 = vpack.c.bf16 %v3024_v26, %v3024_v26  ;;  %v3025_v59 = vmax.f32 %v2961_v28, 0.0 }
 0x296   :  { %3344 = vst.msk [vmem:[%s6046_s5 + $0xf4] sm:$0xf] %vm3282_vm2, %v3771_v46 }
 0x297   :  { %3345 = vst.msk [vmem:[%s6046_s5 + $0xf8] sm:$0xf] %vm3282_vm2, %v3772_v35  ;;  %v3773_v48 = vpack.c.bf16 %v3025_v59, %v3025_v59 }
 0x299   :  { %3346 = vst.msk [vmem:[%s6046_s5 + $0xfc] sm:$0xf] %vm3282_vm2, %v3773_v48 }

// kernel: _lambda_.14
= control target key start
LH: loop header
LB: loop body
LE: loop exit
PB: predicated region body
PF: predicated region fallthrough
CT: control target
= control target key end

     0   :  { %vm558_vm0 = vcmask 523264   ;;  %s1733_s1 = inlined_call_operand.vmem [shape: bf16[576,128], index: 1, kind: input, shape index: {}]   ;;  %s1734_s0 = inlined_call_operand.vmem [shape: bf16[128,576], index: 0, kind: input, shape index: {}]   ;;  %s1735_s2 = inlined_call_operand.vmem [shape: f32[1,128], index: 2, kind: input, shape index: {}]   ;;  %s1736_s3 = inlined_call_operand.vmem [shape: bf16[128,128], index: 3, kind: output, shape index: {}]  }
   0x1   :  { %v1310_v0 = vld [vmem:[%s1733_s1 + $0x40] sm:$0xff]   ;;  %v1314_v4 = vld [vmem:[%s1733_s1 + $0x48] sm:$0xff]   ;;  %v1318_v8 = vld [vmem:[%s1733_s1 + $0x50] sm:$0xff]  }
   0x2   :  { %v1311_v1 = vld [vmem:[%s1733_s1 + $0xc0] sm:$0xff]   ;;  %1138 = vmatprep.subr.bf16.mxu0 %v1310_v0  ;;  %v1315_v5 = vld [vmem:[%s1733_s1 + $0xc8] sm:$0xff]   ;;  %v1319_v9 = vld [vmem:[%s1733_s1 + $0xd0] sm:$0xff]  }
   0x3   :  { %v1312_v2 = vld [vmem:[%s1733_s1] sm:$0xff]   ;;  %1202 = vmatprep.subr.bf16.mxu1 %v1311_v1  ;;  %v1316_v6 = vld [vmem:[%s1733_s1 + $0x8] sm:$0xff]   ;;  %v1320_v10 = vld [vmem:[%s1733_s1 + $0x10] sm:$0xff]  }
   0x4   :  { %v1313_v3 = vld [vmem:[%s1733_s1 + $0x80] sm:$0xff]   ;;  %1139 = vmatpush3.bf16.msra.mxu0 %v1312_v2  ;;  %v1317_v7 = vld [vmem:[%s1733_s1 + $0x88] sm:$0xff]   ;;  %v1321_v11 = vld [vmem:[%s1733_s1 + $0x90] sm:$0xff]  }
   0x5   :  { %1203 = vmatpush3.bf16.msra.mxu1 %v1313_v3  ;;  %1140 = vmatprep.subr.bf16.mxu0 %v1314_v4  ;;  %v1322_v12 = vld [vmem:[%s1733_s1 + $0x58] sm:$0xff]   ;;  %v1326_v16 = vld [vmem:[%s1733_s1 + $0x60] sm:$0xff]   ;;  %v1330_v20 = vld [vmem:[%s1733_s1 + $0x68] sm:$0xff]  }
   0x6   :  { %1204 = vmatprep.subr.bf16.mxu1 %v1315_v5  ;;  %v1323_v13 = vld [vmem:[%s1733_s1 + $0xd8] sm:$0xff]   ;;  %v1327_v17 = vld [vmem:[%s1733_s1 + $0xe0] sm:$0xff]   ;;  %v1331_v21 = vld [vmem:[%s1733_s1 + $0xe8] sm:$0xff]  }
   0x7   :  { %v1324_v14 = vld [vmem:[%s1733_s1 + $0x18] sm:$0xff]   ;;  %v1328_v18 = vld [vmem:[%s1733_s1 + $0x20] sm:$0xff]   ;;  %v1332_v22 = vld [vmem:[%s1733_s1 + $0x28] sm:$0xff]  }
   0x8   :  { %1141 = vmatpush3.bf16.msra.mxu0 %v1316_v6  ;;  %v1325_v15 = vld [vmem:[%s1733_s1 + $0x98] sm:$0xff]   ;;  %v1329_v19 = vld [vmem:[%s1733_s1 + $0xa0] sm:$0xff]   ;;  %v1333_v23 = vld [vmem:[%s1733_s1 + $0xa8] sm:$0xff]  }
   0x9   :  { %1205 = vmatpush3.bf16.msra.mxu1 %v1317_v7  ;;  %1142 = vmatprep.subr.bf16.mxu0 %v1318_v8  ;;  %v1334_v24 = vld [vmem:[%s1733_s1 + $0x70] sm:$0xff]   ;;  %v1338_v28 = vld [vmem:[%s1733_s1 + $0x78] sm:$0xff]   ;;  %v1347_v35 = vld [vmem:[%s1734_s0 + $0xc] ss:$20 sps:$4 sm:$0xff]  }
   0xa   :  { %1206 = vmatprep.subr.bf16.mxu1 %v1319_v9  ;;  %v1335_v25 = vld [vmem:[%s1733_s1 + $0xf0] sm:$0xff]   ;;  %v1339_v29 = vld [vmem:[%s1733_s1 + $0xf8] sm:$0xff]   ;;  %v1348_v36 = vld [vmem:[%s1733_s1 + $0x100] sm:$0xff]   ;;  %712 = vmatprep.mubr.bf16.mxu1 %v1347_v35 }
   0xb   :  { %v1336_v26 = vld [vmem:[%s1733_s1 + $0x30] sm:$0xff]   ;;  %v1340_v30 = vld [vmem:[%s1733_s1 + $0x38] sm:$0xff]   ;;  %v1349_v37 = vld [vmem:[%s1734_s0 + $0x2c] ss:$20 sps:$4 sm:$0xff]  }
   0xc   :  { %1143 = vmatpush3.bf16.msra.mxu0 %v1320_v10  ;;  %v1337_v27 = vld [vmem:[%s1733_s1 + $0xb0] sm:$0xff]   ;;  %v1341_v31 = vld [vmem:[%s1733_s1 + $0xb8] sm:$0xff]   ;;  %v1361_v42 = vld [vmem:[%s1733_s1 + $0x108] sm:$0xff]  }
   0xd   :  { %1207 = vmatpush3.bf16.msra.mxu1 %v1321_v11  ;;  %1144 = vmatprep.subr.bf16.mxu0 %v1322_v12  ;;  %v1342_v32 = vld [vmem:[%s1734_s0] ss:$20 sps:$4 sm:$0xff]   ;;  %v1344_v33 = vld [vmem:[%s1734_s0 + $0x4] ss:$20 sps:$4 sm:$0xff]   ;;  %v1345_v34 = vld [vmem:[%s1734_s0 + $0x8] ss:$20 sps:$4 sm:$0xff]  }
   0xe   :  { %1208 = vmatprep.subr.bf16.mxu1 %v1323_v13  ;;  %615 = vmatprep.mubr.bf16.mxu0 %v1344_v33  ;;  %v1351_v38 = vld [vmem:[%s1734_s0 + $0x34] ss:$20 sps:$4 sm:$0xff]   ;;  %v1354_v40 = vld [vmem:[%s1734_s0 + $0x30] ss:$20 sps:$4 sm:$0xff]   ;;  %v1360_v45 = vld [vmem:[%s1734_s0 + $0x58] ss:$20 sps:$4 sm:$0xff]  }
   0xf   :  { %v1353_v39 = vld [vmem:[%s1734_s0 + $0x28] ss:$20 sps:$4 sm:$0xff]   ;;  %v1359_v44 = vld [vmem:[%s1734_s0 + $0x50] ss:$20 sps:$4 sm:$0xff]   ;;  %v1366_v50 = vld [vmem:[%s1734_s0 + $0x78] ss:$20 sps:$4 sm:$0xff]  }
  0x10   :  { %1145 = vmatpush3.bf16.msra.mxu0 %v1324_v14  ;;  %v1355_v41 = vld [vmem:[%s1734_s0 + $0x54] ss:$20 sps:$4 sm:$0xff]   ;;  %v1357_v43 = vld [vmem:[%s1734_s0 + $0x5c] ss:$20 sps:$4 sm:$0xff]   ;;  %v1364_v48 = vld [vmem:[%s1734_s0 + $0x84] ss:$20 sps:$4 sm:$0xff]  }
  0x11   :  { %1209 = vmatpush3.bf16.msra.mxu1 %v1325_v15  ;;  %1146 = vmatprep.subr.bf16.mxu0 %v1326_v16  ;;  %v1374_v46 = vld [vmem:[%s1733_s1 + $0x110] sm:$0xff]   ;;  %v1387_v49 = vld [vmem:[%s1733_s1 + $0x118] sm:$0xff]   ;;  %v1370_v53 = vld [vmem:[%s1734_s0 + $0xac] ss:$20 sps:$4 sm:$0xff]  }
  0x12   :  { %1210 = vmatprep.subr.bf16.mxu1 %v1327_v17  ;;  %v1362_v47 = vld [vmem:[%s1734_s0 + $0x7c] ss:$20 sps:$4 sm:$0xff]   ;;  %v1367_v51 = vld [vmem:[%s1734_s0 + $0x80] ss:$20 sps:$4 sm:$0xff]   ;;  %v1368_v52 = vld [vmem:[%s1734_s0 + $0xa4] ss:$20 sps:$4 sm:$0xff]  }
  0x13   :  { %v1372_v54 = vld [vmem:[%s1734_s0 + $0xa0] ss:$20 sps:$4 sm:$0xff]   ;;  %v1373_v55 = vld [vmem:[%s1734_s0 + $0xa8] ss:$20 sps:$4 sm:$0xff]   ;;  %v1380_v59 = vld [vmem:[%s1734_s0 + $0xd0] ss:$20 sps:$4 sm:$0xff]  }
  0x14   :  { %1147 = vmatpush3.bf16.msra.mxu0 %v1328_v18  ;;  %v1375_v56 = vld [vmem:[%s1734_s0 + $0xcc] ss:$20 sps:$4 sm:$0xff]   ;;  %v1377_v57 = vld [vmem:[%s1734_s0 + $0xd4] ss:$20 sps:$4 sm:$0xff]   ;;  %v1383_v61 = vld [vmem:[%s1734_s0 + $0xfc] ss:$20 sps:$4 sm:$0xff]  }
  0x15   :  { %1211 = vmatpush3.bf16.msra.mxu1 %v1329_v19  ;;  %1148 = vmatprep.subr.bf16.mxu0 %v1330_v20  ;;  %v1379_v58 = vld [vmem:[%s1734_s0 + $0xc8] ss:$20 sps:$4 sm:$0xff]   ;;  %v1385_v62 = vld [vmem:[%s1734_s0 + $0xf0] ss:$20 sps:$4 sm:$0xff]   ;;  %v1386_v63 = vld [vmem:[%s1734_s0 + $0xf8] ss:$20 sps:$4 sm:$0xff]  }
  0x16   :  { %1212 = vmatprep.subr.bf16.mxu1 %v1331_v21  ;;  %v1381_v60 = vld [vmem:[%s1734_s0 + $0xf4] ss:$20 sps:$4 sm:$0xff]   ;;  %v1388_v0 = vld [vmem:[%s1734_s0 + $0x11c] ss:$20 sps:$4 sm:$0xff]   ;;  %v1390_v1 = vld [vmem:[%s1734_s0 + $0x124] ss:$20 sps:$4 sm:$0xff]  }
  0x17   :  { %v1392_v2 = vld [vmem:[%s1734_s0 + $0x118] ss:$20 sps:$4 sm:$0xff]   ;;  %v1393_v3 = vld [vmem:[%s1734_s0 + $0x120] ss:$20 sps:$4 sm:$0xff]   ;;  %v1394_v4 = vld [vmem:[%s1734_s0 + $0x10] ss:$20 sps:$4 sm:$0xff]  }
  0x18   :  { %1149 = vmatpush3.bf16.msra.mxu0 %v1332_v22  ;;  %v1395_v5 = vld [vmem:[%s1734_s0 + $0xb0] ss:$20 sps:$4 sm:$0xff]   ;;  %v1396_v6 = vld [vmem:[%s1734_s0 + $0x38] ss:$20 sps:$4 sm:$0xff]   ;;  %v1398_v8 = vld [vmem:[%s1734_s0 + $0x60] ss:$20 sps:$4 sm:$0xff]  }
  0x19   :  { %1213 = vmatpush3.bf16.msra.mxu1 %v1333_v23  ;;  %1150 = vmatprep.subr.bf16.mxu0 %v1334_v24  ;;  %v1397_v7 = vld [vmem:[%s1734_s0 + $0xd8] ss:$20 sps:$4 sm:$0xff]   ;;  %v1399_v9 = vld [vmem:[%s1734_s0 + $0x100] ss:$20 sps:$4 sm:$0xff]   ;;  %v1400_v10 = vld [vmem:[%s1734_s0 + $0x88] ss:$20 sps:$4 sm:$0xff]  }
  0x1a   :  { %1214 = vmatprep.subr.bf16.mxu1 %v1335_v25  ;;  %v1401_v11 = vld [vmem:[%s1734_s0 + $0x128] ss:$20 sps:$4 sm:$0xff]   ;;  %v1661_v14 = vld [vmem:[%s1735_s2] ss:$0 sm:$0xff] }
  0x1c   :  { %1151 = vmatpush3.bf16.msra.mxu0 %v1336_v26 }
  0x1d   :  { %1215 = vmatpush3.bf16.msra.mxu1 %v1337_v27  ;;  %1152 = vmatprep.subr.bf16.mxu0 %v1338_v28 }
  0x1e   :  { %1216 = vmatprep.subr.bf16.mxu1 %v1339_v29 }
  0x20   :  { %1153 = vmatpush3.bf16.msra.mxu0 %v1340_v30 }
  0x21   :  { %1217 = vmatpush3.bf16.msra.mxu1 %v1341_v31  ;;  %1278 = vmatprep.subr.bf16.mxu0 %v1348_v36 }
  0x22   :  { %1302 = vmatprep.subr.bf16.mxu1 %v1348_v36 }
  0x23   :  { %616 = vmatmul.mubr.bf16.vlgmr.msra.gmra.mrb[0].mxu0 %v1342_v32 }
  0x24   :  { %713 = vmatmul.mubr.bf16.vlgmr.msra.gmra.mrb[0].mxu1 %v1345_v34  ;;  %1279 = vmatpush3.bf16.msra.mxu0 %v1348_v36 }
  0x25   :  { %1306 = vmatpush3.bf16.msra.mxu1 %v1348_v36  ;;  %623 = vmatprep.mubr.bf16.mxu0 %v1349_v37 }
  0x26   :  { %720 = vmatprep.mubr.bf16.mxu1 %v1351_v38  ;;  %1280 = vmatprep.subr.bf16.mxu0 %v1361_v42 }
  0x27   :  { %1303 = vmatprep.subr.bf16.mxu1 %v1361_v42 }
  0x28   :  { %1281 = vmatpush3.bf16.msra.mxu0 %v1361_v42 }
  0x29   :  { %1307 = vmatpush3.bf16.msra.mxu1 %v1361_v42  ;;  %1282 = vmatprep.subr.bf16.mxu0 %v1374_v46 }
  0x2a   :  { %1304 = vmatprep.subr.bf16.mxu1 %v1374_v46 }
  0x2b   :  { %624 = vmatmul.mubr.bf16.gmra.mrb[4].mxu0 %v1353_v39 }
  0x2c   :  { %721 = vmatmul.mubr.bf16.gmra.mrb[4].mxu1 %v1354_v40  ;;  %631 = vmatprep.mubr.bf16.mxu0 %v1355_v41 }
  0x2d   :  { %728 = vmatprep.mubr.bf16.mxu1 %v1357_v43  ;;  %1283 = vmatpush3.bf16.msra.mxu0 %v1374_v46 }
  0x2e   :  { %1308 = vmatpush3.bf16.msra.mxu1 %v1374_v46  ;;  %1284 = vmatprep.subr.bf16.mxu0 %v1387_v49 }
  0x2f   :  { %1305 = vmatprep.subr.bf16.mxu1 %v1387_v49 }
  0x31   :  { %1285 = vmatpush3.bf16.msra.mxu0 %v1387_v49 }
  0x32   :  { %1309 = vmatpush3.bf16.msra.mxu1 %v1387_v49 }
  0x33   :  { %632 = vmatmul.mubr.bf16.gmra.mrb[8].mxu0 %v1359_v44 }
  0x34   :  { %729 = vmatmul.mubr.bf16.gmra.mrb[8].mxu1 %v1360_v45  ;;  %639 = vmatprep.mubr.bf16.mxu0 %v1362_v47 }
  0x35   :  { %736 = vmatprep.mubr.bf16.mxu1 %v1364_v48 }
  0x3b   :  { %640 = vmatmul.mubr.bf16.gmra.mrb[12].mxu0 %v1366_v50 }
  0x3c   :  { %737 = vmatmul.mubr.bf16.gmra.mrb[12].mxu1 %v1367_v51  ;;  %647 = vmatprep.mubr.bf16.mxu0 %v1368_v52 }
  0x3d   :  { %744 = vmatprep.mubr.bf16.mxu1 %v1370_v53 }
  0x43   :  { %648 = vmatmul.mubr.bf16.gmra.mrb[16].mxu0 %v1372_v54 }
  0x44   :  { %745 = vmatmul.mubr.bf16.gmra.mrb[16].mxu1 %v1373_v55  ;;  %655 = vmatprep.mubr.bf16.mxu0 %v1375_v56 }
  0x45   :  { %752 = vmatprep.mubr.bf16.mxu1 %v1377_v57 }
  0x4b   :  { %656 = vmatmul.mubr.bf16.gmra.mrb[20].mxu0 %v1379_v58 }
  0x4c   :  { %753 = vmatmul.mubr.bf16.gmra.mrb[20].mxu1 %v1380_v59  ;;  %663 = vmatprep.mubr.bf16.mxu0 %v1381_v60 }
  0x4d   :  { %760 = vmatprep.mubr.bf16.mxu1 %v1383_v61 }
  0x53   :  { %664 = vmatmul.mubr.bf16.gmra.mrb[24].mxu0 %v1385_v62 }
  0x54   :  { %761 = vmatmul.mubr.bf16.gmra.mrb[24].mxu1 %v1386_v63  ;;  %671 = vmatprep.mubr.bf16.mxu0 %v1388_v0 }
  0x55   :  { %768 = vmatprep.mubr.bf16.mxu1 %v1390_v1 }
  0x5b   :  { %672 = vmatmul.mubr.bf16.gmra.mrb[28].mxu0 %v1392_v2 }
  0x5c   :  { %769 = vmatmul.mubr.bf16.gmra.mrb[28].mxu1 %v1393_v3  ;;  %1286 = vmatprep.mubr.msk.bf16.mxu0 %vm558_vm0, %v1394_v4 }
  0x5d   :  { %1294 = vmatprep.mubr.msk.bf16.mxu1 %vm558_vm0, %v1395_v5 }
  0x63   :  { %1287 = vmatmul.mubr.msk.bf16.vlgmr.msra.gmra.mrb[32].mxu0 %vm558_vm0, %v1396_v6 }
  0x64   :  { %1295 = vmatmul.mubr.msk.bf16.vlgmr.msra.gmra.mrb[32].mxu1 %vm558_vm0, %v1397_v7  ;;  %1290 = vmatprep.mubr.msk.bf16.mxu0 %vm558_vm0, %v1398_v8 }
  0x65   :  { %1298 = vmatprep.mubr.msk.bf16.mxu1 %vm558_vm0, %v1399_v9 }
  0x6b   :  { %1291 = vmatmul.mubr.msk.bf16.gmra.mrb[36].mxu0 %vm558_vm0, %v1400_v10 }
  0x6c   :  { %1299 = vmatmul.mubr.msk.bf16.gmra.mrb[36].mxu1 %vm558_vm0, %v1401_v11 }
  0xf6   :  { %v1154_v12 = vpop.f32.mrb[0].mxu0 }
  0xf7   :  { %v1218_v13 = vpop.f32.mrb[0].mxu1  ;;  %v1155_v15 = vpop.f32.mrb[1].mxu0 }
  0xf8   :  { %v1156_v16 = vadd.f32 %v1155_v15, %v1154_v12  ;;  %v1219_v17 = vpop.f32.mrb[1].mxu1  ;;  %v1157_v18 = vpop.f32.mrb[2].mxu0 }
  0xf9   :  { %v1220_v19 = vadd.f32 %v1219_v17, %v1218_v13  ;;  %v1221_v20 = vpop.f32.mrb[2].mxu1  ;;  %v1158_v21 = vpop.f32.mrb[3].mxu0 }
  0xfa   :  { %v618_v22 = vadd.f32 %v1156_v16, %v1661_v14  ;;  %v1159_v23 = vadd.f32 %v1158_v21, %v1157_v18  ;;  %v1222_v24 = vpop.f32.mrb[3].mxu1 }
  0xfb   :  { %v1223_v25 = vadd.f32 %v1222_v24, %v1221_v20 }
  0xfc   :  { %v621_v26 = vadd.f32 %v1159_v23, %v1661_v14  ;;  %v1665_v27 = vadd.f32 %v1220_v19, %v618_v22 }
  0xfe   :  { %v1160_v28 = vpop.f32.mrb[4].mxu0  ;;  %v1667_v29 = vadd.f32 %v1223_v25, %v621_v26 }
  0xff   :  { %v1224_v30 = vpop.f32.mrb[4].mxu1  ;;  %v1161_v31 = vpop.f32.mrb[5].mxu0 }
 0x100   :  { %v1162_v32 = vadd.f32 %v1161_v31, %v1160_v28  ;;  %v1225_v33 = vpop.f32.mrb[5].mxu1  ;;  %v1163_v34 = vpop.f32.mrb[6].mxu0 }
 0x101   :  { %v1226_v35 = vadd.f32 %v1225_v33, %v1224_v30  ;;  %v1227_v36 = vpop.f32.mrb[6].mxu1  ;;  %v1164_v37 = vpop.f32.mrb[7].mxu0 }
 0x102   :  { %v626_v38 = vadd.f32 %v1162_v32, %v1661_v14  ;;  %v1165_v39 = vadd.f32 %v1164_v37, %v1163_v34  ;;  %v1228_v40 = vpop.f32.mrb[7].mxu1 }
 0x103   :  { %v1229_v41 = vadd.f32 %v1228_v40, %v1227_v36 }
 0x104   :  { %v629_v42 = vadd.f32 %v1165_v39, %v1661_v14  ;;  %v1671_v43 = vadd.f32 %v1226_v35, %v626_v38 }
 0x106   :  { %v1166_v44 = vpop.f32.mrb[8].mxu0  ;;  %v1673_v45 = vadd.f32 %v1229_v41, %v629_v42 }
 0x107   :  { %v1230_v46 = vpop.f32.mrb[8].mxu1  ;;  %v1167_v47 = vpop.f32.mrb[9].mxu0 }
 0x108   :  { %v1168_v48 = vadd.f32 %v1167_v47, %v1166_v44  ;;  %v1231_v49 = vpop.f32.mrb[9].mxu1  ;;  %v1169_v50 = vpop.f32.mrb[10].mxu0 }
 0x109   :  { %v1232_v51 = vadd.f32 %v1231_v49, %v1230_v46  ;;  %v1233_v52 = vpop.f32.mrb[10].mxu1  ;;  %v1170_v53 = vpop.f32.mrb[11].mxu0 }
 0x10a   :  { %v634_v54 = vadd.f32 %v1168_v48, %v1661_v14  ;;  %v1171_v55 = vadd.f32 %v1170_v53, %v1169_v50  ;;  %v1234_v56 = vpop.f32.mrb[11].mxu1 }
 0x10b   :  { %v1235_v57 = vadd.f32 %v1234_v56, %v1233_v52 }
 0x10c   :  { %v637_v58 = vadd.f32 %v1171_v55, %v1661_v14  ;;  %v1677_v59 = vadd.f32 %v1232_v51, %v634_v54 }
 0x10e   :  { %v1172_v60 = vpop.f32.mrb[12].mxu0  ;;  %v1679_v61 = vadd.f32 %v1235_v57, %v637_v58 }
 0x10f   :  { %v1236_v62 = vpop.f32.mrb[12].mxu1  ;;  %v1173_v63 = vpop.f32.mrb[13].mxu0 }
 0x110   :  { %v1174_v0 = vadd.f32 %v1173_v63, %v1172_v60  ;;  %v1237_v1 = vpop.f32.mrb[13].mxu1  ;;  %v1175_v2 = vpop.f32.mrb[14].mxu0 }
 0x111   :  { %v1238_v3 = vadd.f32 %v1237_v1, %v1236_v62  ;;  %v1239_v4 = vpop.f32.mrb[14].mxu1  ;;  %v1176_v5 = vpop.f32.mrb[15].mxu0 }
 0x112   :  { %v642_v6 = vadd.f32 %v1174_v0, %v1661_v14  ;;  %v1177_v7 = vadd.f32 %v1176_v5, %v1175_v2  ;;  %v1240_v8 = vpop.f32.mrb[15].mxu1 }
 0x113   :  { %v1241_v9 = vadd.f32 %v1240_v8, %v1239_v4 }
 0x114   :  { %v645_v10 = vadd.f32 %v1177_v7, %v1661_v14  ;;  %v1683_v11 = vadd.f32 %v1238_v3, %v642_v6 }
 0x116   :  { %v1178_v12 = vpop.f32.mrb[16].mxu0  ;;  %v1685_v13 = vadd.f32 %v1241_v9, %v645_v10 }
 0x117   :  { %v1242_v15 = vpop.f32.mrb[16].mxu1  ;;  %v1179_v16 = vpop.f32.mrb[17].mxu0 }
 0x118   :  { %v1180_v17 = vadd.f32 %v1179_v16, %v1178_v12  ;;  %v1243_v18 = vpop.f32.mrb[17].mxu1  ;;  %v1181_v19 = vpop.f32.mrb[18].mxu0 }
 0x119   :  { %v1244_v20 = vadd.f32 %v1243_v18, %v1242_v15  ;;  %v1245_v21 = vpop.f32.mrb[18].mxu1  ;;  %v1182_v22 = vpop.f32.mrb[19].mxu0 }
 0x11a   :  { %v650_v23 = vadd.f32 %v1180_v17, %v1661_v14  ;;  %v1183_v24 = vadd.f32 %v1182_v22, %v1181_v19  ;;  %v1246_v25 = vpop.f32.mrb[19].mxu1 }
 0x11b   :  { %v1247_v26 = vadd.f32 %v1246_v25, %v1245_v21 }
 0x11c   :  { %v653_v28 = vadd.f32 %v1183_v24, %v1661_v14  ;;  %v747_v30 = vadd.f32 %v1244_v20, %v650_v23 }
 0x11e   :  { %v1184_v31 = vpop.f32.mrb[20].mxu0  ;;  %v1689_v32 = vadd.f32 %v1247_v26, %v653_v28 }
 0x11f   :  { %v1248_v33 = vpop.f32.mrb[20].mxu1  ;;  %v1185_v34 = vpop.f32.mrb[21].mxu0 }
 0x120   :  { %v1186_v35 = vadd.f32 %v1185_v34, %v1184_v31  ;;  %v1249_v36 = vpop.f32.mrb[21].mxu1  ;;  %v1187_v37 = vpop.f32.mrb[22].mxu0 }
 0x121   :  { %v1250_v38 = vadd.f32 %v1249_v36, %v1248_v33  ;;  %v1251_v39 = vpop.f32.mrb[22].mxu1  ;;  %v1188_v40 = vpop.f32.mrb[23].mxu0 }
 0x122   :  { %v658_v41 = vadd.f32 %v1186_v35, %v1661_v14  ;;  %v1189_v42 = vadd.f32 %v1188_v40, %v1187_v37  ;;  %v1252_v44 = vpop.f32.mrb[23].mxu1 }
 0x123   :  { %v1253_v46 = vadd.f32 %v1252_v44, %v1251_v39 }
 0x124   :  { %v661_v47 = vadd.f32 %v1189_v42, %v1661_v14  ;;  %v755_v48 = vadd.f32 %v1250_v38, %v658_v41 }
 0x126   :  { %v1190_v49 = vpop.f32.mrb[24].mxu0  ;;  %v758_v50 = vadd.f32 %v1253_v46, %v661_v47 }
 0x127   :  { %v1254_v51 = vpop.f32.mrb[24].mxu1  ;;  %v1191_v52 = vpop.f32.mrb[25].mxu0 }
 0x128   :  { %v1192_v53 = vadd.f32 %v1191_v52, %v1190_v49  ;;  %v1255_v54 = vpop.f32.mrb[25].mxu1  ;;  %v1193_v55 = vpop.f32.mrb[26].mxu0 }
 0x129   :  { %v1256_v56 = vadd.f32 %v1255_v54, %v1254_v51  ;;  %v1257_v57 = vpop.f32.mrb[26].mxu1  ;;  %v1194_v58 = vpop.f32.mrb[27].mxu0 }
 0x12a   :  { %v666_v60 = vadd.f32 %v1192_v53, %v1661_v14  ;;  %v1195_v62 = vadd.f32 %v1194_v58, %v1193_v55  ;;  %v1258_v63 = vpop.f32.mrb[27].mxu1 }
 0x12b   :  { %v1259_v0 = vadd.f32 %v1258_v63, %v1257_v57 }
 0x12c   :  { %v669_v1 = vadd.f32 %v1195_v62, %v1661_v14  ;;  %v763_v2 = vadd.f32 %v1256_v56, %v666_v60 }
 0x12e   :  { %v1196_v3 = vpop.f32.mrb[28].mxu0  ;;  %v1695_v4 = vadd.f32 %v1259_v0, %v669_v1 }
 0x12f   :  { %v1260_v5 = vpop.f32.mrb[28].mxu1  ;;  %v1197_v6 = vpop.f32.mrb[29].mxu0 }
 0x130   :  { %v1198_v7 = vadd.f32 %v1197_v6, %v1196_v3  ;;  %v1261_v8 = vpop.f32.mrb[29].mxu1  ;;  %v1199_v9 = vpop.f32.mrb[30].mxu0 }
 0x131   :  { %v1262_v10 = vadd.f32 %v1261_v8, %v1260_v5  ;;  %v1263_v12 = vpop.f32.mrb[30].mxu1  ;;  %v1200_v15 = vpop.f32.mrb[31].mxu0 }
 0x132   :  { %v674_v16 = vadd.f32 %v1198_v7, %v1661_v14  ;;  %v1201_v17 = vadd.f32 %v1200_v15, %v1199_v9  ;;  %v1264_v18 = vpop.f32.mrb[31].mxu1 }
 0x133   :  { %v1265_v19 = vadd.f32 %v1264_v18, %v1263_v12 }
 0x134   :  { %v677_v20 = vadd.f32 %v1201_v17, %v1661_v14  ;;  %v771_v21 = vadd.f32 %v1262_v10, %v674_v16 }
 0x136   :  { %v1288_v22 = vpop.f32.mrb[32].mxu0  ;;  %v774_v23 = vadd.f32 %v1265_v19, %v677_v20 }
 0x137   :  { %v820_v24 = vadd.f32 %v1288_v22, %v1671_v43  ;;  %v1296_v25 = vpop.f32.mrb[32].mxu1  ;;  %v811_v26 = vpop.f32.mrb[33].mxu0 }
 0x138   :  { %v852_v28 = vadd.f32 %v1296_v25, %v755_v48  ;;  %v812_v31 = vadd.f32 %v811_v26, %v1665_v27  ;;  %v843_v33 = vpop.f32.mrb[33].mxu1  ;;  %v1289_v34 = vpop.f32.mrb[34].mxu0 }
 0x139   :  { %v844_v35 = vadd.f32 %v843_v33, %v747_v30  ;;  %v823_v36 = vadd.f32 %v1289_v34, %v1673_v45  ;;  %v1297_v37 = vpop.f32.mrb[34].mxu1  ;;  %v814_v38 = vpop.f32.mrb[35].mxu0  ;;  %v876_v41 = vmax.f32 %v820_v24, 0.0 }
 0x13a   :  { %v855_v39 = vadd.f32 %v1297_v37, %v758_v50  ;;  %v815_v14 = vadd.f32 %v814_v38, %v1667_v29  ;;  %v846_v40 = vpop.f32.mrb[35].mxu1  ;;  %v884_v44 = vmax.f32 %v852_v28, 0.0  ;;  %v874_v46 = vmax.f32 %v812_v31, 0.0 }
 0x13b   :  { %v877_v42 = vmax.f32 %v823_v36, 0.0  ;;  %v847_v43 = vadd.f32 %v846_v40, %v1689_v32  ;;  %v882_v27 = vmax.f32 %v844_v35, 0.0 }
 0x13c   :  { %v885_v47 = vmax.f32 %v855_v39, 0.0  ;;  %v875_v48 = vmax.f32 %v815_v14, 0.0 }
 0x13d   :  { %v1099_v49 = vpack.c.bf16 %v877_v42, %v876_v41  ;;  %v883_v51 = vmax.f32 %v847_v43, 0.0 }
 0x13e   :  { %v1119_v30 = vpack.c.bf16 %v885_v47, %v884_v44  ;;  %v1094_v52 = vpack.c.bf16 %v875_v48, %v874_v46  ;;  %v1292_v45 = vpop.f32.mrb[36].mxu0 }
 0x13f   :  { %1131 = vst [vmem:[%s1736_s3 + $0x8] sm:$0xff] %v1099_v49   ;;  %v1114_v29 = vpack.c.bf16 %v883_v51, %v882_v27  ;;  %v836_v50 = vadd.f32 %v1292_v45, %v1683_v11  ;;  %v1300_v53 = vpop.f32.mrb[36].mxu1  ;;  %v827_v54 = vpop.f32.mrb[37].mxu0 }
 0x140   :  { %1135 = vst [vmem:[%s1736_s3 + $0x28] sm:$0xff] %v1119_v30   ;;  %1095 = vst [vmem:[%s1736_s3] sm:$0xff] %v1094_v52   ;;  %v868_v32 = vadd.f32 %v1300_v53, %v771_v21  ;;  %v828_v55 = vadd.f32 %v827_v54, %v1677_v59  ;;  %v859_v56 = vpop.f32.mrb[37].mxu1  ;;  %v1293_v57 = vpop.f32.mrb[38].mxu0 }
 0x141   :  { %1134 = vst [vmem:[%s1736_s3 + $0x20] sm:$0xff] %v1114_v29   ;;  %v860_v11 = vadd.f32 %v859_v56, %v763_v2  ;;  %v839_v58 = vadd.f32 %v1293_v57, %v1685_v13  ;;  %v1301_v60 = vpop.f32.mrb[38].mxu1  ;;  %v830_v62 = vpop.f32.mrb[39].mxu0  ;;  %v880_v3 = vmax.f32 %v836_v50, 0.0 }
 0x142   :  { %v871_v63 = vadd.f32 %v1301_v60, %v774_v23  ;;  %v831_v0 = vadd.f32 %v830_v62, %v1679_v61  ;;  %v862_v1 = vpop.f32.mrb[39].mxu1  ;;  %v888_v59 = vmax.f32 %v868_v32, 0.0  ;;  %v878_v7 = vmax.f32 %v828_v55, 0.0 }
 0x143   :  { %v881_v5 = vmax.f32 %v839_v58, 0.0  ;;  %v863_v6 = vadd.f32 %v862_v1, %v1695_v4  ;;  %v886_v10 = vmax.f32 %v860_v11, 0.0 }
 0x144   :  { %v889_v8 = vmax.f32 %v871_v63, 0.0  ;;  %v879_v9 = vmax.f32 %v831_v0, 0.0 }
 0x145   :  { %v1109_v12 = vpack.c.bf16 %v881_v5, %v880_v3  ;;  %v887_v15 = vmax.f32 %v863_v6, 0.0 }
 0x146   :  { %v1129_v2 = vpack.c.bf16 %v889_v8, %v888_v59  ;;  %v1104_v16 = vpack.c.bf16 %v879_v9, %v878_v7 }
 0x147   :  { %1133 = vst [vmem:[%s1736_s3 + $0x18] sm:$0xff] %v1109_v12   ;;  %v1124_v13 = vpack.c.bf16 %v887_v15, %v886_v10 }
 0x148   :  { %1137 = vst [vmem:[%s1736_s3 + $0x38] sm:$0xff] %v1129_v2   ;;  %1132 = vst [vmem:[%s1736_s3 + $0x10] sm:$0xff] %v1104_v16  }
 0x149   :  { %1136 = vst [vmem:[%s1736_s3 + $0x30] sm:$0xff] %v1124_v13  }

// kernel: _lambda_.15
= control target key start
LH: loop header
LB: loop body
LE: loop exit
PB: predicated region body
PF: predicated region fallthrough
CT: control target
= control target key end

     0   :  { %vm1625_vm0 = vcmask 523264   ;;  %s3312_s1 = inlined_call_operand.vmem [shape: bf16[1152,128], index: 1, kind: input, shape index: {}]   ;;  %s3313_s0 = inlined_call_operand.vmem [shape: bf16[128,1152], index: 0, kind: input, shape index: {}]   ;;  %s3314_s4 = inlined_call_operand.vmem [shape: bf16[64,128], index: 4, kind: input, shape index: {}]   ;;  %s3315_s3 = inlined_call_operand.vmem [shape: bf16[128,64], index: 3, kind: input, shape index: {}]   ;;  %s3316_s2 = inlined_call_operand.vmem [shape: f32[1,128], index: 2, kind: input, shape index: {}]   ;;  %s3317_s5 = inlined_call_operand.vmem [shape: bf16[128,128], index: 5, kind: output, shape index: {}]  }
   0x1   :  { %v2495_v0 = vld [vmem:[%s3312_s1 + $0x40] sm:$0xff]   ;;  %v2497_v2 = vld [vmem:[%s3312_s1 + $0x48] sm:$0xff]   ;;  %v2499_v4 = vld [vmem:[%s3312_s1 + $0x50] sm:$0xff]  }
   0x2   :  { %v2496_v1 = vld [vmem:[%s3312_s1] sm:$0xff]   ;;  %2107 = vmatprep.subr.bf16.mxu0 %v2495_v0  ;;  %2447 = vmatprep.subr.bf16.mxu1 %v2495_v0  ;;  %v2498_v3 = vld [vmem:[%s3312_s1 + $0x8] sm:$0xff]   ;;  %v2500_v5 = vld [vmem:[%s3312_s1 + $0x10] sm:$0xff]  }
   0x3   :  { %2108 = vmatpush3.bf16.msra.mxu0 %v2496_v1  ;;  %2455 = vmatpush3.bf16.msra.mxu1 %v2496_v1  ;;  %v2501_v6 = vld [vmem:[%s3312_s1 + $0x58] sm:$0xff]   ;;  %v2503_v8 = vld [vmem:[%s3312_s1 + $0x60] sm:$0xff]   ;;  %v2505_v10 = vld [vmem:[%s3312_s1 + $0x68] sm:$0xff]  }
   0x4   :  { %2109 = vmatprep.subr.bf16.mxu0 %v2497_v2  ;;  %2448 = vmatprep.subr.bf16.mxu1 %v2497_v2  ;;  %v2502_v7 = vld [vmem:[%s3312_s1 + $0x18] sm:$0xff]   ;;  %v2504_v9 = vld [vmem:[%s3312_s1 + $0x20] sm:$0xff]   ;;  %v2506_v13 = vld [vmem:[%s3312_s1 + $0x28] sm:$0xff]  }
   0x5   :  { %v2513_v11 = vld [vmem:[%s3313_s0 + $0x4] ss:$36 sps:$4 sm:$0xff]   ;;  %v2507_v14 = vld [vmem:[%s3312_s1 + $0x70] sm:$0xff]   ;;  %v2509_v16 = vld [vmem:[%s3312_s1 + $0x78] sm:$0xff]  }
   0x6   :  { %v2516_v12 = vld [vmem:[%s3313_s0 + $0x124] ss:$36 sps:$4 sm:$0xff]   ;;  %1084 = vmatprep.mubr.bf16.mxu0 %v2513_v11  ;;  %v2508_v15 = vld [vmem:[%s3312_s1 + $0x30] sm:$0xff]   ;;  %v2510_v17 = vld [vmem:[%s3312_s1 + $0x38] sm:$0xff]  }
   0x7   :  { %2110 = vmatpush3.bf16.msra.mxu0 %v2498_v3  ;;  %2456 = vmatpush3.bf16.msra.mxu1 %v2498_v3  ;;  %v2511_v18 = vld [vmem:[%s3313_s0] ss:$36 sps:$4 sm:$0xff]   ;;  %v2521_v24 = vld [vmem:[%s3312_s1 + $0xc8] sm:$0xff]   ;;  %v2531_v30 = vld [vmem:[%s3312_s1 + $0xd0] sm:$0xff]  }
   0x8   :  { %2111 = vmatprep.subr.bf16.mxu0 %v2499_v4  ;;  %2449 = vmatprep.subr.bf16.mxu1 %v2499_v4  ;;  %v2514_v19 = vld [vmem:[%s3313_s0 + $0x120] ss:$36 sps:$4 sm:$0xff]   ;;  %v2522_v25 = vld [vmem:[%s3312_s1 + $0x148] sm:$0xff]   ;;  %v2532_v32 = vld [vmem:[%s3312_s1 + $0x150] sm:$0xff]  }
   0x9   :  { %1116 = vmatprep.mubr.bf16.mxu1 %v2516_v12  ;;  %v2517_v20 = vld [vmem:[%s3312_s1 + $0xc0] sm:$0xff]   ;;  %v2525_v26 = vld [vmem:[%s3313_s0 + $0x4c] ss:$36 sps:$4 sm:$0xff]   ;;  %v2535_v36 = vld [vmem:[%s3312_s1 + $0xd8] sm:$0xff]  }
   0xa   :  { %v2518_v21 = vld [vmem:[%s3312_s1 + $0x140] sm:$0xff]   ;;  %v2523_v27 = vld [vmem:[%s3312_s1 + $0x88] sm:$0xff]   ;;  %v2533_v34 = vld [vmem:[%s3312_s1 + $0x90] sm:$0xff]  }
   0xb   :  { %2112 = vmatpush3.bf16.msra.mxu0 %v2500_v5  ;;  %2457 = vmatpush3.bf16.msra.mxu1 %v2500_v5  ;;  %v2519_v22 = vld [vmem:[%s3312_s1 + $0x80] sm:$0xff]   ;;  %v2527_v28 = vld [vmem:[%s3313_s0 + $0x16c] ss:$36 sps:$4 sm:$0xff]   ;;  %v2536_v37 = vld [vmem:[%s3312_s1 + $0x158] sm:$0xff]  }
   0xc   :  { %2113 = vmatprep.subr.bf16.mxu0 %v2501_v6  ;;  %2450 = vmatprep.subr.bf16.mxu1 %v2501_v6  ;;  %v2520_v23 = vld [vmem:[%s3312_s1 + $0x100] sm:$0xff]   ;;  %v2524_v29 = vld [vmem:[%s3312_s1 + $0x108] sm:$0xff]   ;;  %v2534_v35 = vld [vmem:[%s3312_s1 + $0x110] sm:$0xff]  }
   0xd   :  { %v2529_v31 = vld [vmem:[%s3313_s0 + $0x48] ss:$36 sps:$4 sm:$0xff]   ;;  %v2539_v38 = vld [vmem:[%s3313_s0 + $0x94] ss:$36 sps:$4 sm:$0xff]   ;;  %v2545_v42 = vld [vmem:[%s3312_s1 + $0xe0] sm:$0xff]  }
   0xe   :  { %v2530_v33 = vld [vmem:[%s3313_s0 + $0x168] ss:$36 sps:$4 sm:$0xff]   ;;  %v2537_v39 = vld [vmem:[%s3312_s1 + $0x98] sm:$0xff]   ;;  %v2543_v43 = vld [vmem:[%s3313_s0 + $0x90] ss:$36 sps:$4 sm:$0xff]  }
   0xf   :  { %2114 = vmatpush3.bf16.msra.mxu0 %v2502_v7  ;;  %2458 = vmatpush3.bf16.msra.mxu1 %v2502_v7  ;;  %v2541_v40 = vld [vmem:[%s3313_s0 + $0x1b4] ss:$36 sps:$4 sm:$0xff]   ;;  %v2546_v45 = vld [vmem:[%s3312_s1 + $0x160] sm:$0xff]   ;;  %v2549_v48 = vld [vmem:[%s3312_s1 + $0xe8] sm:$0xff]  }
  0x10   :  { %2115 = vmatprep.subr.bf16.mxu0 %v2503_v8  ;;  %2451 = vmatprep.subr.bf16.mxu1 %v2503_v8  ;;  %v2538_v41 = vld [vmem:[%s3312_s1 + $0x118] sm:$0xff]   ;;  %v2544_v44 = vld [vmem:[%s3313_s0 + $0x1b0] ss:$36 sps:$4 sm:$0xff]   ;;  %v2547_v46 = vld [vmem:[%s3312_s1 + $0xa0] sm:$0xff]  }
  0x11   :  { %v2548_v47 = vld [vmem:[%s3312_s1 + $0x120] sm:$0xff]   ;;  %v2550_v49 = vld [vmem:[%s3312_s1 + $0x168] sm:$0xff]   ;;  %v2559_v54 = vld [vmem:[%s3312_s1 + $0xf0] sm:$0xff]  }
  0x12   :  { %v2553_v50 = vld [vmem:[%s3313_s0 + $0xdc] ss:$36 sps:$4 sm:$0xff]   ;;  %v2551_v52 = vld [vmem:[%s3312_s1 + $0xa8] sm:$0xff]   ;;  %v2560_v57 = vld [vmem:[%s3312_s1 + $0x170] sm:$0xff]  }
  0x13   :  { %2116 = vmatpush3.bf16.msra.mxu0 %v2504_v9  ;;  %2459 = vmatpush3.bf16.msra.mxu1 %v2504_v9  ;;  %v2555_v51 = vld [vmem:[%s3313_s0 + $0x1fc] ss:$36 sps:$4 sm:$0xff]   ;;  %v2552_v53 = vld [vmem:[%s3312_s1 + $0x128] sm:$0xff]   ;;  %v2561_v58 = vld [vmem:[%s3312_s1 + $0xb0] sm:$0xff]  }
  0x14   :  { %2117 = vmatprep.subr.bf16.mxu0 %v2505_v10  ;;  %2452 = vmatprep.subr.bf16.mxu1 %v2505_v10  ;;  %v2557_v55 = vld [vmem:[%s3313_s0 + $0xd8] ss:$36 sps:$4 sm:$0xff]   ;;  %v2562_v59 = vld [vmem:[%s3312_s1 + $0x130] sm:$0xff]   ;;  %v2567_v1 = vld [vmem:[%s3313_s0 + $0x8] ss:$36 sps:$4 sm:$0xff]  }
  0x15   :  { %v2558_v56 = vld [vmem:[%s3313_s0 + $0x1f8] ss:$36 sps:$4 sm:$0xff]   ;;  %v2569_v0 = vld [vmem:[%s3313_s0 + $0xc] ss:$36 sps:$4 sm:$0xff]   ;;  %v2573_v4 = vld [vmem:[%s3312_s1 + $0x1c0] sm:$0xff]  }
  0x16   :  { %v2563_v60 = vld [vmem:[%s3312_s1 + $0xf8] sm:$0xff]   ;;  %v2570_v2 = vld [vmem:[%s3313_s0 + $0x10] ss:$36 sps:$4 sm:$0xff]   ;;  %v2574_v5 = vld [vmem:[%s3312_s1 + $0x180] sm:$0xff]  }
  0x17   :  { %2118 = vmatpush3.bf16.msra.mxu0 %v2506_v13  ;;  %2460 = vmatpush3.bf16.msra.mxu1 %v2506_v13  ;;  %v2564_v61 = vld [vmem:[%s3312_s1 + $0x178] sm:$0xff]   ;;  %v2575_v6 = vld [vmem:[%s3312_s1 + $0x200] sm:$0xff]   ;;  %v2582_v9 = vld [vmem:[%s3312_s1 + $0x1c8] sm:$0xff]  }
  0x18   :  { %2119 = vmatprep.subr.bf16.mxu0 %v2507_v14  ;;  %2453 = vmatprep.subr.bf16.mxu1 %v2507_v14  ;;  %v2565_v62 = vld [vmem:[%s3312_s1 + $0xb8] sm:$0xff]   ;;  %v2580_v10 = vld [vmem:[%s3313_s0 + $0x50] ss:$36 sps:$4 sm:$0xff]   ;;  %v2583_v12 = vld [vmem:[%s3312_s1 + $0x188] sm:$0xff]  }
  0x19   :  { %v2566_v63 = vld [vmem:[%s3312_s1 + $0x138] sm:$0xff]   ;;  %v2584_v13 = vld [vmem:[%s3312_s1 + $0x208] sm:$0xff]  }
  0x1a   :  { %v2572_v3 = vld [vmem:[%s3313_s0 + $0x14] ss:$36 sps:$4 sm:$0xff]   ;;  %v2578_v8 = vld [vmem:[%s3313_s0 + $0x5c] ss:$36 sps:$4 sm:$0xff]  }
  0x1b   :  { %2120 = vmatpush3.bf16.msra.mxu0 %v2508_v15  ;;  %2461 = vmatpush3.bf16.msra.mxu1 %v2508_v15  ;;  %v2576_v7 = vld [vmem:[%s3313_s0 + $0x54] ss:$36 sps:$4 sm:$0xff]   ;;  %v2585_v14 = vld [vmem:[%s3313_s0 + $0x9c] ss:$36 sps:$4 sm:$0xff]   ;;  %v2587_v15 = vld [vmem:[%s3313_s0 + $0xa4] ss:$36 sps:$4 sm:$0xff]  }
  0x1c   :  { %2121 = vmatprep.subr.bf16.mxu0 %v2509_v16  ;;  %2454 = vmatprep.subr.bf16.mxu1 %v2509_v16  ;;  %v2581_v11 = vld [vmem:[%s3313_s0 + $0x58] ss:$36 sps:$4 sm:$0xff]   ;;  %v2591_v16 = vld [vmem:[%s3312_s1 + $0x1d0] sm:$0xff]  }
  0x1f   :  { %2122 = vmatpush3.bf16.msra.mxu0 %v2510_v17  ;;  %2462 = vmatpush3.bf16.msra.mxu1 %v2510_v17  ;;  %v2592_v17 = vld [vmem:[%s3312_s1 + $0x190] sm:$0xff]  }
  0x20   :  { %2171 = vmatprep.subr.bf16.mxu1 %v2517_v20  ;;  %2235 = vmatprep.subr.bf16.mxu0 %v2518_v21  ;;  %v2590_v20 = vld [vmem:[%s3313_s0 + $0xa0] ss:$36 sps:$4 sm:$0xff]  }
  0x21   :  { %v2594_v21 = vld [vmem:[%s3313_s0 + $0xe4] ss:$36 sps:$4 sm:$0xff]  }
  0x22   :  { %1085 = vmatmul.mubr.bf16.vlgmr.msra.gmra.mrb[0].mxu0 %v2511_v18  ;;  %1117 = vmatmul.mubr.bf16.vlgmr.msra.gmra.mrb[0].mxu1 %v2514_v19  ;;  %v2593_v18 = vld [vmem:[%s3312_s1 + $0x210] sm:$0xff]   ;;  %v2589_v19 = vld [vmem:[%s3313_s0 + $0x98] ss:$36 sps:$4 sm:$0xff]  }
  0x23   :  { %2172 = vmatpush3.bf16.msra.mxu1 %v2519_v22  ;;  %2236 = vmatpush3.bf16.msra.mxu0 %v2520_v23  ;;  %v2596_v22 = vld [vmem:[%s3313_s0 + $0xec] ss:$36 sps:$4 sm:$0xff]   ;;  %v2600_v23 = vld [vmem:[%s3312_s1 + $0x1d8] sm:$0xff]  }
  0x24   :  { %2173 = vmatprep.subr.bf16.mxu1 %v2521_v24  ;;  %2237 = vmatprep.subr.bf16.mxu0 %v2522_v25  ;;  %v2601_v24 = vld [vmem:[%s3312_s1 + $0x198] sm:$0xff]  }
  0x25   :  { %1092 = vmatprep.mubr.bf16.mxu0 %v2525_v26  ;;  %1124 = vmatprep.mubr.bf16.mxu1 %v2527_v28  ;;  %v2602_v25 = vld [vmem:[%s3312_s1 + $0x218] sm:$0xff]   ;;  %v2598_v26 = vld [vmem:[%s3313_s0 + $0xe0] ss:$36 sps:$4 sm:$0xff]  }
  0x26   :  { %v2609_v28 = vld [vmem:[%s3312_s1 + $0x1e0] sm:$0xff]  }
  0x27   :  { %2174 = vmatpush3.bf16.msra.mxu1 %v2523_v27  ;;  %2238 = vmatpush3.bf16.msra.mxu0 %v2524_v29  ;;  %v2599_v27 = vld [vmem:[%s3313_s0 + $0xe8] ss:$36 sps:$4 sm:$0xff]  }
  0x28   :  { %2175 = vmatprep.subr.bf16.mxu1 %v2531_v30  ;;  %2239 = vmatprep.subr.bf16.mxu0 %v2532_v32  ;;  %v2603_v29 = vld [vmem:[%s3313_s0 + $0x12c] ss:$36 sps:$4 sm:$0xff]   ;;  %v2610_v30 = vld [vmem:[%s3312_s1 + $0x1a0] sm:$0xff]   ;;  %v2605_v32 = vld [vmem:[%s3313_s0 + $0x134] ss:$36 sps:$4 sm:$0xff]  }
  0x2a   :  { %1093 = vmatmul.mubr.bf16.gmra.mrb[4].mxu0 %v2529_v31  ;;  %1125 = vmatmul.mubr.bf16.gmra.mrb[4].mxu1 %v2530_v33  ;;  %v2611_v31 = vld [vmem:[%s3312_s1 + $0x220] sm:$0xff]   ;;  %v2618_v33 = vld [vmem:[%s3312_s1 + $0x1e8] sm:$0xff]  }
  0x2b   :  { %2176 = vmatpush3.bf16.msra.mxu1 %v2533_v34  ;;  %2240 = vmatpush3.bf16.msra.mxu0 %v2534_v35  ;;  %v2619_v34 = vld [vmem:[%s3312_s1 + $0x1a8] sm:$0xff]  }
  0x2c   :  { %2177 = vmatprep.subr.bf16.mxu1 %v2535_v36  ;;  %2241 = vmatprep.subr.bf16.mxu0 %v2536_v37  ;;  %v2620_v35 = vld [vmem:[%s3312_s1 + $0x228] sm:$0xff]   ;;  %v2608_v37 = vld [vmem:[%s3313_s0 + $0x130] ss:$36 sps:$4 sm:$0xff]  }
  0x2d   :  { %1100 = vmatprep.mubr.bf16.mxu0 %v2539_v38  ;;  %1132 = vmatprep.mubr.bf16.mxu1 %v2541_v40  ;;  %v2607_v36 = vld [vmem:[%s3313_s0 + $0x128] ss:$36 sps:$4 sm:$0xff]   ;;  %v2612_v38 = vld [vmem:[%s3313_s0 + $0x174] ss:$36 sps:$4 sm:$0xff]  }
  0x2e   :  { %v2627_v40 = vld [vmem:[%s3312_s1 + $0x1f0] sm:$0xff]  }
  0x2f   :  { %2178 = vmatpush3.bf16.msra.mxu1 %v2537_v39  ;;  %2242 = vmatpush3.bf16.msra.mxu0 %v2538_v41  ;;  %v2614_v39 = vld [vmem:[%s3313_s0 + $0x17c] ss:$36 sps:$4 sm:$0xff]   ;;  %v2628_v41 = vld [vmem:[%s3312_s1 + $0x1b0] sm:$0xff]  }
  0x30   :  { %2179 = vmatprep.subr.bf16.mxu1 %v2545_v42  ;;  %2243 = vmatprep.subr.bf16.mxu0 %v2546_v45  ;;  %v2629_v42 = vld [vmem:[%s3312_s1 + $0x230] sm:$0xff]   ;;  %v2621_v45 = vld [vmem:[%s3313_s0 + $0x1bc] ss:$36 sps:$4 sm:$0xff]  }
  0x32   :  { %1101 = vmatmul.mubr.bf16.gmra.mrb[8].mxu0 %v2543_v43  ;;  %1133 = vmatmul.mubr.bf16.gmra.mrb[8].mxu1 %v2544_v44  ;;  %v2616_v43 = vld [vmem:[%s3313_s0 + $0x170] ss:$36 sps:$4 sm:$0xff]   ;;  %v2617_v44 = vld [vmem:[%s3313_s0 + $0x178] ss:$36 sps:$4 sm:$0xff]  }
  0x33   :  { %2180 = vmatpush3.bf16.msra.mxu1 %v2547_v46  ;;  %2244 = vmatpush3.bf16.msra.mxu0 %v2548_v47  ;;  %v2623_v46 = vld [vmem:[%s3313_s0 + $0x1c4] ss:$36 sps:$4 sm:$0xff]   ;;  %v2636_v47 = vld [vmem:[%s3312_s1 + $0x1f8] sm:$0xff]  }
  0x34   :  { %2181 = vmatprep.subr.bf16.mxu1 %v2549_v48  ;;  %2245 = vmatprep.subr.bf16.mxu0 %v2550_v49  ;;  %v2637_v48 = vld [vmem:[%s3312_s1 + $0x1b8] sm:$0xff]  }
  0x35   :  { %1108 = vmatprep.mubr.bf16.mxu0 %v2553_v50  ;;  %1140 = vmatprep.mubr.bf16.mxu1 %v2555_v51  ;;  %v2638_v49 = vld [vmem:[%s3312_s1 + $0x238] sm:$0xff]   ;;  %v2644_v50 = vld [vmem:[%s3314_s4] sm:$0xff]  }
  0x36   :  { %v2625_v51 = vld [vmem:[%s3313_s0 + $0x1b8] ss:$36 sps:$4 sm:$0xff]  }
  0x37   :  { %2182 = vmatpush3.bf16.msra.mxu1 %v2551_v52  ;;  %2246 = vmatpush3.bf16.msra.mxu0 %v2552_v53  ;;  %v2626_v52 = vld [vmem:[%s3313_s0 + $0x1c0] ss:$36 sps:$4 sm:$0xff]  }
  0x38   :  { %2183 = vmatprep.subr.bf16.mxu1 %v2559_v54  ;;  %2247 = vmatprep.subr.bf16.mxu0 %v2560_v57  ;;  %v2630_v53 = vld [vmem:[%s3313_s0 + $0x204] ss:$36 sps:$4 sm:$0xff]   ;;  %v2632_v54 = vld [vmem:[%s3313_s0 + $0x20c] ss:$36 sps:$4 sm:$0xff]   ;;  %v2641_v57 = vld [vmem:[%s3313_s0 + $0x1c] ss:$36 sps:$4 sm:$0xff]  }
  0x3a   :  { %1109 = vmatmul.mubr.bf16.gmra.mrb[12].mxu0 %v2557_v55  ;;  %1141 = vmatmul.mubr.bf16.gmra.mrb[12].mxu1 %v2558_v56  ;;  %v2634_v55 = vld [vmem:[%s3313_s0 + $0x200] ss:$36 sps:$4 sm:$0xff]   ;;  %v2635_v56 = vld [vmem:[%s3313_s0 + $0x208] ss:$36 sps:$4 sm:$0xff]  }
  0x3b   :  { %2184 = vmatpush3.bf16.msra.mxu1 %v2561_v58  ;;  %2248 = vmatpush3.bf16.msra.mxu0 %v2562_v59  ;;  %v2642_v58 = vld [vmem:[%s3313_s0 + $0x20] ss:$36 sps:$4 sm:$0xff]   ;;  %v2639_v59 = vld [vmem:[%s3313_s0 + $0x18] ss:$36 sps:$4 sm:$0xff]  }
  0x3c   :  { %2185 = vmatprep.subr.bf16.mxu1 %v2563_v60  ;;  %2249 = vmatprep.subr.bf16.mxu0 %v2564_v61  ;;  %v2643_v60 = vld [vmem:[%s3313_s0 + $0x68] ss:$36 sps:$4 sm:$0xff]  }
  0x3d   :  { %1181 = vmatprep.mubr.bf16.mxu1 %v2569_v0  ;;  %1278 = vmatprep.mubr.bf16.mxu0 %v2572_v3  ;;  %v2645_v61 = vld [vmem:[%s3313_s0 + $0x64] ss:$36 sps:$4 sm:$0xff]   ;;  %v2656_v0 = vld [vmem:[%s3314_s4 + $0x10] sm:$0xff]  }
  0x3e   :  { %v2651_v3 = vld [vmem:[%s3313_s0 + $0xac] ss:$36 sps:$4 sm:$0xff]  }
  0x3f   :  { %2186 = vmatpush3.bf16.msra.mxu1 %v2565_v62  ;;  %2250 = vmatpush3.bf16.msra.mxu0 %v2566_v63  ;;  %v2647_v62 = vld [vmem:[%s3313_s0 + $0xb0] ss:$36 sps:$4 sm:$0xff]   ;;  %v2650_v63 = vld [vmem:[%s3314_s4 + $0x8] sm:$0xff]  }
  0x40   :  { %2299 = vmatprep.subr.bf16.mxu1 %v2573_v4  ;;  %2391 = vmatprep.subr.bf16.mxu0 %v2575_v6  ;;  %v2653_v4 = vld [vmem:[%s3313_s0 + $0x140] ss:$36 sps:$4 sm:$0xff]  }
  0x42   :  { %1182 = vmatmul.mubr.bf16.vlgmr.msra.gmra.mrb[16].mxu1 %v2567_v1  ;;  %1279 = vmatmul.mubr.bf16.vlgmr.msra.gmra.mrb[16].mxu0 %v2570_v2  ;;  %v2648_v1 = vld [vmem:[%s3313_s0 + $0x60] ss:$36 sps:$4 sm:$0xff]   ;;  %v2649_v2 = vld [vmem:[%s3313_s0 + $0xf8] ss:$36 sps:$4 sm:$0xff]  }
  0x43   :  { %2300 = vmatpush3.bf16.msra.mxu1 %v2574_v5  ;;  %2392 = vmatpush3.bf16.msra.mxu0 %v2575_v6  ;;  %v2662_v5 = vld [vmem:[%s3314_s4 + $0x18] sm:$0xff]   ;;  %v2654_v6 = vld [vmem:[%s3313_s0 + $0xa8] ss:$36 sps:$4 sm:$0xff]  }
  0x44   :  { %1189 = vmatprep.mubr.bf16.mxu1 %v2576_v7  ;;  %1286 = vmatprep.mubr.bf16.mxu0 %v2578_v8  ;;  %v2655_v7 = vld [vmem:[%s3313_s0 + $0x188] ss:$36 sps:$4 sm:$0xff]   ;;  %v2657_v8 = vld [vmem:[%s3313_s0 + $0xf4] ss:$36 sps:$4 sm:$0xff]  }
  0x45   :  { %2301 = vmatprep.subr.bf16.mxu1 %v2582_v9  ;;  %2393 = vmatprep.subr.bf16.mxu0 %v2584_v13  ;;  %v2659_v9 = vld [vmem:[%s3313_s0 + $0x1d0] ss:$36 sps:$4 sm:$0xff]  }
  0x47   :  { %2302 = vmatpush3.bf16.msra.mxu1 %v2583_v12  ;;  %2394 = vmatpush3.bf16.msra.mxu0 %v2584_v13  ;;  %v2663_v12 = vld [vmem:[%s3313_s0 + $0x13c] ss:$36 sps:$4 sm:$0xff]  }
  0x48   :  { %2303 = vmatprep.subr.bf16.mxu1 %v2591_v16  ;;  %2395 = vmatprep.subr.bf16.mxu0 %v2593_v18  ;;  %v2665_v13 = vld [vmem:[%s3315_s3] sm:$0xff]  }
  0x49   :  { %v2668_v16 = vld [vmem:[%s3313_s0 + $0x184] ss:$36 sps:$4 sm:$0xff]  }
  0x4a   :  { %1190 = vmatmul.mubr.bf16.gmra.mrb[20].mxu1 %v2580_v10  ;;  %1287 = vmatmul.mubr.bf16.gmra.mrb[20].mxu0 %v2581_v11  ;;  %v2660_v10 = vld [vmem:[%s3313_s0 + $0xf0] ss:$36 sps:$4 sm:$0xff]   ;;  %v2661_v11 = vld [vmem:[%s3313_s0 + $0x218] ss:$36 sps:$4 sm:$0xff]  }
  0x4b   :  { %1197 = vmatprep.mubr.bf16.mxu1 %v2585_v14  ;;  %1294 = vmatprep.mubr.bf16.mxu0 %v2587_v15  ;;  %v2666_v14 = vld [vmem:[%s3313_s0 + $0x138] ss:$36 sps:$4 sm:$0xff]   ;;  %v2667_v15 = vld [vmem:[%s3315_s3 + $0x8] sm:$0xff]  }
  0x4c   :  { %2304 = vmatpush3.bf16.msra.mxu1 %v2592_v17  ;;  %2396 = vmatpush3.bf16.msra.mxu0 %v2593_v18  ;;  %v2670_v17 = vld [vmem:[%s3315_s3 + $0x10] sm:$0xff]   ;;  %v2671_v18 = vld [vmem:[%s3313_s0 + $0x180] ss:$36 sps:$4 sm:$0xff]  }
  0x4d   :  { %2305 = vmatprep.subr.bf16.mxu1 %v2600_v23  ;;  %2397 = vmatprep.subr.bf16.mxu0 %v2602_v25  ;;  %v2677_v23 = vld [vmem:[%s3315_s3 + $0x28] sm:$0xff]  }
  0x50   :  { %2306 = vmatpush3.bf16.msra.mxu1 %v2601_v24  ;;  %2398 = vmatpush3.bf16.msra.mxu0 %v2602_v25  ;;  %v2678_v24 = vld [vmem:[%s3313_s0 + $0x214] ss:$36 sps:$4 sm:$0xff]  }
  0x51   :  { %2307 = vmatprep.subr.bf16.mxu1 %v2609_v28  ;;  %2399 = vmatprep.subr.bf16.mxu0 %v2611_v31  ;;  %v2680_v25 = vld [vmem:[%s3315_s3 + $0x30] sm:$0xff]  }
  0x52   :  { %1198 = vmatmul.mubr.bf16.gmra.mrb[24].mxu1 %v2589_v19  ;;  %1295 = vmatmul.mubr.bf16.gmra.mrb[24].mxu0 %v2590_v20  ;;  %v2672_v19 = vld [vmem:[%s3315_s3 + $0x18] sm:$0xff]   ;;  %v2673_v20 = vld [vmem:[%s3313_s0 + $0x1cc] ss:$36 sps:$4 sm:$0xff]  }
  0x53   :  { %1205 = vmatprep.mubr.bf16.mxu1 %v2594_v21  ;;  %1302 = vmatprep.mubr.bf16.mxu0 %v2596_v22  ;;  %v2675_v21 = vld [vmem:[%s3315_s3 + $0x20] sm:$0xff]   ;;  %v2676_v22 = vld [vmem:[%s3313_s0 + $0x1c8] ss:$36 sps:$4 sm:$0xff]  }
  0x54   :  { %2308 = vmatpush3.bf16.msra.mxu1 %v2610_v30  ;;  %2400 = vmatpush3.bf16.msra.mxu0 %v2611_v31 }
  0x55   :  { %2309 = vmatprep.subr.bf16.mxu1 %v2618_v33  ;;  %2401 = vmatprep.subr.bf16.mxu0 %v2620_v35 }
  0x58   :  { %2310 = vmatpush3.bf16.msra.mxu1 %v2619_v34  ;;  %2402 = vmatpush3.bf16.msra.mxu0 %v2620_v35 }
  0x59   :  { %2311 = vmatprep.subr.bf16.mxu1 %v2627_v40  ;;  %2403 = vmatprep.subr.bf16.mxu0 %v2629_v42 }
  0x5a   :  { %1206 = vmatmul.mubr.bf16.gmra.mrb[28].mxu1 %v2598_v26  ;;  %1303 = vmatmul.mubr.bf16.gmra.mrb[28].mxu0 %v2599_v27  ;;  %v2681_v26 = vld [vmem:[%s3313_s0 + $0x210] ss:$36 sps:$4 sm:$0xff]   ;;  %v2682_v27 = vld [vmem:[%s3315_s3 + $0x38] sm:$0xff]  }
  0x5b   :  { %1213 = vmatprep.mubr.bf16.mxu1 %v2603_v29  ;;  %1310 = vmatprep.mubr.bf16.mxu0 %v2605_v32 }
  0x5c   :  { %2312 = vmatpush3.bf16.msra.mxu1 %v2628_v41  ;;  %2404 = vmatpush3.bf16.msra.mxu0 %v2629_v42 }
  0x5d   :  { %2313 = vmatprep.subr.bf16.mxu1 %v2636_v47  ;;  %2405 = vmatprep.subr.bf16.mxu0 %v2638_v49 }
  0x60   :  { %2314 = vmatpush3.bf16.msra.mxu1 %v2637_v48  ;;  %2406 = vmatpush3.bf16.msra.mxu0 %v2638_v49 }
  0x61   :  { %2423 = vmatprep.subr.bf16.mxu0 %v2644_v50 }
  0x62   :  { %1214 = vmatmul.mubr.bf16.gmra.mrb[32].mxu1 %v2607_v36  ;;  %1311 = vmatmul.mubr.bf16.gmra.mrb[32].mxu0 %v2608_v37 }
  0x63   :  { %1221 = vmatprep.mubr.bf16.mxu1 %v2612_v38  ;;  %1318 = vmatprep.mubr.bf16.mxu0 %v2614_v39 }
  0x6a   :  { %1222 = vmatmul.mubr.bf16.gmra.mrb[36].mxu1 %v2616_v43  ;;  %1319 = vmatmul.mubr.bf16.gmra.mrb[36].mxu0 %v2617_v44 }
  0x6b   :  { %1229 = vmatprep.mubr.bf16.mxu1 %v2621_v45  ;;  %1326 = vmatprep.mubr.bf16.mxu0 %v2623_v46 }
  0x72   :  { %1230 = vmatmul.mubr.bf16.gmra.mrb[40].mxu1 %v2625_v51  ;;  %1327 = vmatmul.mubr.bf16.gmra.mrb[40].mxu0 %v2626_v52 }
  0x73   :  { %1237 = vmatprep.mubr.bf16.mxu1 %v2630_v53  ;;  %1334 = vmatprep.mubr.bf16.mxu0 %v2632_v54 }
  0x7a   :  { %1238 = vmatmul.mubr.bf16.gmra.mrb[44].mxu1 %v2634_v55  ;;  %1335 = vmatmul.mubr.bf16.gmra.mrb[44].mxu0 %v2635_v56 }
  0x7b   :  { %1375 = vmatprep.mubr.bf16.mxu1 %v2641_v57  ;;  %2407 = vmatprep.mubr.bf16.mxu0 %v2642_v58 }
  0x82   :  { %1376 = vmatmul.mubr.bf16.vlgmr.msra.gmra.mrb[48].mxu1 %v2639_v59  ;;  %2408 = vmatmul.mubr.bf16.vlgmr.msra.gmra.mrb[48].mxu0 %v2643_v60 }
  0x83   :  { %2424 = vmatpush3.bf16.msra.mxu0 %v2644_v50  ;;  %1383 = vmatprep.mubr.bf16.mxu1 %v2645_v61 }
  0x84   :  { %2411 = vmatprep.mubr.bf16.mxu0 %v2647_v62  ;;  %2425 = vmatprep.subr.bf16.mxu0 %v2650_v63 }
  0x87   :  { %2426 = vmatpush3.bf16.msra.mxu0 %v2650_v63 }
  0x88   :  { %2427 = vmatprep.subr.bf16.mxu0 %v2656_v0 }
  0x8a   :  { %1384 = vmatmul.mubr.bf16.gmra.mrb[52].mxu1 %v2648_v1  ;;  %2412 = vmatmul.mubr.bf16.gmra.mrb[52].mxu0 %v2649_v2 }
  0x8b   :  { %1391 = vmatprep.mubr.bf16.mxu1 %v2651_v3  ;;  %2415 = vmatprep.mubr.bf16.mxu0 %v2653_v4 }
  0x8c   :  { %2428 = vmatpush3.bf16.msra.mxu0 %v2656_v0 }
  0x8d   :  { %2429 = vmatprep.subr.bf16.mxu0 %v2662_v5 }
  0x90   :  { %2430 = vmatpush3.bf16.msra.mxu0 %v2662_v5 }
  0x92   :  { %1392 = vmatmul.mubr.bf16.gmra.mrb[56].mxu1 %v2654_v6  ;;  %2416 = vmatmul.mubr.bf16.gmra.mrb[56].mxu0 %v2655_v7 }
  0x93   :  { %1399 = vmatprep.mubr.bf16.mxu1 %v2657_v8  ;;  %2419 = vmatprep.mubr.bf16.mxu0 %v2659_v9 }
  0x9a   :  { %1400 = vmatmul.mubr.bf16.gmra.mrb[60].mxu1 %v2660_v10  ;;  %2420 = vmatmul.mubr.bf16.gmra.mrb[60].mxu0 %v2661_v11 }
  0x9b   :  { %1407 = vmatprep.mubr.bf16.mxu1 %v2663_v12  ;;  %2431 = vmatprep.mubr.msk.bf16.mxu0 %vm1625_vm0, %v2665_v13 }
  0xa2   :  { %1408 = vmatmul.mubr.bf16.gmra.mrb[64].mxu1 %v2666_v14  ;;  %2432 = vmatmul.mubr.msk.bf16.vlgmr.msra.gmra.mrb[48].mxu0 %vm1625_vm0, %v2667_v15  ;;  %v3212_v14 = vld [vmem:[%s3316_s2] ss:$0 sm:$0xff] }
  0xa3   :  { %1415 = vmatprep.mubr.bf16.mxu1 %v2668_v16  ;;  %2435 = vmatprep.mubr.msk.bf16.mxu0 %vm1625_vm0, %v2670_v17 }
  0xaa   :  { %1416 = vmatmul.mubr.bf16.gmra.mrb[68].mxu1 %v2671_v18  ;;  %2436 = vmatmul.mubr.msk.bf16.gmra.mrb[52].mxu0 %vm1625_vm0, %v2672_v19 }
  0xab   :  { %1423 = vmatprep.mubr.bf16.mxu1 %v2673_v20  ;;  %2439 = vmatprep.mubr.msk.bf16.mxu0 %vm1625_vm0, %v2675_v21 }
  0xb2   :  { %1424 = vmatmul.mubr.bf16.gmra.mrb[72].mxu1 %v2676_v22  ;;  %2440 = vmatmul.mubr.msk.bf16.gmra.mrb[56].mxu0 %vm1625_vm0, %v2677_v23 }
  0xb3   :  { %1431 = vmatprep.mubr.bf16.mxu1 %v2678_v24  ;;  %2443 = vmatprep.mubr.msk.bf16.mxu0 %vm1625_vm0, %v2680_v25 }
  0xba   :  { %1432 = vmatmul.mubr.bf16.gmra.mrb[76].mxu1 %v2681_v26  ;;  %2444 = vmatmul.mubr.msk.bf16.gmra.mrb[60].mxu0 %vm1625_vm0, %v2682_v27 }
  0xf5   :  { %v2147_v28 = vpop.f32.mrb[0].mxu1  ;;  %v2123_v29 = vpop.f32.mrb[0].mxu0 }
  0xf6   :  { %v2148_v30 = vpop.f32.mrb[1].mxu1  ;;  %v2124_v31 = vpop.f32.mrb[1].mxu0 }
  0xf7   :  { %v3189_v32 = vadd.f32 %v2148_v30, %v2147_v28  ;;  %v2150_v33 = vpop.f32.mrb[2].mxu1  ;;  %v2125_v34 = vadd.f32 %v2124_v31, %v2123_v29  ;;  %v2126_v35 = vpop.f32.mrb[2].mxu0 }
  0xf8   :  { %v2151_v36 = vpop.f32.mrb[3].mxu1  ;;  %v2127_v37 = vpop.f32.mrb[3].mxu0 }
  0xf9   :  { %v3191_v38 = vadd.f32 %v2151_v36, %v2150_v33  ;;  %v2128_v39 = vadd.f32 %v2127_v37, %v2126_v35  ;;  %v1087_v17 = vadd.f32 %v2125_v34, %v3212_v14 }
  0xfb   :  { %v1090_v24 = vadd.f32 %v2128_v39, %v3212_v14 }
  0xfd   :  { %v2153_v40 = vpop.f32.mrb[4].mxu1  ;;  %v2129_v41 = vpop.f32.mrb[4].mxu0 }
  0xfe   :  { %v2154_v42 = vpop.f32.mrb[5].mxu1  ;;  %v2130_v43 = vpop.f32.mrb[5].mxu0 }
  0xff   :  { %v3193_v44 = vadd.f32 %v2154_v42, %v2153_v40  ;;  %v2156_v45 = vpop.f32.mrb[6].mxu1  ;;  %v2131_v46 = vadd.f32 %v2130_v43, %v2129_v41  ;;  %v2132_v47 = vpop.f32.mrb[6].mxu0 }
 0x100   :  { %v2157_v48 = vpop.f32.mrb[7].mxu1  ;;  %v2133_v49 = vpop.f32.mrb[7].mxu0 }
 0x101   :  { %v3195_v50 = vadd.f32 %v2157_v48, %v2156_v45  ;;  %v2134_v51 = vadd.f32 %v2133_v49, %v2132_v47  ;;  %v1095_v36 = vadd.f32 %v2131_v46, %v3212_v14 }
 0x103   :  { %v1098_v45 = vadd.f32 %v2134_v51, %v3212_v14 }
 0x105   :  { %v2159_v52 = vpop.f32.mrb[8].mxu1  ;;  %v2135_v53 = vpop.f32.mrb[8].mxu0 }
 0x106   :  { %v2160_v54 = vpop.f32.mrb[9].mxu1  ;;  %v2136_v55 = vpop.f32.mrb[9].mxu0 }
 0x107   :  { %v3197_v56 = vadd.f32 %v2160_v54, %v2159_v52  ;;  %v2162_v57 = vpop.f32.mrb[10].mxu1  ;;  %v2137_v58 = vadd.f32 %v2136_v55, %v2135_v53  ;;  %v2138_v59 = vpop.f32.mrb[10].mxu0 }
 0x108   :  { %v2163_v60 = vpop.f32.mrb[11].mxu1  ;;  %v2139_v61 = vpop.f32.mrb[11].mxu0 }
 0x109   :  { %v3199_v62 = vadd.f32 %v2163_v60, %v2162_v57  ;;  %v2140_v63 = vadd.f32 %v2139_v61, %v2138_v59  ;;  %v1103_v60 = vadd.f32 %v2137_v58, %v3212_v14 }
 0x10d   :  { %v2165_v0 = vpop.f32.mrb[12].mxu1  ;;  %v2141_v1 = vpop.f32.mrb[12].mxu0 }
 0x10e   :  { %v2166_v2 = vpop.f32.mrb[13].mxu1  ;;  %v2142_v3 = vpop.f32.mrb[13].mxu0 }
 0x10f   :  { %v3201_v4 = vadd.f32 %v2166_v2, %v2165_v0  ;;  %v2168_v5 = vpop.f32.mrb[14].mxu1  ;;  %v3203_v6 = vadd.f32 %v2142_v3, %v2141_v1  ;;  %v2144_v7 = vpop.f32.mrb[14].mxu0 }
 0x110   :  { %v2169_v8 = vpop.f32.mrb[15].mxu1  ;;  %v2145_v9 = vpop.f32.mrb[15].mxu0 }
 0x111   :  { %v3205_v10 = vadd.f32 %v2169_v8, %v2168_v5  ;;  %v3207_v11 = vadd.f32 %v2145_v9, %v2144_v7  ;;  %v1106_v5 = vadd.f32 %v2140_v63, %v3212_v14 }
 0x115   :  { %v2187_v12 = vpop.f32.mrb[16].mxu1  ;;  %v2251_v13 = vpop.f32.mrb[16].mxu0 }
 0x116   :  { %v2188_v15 = vpop.f32.mrb[17].mxu1  ;;  %v2252_v16 = vpop.f32.mrb[17].mxu0 }
 0x117   :  { %v2189_v18 = vadd.f32 %v2188_v15, %v2187_v12  ;;  %v2190_v19 = vpop.f32.mrb[18].mxu1  ;;  %v2253_v20 = vadd.f32 %v2252_v16, %v2251_v13  ;;  %v2254_v21 = vpop.f32.mrb[18].mxu0 }
 0x118   :  { %v2191_v22 = vpop.f32.mrb[19].mxu1  ;;  %v2255_v23 = vpop.f32.mrb[19].mxu0 }
 0x119   :  { %v1184_v25 = vadd.f32 %v2189_v18, %v1087_v17  ;;  %v2192_v26 = vadd.f32 %v2191_v22, %v2190_v19  ;;  %v2256_v27 = vadd.f32 %v2255_v23, %v2254_v21  ;;  %v1111_v19 = vadd.f32 %v3203_v6, %v3212_v14 }
 0x11b   :  { %v1187_v28 = vadd.f32 %v2192_v26, %v1090_v24  ;;  %v3216_v29 = vadd.f32 %v2253_v20, %v1184_v25  ;;  %v1114_v25 = vadd.f32 %v3207_v11, %v3212_v14 }
 0x11d   :  { %v3218_v30 = vadd.f32 %v2256_v27, %v1187_v28  ;;  %v2193_v31 = vpop.f32.mrb[20].mxu1  ;;  %v2257_v33 = vpop.f32.mrb[20].mxu0 }
 0x11e   :  { %v2194_v35 = vpop.f32.mrb[21].mxu1  ;;  %v2258_v34 = vpop.f32.mrb[21].mxu0 }
 0x11f   :  { %v2195_v37 = vadd.f32 %v2194_v35, %v2193_v31  ;;  %v2196_v40 = vpop.f32.mrb[22].mxu1  ;;  %v2259_v41 = vadd.f32 %v2258_v34, %v2257_v33  ;;  %v2260_v42 = vpop.f32.mrb[22].mxu0 }
 0x120   :  { %v2197_v43 = vpop.f32.mrb[23].mxu1  ;;  %v2261_v39 = vpop.f32.mrb[23].mxu0 }
 0x121   :  { %v1192_v47 = vadd.f32 %v2195_v37, %v1095_v36  ;;  %v2198_v48 = vadd.f32 %v2197_v43, %v2196_v40  ;;  %v2262_v49 = vadd.f32 %v2261_v39, %v2260_v42  ;;  %v1119_v40 = vadd.f32 %v3189_v32, %v3212_v14 }
 0x123   :  { %v1195_v52 = vadd.f32 %v2198_v48, %v1098_v45  ;;  %v3222_v53 = vadd.f32 %v2259_v41, %v1192_v47  ;;  %v1122_v47 = vadd.f32 %v3191_v38, %v3212_v14 }
 0x125   :  { %v3224_v54 = vadd.f32 %v2262_v49, %v1195_v52  ;;  %v2199_v55 = vpop.f32.mrb[24].mxu1  ;;  %v2263_v57 = vpop.f32.mrb[24].mxu0 }
 0x126   :  { %v2200_v59 = vpop.f32.mrb[25].mxu1  ;;  %v2264_v46 = vpop.f32.mrb[25].mxu0 }
 0x127   :  { %v2201_v61 = vadd.f32 %v2200_v59, %v2199_v55  ;;  %v2202_v0 = vpop.f32.mrb[26].mxu1  ;;  %v2265_v1 = vadd.f32 %v2264_v46, %v2263_v57  ;;  %v2266_v2 = vpop.f32.mrb[26].mxu0 }
 0x128   :  { %v2203_v3 = vpop.f32.mrb[27].mxu1  ;;  %v2267_v51 = vpop.f32.mrb[27].mxu0 }
 0x129   :  { %v1200_v7 = vadd.f32 %v2201_v61, %v1103_v60  ;;  %v2204_v8 = vadd.f32 %v2203_v3, %v2202_v0  ;;  %v2268_v9 = vadd.f32 %v2267_v51, %v2266_v2  ;;  %v1127_v0 = vadd.f32 %v3193_v44, %v3212_v14 }
 0x12b   :  { %v1203_v12 = vadd.f32 %v2204_v8, %v1106_v5  ;;  %v3228_v13 = vadd.f32 %v2265_v1, %v1200_v7  ;;  %v1130_v7 = vadd.f32 %v3195_v50, %v3212_v14 }
 0x12d   :  { %v3230_v15 = vadd.f32 %v2268_v9, %v1203_v12  ;;  %v2205_v16 = vpop.f32.mrb[28].mxu1  ;;  %v2269_v17 = vpop.f32.mrb[28].mxu0 }
 0x12e   :  { %v2206_v18 = vpop.f32.mrb[29].mxu1  ;;  %v2270_v58 = vpop.f32.mrb[29].mxu0 }
 0x12f   :  { %v2207_v20 = vadd.f32 %v2206_v18, %v2205_v16  ;;  %v2208_v21 = vpop.f32.mrb[30].mxu1  ;;  %v2271_v22 = vadd.f32 %v2270_v58, %v2269_v17  ;;  %v2272_v23 = vpop.f32.mrb[30].mxu0 }
 0x130   :  { %v2209_v63 = vpop.f32.mrb[31].mxu1  ;;  %v2273_v24 = vpop.f32.mrb[31].mxu0 }
 0x131   :  { %v1208_v26 = vadd.f32 %v2207_v20, %v1111_v19  ;;  %v2210_v27 = vadd.f32 %v2209_v63, %v2208_v21  ;;  %v2274_v28 = vadd.f32 %v2273_v24, %v2272_v23  ;;  %v1135_v21 = vadd.f32 %v3197_v56, %v3212_v14 }
 0x133   :  { %v1211_v31 = vadd.f32 %v2210_v27, %v1114_v25  ;;  %v3236_v33 = vadd.f32 %v2271_v22, %v1208_v26  ;;  %v1138_v26 = vadd.f32 %v3199_v62, %v3212_v14 }
 0x135   :  { %v3238_v35 = vadd.f32 %v2274_v28, %v1211_v31  ;;  %v2211_v34 = vpop.f32.mrb[32].mxu1  ;;  %v2275_v36 = vpop.f32.mrb[32].mxu0 }
 0x136   :  { %v2212_v6 = vpop.f32.mrb[33].mxu1  ;;  %v2276_v37 = vpop.f32.mrb[33].mxu0 }
 0x137   :  { %v2213_v41 = vadd.f32 %v2212_v6, %v2211_v34  ;;  %v2214_v42 = vpop.f32.mrb[34].mxu1  ;;  %v2277_v43 = vadd.f32 %v2276_v37, %v2275_v36  ;;  %v2278_v39 = vpop.f32.mrb[34].mxu0 }
 0x138   :  { %v2215_v11 = vpop.f32.mrb[35].mxu1  ;;  %v2279_v45 = vpop.f32.mrb[35].mxu0 }
 0x139   :  { %v1216_v48 = vadd.f32 %v2213_v41, %v1119_v40  ;;  %v2216_v49 = vadd.f32 %v2215_v11, %v2214_v42  ;;  %v2280_v52 = vadd.f32 %v2279_v45, %v2278_v39  ;;  %v1143_v42 = vadd.f32 %v3201_v4, %v3212_v14 }
 0x13b   :  { %v1219_v55 = vadd.f32 %v2216_v49, %v1122_v47  ;;  %v3244_v57 = vadd.f32 %v2277_v43, %v1216_v48  ;;  %v1146_v48 = vadd.f32 %v3205_v10, %v3212_v14 }
 0x13d   :  { %v3246_v59 = vadd.f32 %v2280_v52, %v1219_v55  ;;  %v2217_v46 = vpop.f32.mrb[36].mxu1  ;;  %v2281_v60 = vpop.f32.mrb[36].mxu0 }
 0x13e   :  { %v2218_v32 = vpop.f32.mrb[37].mxu1  ;;  %v2282_v61 = vpop.f32.mrb[37].mxu0 }
 0x13f   :  { %v2219_v1 = vadd.f32 %v2218_v32, %v2217_v46  ;;  %v2220_v2 = vpop.f32.mrb[38].mxu1  ;;  %v2283_v3 = vadd.f32 %v2282_v61, %v2281_v60  ;;  %v2284_v51 = vpop.f32.mrb[38].mxu0 }
 0x140   :  { %v2221_v38 = vpop.f32.mrb[39].mxu1  ;;  %v2285_v5 = vpop.f32.mrb[39].mxu0 }
 0x141   :  { %v1224_v8 = vadd.f32 %v2219_v1, %v1127_v0  ;;  %v2222_v9 = vadd.f32 %v2221_v38, %v2220_v2  ;;  %v2286_v12 = vadd.f32 %v2285_v5, %v2284_v51 }
 0x143   :  { %v1227_v16 = vadd.f32 %v2222_v9, %v1130_v7  ;;  %v3252_v17 = vadd.f32 %v2283_v3, %v1224_v8 }
 0x145   :  { %v3254_v18 = vadd.f32 %v2286_v12, %v1227_v16  ;;  %v2223_v58 = vpop.f32.mrb[40].mxu1  ;;  %v2287_v19 = vpop.f32.mrb[40].mxu0 }
 0x146   :  { %v2224_v44 = vpop.f32.mrb[41].mxu1  ;;  %v2288_v20 = vpop.f32.mrb[41].mxu0 }
 0x147   :  { %v2225_v22 = vadd.f32 %v2224_v44, %v2223_v58  ;;  %v2226_v23 = vpop.f32.mrb[42].mxu1  ;;  %v2289_v63 = vadd.f32 %v2288_v20, %v2287_v19  ;;  %v2290_v24 = vpop.f32.mrb[42].mxu0 }
 0x148   :  { %v2227_v50 = vpop.f32.mrb[43].mxu1  ;;  %v2291_v25 = vpop.f32.mrb[43].mxu0 }
 0x149   :  { %v1232_v27 = vadd.f32 %v2225_v22, %v1135_v21  ;;  %v2228_v28 = vadd.f32 %v2227_v50, %v2226_v23  ;;  %v2292_v31 = vadd.f32 %v2291_v25, %v2290_v24 }
 0x14b   :  { %v1235_v34 = vadd.f32 %v2228_v28, %v1138_v26  ;;  %v3260_v36 = vadd.f32 %v2289_v63, %v1232_v27 }
 0x14d   :  { %v3262_v6 = vadd.f32 %v2292_v31, %v1235_v34  ;;  %v2229_v37 = vpop.f32.mrb[44].mxu1  ;;  %v2293_v40 = vpop.f32.mrb[44].mxu0 }
 0x14e   :  { %v2230_v56 = vpop.f32.mrb[45].mxu1  ;;  %v2294_v41 = vpop.f32.mrb[45].mxu0 }
 0x14f   :  { %v2231_v43 = vadd.f32 %v2230_v56, %v2229_v37  ;;  %v2232_v39 = vpop.f32.mrb[46].mxu1  ;;  %v2295_v11 = vadd.f32 %v2294_v41, %v2293_v40  ;;  %v2296_v45 = vpop.f32.mrb[46].mxu0 }
 0x150   :  { %v2233_v62 = vpop.f32.mrb[47].mxu1  ;;  %v2297_v47 = vpop.f32.mrb[47].mxu0 }
 0x151   :  { %v1240_v49 = vadd.f32 %v2231_v43, %v1143_v42  ;;  %v2234_v52 = vadd.f32 %v2233_v62, %v2232_v39  ;;  %v2298_v55 = vadd.f32 %v2297_v47, %v2296_v45 }
 0x153   :  { %v1243_v46 = vadd.f32 %v2234_v52, %v1146_v48  ;;  %v3268_v60 = vadd.f32 %v2295_v11, %v1240_v49 }
 0x155   :  { %v3270_v32 = vadd.f32 %v2298_v55, %v1243_v46  ;;  %v2315_v61 = vpop.f32.mrb[48].mxu1 }
 0x156   :  { %v2316_v0 = vpop.f32.mrb[49].mxu1 }
 0x157   :  { %v2317_v4 = vadd.f32 %v2316_v0, %v2315_v61  ;;  %v2318_v1 = vpop.f32.mrb[50].mxu1 }
 0x158   :  { %v2319_v2 = vpop.f32.mrb[51].mxu1 }
 0x159   :  { %v2320_v3 = vadd.f32 %v2319_v2, %v2318_v1  ;;  %v1378_v51 = vadd.f32 %v2317_v4, %v3216_v29 }
 0x15b   :  { %v1381_v38 = vadd.f32 %v2320_v3, %v3218_v30 }
 0x15d   :  { %v2321_v5 = vpop.f32.mrb[52].mxu1 }
 0x15e   :  { %v2322_v10 = vpop.f32.mrb[53].mxu1 }
 0x15f   :  { %v2323_v14 = vadd.f32 %v2322_v10, %v2321_v5  ;;  %v2324_v7 = vpop.f32.mrb[54].mxu1 }
 0x160   :  { %v2325_v8 = vpop.f32.mrb[55].mxu1 }
 0x161   :  { %v2326_v9 = vadd.f32 %v2325_v8, %v2324_v7  ;;  %v1386_v12 = vadd.f32 %v2323_v14, %v3222_v53 }
 0x163   :  { %v1389_v16 = vadd.f32 %v2326_v9, %v3224_v54 }
 0x165   :  { %v2327_v58 = vpop.f32.mrb[56].mxu1 }
 0x166   :  { %v2328_v19 = vpop.f32.mrb[57].mxu1 }
 0x167   :  { %v2329_v44 = vadd.f32 %v2328_v19, %v2327_v58  ;;  %v2330_v20 = vpop.f32.mrb[58].mxu1 }
 0x168   :  { %v2331_v21 = vpop.f32.mrb[59].mxu1 }
 0x169   :  { %v2332_v22 = vadd.f32 %v2331_v21, %v2330_v20  ;;  %v1394_v29 = vadd.f32 %v2329_v44, %v3228_v13 }
 0x16b   :  { %v1397_v30 = vadd.f32 %v2332_v22, %v3230_v15 }
 0x16d   :  { %v2333_v23 = vpop.f32.mrb[60].mxu1 }
 0x16e   :  { %v2334_v63 = vpop.f32.mrb[61].mxu1 }
 0x16f   :  { %v2335_v24 = vadd.f32 %v2334_v63, %v2333_v23  ;;  %v2336_v50 = vpop.f32.mrb[62].mxu1 }
 0x170   :  { %v2337_v25 = vpop.f32.mrb[63].mxu1 }
 0x171   :  { %v2338_v26 = vadd.f32 %v2337_v25, %v2336_v50  ;;  %v1402_v53 = vadd.f32 %v2335_v24, %v3236_v33 }
 0x173   :  { %v1405_v54 = vadd.f32 %v2338_v26, %v3238_v35 }
 0x175   :  { %v2339_v27 = vpop.f32.mrb[64].mxu1  ;;  %v2433_v28 = vpop.f32.mrb[48].mxu0 }
 0x176   :  { %v2463_v31 = vadd.f32 %v2433_v28, %v1386_v12  ;;  %v2340_v34 = vpop.f32.mrb[65].mxu1  ;;  %v1684_v37 = vpop.f32.mrb[49].mxu0 }
 0x177   :  { %v2341_v40 = vadd.f32 %v2340_v34, %v2339_v27  ;;  %v2464_v56 = vadd.f32 %v1684_v37, %v1378_v51  ;;  %v2342_v13 = vpop.f32.mrb[66].mxu1  ;;  %v2434_v41 = vpop.f32.mrb[50].mxu0 }
 0x178   :  { %v2465_v15 = vadd.f32 %v2434_v41, %v1389_v16  ;;  %v2343_v42 = vpop.f32.mrb[67].mxu1  ;;  %v1687_v43 = vpop.f32.mrb[51].mxu0  ;;  %v1765_v62 = vmax.f32 %v2463_v31, 0.0 }
 0x179   :  { %v2344_v39 = vadd.f32 %v2343_v42, %v2342_v13  ;;  %v2466_v11 = vadd.f32 %v1687_v43, %v1381_v38  ;;  %v1410_v45 = vadd.f32 %v2341_v40, %v3244_v57  ;;  %v1763_v47 = vmax.f32 %v2464_v56, 0.0 }
 0x17a   :  { %v1766_v33 = vmax.f32 %v2465_v15, 0.0 }
 0x17b   :  { %v1764_v35 = vmax.f32 %v2466_v11, 0.0  ;;  %v1413_v48 = vadd.f32 %v2344_v39, %v3246_v59 }
 0x17c   :  { %v2068_v49 = vpack.c.bf16 %v1766_v33, %v1765_v62 }
 0x17d   :  { %v2063_v52 = vpack.c.bf16 %v1764_v35, %v1763_v47  ;;  %v2345_v55 = vpop.f32.mrb[68].mxu1  ;;  %v2437_v46 = vpop.f32.mrb[52].mxu0 }
 0x17e   :  { %2100 = vst [vmem:[%s3317_s5 + $0x8] sm:$0xff] %v2068_v49   ;;  %v2467_v61 = vadd.f32 %v2437_v46, %v1402_v53  ;;  %v2346_v0 = vpop.f32.mrb[69].mxu1  ;;  %v1700_v4 = vpop.f32.mrb[53].mxu0 }
 0x17f   :  { %2064 = vst [vmem:[%s3317_s5] sm:$0xff] %v2063_v52   ;;  %v2347_v57 = vadd.f32 %v2346_v0, %v2345_v55  ;;  %v2468_v1 = vadd.f32 %v1700_v4, %v1394_v29  ;;  %v2348_v2 = vpop.f32.mrb[70].mxu1  ;;  %v2438_v3 = vpop.f32.mrb[54].mxu0 }
 0x180   :  { %v2469_v59 = vadd.f32 %v2438_v3, %v1405_v54  ;;  %v2349_v51 = vpop.f32.mrb[71].mxu1  ;;  %v1703_v38 = vpop.f32.mrb[55].mxu0  ;;  %v1769_v7 = vmax.f32 %v2467_v61, 0.0 }
 0x181   :  { %v2350_v5 = vadd.f32 %v2349_v51, %v2348_v2  ;;  %v2470_v10 = vadd.f32 %v1703_v38, %v1397_v30  ;;  %v1418_v14 = vadd.f32 %v2347_v57, %v3252_v17  ;;  %v1767_v9 = vmax.f32 %v2468_v1, 0.0 }
 0x182   :  { %v1770_v8 = vmax.f32 %v2469_v59, 0.0 }
 0x183   :  { %v1768_v12 = vmax.f32 %v2470_v10, 0.0  ;;  %v1421_v16 = vadd.f32 %v2350_v5, %v3254_v18 }
 0x184   :  { %v2078_v58 = vpack.c.bf16 %v1770_v8, %v1769_v7 }
 0x185   :  { %v2073_v19 = vpack.c.bf16 %v1768_v12, %v1767_v9  ;;  %v2351_v44 = vpop.f32.mrb[72].mxu1  ;;  %v2441_v20 = vpop.f32.mrb[56].mxu0 }
 0x186   :  { %2102 = vst [vmem:[%s3317_s5 + $0x18] sm:$0xff] %v2078_v58   ;;  %v2471_v21 = vadd.f32 %v2441_v20, %v1418_v14  ;;  %v2352_v22 = vpop.f32.mrb[73].mxu1  ;;  %v1716_v29 = vpop.f32.mrb[57].mxu0 }
 0x187   :  { %2101 = vst [vmem:[%s3317_s5 + $0x10] sm:$0xff] %v2073_v19   ;;  %v2353_v17 = vadd.f32 %v2352_v22, %v2351_v44  ;;  %v2472_v30 = vadd.f32 %v1716_v29, %v1410_v45  ;;  %v2354_v23 = vpop.f32.mrb[74].mxu1  ;;  %v2442_v63 = vpop.f32.mrb[58].mxu0 }
 0x188   :  { %v2473_v18 = vadd.f32 %v2442_v63, %v1421_v16  ;;  %v2355_v24 = vpop.f32.mrb[75].mxu1  ;;  %v1719_v50 = vpop.f32.mrb[59].mxu0  ;;  %v1773_v54 = vmax.f32 %v2471_v21, 0.0 }
 0x189   :  { %v2356_v25 = vadd.f32 %v2355_v24, %v2354_v23  ;;  %v2474_v26 = vadd.f32 %v1719_v50, %v1413_v48  ;;  %v1426_v53 = vadd.f32 %v2353_v17, %v3260_v36  ;;  %v1771_v28 = vmax.f32 %v2472_v30, 0.0 }
 0x18a   :  { %v1774_v27 = vmax.f32 %v2473_v18, 0.0 }
 0x18b   :  { %v1772_v31 = vmax.f32 %v2474_v26, 0.0  ;;  %v1429_v34 = vadd.f32 %v2356_v25, %v3262_v6 }
 0x18c   :  { %v2088_v37 = vpack.c.bf16 %v1774_v27, %v1773_v54 }
 0x18d   :  { %v2083_v40 = vpack.c.bf16 %v1772_v31, %v1771_v28  ;;  %v2357_v56 = vpop.f32.mrb[76].mxu1  ;;  %v2445_v13 = vpop.f32.mrb[60].mxu0 }
 0x18e   :  { %2104 = vst [vmem:[%s3317_s5 + $0x28] sm:$0xff] %v2088_v37   ;;  %v2358_v41 = vpop.f32.mrb[77].mxu1  ;;  %v1732_v15 = vpop.f32.mrb[61].mxu0 }
 0x18f   :  { %2103 = vst [vmem:[%s3317_s5 + $0x20] sm:$0xff] %v2083_v40   ;;  %v2359_v36 = vadd.f32 %v2358_v41, %v2357_v56  ;;  %v2476_v42 = vadd.f32 %v1732_v15, %v1426_v53  ;;  %v2360_v43 = vpop.f32.mrb[78].mxu1  ;;  %v2446_v39 = vpop.f32.mrb[62].mxu0 }
 0x190   :  { %v2361_v11 = vpop.f32.mrb[79].mxu1  ;;  %v1735_v6 = vpop.f32.mrb[63].mxu0 }
 0x191   :  { %v1434_v45 = vadd.f32 %v2359_v36, %v3268_v60  ;;  %v2362_v62 = vadd.f32 %v2361_v11, %v2360_v43  ;;  %v2478_v33 = vadd.f32 %v1735_v6, %v1429_v34  ;;  %v1775_v35 = vmax.f32 %v2476_v42, 0.0 }
 0x193   :  { %v2475_v47 = vadd.f32 %v2445_v13, %v1434_v45  ;;  %v1437_v48 = vadd.f32 %v2362_v62, %v3270_v32  ;;  %v1776_v49 = vmax.f32 %v2478_v33, 0.0 }
 0x195   :  { %v2477_v52 = vadd.f32 %v2446_v39, %v1437_v48  ;;  %v2093_v55 = vpack.c.bf16 %v1776_v49, %v1775_v35  ;;  %v1777_v46 = vmax.f32 %v2475_v47, 0.0 }
 0x197   :  { %v1778_v61 = vmax.f32 %v2477_v52, 0.0  ;;  %2105 = vst [vmem:[%s3317_s5 + $0x30] sm:$0xff] %v2093_v55  }
 0x199   :  { %v2098_v0 = vpack.c.bf16 %v1778_v61, %v1777_v46 }
 0x19b   :  { %2106 = vst [vmem:[%s3317_s5 + $0x38] sm:$0xff] %v2098_v0  }

// kernel: _lambda_.16
= control target key start
LH: loop header
LB: loop body
LE: loop exit
PB: predicated region body
PF: predicated region fallthrough
CT: control target
= control target key end

     0   :  { %s2299_s1 = inlined_call_operand.vmem [shape: bf16[1152,256], index: 1, kind: input, shape index: {}]   ;;  %s2300_s0 = inlined_call_operand.vmem [shape: bf16[32,1152], index: 0, kind: input, shape index: {}]   ;;  %s2301_s2 = inlined_call_operand.vmem [shape: f32[1,256], index: 2, kind: input, shape index: {}]   ;;  %s2302_s3 = inlined_call_operand.vmem [shape: bf16[32,256], index: 3, kind: output, shape index: {}]  }
   0x1   :  { %v1535_v0 = vld [vmem:[%s2299_s1 + $0x4] ss:$8 sps:$4 sm:$0xff]   ;;  %v1539_v2 = vld [vmem:[%s2299_s1] ss:$8 sps:$4 sm:$0xff]   ;;  %v1541_v4 = vld [vmem:[%s2299_s1 + $0x14] ss:$8 sps:$4 sm:$0xff]  }
   0x2   :  { %v1537_v1 = vld [vmem:[%s2299_s1 + $0x204] ss:$8 sps:$4 sm:$0xff]   ;;  %1003 = vmatprep.subr.bf16.mxu1 %v1535_v0  ;;  %v1540_v3 = vld [vmem:[%s2299_s1 + $0x200] ss:$8 sps:$4 sm:$0xff]   ;;  %v1543_v5 = vld [vmem:[%s2299_s1 + $0x214] ss:$8 sps:$4 sm:$0xff]  }
   0x3   :  { %1109 = vmatprep.subr.bf16.mxu0 %v1537_v1  ;;  %1004 = vmatpush1.bf16.msra.mxu1 %v1539_v2  ;;  %v1545_v6 = vld [vmem:[%s2299_s1 + $0x10] ss:$8 sps:$4 sm:$0xff]   ;;  %v1547_v8 = vld [vmem:[%s2299_s1 + $0x24] ss:$8 sps:$4 sm:$0xff]   ;;  %v1551_v10 = vld [vmem:[%s2299_s1 + $0x20] ss:$8 sps:$4 sm:$0xff]  }
   0x4   :  { %1110 = vmatpush1.bf16.msra.mxu0 %v1540_v3  ;;  %1005 = vmatprep.subr.bf16.mxu1 %v1541_v4  ;;  %v1546_v7 = vld [vmem:[%s2299_s1 + $0x210] ss:$8 sps:$4 sm:$0xff]   ;;  %v1549_v9 = vld [vmem:[%s2299_s1 + $0x224] ss:$8 sps:$4 sm:$0xff]   ;;  %v1552_v11 = vld [vmem:[%s2299_s1 + $0x220] ss:$8 sps:$4 sm:$0xff]  }
   0x5   :  { %1111 = vmatprep.subr.bf16.mxu0 %v1543_v5  ;;  %v1553_v12 = vld [vmem:[%s2299_s1 + $0x34] ss:$8 sps:$4 sm:$0xff]   ;;  %v1557_v14 = vld [vmem:[%s2299_s1 + $0x30] ss:$8 sps:$4 sm:$0xff]   ;;  %v1559_v16 = vld [vmem:[%s2299_s1 + $0x44] ss:$8 sps:$4 sm:$0xff]  }
   0x6   :  { %v1555_v13 = vld [vmem:[%s2299_s1 + $0x234] ss:$8 sps:$4 sm:$0xff]   ;;  %v1558_v15 = vld [vmem:[%s2299_s1 + $0x230] ss:$8 sps:$4 sm:$0xff]   ;;  %v1561_v17 = vld [vmem:[%s2299_s1 + $0x244] ss:$8 sps:$4 sm:$0xff]  }
   0x7   :  { %1006 = vmatpush1.bf16.msra.mxu1 %v1545_v6  ;;  %v1563_v18 = vld [vmem:[%s2299_s1 + $0x40] ss:$8 sps:$4 sm:$0xff]   ;;  %v1565_v20 = vld [vmem:[%s2299_s1 + $0x54] ss:$8 sps:$4 sm:$0xff]   ;;  %v1569_v22 = vld [vmem:[%s2299_s1 + $0x50] ss:$8 sps:$4 sm:$0xff]  }
   0x8   :  { %1112 = vmatpush1.bf16.msra.mxu0 %v1546_v7  ;;  %1007 = vmatprep.subr.bf16.mxu1 %v1547_v8  ;;  %v1564_v19 = vld [vmem:[%s2299_s1 + $0x240] ss:$8 sps:$4 sm:$0xff]   ;;  %v1567_v21 = vld [vmem:[%s2299_s1 + $0x254] ss:$8 sps:$4 sm:$0xff]   ;;  %v1570_v23 = vld [vmem:[%s2299_s1 + $0x250] ss:$8 sps:$4 sm:$0xff]  }
   0x9   :  { %1113 = vmatprep.subr.bf16.mxu0 %v1549_v9  ;;  %v1571_v24 = vld [vmem:[%s2299_s1 + $0x64] ss:$8 sps:$4 sm:$0xff]   ;;  %v1575_v26 = vld [vmem:[%s2299_s1 + $0x60] ss:$8 sps:$4 sm:$0xff]   ;;  %v1577_v28 = vld [vmem:[%s2299_s1 + $0x74] ss:$8 sps:$4 sm:$0xff]  }
   0xa   :  { %v1573_v25 = vld [vmem:[%s2299_s1 + $0x264] ss:$8 sps:$4 sm:$0xff]   ;;  %v1576_v27 = vld [vmem:[%s2299_s1 + $0x260] ss:$8 sps:$4 sm:$0xff]   ;;  %v1579_v29 = vld [vmem:[%s2299_s1 + $0x274] ss:$8 sps:$4 sm:$0xff]  }
   0xb   :  { %1008 = vmatpush1.bf16.msra.mxu1 %v1551_v10  ;;  %v1581_v30 = vld [vmem:[%s2299_s1 + $0x70] ss:$8 sps:$4 sm:$0xff]   ;;  %v1583_v32 = vld [vmem:[%s2299_s1 + $0x84] ss:$8 sps:$4 sm:$0xff]   ;;  %v1587_v34 = vld [vmem:[%s2299_s1 + $0x80] ss:$8 sps:$4 sm:$0xff]  }
   0xc   :  { %1114 = vmatpush1.bf16.msra.mxu0 %v1552_v11  ;;  %1009 = vmatprep.subr.bf16.mxu1 %v1553_v12  ;;  %v1582_v31 = vld [vmem:[%s2299_s1 + $0x270] ss:$8 sps:$4 sm:$0xff]   ;;  %v1585_v33 = vld [vmem:[%s2299_s1 + $0x284] ss:$8 sps:$4 sm:$0xff]   ;;  %v1588_v35 = vld [vmem:[%s2299_s1 + $0x280] ss:$8 sps:$4 sm:$0xff]  }
   0xd   :  { %1115 = vmatprep.subr.bf16.mxu0 %v1555_v13  ;;  %v1589_v36 = vld [vmem:[%s2299_s1 + $0x94] ss:$8 sps:$4 sm:$0xff]   ;;  %v1593_v38 = vld [vmem:[%s2299_s1 + $0x90] ss:$8 sps:$4 sm:$0xff]   ;;  %v1595_v40 = vld [vmem:[%s2299_s1 + $0xa4] ss:$8 sps:$4 sm:$0xff]  }
   0xe   :  { %v1591_v37 = vld [vmem:[%s2299_s1 + $0x294] ss:$8 sps:$4 sm:$0xff]   ;;  %v1594_v39 = vld [vmem:[%s2299_s1 + $0x290] ss:$8 sps:$4 sm:$0xff]   ;;  %v1597_v41 = vld [vmem:[%s2299_s1 + $0x2a4] ss:$8 sps:$4 sm:$0xff]  }
   0xf   :  { %1010 = vmatpush1.bf16.msra.mxu1 %v1557_v14  ;;  %v1599_v42 = vld [vmem:[%s2299_s1 + $0xa0] ss:$8 sps:$4 sm:$0xff]   ;;  %v1601_v44 = vld [vmem:[%s2299_s1 + $0xb4] ss:$8 sps:$4 sm:$0xff]   ;;  %v1605_v46 = vld [vmem:[%s2299_s1 + $0xb0] ss:$8 sps:$4 sm:$0xff]  }
  0x10   :  { %1116 = vmatpush1.bf16.msra.mxu0 %v1558_v15  ;;  %1011 = vmatprep.subr.bf16.mxu1 %v1559_v16  ;;  %v1600_v43 = vld [vmem:[%s2299_s1 + $0x2a0] ss:$8 sps:$4 sm:$0xff]   ;;  %v1603_v45 = vld [vmem:[%s2299_s1 + $0x2b4] ss:$8 sps:$4 sm:$0xff]   ;;  %v1606_v47 = vld [vmem:[%s2299_s1 + $0x2b0] ss:$8 sps:$4 sm:$0xff]  }
  0x11   :  { %1117 = vmatprep.subr.bf16.mxu0 %v1561_v17  ;;  %v1633_v48 = vld [vmem:[%s2300_s0 + $0x4] ss:$36 sps:$4 sm:$0xff]   ;;  %v1639_v51 = vld [vmem:[%s2300_s0 + $0x14] ss:$36 sps:$4 sm:$0xff]  }
  0x12   :  { %v1607_v49 = vld [vmem:[%s2299_s1 + $0xc4] ss:$8 sps:$4 sm:$0xff]   ;;  %1035 = vmatprep.mubr.bf16.mxu1 %v1633_v48  ;;  %v1611_v52 = vld [vmem:[%s2299_s1 + $0xc0] ss:$8 sps:$4 sm:$0xff]   ;;  %v1613_v54 = vld [vmem:[%s2299_s1 + $0xd4] ss:$8 sps:$4 sm:$0xff]   ;;  %1141 = vmatprep.mubr.bf16.mxu0 %v1639_v51 }
  0x13   :  { %1012 = vmatpush1.bf16.msra.mxu1 %v1563_v18  ;;  %v1609_v50 = vld [vmem:[%s2299_s1 + $0x2c4] ss:$8 sps:$4 sm:$0xff]   ;;  %v1612_v53 = vld [vmem:[%s2299_s1 + $0x2c0] ss:$8 sps:$4 sm:$0xff]   ;;  %v1615_v55 = vld [vmem:[%s2299_s1 + $0x2d4] ss:$8 sps:$4 sm:$0xff]  }
  0x14   :  { %1118 = vmatpush1.bf16.msra.mxu0 %v1564_v19  ;;  %1013 = vmatprep.subr.bf16.mxu1 %v1565_v20  ;;  %v1617_v56 = vld [vmem:[%s2299_s1 + $0xd0] ss:$8 sps:$4 sm:$0xff]   ;;  %v1619_v58 = vld [vmem:[%s2299_s1 + $0xe4] ss:$8 sps:$4 sm:$0xff]   ;;  %v1623_v60 = vld [vmem:[%s2299_s1 + $0xe0] ss:$8 sps:$4 sm:$0xff]  }
  0x15   :  { %1119 = vmatprep.subr.bf16.mxu0 %v1567_v21  ;;  %v1618_v57 = vld [vmem:[%s2299_s1 + $0x2d0] ss:$8 sps:$4 sm:$0xff]   ;;  %v1621_v59 = vld [vmem:[%s2299_s1 + $0x2e4] ss:$8 sps:$4 sm:$0xff]   ;;  %v1624_v61 = vld [vmem:[%s2299_s1 + $0x2e0] ss:$8 sps:$4 sm:$0xff]  }
  0x16   :  { %v1625_v62 = vld [vmem:[%s2299_s1 + $0xf4] ss:$8 sps:$4 sm:$0xff]   ;;  %v1629_v0 = vld [vmem:[%s2299_s1 + $0xf0] ss:$8 sps:$4 sm:$0xff]   ;;  %v1636_v2 = vld [vmem:[%s2299_s1 + $0x104] ss:$8 sps:$4 sm:$0xff]  }
  0x17   :  { %1014 = vmatpush1.bf16.msra.mxu1 %v1569_v22  ;;  %v1627_v63 = vld [vmem:[%s2299_s1 + $0x2f4] ss:$8 sps:$4 sm:$0xff]   ;;  %v1630_v1 = vld [vmem:[%s2299_s1 + $0x2f0] ss:$8 sps:$4 sm:$0xff]   ;;  %v1642_v3 = vld [vmem:[%s2299_s1 + $0x304] ss:$8 sps:$4 sm:$0xff]  }
  0x18   :  { %1120 = vmatpush1.bf16.msra.mxu0 %v1570_v23  ;;  %1015 = vmatprep.subr.bf16.mxu1 %v1571_v24  ;;  %v1631_v4 = vld [vmem:[%s2300_s0] ss:$36 sps:$4 sm:$0xff]   ;;  %v1637_v6 = vld [vmem:[%s2300_s0 + $0x10] ss:$36 sps:$4 sm:$0xff]  }
  0x19   :  { %1121 = vmatprep.subr.bf16.mxu0 %v1573_v25  ;;  %v1634_v5 = vld [vmem:[%s2299_s1 + $0x100] ss:$8 sps:$4 sm:$0xff]   ;;  %v1645_v8 = vld [vmem:[%s2299_s1 + $0x114] ss:$8 sps:$4 sm:$0xff]   ;;  %v1643_v10 = vld [vmem:[%s2299_s1 + $0x110] ss:$8 sps:$4 sm:$0xff]  }
  0x1a   :  { %v1640_v7 = vld [vmem:[%s2299_s1 + $0x300] ss:$8 sps:$4 sm:$0xff]   ;;  %v1648_v9 = vld [vmem:[%s2299_s1 + $0x314] ss:$8 sps:$4 sm:$0xff]   ;;  %v1646_v11 = vld [vmem:[%s2299_s1 + $0x310] ss:$8 sps:$4 sm:$0xff]  }
  0x1b   :  { %1016 = vmatpush1.bf16.msra.mxu1 %v1575_v26  ;;  %v1651_v12 = vld [vmem:[%s2299_s1 + $0x124] ss:$8 sps:$4 sm:$0xff]   ;;  %v1649_v14 = vld [vmem:[%s2299_s1 + $0x120] ss:$8 sps:$4 sm:$0xff]   ;;  %v1657_v16 = vld [vmem:[%s2299_s1 + $0x134] ss:$8 sps:$4 sm:$0xff]  }
  0x1c   :  { %1122 = vmatpush1.bf16.msra.mxu0 %v1576_v27  ;;  %1017 = vmatprep.subr.bf16.mxu1 %v1577_v28  ;;  %v1654_v13 = vld [vmem:[%s2299_s1 + $0x324] ss:$8 sps:$4 sm:$0xff]   ;;  %v1652_v15 = vld [vmem:[%s2299_s1 + $0x320] ss:$8 sps:$4 sm:$0xff]   ;;  %v1660_v17 = vld [vmem:[%s2299_s1 + $0x334] ss:$8 sps:$4 sm:$0xff]  }
  0x1d   :  { %1123 = vmatprep.subr.bf16.mxu0 %v1579_v29  ;;  %v1655_v18 = vld [vmem:[%s2299_s1 + $0x130] ss:$8 sps:$4 sm:$0xff]   ;;  %v1663_v20 = vld [vmem:[%s2299_s1 + $0x144] ss:$8 sps:$4 sm:$0xff]   ;;  %v1661_v22 = vld [vmem:[%s2299_s1 + $0x140] ss:$8 sps:$4 sm:$0xff]  }
  0x1e   :  { %v1658_v19 = vld [vmem:[%s2299_s1 + $0x330] ss:$8 sps:$4 sm:$0xff]   ;;  %v1666_v21 = vld [vmem:[%s2299_s1 + $0x344] ss:$8 sps:$4 sm:$0xff]   ;;  %v1664_v23 = vld [vmem:[%s2299_s1 + $0x340] ss:$8 sps:$4 sm:$0xff]  }
  0x1f   :  { %1018 = vmatpush1.bf16.msra.mxu1 %v1581_v30  ;;  %v1669_v24 = vld [vmem:[%s2299_s1 + $0x154] ss:$8 sps:$4 sm:$0xff]   ;;  %v1667_v26 = vld [vmem:[%s2299_s1 + $0x150] ss:$8 sps:$4 sm:$0xff]   ;;  %v1675_v28 = vld [vmem:[%s2299_s1 + $0x164] ss:$8 sps:$4 sm:$0xff]  }
  0x20   :  { %1124 = vmatpush1.bf16.msra.mxu0 %v1582_v31  ;;  %1019 = vmatprep.subr.bf16.mxu1 %v1583_v32  ;;  %v1672_v25 = vld [vmem:[%s2299_s1 + $0x354] ss:$8 sps:$4 sm:$0xff]   ;;  %v1670_v27 = vld [vmem:[%s2299_s1 + $0x350] ss:$8 sps:$4 sm:$0xff]   ;;  %v1725_v31 = vld [vmem:[%s2300_s0 + $0x48] ss:$36 sps:$4 sm:$0xff]  }
  0x21   :  { %1125 = vmatprep.subr.bf16.mxu0 %v1585_v33  ;;  %v1721_v29 = vld [vmem:[%s2300_s0 + $0x4c] ss:$36 sps:$4 sm:$0xff]   ;;  %v1723_v30 = vld [vmem:[%s2300_s0 + $0x5c] ss:$36 sps:$4 sm:$0xff]  }
  0x22   :  { %v1678_v32 = vld [vmem:[%s2299_s1 + $0x364] ss:$8 sps:$4 sm:$0xff]   ;;  %v1729_v33 = vld [vmem:[%s2300_s0 + $0x58] ss:$36 sps:$4 sm:$0xff]  }
  0x23   :  { %1020 = vmatpush1.bf16.msra.mxu1 %v1587_v34  ;;  %v1673_v34 = vld [vmem:[%s2299_s1 + $0x160] ss:$8 sps:$4 sm:$0xff]   ;;  %v1691_v48 = vld [vmem:[%s2299_s1 + $0x190] ss:$8 sps:$4 sm:$0xff]   ;;  %v1702_v51 = vld [vmem:[%s2299_s1 + $0x3a4] ss:$8 sps:$4 sm:$0xff]  }
  0x24   :  { %1126 = vmatpush1.bf16.msra.mxu0 %v1588_v35  ;;  %1021 = vmatprep.subr.bf16.mxu1 %v1589_v36  ;;  %v1676_v35 = vld [vmem:[%s2299_s1 + $0x360] ss:$8 sps:$4 sm:$0xff]   ;;  %v1681_v36 = vld [vmem:[%s2299_s1 + $0x174] ss:$8 sps:$4 sm:$0xff]  }
  0x25   :  { %1127 = vmatprep.subr.bf16.mxu0 %v1591_v37  ;;  %v1684_v37 = vld [vmem:[%s2299_s1 + $0x374] ss:$8 sps:$4 sm:$0xff]  }
  0x27   :  { %1022 = vmatpush1.bf16.msra.mxu1 %v1593_v38  ;;  %v1679_v38 = vld [vmem:[%s2299_s1 + $0x170] ss:$8 sps:$4 sm:$0xff]  }
  0x28   :  { %1128 = vmatpush1.bf16.msra.mxu0 %v1594_v39  ;;  %1023 = vmatprep.subr.bf16.mxu1 %v1595_v40  ;;  %v1682_v39 = vld [vmem:[%s2299_s1 + $0x370] ss:$8 sps:$4 sm:$0xff]   ;;  %v1687_v40 = vld [vmem:[%s2299_s1 + $0x184] ss:$8 sps:$4 sm:$0xff]  }
  0x29   :  { %1129 = vmatprep.subr.bf16.mxu0 %v1597_v41  ;;  %v1741_v41 = vld [vmem:[%s2300_s0 + $0xc] ss:$36 sps:$4 sm:$0xff]  }
  0x2b   :  { %1024 = vmatpush1.bf16.msra.mxu1 %v1599_v42  ;;  %v1690_v42 = vld [vmem:[%s2299_s1 + $0x384] ss:$8 sps:$4 sm:$0xff]  }
  0x2c   :  { %1130 = vmatpush1.bf16.msra.mxu0 %v1600_v43  ;;  %1025 = vmatprep.subr.bf16.mxu1 %v1601_v44  ;;  %v1744_v43 = vld [vmem:[%s2300_s0 + $0x1c] ss:$36 sps:$4 sm:$0xff]  }
  0x2d   :  { %1131 = vmatprep.subr.bf16.mxu0 %v1603_v45  ;;  %v1685_v44 = vld [vmem:[%s2299_s1 + $0x180] ss:$8 sps:$4 sm:$0xff]  }
  0x2e   :  { %v1688_v45 = vld [vmem:[%s2299_s1 + $0x380] ss:$8 sps:$4 sm:$0xff]  }
  0x2f   :  { %1026 = vmatpush1.bf16.msra.mxu1 %v1605_v46  ;;  %v1693_v46 = vld [vmem:[%s2299_s1 + $0x194] ss:$8 sps:$4 sm:$0xff]  }
  0x30   :  { %1132 = vmatpush1.bf16.msra.mxu0 %v1606_v47  ;;  %1027 = vmatprep.subr.bf16.mxu1 %v1607_v49  ;;  %v1696_v47 = vld [vmem:[%s2299_s1 + $0x394] ss:$8 sps:$4 sm:$0xff]   ;;  %v1694_v49 = vld [vmem:[%s2299_s1 + $0x390] ss:$8 sps:$4 sm:$0xff]  }
  0x31   :  { %1133 = vmatprep.subr.bf16.mxu0 %v1609_v50  ;;  %v1699_v50 = vld [vmem:[%s2299_s1 + $0x1a4] ss:$8 sps:$4 sm:$0xff]  }
  0x33   :  { %1028 = vmatpush1.bf16.msra.mxu1 %v1611_v52  ;;  %v1697_v52 = vld [vmem:[%s2299_s1 + $0x1a0] ss:$8 sps:$4 sm:$0xff]  }
  0x34   :  { %1134 = vmatpush1.bf16.msra.mxu0 %v1612_v53  ;;  %1029 = vmatprep.subr.bf16.mxu1 %v1613_v54  ;;  %v1700_v53 = vld [vmem:[%s2299_s1 + $0x3a0] ss:$8 sps:$4 sm:$0xff]   ;;  %v1705_v54 = vld [vmem:[%s2299_s1 + $0x1b4] ss:$8 sps:$4 sm:$0xff]  }
  0x35   :  { %1135 = vmatprep.subr.bf16.mxu0 %v1615_v55  ;;  %v1708_v55 = vld [vmem:[%s2299_s1 + $0x3b4] ss:$8 sps:$4 sm:$0xff]  }
  0x37   :  { %1030 = vmatpush1.bf16.msra.mxu1 %v1617_v56  ;;  %v1703_v56 = vld [vmem:[%s2299_s1 + $0x1b0] ss:$8 sps:$4 sm:$0xff]  }
  0x38   :  { %1136 = vmatpush1.bf16.msra.mxu0 %v1618_v57  ;;  %1031 = vmatprep.subr.bf16.mxu1 %v1619_v58  ;;  %v1706_v57 = vld [vmem:[%s2299_s1 + $0x3b0] ss:$8 sps:$4 sm:$0xff]   ;;  %v1711_v58 = vld [vmem:[%s2299_s1 + $0x1c4] ss:$8 sps:$4 sm:$0xff]  }
  0x39   :  { %1137 = vmatprep.subr.bf16.mxu0 %v1621_v59  ;;  %v1714_v59 = vld [vmem:[%s2299_s1 + $0x3c4] ss:$8 sps:$4 sm:$0xff]  }
  0x3b   :  { %1032 = vmatpush1.bf16.msra.mxu1 %v1623_v60  ;;  %v1709_v60 = vld [vmem:[%s2299_s1 + $0x1c0] ss:$8 sps:$4 sm:$0xff]  }
  0x3c   :  { %1138 = vmatpush1.bf16.msra.mxu0 %v1624_v61  ;;  %1033 = vmatprep.subr.bf16.mxu1 %v1625_v62  ;;  %v1712_v61 = vld [vmem:[%s2299_s1 + $0x3c0] ss:$8 sps:$4 sm:$0xff]   ;;  %v1717_v62 = vld [vmem:[%s2299_s1 + $0x1d4] ss:$8 sps:$4 sm:$0xff]  }
  0x3d   :  { %1139 = vmatprep.subr.bf16.mxu0 %v1627_v63  ;;  %v1720_v63 = vld [vmem:[%s2299_s1 + $0x3d4] ss:$8 sps:$4 sm:$0xff]  }
  0x3f   :  { %1034 = vmatpush1.bf16.msra.mxu1 %v1629_v0  ;;  %v1715_v0 = vld [vmem:[%s2299_s1 + $0x1d0] ss:$8 sps:$4 sm:$0xff]  }
  0x40   :  { %1140 = vmatpush1.bf16.msra.mxu0 %v1630_v1  ;;  %1056 = vmatprep.subr.bf16.mxu1 %v1636_v2  ;;  %v1718_v1 = vld [vmem:[%s2299_s1 + $0x3d0] ss:$8 sps:$4 sm:$0xff]   ;;  %v1728_v2 = vld [vmem:[%s2299_s1 + $0x1e4] ss:$8 sps:$4 sm:$0xff]  }
  0x41   :  { %1162 = vmatprep.subr.bf16.mxu0 %v1642_v3  ;;  %v1732_v3 = vld [vmem:[%s2299_s1 + $0x3e4] ss:$8 sps:$4 sm:$0xff]  }
  0x42   :  { %1036 = vmatmul.mubr.bf16.vlgmr.msra.gmra.mrb[0].mxu1 %v1631_v4  ;;  %v1726_v4 = vld [vmem:[%s2299_s1 + $0x1e0] ss:$8 sps:$4 sm:$0xff]  }
  0x43   :  { %1142 = vmatmul.mubr.bf16.vlgmr.msra.gmra.mrb[0].mxu0 %v1637_v6  ;;  %1057 = vmatpush1.bf16.msra.mxu1 %v1634_v5  ;;  %v1730_v5 = vld [vmem:[%s2299_s1 + $0x3e0] ss:$8 sps:$4 sm:$0xff]   ;;  %v1735_v6 = vld [vmem:[%s2299_s1 + $0x1f4] ss:$8 sps:$4 sm:$0xff]  }
  0x44   :  { %1163 = vmatpush1.bf16.msra.mxu0 %v1640_v7  ;;  %1058 = vmatprep.subr.bf16.mxu1 %v1645_v8  ;;  %v1738_v7 = vld [vmem:[%s2299_s1 + $0x3f4] ss:$8 sps:$4 sm:$0xff]   ;;  %v1733_v8 = vld [vmem:[%s2299_s1 + $0x1f0] ss:$8 sps:$4 sm:$0xff]  }
  0x45   :  { %1164 = vmatprep.subr.bf16.mxu0 %v1648_v9  ;;  %1045 = vmatprep.mubr.bf16.mxu1 %v1721_v29  ;;  %v1736_v9 = vld [vmem:[%s2299_s1 + $0x3f0] ss:$8 sps:$4 sm:$0xff]   ;;  %v1771_v29 = vld [vmem:[%s2299_s1 + $0x464] ss:$8 sps:$4 sm:$0xff]  }
  0x46   :  { %1151 = vmatprep.mubr.bf16.mxu0 %v1723_v30  ;;  %v1769_v30 = vld [vmem:[%s2299_s1 + $0x460] ss:$8 sps:$4 sm:$0xff]  }
  0x47   :  { %1059 = vmatpush1.bf16.msra.mxu1 %v1643_v10  ;;  %v1747_v10 = vld [vmem:[%s2299_s1 + $0x404] ss:$8 sps:$4 sm:$0xff]  }
  0x48   :  { %1165 = vmatpush1.bf16.msra.mxu0 %v1646_v11  ;;  %1060 = vmatprep.subr.bf16.mxu1 %v1651_v12  ;;  %v1739_v11 = vld [vmem:[%s2300_s0 + $0x8] ss:$36 sps:$4 sm:$0xff]   ;;  %v1742_v12 = vld [vmem:[%s2300_s0 + $0x18] ss:$36 sps:$4 sm:$0xff]  }
  0x49   :  { %1166 = vmatprep.subr.bf16.mxu0 %v1654_v13  ;;  %v1745_v13 = vld [vmem:[%s2299_s1 + $0x400] ss:$8 sps:$4 sm:$0xff]  }
  0x4a   :  { %1046 = vmatmul.mubr.bf16.gmra.mrb[4].mxu1 %v1725_v31  ;;  %v1774_v31 = vld [vmem:[%s2299_s1 + $0x474] ss:$8 sps:$4 sm:$0xff]  }
  0x4b   :  { %1061 = vmatpush1.bf16.msra.mxu1 %v1649_v14  ;;  %1152 = vmatmul.mubr.bf16.gmra.mrb[4].mxu0 %v1729_v33  ;;  %v1750_v14 = vld [vmem:[%s2299_s1 + $0x414] ss:$8 sps:$4 sm:$0xff]   ;;  %v1775_v33 = vld [vmem:[%s2300_s0 + $0x20] ss:$36 sps:$4 sm:$0xff]  }
  0x4c   :  { %1167 = vmatpush1.bf16.msra.mxu0 %v1652_v15  ;;  %1062 = vmatprep.subr.bf16.mxu1 %v1657_v16  ;;  %v1751_v15 = vld [vmem:[%s2300_s0 + $0x54] ss:$36 sps:$4 sm:$0xff]   ;;  %v1753_v16 = vld [vmem:[%s2300_s0 + $0x64] ss:$36 sps:$4 sm:$0xff]  }
  0x4d   :  { %1168 = vmatprep.subr.bf16.mxu0 %v1660_v17  ;;  %1088 = vmatprep.mubr.bf16.mxu1 %v1741_v41  ;;  %v1748_v17 = vld [vmem:[%s2299_s1 + $0x410] ss:$8 sps:$4 sm:$0xff]  }
  0x4e   :  { %1194 = vmatprep.mubr.bf16.mxu0 %v1744_v43 }
  0x4f   :  { %1063 = vmatpush1.bf16.msra.mxu1 %v1655_v18  ;;  %v1759_v18 = vld [vmem:[%s2299_s1 + $0x424] ss:$8 sps:$4 sm:$0xff]  }
  0x50   :  { %1169 = vmatpush1.bf16.msra.mxu0 %v1658_v19  ;;  %1064 = vmatprep.subr.bf16.mxu1 %v1663_v20  ;;  %v1755_v19 = vld [vmem:[%s2300_s0 + $0x50] ss:$36 sps:$4 sm:$0xff]   ;;  %v1756_v20 = vld [vmem:[%s2300_s0 + $0x60] ss:$36 sps:$4 sm:$0xff]  }
  0x51   :  { %1170 = vmatprep.subr.bf16.mxu0 %v1666_v21  ;;  %v1757_v21 = vld [vmem:[%s2299_s1 + $0x420] ss:$8 sps:$4 sm:$0xff]  }
  0x53   :  { %1065 = vmatpush1.bf16.msra.mxu1 %v1661_v22  ;;  %v1762_v22 = vld [vmem:[%s2299_s1 + $0x434] ss:$8 sps:$4 sm:$0xff]  }
  0x54   :  { %1171 = vmatpush1.bf16.msra.mxu0 %v1664_v23  ;;  %1066 = vmatprep.subr.bf16.mxu1 %v1669_v24  ;;  %v1760_v23 = vld [vmem:[%s2299_s1 + $0x430] ss:$8 sps:$4 sm:$0xff]   ;;  %v1765_v24 = vld [vmem:[%s2299_s1 + $0x444] ss:$8 sps:$4 sm:$0xff]  }
  0x55   :  { %1172 = vmatprep.subr.bf16.mxu0 %v1672_v25  ;;  %v1777_v25 = vmov 0  }
  0x57   :  { %1067 = vmatpush1.bf16.msra.mxu1 %v1667_v26  ;;  %v1763_v26 = vld [vmem:[%s2299_s1 + $0x440] ss:$8 sps:$4 sm:$0xff]  }
  0x58   :  { %1173 = vmatpush1.bf16.msra.mxu0 %v1670_v27  ;;  %1068 = vmatprep.subr.bf16.mxu1 %v1675_v28  ;;  %v1768_v27 = vld [vmem:[%s2299_s1 + $0x454] ss:$8 sps:$4 sm:$0xff]   ;;  %v1766_v28 = vld [vmem:[%s2299_s1 + $0x450] ss:$8 sps:$4 sm:$0xff]  }
  0x59   :  { %1174 = vmatprep.subr.bf16.mxu0 %v1678_v32  ;;  %v1772_v32 = vld [vmem:[%s2299_s1 + $0x470] ss:$8 sps:$4 sm:$0xff]  }
  0x5b   :  { %1069 = vmatpush1.bf16.msra.mxu1 %v1673_v34  ;;  %v1776_v34 = vld [vmem:[%s2300_s0 + $0x68] ss:$36 sps:$4 sm:$0xff]  }
  0x5c   :  { %1175 = vmatpush1.bf16.msra.mxu0 %v1676_v35  ;;  %1070 = vmatprep.subr.bf16.mxu1 %v1681_v36  ;;  %v181_v35 = vlaneseq }
  0x5d   :  { %1176 = vmatprep.subr.bf16.mxu0 %v1684_v37 }
  0x5e   :  { %v182_v36 = vshrl.u32 %v181_v35, 7 }
  0x5f   :  { %1071 = vmatpush1.bf16.msra.mxu1 %v1679_v38 }
  0x60   :  { %1177 = vmatpush1.bf16.msra.mxu0 %v1682_v39  ;;  %1072 = vmatprep.subr.bf16.mxu1 %v1687_v40  ;;  %v183_v40 = vsub.s32 0, %v182_v36  ;;  %v187_v43 = vsub.s32 1, %v182_v36 }
  0x61   :  { %1178 = vmatprep.subr.bf16.mxu0 %v1690_v42  ;;  %v179_v42 = vld [vmem:[%s2301_s2] sm:$0x3] }
  0x63   :  { %1073 = vmatpush1.bf16.msra.mxu1 %v1685_v44  ;;  %v184_v44 = vrot.slane %v179_v42, %v183_v40 }
  0x64   :  { %1179 = vmatpush1.bf16.msra.mxu0 %v1688_v45  ;;  %1074 = vmatprep.subr.bf16.mxu1 %v1693_v46  ;;  %v188_v45 = vrot.slane %v179_v42, %v187_v43 }
  0x65   :  { %1180 = vmatprep.subr.bf16.mxu0 %v1696_v47 }
  0x67   :  { %1075 = vmatpush1.bf16.msra.mxu1 %v1691_v48 }
  0x68   :  { %1181 = vmatpush1.bf16.msra.mxu0 %v1694_v49  ;;  %1076 = vmatprep.subr.bf16.mxu1 %v1699_v50 }
  0x69   :  { %1182 = vmatprep.subr.bf16.mxu0 %v1702_v51 }
  0x6b   :  { %1077 = vmatpush1.bf16.msra.mxu1 %v1697_v52 }
  0x6c   :  { %1183 = vmatpush1.bf16.msra.mxu0 %v1700_v53  ;;  %1078 = vmatprep.subr.bf16.mxu1 %v1705_v54 }
  0x6d   :  { %1184 = vmatprep.subr.bf16.mxu0 %v1708_v55 }
  0x6f   :  { %1079 = vmatpush1.bf16.msra.mxu1 %v1703_v56 }
  0x70   :  { %1185 = vmatpush1.bf16.msra.mxu0 %v1706_v57  ;;  %1080 = vmatprep.subr.bf16.mxu1 %v1711_v58 }
  0x71   :  { %1186 = vmatprep.subr.bf16.mxu0 %v1714_v59 }
  0x73   :  { %1081 = vmatpush1.bf16.msra.mxu1 %v1709_v60 }
  0x74   :  { %1187 = vmatpush1.bf16.msra.mxu0 %v1712_v61  ;;  %1082 = vmatprep.subr.bf16.mxu1 %v1717_v62 }
  0x75   :  { %1188 = vmatprep.subr.bf16.mxu0 %v1720_v63 }
  0x77   :  { %1083 = vmatpush1.bf16.msra.mxu1 %v1715_v0 }
  0x78   :  { %1189 = vmatpush1.bf16.msra.mxu0 %v1718_v1  ;;  %1084 = vmatprep.subr.bf16.mxu1 %v1728_v2 }
  0x79   :  { %1190 = vmatprep.subr.bf16.mxu0 %v1732_v3 }
  0x7b   :  { %1085 = vmatpush1.bf16.msra.mxu1 %v1726_v4 }
  0x7c   :  { %1191 = vmatpush1.bf16.msra.mxu0 %v1730_v5  ;;  %1086 = vmatprep.subr.bf16.mxu1 %v1735_v6 }
  0x7d   :  { %1192 = vmatprep.subr.bf16.mxu0 %v1738_v7 }
  0x7f   :  { %1087 = vmatpush1.bf16.msra.mxu1 %v1733_v8 }
  0x80   :  { %1193 = vmatpush1.bf16.msra.mxu0 %v1736_v9  ;;  %1478 = vmatprep.subr.bf16.mxu1 %v1747_v10 }
  0x81   :  { %1215 = vmatprep.subr.bf16.mxu0 %v1747_v10 }
  0x82   :  { %1089 = vmatmul.mubr.bf16.vlgmr.msra.gmra.mrb[0].mxu1 %v1739_v11 }
  0x83   :  { %1195 = vmatmul.mubr.bf16.vlgmr.msra.gmra.mrb[0].mxu0 %v1742_v12  ;;  %1486 = vmatpush1.bf16.msra.mxu1 %v1745_v13 }
  0x84   :  { %1216 = vmatpush1.bf16.msra.mxu0 %v1745_v13  ;;  %1479 = vmatprep.subr.bf16.mxu1 %v1750_v14 }
  0x85   :  { %1217 = vmatprep.subr.bf16.mxu0 %v1750_v14  ;;  %1098 = vmatprep.mubr.bf16.mxu1 %v1751_v15 }
  0x86   :  { %1204 = vmatprep.mubr.bf16.mxu0 %v1753_v16 }
  0x87   :  { %1487 = vmatpush1.bf16.msra.mxu1 %v1748_v17 }
  0x88   :  { %1218 = vmatpush1.bf16.msra.mxu0 %v1748_v17  ;;  %1480 = vmatprep.subr.bf16.mxu1 %v1759_v18 }
  0x89   :  { %1219 = vmatprep.subr.bf16.mxu0 %v1759_v18 }
  0x8a   :  { %1099 = vmatmul.mubr.bf16.gmra.mrb[4].mxu1 %v1755_v19 }
  0x8b   :  { %1205 = vmatmul.mubr.bf16.gmra.mrb[4].mxu0 %v1756_v20  ;;  %1488 = vmatpush1.bf16.msra.mxu1 %v1757_v21 }
  0x8c   :  { %1220 = vmatpush1.bf16.msra.mxu0 %v1757_v21  ;;  %1481 = vmatprep.subr.bf16.mxu1 %v1762_v22 }
  0x8d   :  { %1221 = vmatprep.subr.bf16.mxu0 %v1762_v22  ;;  %1247 = vmatprep.mubr.bf16.mxu0 %v1777_v25 }
  0x8e   :  { %1257 = vmatprep.mubr.bf16.mxu1 %v1777_v25 }
  0x8f   :  { %1489 = vmatpush1.bf16.msra.mxu1 %v1760_v23 }
  0x90   :  { %1222 = vmatpush1.bf16.msra.mxu0 %v1760_v23  ;;  %1482 = vmatprep.subr.bf16.mxu1 %v1765_v24 }
  0x91   :  { %1223 = vmatprep.subr.bf16.mxu0 %v1765_v24 }
  0x93   :  { %1490 = vmatpush1.bf16.msra.mxu1 %v1763_v26 }
  0x94   :  { %1224 = vmatpush1.bf16.msra.mxu0 %v1763_v26  ;;  %1483 = vmatprep.subr.bf16.mxu1 %v1768_v27 }
  0x95   :  { %1225 = vmatprep.subr.bf16.mxu0 %v1768_v27 }
  0x97   :  { %1491 = vmatpush1.bf16.msra.mxu1 %v1766_v28 }
  0x98   :  { %1226 = vmatpush1.bf16.msra.mxu0 %v1766_v28  ;;  %1484 = vmatprep.subr.bf16.mxu1 %v1771_v29 }
  0x99   :  { %1227 = vmatprep.subr.bf16.mxu0 %v1771_v29 }
  0x9b   :  { %1492 = vmatpush1.bf16.msra.mxu1 %v1769_v30 }
  0x9c   :  { %1228 = vmatpush1.bf16.msra.mxu0 %v1769_v30  ;;  %1485 = vmatprep.subr.bf16.mxu1 %v1774_v31 }
  0x9d   :  { %1229 = vmatprep.subr.bf16.mxu0 %v1774_v31 }
  0x9f   :  { %1493 = vmatpush1.bf16.msra.mxu1 %v1772_v32 }
  0xa0   :  { %1230 = vmatpush1.bf16.msra.mxu0 %v1772_v32 }
  0xa2   :  { %1258 = vmatmul.mubr.bf16.vlgmr.msra.gmra.mrb[8].mxu1 %v1776_v34 }
  0xa3   :  { %1248 = vmatmul.mubr.bf16.vlgmr.msra.gmra.mrb[0].mxu0 %v1775_v33 }
 0x155   :  { %v1090_v37 = vpop.f32.mrb[0].mxu1 }
 0x156   :  { %v1092_v38 = vpop.f32.mrb[1].mxu1  ;;  %v1494_v62 = vadd.f32 %v1090_v37, %v184_v44 }
 0x157   :  { %v1094_v39 = vpop.f32.mrb[2].mxu1  ;;  %v1496_v63 = vadd.f32 %v1092_v38, %v188_v45 }
 0x158   :  { %v1096_v41 = vpop.f32.mrb[3].mxu1  ;;  %v1498_v2 = vadd.f32 %v1094_v39, %v184_v44 }
 0x159   :  { %v1500_v7 = vadd.f32 %v1096_v41, %v188_v45 }
 0x15d   :  { %v1100_v46 = vpop.f32.mrb[4].mxu1 }
 0x15e   :  { %v1206_v47 = vpop.f32.mrb[4].mxu0  ;;  %v1502_v48 = vadd.f32 %v1100_v46, %v184_v44  ;;  %v1102_v49 = vpop.f32.mrb[5].mxu1 }
 0x15f   :  { %v1208_v50 = vpop.f32.mrb[5].mxu0  ;;  %v1505_v51 = vadd.f32 %v1102_v49, %v188_v45  ;;  %v1104_v52 = vpop.f32.mrb[6].mxu1 }
 0x160   :  { %v1210_v53 = vpop.f32.mrb[6].mxu0  ;;  %v1503_v54 = vadd.f32 %v1502_v48, %v1206_v47  ;;  %v1508_v55 = vadd.f32 %v1104_v52, %v184_v44  ;;  %v1106_v56 = vpop.f32.mrb[7].mxu1 }
 0x161   :  { %v1212_v57 = vpop.f32.mrb[7].mxu0  ;;  %v1506_v58 = vadd.f32 %v1505_v51, %v1208_v50  ;;  %v1511_v59 = vadd.f32 %v1106_v56, %v188_v45 }
 0x162   :  { %v1509_v60 = vadd.f32 %v1508_v55, %v1210_v53 }
 0x163   :  { %v1512_v61 = vadd.f32 %v1511_v59, %v1212_v57 }
 0x175   :  { %v1259_v1 = vpop.f32.mrb[8].mxu1 }
 0x176   :  { %v1249_v0 = vpop.f32.mrb[0].mxu0  ;;  %v1504_v4 = vadd.f32 %v1503_v54, %v1259_v1  ;;  %v1261_v6 = vpop.f32.mrb[9].mxu1 }
 0x177   :  { %v1495_v3 = vadd.f32 %v1494_v62, %v1249_v0  ;;  %v1251_v5 = vpop.f32.mrb[1].mxu0  ;;  %v1507_v9 = vadd.f32 %v1506_v58, %v1261_v6  ;;  %v1263_v11 = vpop.f32.mrb[10].mxu1 }
 0x178   :  { %v1497_v8 = vadd.f32 %v1496_v63, %v1251_v5  ;;  %v1253_v10 = vpop.f32.mrb[2].mxu0  ;;  %v1272_v13 = vmax.f32 %v1504_v4, 0.0  ;;  %v1510_v15 = vadd.f32 %v1509_v60, %v1263_v11  ;;  %v1265_v17 = vpop.f32.mrb[11].mxu1 }
 0x179   :  { %v1268_v12 = vmax.f32 %v1495_v3, 0.0  ;;  %v1499_v14 = vadd.f32 %v1498_v2, %v1253_v10  ;;  %v1255_v16 = vpop.f32.mrb[3].mxu0  ;;  %v1273_v19 = vmax.f32 %v1507_v9, 0.0  ;;  %v1513_v21 = vadd.f32 %v1512_v61, %v1265_v17 }
 0x17a   :  { %v1269_v18 = vmax.f32 %v1497_v8, 0.0  ;;  %v1501_v20 = vadd.f32 %v1500_v7, %v1255_v16  ;;  %v1274_v23 = vmax.f32 %v1510_v15, 0.0 }
 0x17b   :  { %v1270_v22 = vmax.f32 %v1499_v14, 0.0  ;;  %v1476_v25 = vpack.c.bf16 %v1273_v19, %v1272_v13  ;;  %v1275_v27 = vmax.f32 %v1513_v21, 0.0 }
 0x17c   :  { %v1474_v24 = vpack.c.bf16 %v1269_v18, %v1268_v12  ;;  %v1271_v26 = vmax.f32 %v1501_v20, 0.0 }
 0x17d   :  { %1302 = vst [vmem:[%s2302_s3 + $0x10] sm:$0xff] %v1476_v25  ;;  %v1477_v29 = vpack.c.bf16 %v1275_v27, %v1274_v23 }
 0x17e   :  { %1300 = vst [vmem:[%s2302_s3] sm:$0xff] %v1474_v24  ;;  %v1475_v28 = vpack.c.bf16 %v1271_v26, %v1270_v22 }
 0x17f   :  { %1303 = vst [vmem:[%s2302_s3 + $0x18] sm:$0xff] %v1477_v29 }
 0x180   :  { %1301 = vst [vmem:[%s2302_s3 + $0x8] sm:$0xff] %v1475_v28 }

// kernel: _lambda_.17
= control target key start
LH: loop header
LB: loop body
LE: loop exit
PB: predicated region body
PF: predicated region fallthrough
CT: control target
= control target key end

     0   :  { %s5075_s0 = inlined_call_operand.vmem [shape: bf16[32,2304], index: 0, kind: input, shape index: {}]   ;;  %s5076_s1 = inlined_call_operand.vmem [shape: bf16[2304,256], index: 1, kind: input, shape index: {}]   ;;  %s5077_s2 = inlined_call_operand.vmem [shape: f32[1,256], index: 2, kind: input, shape index: {}]   ;;  %s5078_s3 = inlined_call_operand.vmem [shape: bf16[32,128], index: 3, kind: input, shape index: {}]   ;;  %s5079_s4 = inlined_call_operand.vmem [shape: bf16[128,256], index: 4, kind: input, shape index: {}]   ;;  %s5080_s5 = inlined_call_operand.vmem [shape: f32[2,32], index: 5, kind: input, shape index: {}]   ;;  %s5081_s6 = inlined_call_operand.vmem [shape: f32[256,10], index: 6, kind: input, shape index: {}]   ;;  %s5082_s7 = inlined_call_operand.vmem [shape: f32[1,10], index: 7, kind: input, shape index: {}]   ;;  %s5083_s8 = inlined_call_operand.hbm [shape: f32[2,10], index: 8, kind: output, shape index: {}]  }
   0x1   :  { %v3348_v0 = vld [vmem:[%s5076_s1 + $0x4] ss:$8 sps:$4 sm:$0xff]   ;;  %v3352_v2 = vld [vmem:[%s5076_s1] ss:$8 sps:$4 sm:$0xff]   ;;  %v3354_v4 = vld [vmem:[%s5076_s1 + $0x14] ss:$8 sps:$4 sm:$0xff]  }
   0x2   :  { %v3350_v1 = vld [vmem:[%s5076_s1 + $0x404] ss:$8 sps:$4 sm:$0xff]   ;;  %1987 = vmatprep.subr.bf16.mxu1 %v3348_v0  ;;  %v3353_v3 = vld [vmem:[%s5076_s1 + $0x400] ss:$8 sps:$4 sm:$0xff]   ;;  %v3356_v5 = vld [vmem:[%s5076_s1 + $0x414] ss:$8 sps:$4 sm:$0xff]  }
   0x3   :  { %2199 = vmatprep.subr.bf16.mxu0 %v3350_v1  ;;  %1988 = vmatpush1.bf16.msra.mxu1 %v3352_v2  ;;  %v3358_v6 = vld [vmem:[%s5076_s1 + $0x10] ss:$8 sps:$4 sm:$0xff]   ;;  %v3360_v8 = vld [vmem:[%s5076_s1 + $0x24] ss:$8 sps:$4 sm:$0xff]   ;;  %v3364_v10 = vld [vmem:[%s5076_s1 + $0x20] ss:$8 sps:$4 sm:$0xff]  }
   0x4   :  { %2200 = vmatpush1.bf16.msra.mxu0 %v3353_v3  ;;  %1989 = vmatprep.subr.bf16.mxu1 %v3354_v4  ;;  %v3359_v7 = vld [vmem:[%s5076_s1 + $0x410] ss:$8 sps:$4 sm:$0xff]   ;;  %v3362_v9 = vld [vmem:[%s5076_s1 + $0x424] ss:$8 sps:$4 sm:$0xff]   ;;  %v3365_v11 = vld [vmem:[%s5076_s1 + $0x420] ss:$8 sps:$4 sm:$0xff]  }
   0x5   :  { %2201 = vmatprep.subr.bf16.mxu0 %v3356_v5  ;;  %v3366_v12 = vld [vmem:[%s5076_s1 + $0x34] ss:$8 sps:$4 sm:$0xff]   ;;  %v3370_v14 = vld [vmem:[%s5076_s1 + $0x30] ss:$8 sps:$4 sm:$0xff]   ;;  %v3372_v16 = vld [vmem:[%s5076_s1 + $0x44] ss:$8 sps:$4 sm:$0xff]  }
   0x6   :  { %v3368_v13 = vld [vmem:[%s5076_s1 + $0x434] ss:$8 sps:$4 sm:$0xff]   ;;  %v3371_v15 = vld [vmem:[%s5076_s1 + $0x430] ss:$8 sps:$4 sm:$0xff]   ;;  %v3374_v17 = vld [vmem:[%s5076_s1 + $0x444] ss:$8 sps:$4 sm:$0xff]  }
   0x7   :  { %1990 = vmatpush1.bf16.msra.mxu1 %v3358_v6  ;;  %v3376_v18 = vld [vmem:[%s5076_s1 + $0x40] ss:$8 sps:$4 sm:$0xff]   ;;  %v3378_v20 = vld [vmem:[%s5076_s1 + $0x54] ss:$8 sps:$4 sm:$0xff]   ;;  %v3382_v22 = vld [vmem:[%s5076_s1 + $0x50] ss:$8 sps:$4 sm:$0xff]  }
   0x8   :  { %2202 = vmatpush1.bf16.msra.mxu0 %v3359_v7  ;;  %1991 = vmatprep.subr.bf16.mxu1 %v3360_v8  ;;  %v3377_v19 = vld [vmem:[%s5076_s1 + $0x440] ss:$8 sps:$4 sm:$0xff]   ;;  %v3380_v21 = vld [vmem:[%s5076_s1 + $0x454] ss:$8 sps:$4 sm:$0xff]   ;;  %v3383_v23 = vld [vmem:[%s5076_s1 + $0x450] ss:$8 sps:$4 sm:$0xff]  }
   0x9   :  { %2203 = vmatprep.subr.bf16.mxu0 %v3362_v9  ;;  %v3384_v24 = vld [vmem:[%s5076_s1 + $0x64] ss:$8 sps:$4 sm:$0xff]   ;;  %v3388_v26 = vld [vmem:[%s5076_s1 + $0x60] ss:$8 sps:$4 sm:$0xff]   ;;  %v3390_v28 = vld [vmem:[%s5076_s1 + $0x74] ss:$8 sps:$4 sm:$0xff]  }
   0xa   :  { %v3386_v25 = vld [vmem:[%s5076_s1 + $0x464] ss:$8 sps:$4 sm:$0xff]   ;;  %v3389_v27 = vld [vmem:[%s5076_s1 + $0x460] ss:$8 sps:$4 sm:$0xff]   ;;  %v3392_v29 = vld [vmem:[%s5076_s1 + $0x474] ss:$8 sps:$4 sm:$0xff]  }
   0xb   :  { %1992 = vmatpush1.bf16.msra.mxu1 %v3364_v10  ;;  %v3394_v30 = vld [vmem:[%s5076_s1 + $0x70] ss:$8 sps:$4 sm:$0xff]   ;;  %v3396_v32 = vld [vmem:[%s5076_s1 + $0x84] ss:$8 sps:$4 sm:$0xff]   ;;  %v3400_v34 = vld [vmem:[%s5076_s1 + $0x80] ss:$8 sps:$4 sm:$0xff]  }
   0xc   :  { %2204 = vmatpush1.bf16.msra.mxu0 %v3365_v11  ;;  %1993 = vmatprep.subr.bf16.mxu1 %v3366_v12  ;;  %v3395_v31 = vld [vmem:[%s5076_s1 + $0x470] ss:$8 sps:$4 sm:$0xff]   ;;  %v3398_v33 = vld [vmem:[%s5076_s1 + $0x484] ss:$8 sps:$4 sm:$0xff]   ;;  %v3401_v35 = vld [vmem:[%s5076_s1 + $0x480] ss:$8 sps:$4 sm:$0xff]  }
   0xd   :  { %2205 = vmatprep.subr.bf16.mxu0 %v3368_v13  ;;  %v3402_v36 = vld [vmem:[%s5076_s1 + $0x94] ss:$8 sps:$4 sm:$0xff]   ;;  %v3406_v38 = vld [vmem:[%s5076_s1 + $0x90] ss:$8 sps:$4 sm:$0xff]   ;;  %v3408_v40 = vld [vmem:[%s5076_s1 + $0xa4] ss:$8 sps:$4 sm:$0xff]  }
   0xe   :  { %v3404_v37 = vld [vmem:[%s5076_s1 + $0x494] ss:$8 sps:$4 sm:$0xff]   ;;  %v3407_v39 = vld [vmem:[%s5076_s1 + $0x490] ss:$8 sps:$4 sm:$0xff]   ;;  %v3410_v41 = vld [vmem:[%s5076_s1 + $0x4a4] ss:$8 sps:$4 sm:$0xff]  }
   0xf   :  { %1994 = vmatpush1.bf16.msra.mxu1 %v3370_v14  ;;  %v3412_v42 = vld [vmem:[%s5076_s1 + $0xa0] ss:$8 sps:$4 sm:$0xff]   ;;  %v3414_v44 = vld [vmem:[%s5076_s1 + $0xb4] ss:$8 sps:$4 sm:$0xff]   ;;  %v3418_v46 = vld [vmem:[%s5076_s1 + $0xb0] ss:$8 sps:$4 sm:$0xff]  }
  0x10   :  { %2206 = vmatpush1.bf16.msra.mxu0 %v3371_v15  ;;  %1995 = vmatprep.subr.bf16.mxu1 %v3372_v16  ;;  %v3413_v43 = vld [vmem:[%s5076_s1 + $0x4a0] ss:$8 sps:$4 sm:$0xff]   ;;  %v3416_v45 = vld [vmem:[%s5076_s1 + $0x4b4] ss:$8 sps:$4 sm:$0xff]   ;;  %v3419_v47 = vld [vmem:[%s5076_s1 + $0x4b0] ss:$8 sps:$4 sm:$0xff]  }
  0x11   :  { %2207 = vmatprep.subr.bf16.mxu0 %v3374_v17  ;;  %v3446_v48 = vld [vmem:[%s5075_s0 + $0x4] ss:$72 sps:$4 sm:$0xff]   ;;  %v3424_v52 = vld [vmem:[%s5076_s1 + $0xc0] ss:$8 sps:$4 sm:$0xff]   ;;  %v3426_v54 = vld [vmem:[%s5076_s1 + $0xd4] ss:$8 sps:$4 sm:$0xff]  }
  0x12   :  { %v3420_v49 = vld [vmem:[%s5076_s1 + $0xc4] ss:$8 sps:$4 sm:$0xff]   ;;  %2019 = vmatprep.mubr.bf16.mxu1 %v3446_v48  ;;  %v3425_v53 = vld [vmem:[%s5076_s1 + $0x4c0] ss:$8 sps:$4 sm:$0xff]   ;;  %v3428_v55 = vld [vmem:[%s5076_s1 + $0x4d4] ss:$8 sps:$4 sm:$0xff]  }
  0x13   :  { %1996 = vmatpush1.bf16.msra.mxu1 %v3376_v18  ;;  %v3422_v50 = vld [vmem:[%s5076_s1 + $0x4c4] ss:$8 sps:$4 sm:$0xff]   ;;  %v3430_v56 = vld [vmem:[%s5076_s1 + $0xd0] ss:$8 sps:$4 sm:$0xff]   ;;  %v3436_v60 = vld [vmem:[%s5076_s1 + $0xe0] ss:$8 sps:$4 sm:$0xff]  }
  0x14   :  { %2208 = vmatpush1.bf16.msra.mxu0 %v3377_v19  ;;  %1997 = vmatprep.subr.bf16.mxu1 %v3378_v20  ;;  %v3452_v51 = vld [vmem:[%s5075_s0 + $0x24] ss:$72 sps:$4 sm:$0xff]   ;;  %v3431_v57 = vld [vmem:[%s5076_s1 + $0x4d0] ss:$8 sps:$4 sm:$0xff]   ;;  %v3437_v61 = vld [vmem:[%s5076_s1 + $0x4e0] ss:$8 sps:$4 sm:$0xff]  }
  0x15   :  { %2209 = vmatprep.subr.bf16.mxu0 %v3380_v21  ;;  %2231 = vmatprep.mubr.bf16.mxu0 %v3452_v51  ;;  %v3432_v58 = vld [vmem:[%s5076_s1 + $0xe4] ss:$8 sps:$4 sm:$0xff]   ;;  %v3438_v62 = vld [vmem:[%s5076_s1 + $0xf4] ss:$8 sps:$4 sm:$0xff]   ;;  %v3442_v0 = vld [vmem:[%s5076_s1 + $0xf0] ss:$8 sps:$4 sm:$0xff]  }
  0x16   :  { %v3434_v59 = vld [vmem:[%s5076_s1 + $0x4e4] ss:$8 sps:$4 sm:$0xff]   ;;  %v3440_v63 = vld [vmem:[%s5076_s1 + $0x4f4] ss:$8 sps:$4 sm:$0xff]   ;;  %v3443_v1 = vld [vmem:[%s5076_s1 + $0x4f0] ss:$8 sps:$4 sm:$0xff]  }
  0x17   :  { %1998 = vmatpush1.bf16.msra.mxu1 %v3382_v22  ;;  %v3449_v2 = vld [vmem:[%s5076_s1 + $0x104] ss:$8 sps:$4 sm:$0xff]   ;;  %v3444_v4 = vld [vmem:[%s5075_s0] ss:$72 sps:$4 sm:$0xff]   ;;  %v3458_v8 = vld [vmem:[%s5076_s1 + $0x114] ss:$8 sps:$4 sm:$0xff]  }
  0x18   :  { %2210 = vmatpush1.bf16.msra.mxu0 %v3383_v23  ;;  %1999 = vmatprep.subr.bf16.mxu1 %v3384_v24  ;;  %v3455_v3 = vld [vmem:[%s5076_s1 + $0x504] ss:$8 sps:$4 sm:$0xff]   ;;  %v3447_v5 = vld [vmem:[%s5076_s1 + $0x100] ss:$8 sps:$4 sm:$0xff]   ;;  %v3461_v9 = vld [vmem:[%s5076_s1 + $0x514] ss:$8 sps:$4 sm:$0xff]  }
  0x19   :  { %2211 = vmatprep.subr.bf16.mxu0 %v3386_v25  ;;  %v3450_v6 = vld [vmem:[%s5075_s0 + $0x20] ss:$72 sps:$4 sm:$0xff]   ;;  %v3456_v10 = vld [vmem:[%s5076_s1 + $0x110] ss:$8 sps:$4 sm:$0xff]   ;;  %v3464_v12 = vld [vmem:[%s5076_s1 + $0x124] ss:$8 sps:$4 sm:$0xff]  }
  0x1a   :  { %v3453_v7 = vld [vmem:[%s5076_s1 + $0x500] ss:$8 sps:$4 sm:$0xff]   ;;  %v3459_v11 = vld [vmem:[%s5076_s1 + $0x510] ss:$8 sps:$4 sm:$0xff]   ;;  %v3467_v13 = vld [vmem:[%s5076_s1 + $0x524] ss:$8 sps:$4 sm:$0xff]  }
  0x1b   :  { %2000 = vmatpush1.bf16.msra.mxu1 %v3388_v26  ;;  %v3462_v14 = vld [vmem:[%s5076_s1 + $0x120] ss:$8 sps:$4 sm:$0xff]   ;;  %v3470_v16 = vld [vmem:[%s5076_s1 + $0x134] ss:$8 sps:$4 sm:$0xff]   ;;  %v3468_v18 = vld [vmem:[%s5076_s1 + $0x130] ss:$8 sps:$4 sm:$0xff]  }
  0x1c   :  { %2212 = vmatpush1.bf16.msra.mxu0 %v3389_v27  ;;  %2001 = vmatprep.subr.bf16.mxu1 %v3390_v28  ;;  %v3465_v15 = vld [vmem:[%s5076_s1 + $0x520] ss:$8 sps:$4 sm:$0xff]   ;;  %v3473_v17 = vld [vmem:[%s5076_s1 + $0x534] ss:$8 sps:$4 sm:$0xff]   ;;  %v3471_v19 = vld [vmem:[%s5076_s1 + $0x530] ss:$8 sps:$4 sm:$0xff]  }
  0x1d   :  { %2213 = vmatprep.subr.bf16.mxu0 %v3392_v29  ;;  %v3476_v20 = vld [vmem:[%s5076_s1 + $0x144] ss:$8 sps:$4 sm:$0xff]   ;;  %v3474_v22 = vld [vmem:[%s5076_s1 + $0x140] ss:$8 sps:$4 sm:$0xff]   ;;  %v3482_v24 = vld [vmem:[%s5076_s1 + $0x154] ss:$8 sps:$4 sm:$0xff]  }
  0x1e   :  { %v3479_v21 = vld [vmem:[%s5076_s1 + $0x544] ss:$8 sps:$4 sm:$0xff]   ;;  %v3477_v23 = vld [vmem:[%s5076_s1 + $0x540] ss:$8 sps:$4 sm:$0xff]   ;;  %v3485_v25 = vld [vmem:[%s5076_s1 + $0x554] ss:$8 sps:$4 sm:$0xff]  }
  0x1f   :  { %2002 = vmatpush1.bf16.msra.mxu1 %v3394_v30  ;;  %v3480_v26 = vld [vmem:[%s5076_s1 + $0x150] ss:$8 sps:$4 sm:$0xff]   ;;  %v3534_v28 = vld [vmem:[%s5075_s0 + $0x94] ss:$72 sps:$4 sm:$0xff]   ;;  %v3488_v29 = vld [vmem:[%s5076_s1 + $0x164] ss:$8 sps:$4 sm:$0xff]  }
  0x20   :  { %2214 = vmatpush1.bf16.msra.mxu0 %v3395_v31  ;;  %2003 = vmatprep.subr.bf16.mxu1 %v3396_v32  ;;  %v3483_v27 = vld [vmem:[%s5076_s1 + $0x550] ss:$8 sps:$4 sm:$0xff]   ;;  %v3491_v30 = vld [vmem:[%s5076_s1 + $0x564] ss:$8 sps:$4 sm:$0xff]   ;;  %v3539_v31 = vld [vmem:[%s5075_s0 + $0xb4] ss:$72 sps:$4 sm:$0xff]  }
  0x21   :  { %2215 = vmatprep.subr.bf16.mxu0 %v3398_v33  ;;  %v3486_v32 = vld [vmem:[%s5076_s1 + $0x160] ss:$8 sps:$4 sm:$0xff]   ;;  %v3504_v48 = vld [vmem:[%s5076_s1 + $0x190] ss:$8 sps:$4 sm:$0xff]   ;;  %v3515_v51 = vld [vmem:[%s5076_s1 + $0x5a4] ss:$8 sps:$4 sm:$0xff]  }
  0x22   :  { %v3489_v33 = vld [vmem:[%s5076_s1 + $0x560] ss:$8 sps:$4 sm:$0xff]  }
  0x23   :  { %2004 = vmatpush1.bf16.msra.mxu1 %v3400_v34  ;;  %v3544_v34 = vld [vmem:[%s5075_s0 + $0x90] ss:$72 sps:$4 sm:$0xff]  }
  0x24   :  { %2216 = vmatpush1.bf16.msra.mxu0 %v3401_v35  ;;  %2005 = vmatprep.subr.bf16.mxu1 %v3402_v36  ;;  %v3545_v35 = vld [vmem:[%s5075_s0 + $0xb0] ss:$72 sps:$4 sm:$0xff]   ;;  %v3494_v36 = vld [vmem:[%s5076_s1 + $0x174] ss:$8 sps:$4 sm:$0xff]  }
  0x25   :  { %2217 = vmatprep.subr.bf16.mxu0 %v3404_v37  ;;  %v3497_v37 = vld [vmem:[%s5076_s1 + $0x574] ss:$8 sps:$4 sm:$0xff]  }
  0x27   :  { %2006 = vmatpush1.bf16.msra.mxu1 %v3406_v38  ;;  %v3492_v38 = vld [vmem:[%s5076_s1 + $0x170] ss:$8 sps:$4 sm:$0xff]  }
  0x28   :  { %2218 = vmatpush1.bf16.msra.mxu0 %v3407_v39  ;;  %2007 = vmatprep.subr.bf16.mxu1 %v3408_v40  ;;  %v3495_v39 = vld [vmem:[%s5076_s1 + $0x570] ss:$8 sps:$4 sm:$0xff]   ;;  %v3554_v40 = vld [vmem:[%s5075_s0 + $0xc] ss:$72 sps:$4 sm:$0xff]  }
  0x29   :  { %2219 = vmatprep.subr.bf16.mxu0 %v3410_v41  ;;  %v3500_v41 = vld [vmem:[%s5076_s1 + $0x184] ss:$8 sps:$4 sm:$0xff]  }
  0x2b   :  { %2008 = vmatpush1.bf16.msra.mxu1 %v3412_v42  ;;  %v3503_v42 = vld [vmem:[%s5076_s1 + $0x584] ss:$8 sps:$4 sm:$0xff]  }
  0x2c   :  { %2220 = vmatpush1.bf16.msra.mxu0 %v3413_v43  ;;  %2009 = vmatprep.subr.bf16.mxu1 %v3414_v44  ;;  %v3560_v43 = vld [vmem:[%s5075_s0 + $0x2c] ss:$72 sps:$4 sm:$0xff]   ;;  %v3498_v44 = vld [vmem:[%s5076_s1 + $0x180] ss:$8 sps:$4 sm:$0xff]  }
  0x2d   :  { %2221 = vmatprep.subr.bf16.mxu0 %v3416_v45  ;;  %v3501_v45 = vld [vmem:[%s5076_s1 + $0x580] ss:$8 sps:$4 sm:$0xff]  }
  0x2f   :  { %2010 = vmatpush1.bf16.msra.mxu1 %v3418_v46  ;;  %v3506_v46 = vld [vmem:[%s5076_s1 + $0x194] ss:$8 sps:$4 sm:$0xff]  }
  0x30   :  { %2222 = vmatpush1.bf16.msra.mxu0 %v3419_v47  ;;  %2011 = vmatprep.subr.bf16.mxu1 %v3420_v49  ;;  %v3509_v47 = vld [vmem:[%s5076_s1 + $0x594] ss:$8 sps:$4 sm:$0xff]   ;;  %v3507_v49 = vld [vmem:[%s5076_s1 + $0x590] ss:$8 sps:$4 sm:$0xff]  }
  0x31   :  { %2223 = vmatprep.subr.bf16.mxu0 %v3422_v50  ;;  %v3512_v50 = vld [vmem:[%s5076_s1 + $0x1a4] ss:$8 sps:$4 sm:$0xff]  }
  0x33   :  { %2012 = vmatpush1.bf16.msra.mxu1 %v3424_v52  ;;  %v3510_v52 = vld [vmem:[%s5076_s1 + $0x1a0] ss:$8 sps:$4 sm:$0xff]  }
  0x34   :  { %2224 = vmatpush1.bf16.msra.mxu0 %v3425_v53  ;;  %2013 = vmatprep.subr.bf16.mxu1 %v3426_v54  ;;  %v3513_v53 = vld [vmem:[%s5076_s1 + $0x5a0] ss:$8 sps:$4 sm:$0xff]   ;;  %v3518_v54 = vld [vmem:[%s5076_s1 + $0x1b4] ss:$8 sps:$4 sm:$0xff]  }
  0x35   :  { %2225 = vmatprep.subr.bf16.mxu0 %v3428_v55  ;;  %v3521_v55 = vld [vmem:[%s5076_s1 + $0x5b4] ss:$8 sps:$4 sm:$0xff]  }
  0x37   :  { %2014 = vmatpush1.bf16.msra.mxu1 %v3430_v56  ;;  %v3516_v56 = vld [vmem:[%s5076_s1 + $0x1b0] ss:$8 sps:$4 sm:$0xff]  }
  0x38   :  { %2226 = vmatpush1.bf16.msra.mxu0 %v3431_v57  ;;  %2015 = vmatprep.subr.bf16.mxu1 %v3432_v58  ;;  %v3519_v57 = vld [vmem:[%s5076_s1 + $0x5b0] ss:$8 sps:$4 sm:$0xff]   ;;  %v3524_v58 = vld [vmem:[%s5076_s1 + $0x1c4] ss:$8 sps:$4 sm:$0xff]  }
  0x39   :  { %2227 = vmatprep.subr.bf16.mxu0 %v3434_v59  ;;  %v3527_v59 = vld [vmem:[%s5076_s1 + $0x5c4] ss:$8 sps:$4 sm:$0xff]  }
  0x3b   :  { %2016 = vmatpush1.bf16.msra.mxu1 %v3436_v60  ;;  %v3522_v60 = vld [vmem:[%s5076_s1 + $0x1c0] ss:$8 sps:$4 sm:$0xff]  }
  0x3c   :  { %2228 = vmatpush1.bf16.msra.mxu0 %v3437_v61  ;;  %2017 = vmatprep.subr.bf16.mxu1 %v3438_v62  ;;  %v3525_v61 = vld [vmem:[%s5076_s1 + $0x5c0] ss:$8 sps:$4 sm:$0xff]   ;;  %v3530_v62 = vld [vmem:[%s5076_s1 + $0x1d4] ss:$8 sps:$4 sm:$0xff]  }
  0x3d   :  { %2229 = vmatprep.subr.bf16.mxu0 %v3440_v63  ;;  %v3533_v63 = vld [vmem:[%s5076_s1 + $0x5d4] ss:$8 sps:$4 sm:$0xff]  }
  0x3f   :  { %2018 = vmatpush1.bf16.msra.mxu1 %v3442_v0  ;;  %v3528_v0 = vld [vmem:[%s5076_s1 + $0x1d0] ss:$8 sps:$4 sm:$0xff]  }
  0x40   :  { %2230 = vmatpush1.bf16.msra.mxu0 %v3443_v1  ;;  %2040 = vmatprep.subr.bf16.mxu1 %v3449_v2  ;;  %v3531_v1 = vld [vmem:[%s5076_s1 + $0x5d0] ss:$8 sps:$4 sm:$0xff]   ;;  %v3538_v2 = vld [vmem:[%s5076_s1 + $0x1e4] ss:$8 sps:$4 sm:$0xff]  }
  0x41   :  { %2252 = vmatprep.subr.bf16.mxu0 %v3455_v3  ;;  %v3543_v3 = vld [vmem:[%s5076_s1 + $0x5e4] ss:$8 sps:$4 sm:$0xff]  }
  0x42   :  { %2020 = vmatmul.mubr.bf16.vlgmr.msra.gmra.mrb[0].mxu1 %v3444_v4  ;;  %v3536_v4 = vld [vmem:[%s5076_s1 + $0x1e0] ss:$8 sps:$4 sm:$0xff]  }
  0x43   :  { %2232 = vmatmul.mubr.bf16.vlgmr.msra.gmra.mrb[0].mxu0 %v3450_v6  ;;  %2041 = vmatpush1.bf16.msra.mxu1 %v3447_v5  ;;  %v3541_v5 = vld [vmem:[%s5076_s1 + $0x5e0] ss:$8 sps:$4 sm:$0xff]   ;;  %v3548_v6 = vld [vmem:[%s5076_s1 + $0x1f4] ss:$8 sps:$4 sm:$0xff]  }
  0x44   :  { %2253 = vmatpush1.bf16.msra.mxu0 %v3453_v7  ;;  %2042 = vmatprep.subr.bf16.mxu1 %v3458_v8  ;;  %v3551_v7 = vld [vmem:[%s5076_s1 + $0x5f4] ss:$8 sps:$4 sm:$0xff]   ;;  %v3546_v8 = vld [vmem:[%s5076_s1 + $0x1f0] ss:$8 sps:$4 sm:$0xff]  }
  0x45   :  { %2254 = vmatprep.subr.bf16.mxu0 %v3461_v9  ;;  %2029 = vmatprep.mubr.bf16.mxu1 %v3534_v28  ;;  %v3549_v9 = vld [vmem:[%s5076_s1 + $0x5f0] ss:$8 sps:$4 sm:$0xff]   ;;  %v3578_v28 = vld [vmem:[%s5076_s1 + $0x234] ss:$8 sps:$4 sm:$0xff]  }
  0x46   :  { %2241 = vmatprep.mubr.bf16.mxu0 %v3539_v31  ;;  %v3579_v31 = vld [vmem:[%s5076_s1 + $0x630] ss:$8 sps:$4 sm:$0xff]  }
  0x47   :  { %2043 = vmatpush1.bf16.msra.mxu1 %v3456_v10  ;;  %v3557_v10 = vld [vmem:[%s5076_s1 + $0x204] ss:$8 sps:$4 sm:$0xff]  }
  0x48   :  { %2255 = vmatpush1.bf16.msra.mxu0 %v3459_v11  ;;  %2044 = vmatprep.subr.bf16.mxu1 %v3464_v12  ;;  %v3563_v11 = vld [vmem:[%s5076_s1 + $0x604] ss:$8 sps:$4 sm:$0xff]   ;;  %v3552_v12 = vld [vmem:[%s5075_s0 + $0x8] ss:$72 sps:$4 sm:$0xff]  }
  0x49   :  { %2256 = vmatprep.subr.bf16.mxu0 %v3467_v13  ;;  %v3555_v13 = vld [vmem:[%s5076_s1 + $0x200] ss:$8 sps:$4 sm:$0xff]  }
  0x4a   :  { %2030 = vmatmul.mubr.bf16.gmra.mrb[4].mxu1 %v3544_v34  ;;  %v3587_v34 = vld [vmem:[%s5076_s1 + $0x644] ss:$8 sps:$4 sm:$0xff]  }
  0x4b   :  { %2045 = vmatpush1.bf16.msra.mxu1 %v3462_v14  ;;  %2242 = vmatmul.mubr.bf16.gmra.mrb[4].mxu0 %v3545_v35  ;;  %v3558_v14 = vld [vmem:[%s5075_s0 + $0x28] ss:$72 sps:$4 sm:$0xff]   ;;  %v3668_v35 = vld [vmem:[%s5075_s0 + $0x34] ss:$72 sps:$4 sm:$0xff]  }
  0x4c   :  { %2257 = vmatpush1.bf16.msra.mxu0 %v3465_v15  ;;  %2046 = vmatprep.subr.bf16.mxu1 %v3470_v16  ;;  %v3561_v15 = vld [vmem:[%s5076_s1 + $0x600] ss:$8 sps:$4 sm:$0xff]   ;;  %v3566_v16 = vld [vmem:[%s5076_s1 + $0x214] ss:$8 sps:$4 sm:$0xff]  }
  0x4d   :  { %2258 = vmatprep.subr.bf16.mxu0 %v3473_v17  ;;  %2072 = vmatprep.mubr.bf16.mxu1 %v3554_v40  ;;  %v3569_v17 = vld [vmem:[%s5076_s1 + $0x614] ss:$8 sps:$4 sm:$0xff]   ;;  %v3588_v40 = vld [vmem:[%s5076_s1 + $0x250] ss:$8 sps:$4 sm:$0xff]  }
  0x4e   :  { %2284 = vmatprep.mubr.bf16.mxu0 %v3560_v43  ;;  %v3599_v43 = vld [vmem:[%s5076_s1 + $0x664] ss:$8 sps:$4 sm:$0xff]  }
  0x4f   :  { %2047 = vmatpush1.bf16.msra.mxu1 %v3468_v18  ;;  %v3564_v18 = vld [vmem:[%s5076_s1 + $0x210] ss:$8 sps:$4 sm:$0xff]  }
  0x50   :  { %2259 = vmatpush1.bf16.msra.mxu0 %v3471_v19  ;;  %2048 = vmatprep.subr.bf16.mxu1 %v3476_v20  ;;  %v3567_v19 = vld [vmem:[%s5076_s1 + $0x610] ss:$8 sps:$4 sm:$0xff]   ;;  %v3642_v20 = vld [vmem:[%s5075_s0 + $0x9c] ss:$72 sps:$4 sm:$0xff]  }
  0x51   :  { %2260 = vmatprep.subr.bf16.mxu0 %v3479_v21  ;;  %v3572_v21 = vld [vmem:[%s5076_s1 + $0x224] ss:$8 sps:$4 sm:$0xff]  }
  0x53   :  { %2049 = vmatpush1.bf16.msra.mxu1 %v3474_v22  ;;  %v3575_v22 = vld [vmem:[%s5076_s1 + $0x624] ss:$8 sps:$4 sm:$0xff]  }
  0x54   :  { %2261 = vmatpush1.bf16.msra.mxu0 %v3477_v23  ;;  %2050 = vmatprep.subr.bf16.mxu1 %v3482_v24  ;;  %v3647_v23 = vld [vmem:[%s5075_s0 + $0xbc] ss:$72 sps:$4 sm:$0xff]   ;;  %v3570_v24 = vld [vmem:[%s5076_s1 + $0x220] ss:$8 sps:$4 sm:$0xff]  }
  0x55   :  { %2262 = vmatprep.subr.bf16.mxu0 %v3485_v25  ;;  %v3573_v25 = vld [vmem:[%s5076_s1 + $0x620] ss:$8 sps:$4 sm:$0xff]  }
  0x57   :  { %2051 = vmatpush1.bf16.msra.mxu1 %v3480_v26  ;;  %v3652_v26 = vld [vmem:[%s5075_s0 + $0x98] ss:$72 sps:$4 sm:$0xff]  }
  0x58   :  { %2263 = vmatpush1.bf16.msra.mxu0 %v3483_v27  ;;  %2052 = vmatprep.subr.bf16.mxu1 %v3488_v29  ;;  %v3653_v27 = vld [vmem:[%s5075_s0 + $0xb8] ss:$72 sps:$4 sm:$0xff]   ;;  %v3581_v29 = vld [vmem:[%s5076_s1 + $0x634] ss:$8 sps:$4 sm:$0xff]  }
  0x59   :  { %2264 = vmatprep.subr.bf16.mxu0 %v3491_v30  ;;  %v3576_v30 = vld [vmem:[%s5076_s1 + $0x230] ss:$8 sps:$4 sm:$0xff]  }
  0x5b   :  { %2053 = vmatpush1.bf16.msra.mxu1 %v3486_v32  ;;  %v3662_v32 = vld [vmem:[%s5075_s0 + $0x14] ss:$72 sps:$4 sm:$0xff]  }
  0x5c   :  { %2265 = vmatpush1.bf16.msra.mxu0 %v3489_v33  ;;  %2054 = vmatprep.subr.bf16.mxu1 %v3494_v36  ;;  %v3584_v33 = vld [vmem:[%s5076_s1 + $0x244] ss:$8 sps:$4 sm:$0xff]   ;;  %v3582_v36 = vld [vmem:[%s5076_s1 + $0x240] ss:$8 sps:$4 sm:$0xff]  }
  0x5d   :  { %2266 = vmatprep.subr.bf16.mxu0 %v3497_v37  ;;  %v3585_v37 = vld [vmem:[%s5076_s1 + $0x640] ss:$8 sps:$4 sm:$0xff]  }
  0x5f   :  { %2055 = vmatpush1.bf16.msra.mxu1 %v3492_v38  ;;  %v3590_v38 = vld [vmem:[%s5076_s1 + $0x254] ss:$8 sps:$4 sm:$0xff]  }
  0x60   :  { %2267 = vmatpush1.bf16.msra.mxu0 %v3495_v39  ;;  %2056 = vmatprep.subr.bf16.mxu1 %v3500_v41  ;;  %v3593_v39 = vld [vmem:[%s5076_s1 + $0x654] ss:$8 sps:$4 sm:$0xff]   ;;  %v3591_v41 = vld [vmem:[%s5076_s1 + $0x650] ss:$8 sps:$4 sm:$0xff]  }
  0x61   :  { %2268 = vmatprep.subr.bf16.mxu0 %v3503_v42  ;;  %v3596_v42 = vld [vmem:[%s5076_s1 + $0x264] ss:$8 sps:$4 sm:$0xff]  }
  0x63   :  { %2057 = vmatpush1.bf16.msra.mxu1 %v3498_v44  ;;  %v3594_v44 = vld [vmem:[%s5076_s1 + $0x260] ss:$8 sps:$4 sm:$0xff]  }
  0x64   :  { %2269 = vmatpush1.bf16.msra.mxu0 %v3501_v45  ;;  %2058 = vmatprep.subr.bf16.mxu1 %v3506_v46  ;;  %v3597_v45 = vld [vmem:[%s5076_s1 + $0x660] ss:$8 sps:$4 sm:$0xff]   ;;  %v3602_v46 = vld [vmem:[%s5076_s1 + $0x274] ss:$8 sps:$4 sm:$0xff]  }
  0x65   :  { %2270 = vmatprep.subr.bf16.mxu0 %v3509_v47  ;;  %v3605_v47 = vld [vmem:[%s5076_s1 + $0x674] ss:$8 sps:$4 sm:$0xff]  }
  0x67   :  { %2059 = vmatpush1.bf16.msra.mxu1 %v3504_v48  ;;  %v3600_v48 = vld [vmem:[%s5076_s1 + $0x270] ss:$8 sps:$4 sm:$0xff]  }
  0x68   :  { %2271 = vmatpush1.bf16.msra.mxu0 %v3507_v49  ;;  %2060 = vmatprep.subr.bf16.mxu1 %v3512_v50  ;;  %v3603_v49 = vld [vmem:[%s5076_s1 + $0x670] ss:$8 sps:$4 sm:$0xff]   ;;  %v3608_v50 = vld [vmem:[%s5076_s1 + $0x284] ss:$8 sps:$4 sm:$0xff]  }
  0x69   :  { %2272 = vmatprep.subr.bf16.mxu0 %v3515_v51  ;;  %v3611_v51 = vld [vmem:[%s5076_s1 + $0x684] ss:$8 sps:$4 sm:$0xff]  }
  0x6b   :  { %2061 = vmatpush1.bf16.msra.mxu1 %v3510_v52  ;;  %v3606_v52 = vld [vmem:[%s5076_s1 + $0x280] ss:$8 sps:$4 sm:$0xff]  }
  0x6c   :  { %2273 = vmatpush1.bf16.msra.mxu0 %v3513_v53  ;;  %2062 = vmatprep.subr.bf16.mxu1 %v3518_v54  ;;  %v3609_v53 = vld [vmem:[%s5076_s1 + $0x680] ss:$8 sps:$4 sm:$0xff]   ;;  %v3614_v54 = vld [vmem:[%s5076_s1 + $0x294] ss:$8 sps:$4 sm:$0xff]  }
  0x6d   :  { %2274 = vmatprep.subr.bf16.mxu0 %v3521_v55  ;;  %v3617_v55 = vld [vmem:[%s5076_s1 + $0x694] ss:$8 sps:$4 sm:$0xff]  }
  0x6f   :  { %2063 = vmatpush1.bf16.msra.mxu1 %v3516_v56  ;;  %v3612_v56 = vld [vmem:[%s5076_s1 + $0x290] ss:$8 sps:$4 sm:$0xff]  }
  0x70   :  { %2275 = vmatpush1.bf16.msra.mxu0 %v3519_v57  ;;  %2064 = vmatprep.subr.bf16.mxu1 %v3524_v58  ;;  %v3615_v57 = vld [vmem:[%s5076_s1 + $0x690] ss:$8 sps:$4 sm:$0xff]   ;;  %v3620_v58 = vld [vmem:[%s5076_s1 + $0x2a4] ss:$8 sps:$4 sm:$0xff]  }
  0x71   :  { %2276 = vmatprep.subr.bf16.mxu0 %v3527_v59  ;;  %v3623_v59 = vld [vmem:[%s5076_s1 + $0x6a4] ss:$8 sps:$4 sm:$0xff]  }
  0x73   :  { %2065 = vmatpush1.bf16.msra.mxu1 %v3522_v60  ;;  %v3618_v60 = vld [vmem:[%s5076_s1 + $0x2a0] ss:$8 sps:$4 sm:$0xff]  }
  0x74   :  { %2277 = vmatpush1.bf16.msra.mxu0 %v3525_v61  ;;  %2066 = vmatprep.subr.bf16.mxu1 %v3530_v62  ;;  %v3621_v61 = vld [vmem:[%s5076_s1 + $0x6a0] ss:$8 sps:$4 sm:$0xff]   ;;  %v3626_v62 = vld [vmem:[%s5076_s1 + $0x2b4] ss:$8 sps:$4 sm:$0xff]  }
  0x75   :  { %2278 = vmatprep.subr.bf16.mxu0 %v3533_v63  ;;  %v3629_v63 = vld [vmem:[%s5076_s1 + $0x6b4] ss:$8 sps:$4 sm:$0xff]  }
  0x77   :  { %2067 = vmatpush1.bf16.msra.mxu1 %v3528_v0  ;;  %v3624_v0 = vld [vmem:[%s5076_s1 + $0x2b0] ss:$8 sps:$4 sm:$0xff]  }
  0x78   :  { %2279 = vmatpush1.bf16.msra.mxu0 %v3531_v1  ;;  %2068 = vmatprep.subr.bf16.mxu1 %v3538_v2  ;;  %v3627_v1 = vld [vmem:[%s5076_s1 + $0x6b0] ss:$8 sps:$4 sm:$0xff]   ;;  %v3632_v2 = vld [vmem:[%s5076_s1 + $0x2c4] ss:$8 sps:$4 sm:$0xff]  }
  0x79   :  { %2280 = vmatprep.subr.bf16.mxu0 %v3543_v3  ;;  %v3635_v3 = vld [vmem:[%s5076_s1 + $0x6c4] ss:$8 sps:$4 sm:$0xff]  }
  0x7b   :  { %2069 = vmatpush1.bf16.msra.mxu1 %v3536_v4  ;;  %v3630_v4 = vld [vmem:[%s5076_s1 + $0x2c0] ss:$8 sps:$4 sm:$0xff]  }
  0x7c   :  { %2281 = vmatpush1.bf16.msra.mxu0 %v3541_v5  ;;  %2070 = vmatprep.subr.bf16.mxu1 %v3548_v6  ;;  %v3633_v5 = vld [vmem:[%s5076_s1 + $0x6c0] ss:$8 sps:$4 sm:$0xff]   ;;  %v3638_v6 = vld [vmem:[%s5076_s1 + $0x2d4] ss:$8 sps:$4 sm:$0xff]  }
  0x7d   :  { %2282 = vmatprep.subr.bf16.mxu0 %v3551_v7  ;;  %v3641_v7 = vld [vmem:[%s5076_s1 + $0x6d4] ss:$8 sps:$4 sm:$0xff]  }
  0x7f   :  { %2071 = vmatpush1.bf16.msra.mxu1 %v3546_v8  ;;  %v3636_v8 = vld [vmem:[%s5076_s1 + $0x2d0] ss:$8 sps:$4 sm:$0xff]  }
  0x80   :  { %2283 = vmatpush1.bf16.msra.mxu0 %v3549_v9  ;;  %2093 = vmatprep.subr.bf16.mxu1 %v3557_v10  ;;  %v3639_v9 = vld [vmem:[%s5076_s1 + $0x6d0] ss:$8 sps:$4 sm:$0xff]   ;;  %v3646_v10 = vld [vmem:[%s5076_s1 + $0x2e4] ss:$8 sps:$4 sm:$0xff]  }
  0x81   :  { %2305 = vmatprep.subr.bf16.mxu0 %v3563_v11  ;;  %v3651_v11 = vld [vmem:[%s5076_s1 + $0x6e4] ss:$8 sps:$4 sm:$0xff]  }
  0x82   :  { %2073 = vmatmul.mubr.bf16.vlgmr.msra.gmra.mrb[0].mxu1 %v3552_v12  ;;  %v3644_v12 = vld [vmem:[%s5076_s1 + $0x2e0] ss:$8 sps:$4 sm:$0xff]  }
  0x83   :  { %2285 = vmatmul.mubr.bf16.vlgmr.msra.gmra.mrb[0].mxu0 %v3558_v14  ;;  %2094 = vmatpush1.bf16.msra.mxu1 %v3555_v13  ;;  %v3649_v13 = vld [vmem:[%s5076_s1 + $0x6e0] ss:$8 sps:$4 sm:$0xff]   ;;  %v3656_v14 = vld [vmem:[%s5076_s1 + $0x2f4] ss:$8 sps:$4 sm:$0xff]  }
  0x84   :  { %2306 = vmatpush1.bf16.msra.mxu0 %v3561_v15  ;;  %2095 = vmatprep.subr.bf16.mxu1 %v3566_v16  ;;  %v3659_v15 = vld [vmem:[%s5076_s1 + $0x6f4] ss:$8 sps:$4 sm:$0xff]   ;;  %v3654_v16 = vld [vmem:[%s5076_s1 + $0x2f0] ss:$8 sps:$4 sm:$0xff]  }
  0x85   :  { %2307 = vmatprep.subr.bf16.mxu0 %v3569_v17  ;;  %2082 = vmatprep.mubr.bf16.mxu1 %v3642_v20  ;;  %v3657_v17 = vld [vmem:[%s5076_s1 + $0x6f0] ss:$8 sps:$4 sm:$0xff]  }
  0x86   :  { %2294 = vmatprep.mubr.bf16.mxu0 %v3647_v23  ;;  %v3660_v20 = vld [vmem:[%s5075_s0 + $0x10] ss:$72 sps:$4 sm:$0xff]   ;;  %v3669_v23 = vld [vmem:[%s5076_s1 + $0x700] ss:$8 sps:$4 sm:$0xff]  }
  0x87   :  { %2096 = vmatpush1.bf16.msra.mxu1 %v3564_v18  ;;  %v3665_v18 = vld [vmem:[%s5076_s1 + $0x304] ss:$8 sps:$4 sm:$0xff]  }
  0x88   :  { %2308 = vmatpush1.bf16.msra.mxu0 %v3567_v19  ;;  %2097 = vmatprep.subr.bf16.mxu1 %v3572_v21  ;;  %v3671_v19 = vld [vmem:[%s5076_s1 + $0x704] ss:$8 sps:$4 sm:$0xff]   ;;  %v3663_v21 = vld [vmem:[%s5076_s1 + $0x300] ss:$8 sps:$4 sm:$0xff]  }
  0x89   :  { %2309 = vmatprep.subr.bf16.mxu0 %v3575_v22  ;;  %v3666_v22 = vld [vmem:[%s5075_s0 + $0x30] ss:$72 sps:$4 sm:$0xff]  }
  0x8a   :  { %2083 = vmatmul.mubr.bf16.gmra.mrb[4].mxu1 %v3652_v26  ;;  %v3750_v26 = vld [vmem:[%s5075_s0 + $0xa4] ss:$72 sps:$4 sm:$0xff]  }
  0x8b   :  { %2295 = vmatmul.mubr.bf16.gmra.mrb[4].mxu0 %v3653_v27  ;;  %2098 = vmatpush1.bf16.msra.mxu1 %v3570_v24  ;;  %v3674_v24 = vld [vmem:[%s5076_s1 + $0x314] ss:$8 sps:$4 sm:$0xff]   ;;  %v3756_v27 = vld [vmem:[%s5075_s0 + $0xc4] ss:$72 sps:$4 sm:$0xff]  }
  0x8c   :  { %2310 = vmatpush1.bf16.msra.mxu0 %v3573_v25  ;;  %2099 = vmatprep.subr.bf16.mxu1 %v3578_v28  ;;  %v3677_v25 = vld [vmem:[%s5076_s1 + $0x714] ss:$8 sps:$4 sm:$0xff]   ;;  %v3672_v28 = vld [vmem:[%s5076_s1 + $0x310] ss:$8 sps:$4 sm:$0xff]  }
  0x8d   :  { %2311 = vmatprep.subr.bf16.mxu0 %v3581_v29  ;;  %2125 = vmatprep.mubr.bf16.mxu1 %v3662_v32  ;;  %v3675_v29 = vld [vmem:[%s5076_s1 + $0x710] ss:$8 sps:$4 sm:$0xff]   ;;  %v3678_v32 = vld [vmem:[%s5076_s1 + $0x320] ss:$8 sps:$4 sm:$0xff]  }
  0x8e   :  { %2337 = vmatprep.mubr.bf16.mxu0 %v3668_v35  ;;  %v3761_v35 = vld [vmem:[%s5075_s0 + $0xc0] ss:$72 sps:$4 sm:$0xff]  }
  0x8f   :  { %2100 = vmatpush1.bf16.msra.mxu1 %v3576_v30  ;;  %v3680_v30 = vld [vmem:[%s5076_s1 + $0x324] ss:$8 sps:$4 sm:$0xff]  }
  0x90   :  { %2312 = vmatpush1.bf16.msra.mxu0 %v3579_v31  ;;  %2101 = vmatprep.subr.bf16.mxu1 %v3584_v33  ;;  %v3683_v31 = vld [vmem:[%s5076_s1 + $0x724] ss:$8 sps:$4 sm:$0xff]   ;;  %v3681_v33 = vld [vmem:[%s5076_s1 + $0x720] ss:$8 sps:$4 sm:$0xff]  }
  0x91   :  { %2313 = vmatprep.subr.bf16.mxu0 %v3587_v34  ;;  %v3752_v34 = vld [vmem:[%s5075_s0 + $0xa0] ss:$72 sps:$4 sm:$0xff]  }
  0x93   :  { %2102 = vmatpush1.bf16.msra.mxu1 %v3582_v36  ;;  %v3686_v36 = vld [vmem:[%s5076_s1 + $0x334] ss:$8 sps:$4 sm:$0xff]  }
  0x94   :  { %2314 = vmatpush1.bf16.msra.mxu0 %v3585_v37  ;;  %2103 = vmatprep.subr.bf16.mxu1 %v3590_v38  ;;  %v3689_v37 = vld [vmem:[%s5076_s1 + $0x734] ss:$8 sps:$4 sm:$0xff]  }
  0x95   :  { %2315 = vmatprep.subr.bf16.mxu0 %v3593_v39  ;;  %v3770_v38 = vld [vmem:[%s5075_s0 + $0x1c] ss:$72 sps:$4 sm:$0xff]  }
  0x96   :  { %v3773_v39 = vld [vmem:[%s5075_s0 + $0x3c] ss:$72 sps:$4 sm:$0xff]  }
  0x97   :  { %2104 = vmatpush1.bf16.msra.mxu1 %v3588_v40  ;;  %v3684_v40 = vld [vmem:[%s5076_s1 + $0x330] ss:$8 sps:$4 sm:$0xff]  }
  0x98   :  { %2316 = vmatpush1.bf16.msra.mxu0 %v3591_v41  ;;  %2105 = vmatprep.subr.bf16.mxu1 %v3596_v42  ;;  %v3687_v41 = vld [vmem:[%s5076_s1 + $0x730] ss:$8 sps:$4 sm:$0xff]   ;;  %v3692_v42 = vld [vmem:[%s5076_s1 + $0x344] ss:$8 sps:$4 sm:$0xff]  }
  0x99   :  { %2317 = vmatprep.subr.bf16.mxu0 %v3599_v43  ;;  %v3695_v43 = vld [vmem:[%s5076_s1 + $0x744] ss:$8 sps:$4 sm:$0xff]  }
  0x9b   :  { %2106 = vmatpush1.bf16.msra.mxu1 %v3594_v44  ;;  %v3690_v44 = vld [vmem:[%s5076_s1 + $0x340] ss:$8 sps:$4 sm:$0xff]  }
  0x9c   :  { %2318 = vmatpush1.bf16.msra.mxu0 %v3597_v45  ;;  %2107 = vmatprep.subr.bf16.mxu1 %v3602_v46  ;;  %v3693_v45 = vld [vmem:[%s5076_s1 + $0x740] ss:$8 sps:$4 sm:$0xff]   ;;  %v3698_v46 = vld [vmem:[%s5076_s1 + $0x354] ss:$8 sps:$4 sm:$0xff]  }
  0x9d   :  { %2319 = vmatprep.subr.bf16.mxu0 %v3605_v47  ;;  %v3701_v47 = vld [vmem:[%s5076_s1 + $0x754] ss:$8 sps:$4 sm:$0xff]  }
  0x9f   :  { %2108 = vmatpush1.bf16.msra.mxu1 %v3600_v48  ;;  %v3696_v48 = vld [vmem:[%s5076_s1 + $0x350] ss:$8 sps:$4 sm:$0xff]  }
  0xa0   :  { %2320 = vmatpush1.bf16.msra.mxu0 %v3603_v49  ;;  %2109 = vmatprep.subr.bf16.mxu1 %v3608_v50  ;;  %v3699_v49 = vld [vmem:[%s5076_s1 + $0x750] ss:$8 sps:$4 sm:$0xff]   ;;  %v3704_v50 = vld [vmem:[%s5076_s1 + $0x364] ss:$8 sps:$4 sm:$0xff]  }
  0xa1   :  { %2321 = vmatprep.subr.bf16.mxu0 %v3611_v51  ;;  %v3707_v51 = vld [vmem:[%s5076_s1 + $0x764] ss:$8 sps:$4 sm:$0xff]  }
  0xa3   :  { %2110 = vmatpush1.bf16.msra.mxu1 %v3606_v52  ;;  %v3702_v52 = vld [vmem:[%s5076_s1 + $0x360] ss:$8 sps:$4 sm:$0xff]  }
  0xa4   :  { %2322 = vmatpush1.bf16.msra.mxu0 %v3609_v53  ;;  %2111 = vmatprep.subr.bf16.mxu1 %v3614_v54  ;;  %v3705_v53 = vld [vmem:[%s5076_s1 + $0x760] ss:$8 sps:$4 sm:$0xff]   ;;  %v3710_v54 = vld [vmem:[%s5076_s1 + $0x374] ss:$8 sps:$4 sm:$0xff]  }
  0xa5   :  { %2323 = vmatprep.subr.bf16.mxu0 %v3617_v55  ;;  %v3713_v55 = vld [vmem:[%s5076_s1 + $0x774] ss:$8 sps:$4 sm:$0xff]  }
  0xa7   :  { %2112 = vmatpush1.bf16.msra.mxu1 %v3612_v56  ;;  %v3708_v56 = vld [vmem:[%s5076_s1 + $0x370] ss:$8 sps:$4 sm:$0xff]  }
  0xa8   :  { %2324 = vmatpush1.bf16.msra.mxu0 %v3615_v57  ;;  %2113 = vmatprep.subr.bf16.mxu1 %v3620_v58  ;;  %v3711_v57 = vld [vmem:[%s5076_s1 + $0x770] ss:$8 sps:$4 sm:$0xff]   ;;  %v3716_v58 = vld [vmem:[%s5076_s1 + $0x384] ss:$8 sps:$4 sm:$0xff]  }
  0xa9   :  { %2325 = vmatprep.subr.bf16.mxu0 %v3623_v59  ;;  %v3719_v59 = vld [vmem:[%s5076_s1 + $0x784] ss:$8 sps:$4 sm:$0xff]  }
  0xab   :  { %2114 = vmatpush1.bf16.msra.mxu1 %v3618_v60  ;;  %v3714_v60 = vld [vmem:[%s5076_s1 + $0x380] ss:$8 sps:$4 sm:$0xff]  }
  0xac   :  { %2326 = vmatpush1.bf16.msra.mxu0 %v3621_v61  ;;  %2115 = vmatprep.subr.bf16.mxu1 %v3626_v62  ;;  %v3717_v61 = vld [vmem:[%s5076_s1 + $0x780] ss:$8 sps:$4 sm:$0xff]   ;;  %v3722_v62 = vld [vmem:[%s5076_s1 + $0x394] ss:$8 sps:$4 sm:$0xff]  }
  0xad   :  { %2327 = vmatprep.subr.bf16.mxu0 %v3629_v63  ;;  %v3725_v63 = vld [vmem:[%s5076_s1 + $0x794] ss:$8 sps:$4 sm:$0xff]  }
  0xaf   :  { %2116 = vmatpush1.bf16.msra.mxu1 %v3624_v0  ;;  %v3720_v0 = vld [vmem:[%s5076_s1 + $0x390] ss:$8 sps:$4 sm:$0xff]  }
  0xb0   :  { %2328 = vmatpush1.bf16.msra.mxu0 %v3627_v1  ;;  %2117 = vmatprep.subr.bf16.mxu1 %v3632_v2  ;;  %v3723_v1 = vld [vmem:[%s5076_s1 + $0x790] ss:$8 sps:$4 sm:$0xff]   ;;  %v3728_v2 = vld [vmem:[%s5076_s1 + $0x3a4] ss:$8 sps:$4 sm:$0xff]  }
  0xb1   :  { %2329 = vmatprep.subr.bf16.mxu0 %v3635_v3  ;;  %v3731_v3 = vld [vmem:[%s5076_s1 + $0x7a4] ss:$8 sps:$4 sm:$0xff]  }
  0xb3   :  { %2118 = vmatpush1.bf16.msra.mxu1 %v3630_v4 }
  0xb4   :  { %2330 = vmatpush1.bf16.msra.mxu0 %v3633_v5  ;;  %2119 = vmatprep.subr.bf16.mxu1 %v3638_v6 }
  0xb5   :  { %2331 = vmatprep.subr.bf16.mxu0 %v3641_v7 }
  0xb7   :  { %2120 = vmatpush1.bf16.msra.mxu1 %v3636_v8 }
  0xb8   :  { %2332 = vmatpush1.bf16.msra.mxu0 %v3639_v9  ;;  %2121 = vmatprep.subr.bf16.mxu1 %v3646_v10 }
  0xb9   :  { %2333 = vmatprep.subr.bf16.mxu0 %v3651_v11 }
  0xbb   :  { %2122 = vmatpush1.bf16.msra.mxu1 %v3644_v12 }
  0xbc   :  { %2334 = vmatpush1.bf16.msra.mxu0 %v3649_v13  ;;  %2123 = vmatprep.subr.bf16.mxu1 %v3656_v14 }
  0xbd   :  { %2335 = vmatprep.subr.bf16.mxu0 %v3659_v15 }
  0xbf   :  { %2124 = vmatpush1.bf16.msra.mxu1 %v3654_v16 }
  0xc0   :  { %2336 = vmatpush1.bf16.msra.mxu0 %v3657_v17  ;;  %2146 = vmatprep.subr.bf16.mxu1 %v3665_v18 }
  0xc1   :  { %2358 = vmatprep.subr.bf16.mxu0 %v3671_v19 }
  0xc2   :  { %2126 = vmatmul.mubr.bf16.vlgmr.msra.gmra.mrb[0].mxu1 %v3660_v20 }
  0xc3   :  { %2338 = vmatmul.mubr.bf16.vlgmr.msra.gmra.mrb[0].mxu0 %v3666_v22  ;;  %2147 = vmatpush1.bf16.msra.mxu1 %v3663_v21 }
  0xc4   :  { %2359 = vmatpush1.bf16.msra.mxu0 %v3669_v23  ;;  %2148 = vmatprep.subr.bf16.mxu1 %v3674_v24 }
  0xc5   :  { %2360 = vmatprep.subr.bf16.mxu0 %v3677_v25  ;;  %2135 = vmatprep.mubr.bf16.mxu1 %v3750_v26 }
  0xc6   :  { %2347 = vmatprep.mubr.bf16.mxu0 %v3756_v27 }
  0xc7   :  { %2149 = vmatpush1.bf16.msra.mxu1 %v3672_v28 }
  0xc8   :  { %2361 = vmatpush1.bf16.msra.mxu0 %v3675_v29  ;;  %2150 = vmatprep.subr.bf16.mxu1 %v3680_v30 }
  0xc9   :  { %2362 = vmatprep.subr.bf16.mxu0 %v3683_v31 }
  0xca   :  { %2136 = vmatmul.mubr.bf16.gmra.mrb[4].mxu1 %v3752_v34 }
  0xcb   :  { %2348 = vmatmul.mubr.bf16.gmra.mrb[4].mxu0 %v3761_v35  ;;  %2151 = vmatpush1.bf16.msra.mxu1 %v3678_v32 }
  0xcc   :  { %2363 = vmatpush1.bf16.msra.mxu0 %v3681_v33  ;;  %2152 = vmatprep.subr.bf16.mxu1 %v3686_v36 }
  0xcd   :  { %2364 = vmatprep.subr.bf16.mxu0 %v3689_v37  ;;  %2178 = vmatprep.mubr.bf16.mxu1 %v3770_v38 }
  0xce   :  { %2390 = vmatprep.mubr.bf16.mxu0 %v3773_v39 }
  0xcf   :  { %2153 = vmatpush1.bf16.msra.mxu1 %v3684_v40 }
  0xd0   :  { %2365 = vmatpush1.bf16.msra.mxu0 %v3687_v41  ;;  %2154 = vmatprep.subr.bf16.mxu1 %v3692_v42 }
  0xd1   :  { %2366 = vmatprep.subr.bf16.mxu0 %v3695_v43 }
  0xd3   :  { %2155 = vmatpush1.bf16.msra.mxu1 %v3690_v44 }
  0xd4   :  { %2367 = vmatpush1.bf16.msra.mxu0 %v3693_v45  ;;  %2156 = vmatprep.subr.bf16.mxu1 %v3698_v46 }
  0xd5   :  { %2368 = vmatprep.subr.bf16.mxu0 %v3701_v47 }
  0xd7   :  { %2157 = vmatpush1.bf16.msra.mxu1 %v3696_v48 }
  0xd8   :  { %2369 = vmatpush1.bf16.msra.mxu0 %v3699_v49  ;;  %2158 = vmatprep.subr.bf16.mxu1 %v3704_v50 }
  0xd9   :  { %2370 = vmatprep.subr.bf16.mxu0 %v3707_v51 }
  0xdb   :  { %2159 = vmatpush1.bf16.msra.mxu1 %v3702_v52 }
  0xdc   :  { %2371 = vmatpush1.bf16.msra.mxu0 %v3705_v53  ;;  %2160 = vmatprep.subr.bf16.mxu1 %v3710_v54 }
  0xdd   :  { %2372 = vmatprep.subr.bf16.mxu0 %v3713_v55 }
  0xdf   :  { %2161 = vmatpush1.bf16.msra.mxu1 %v3708_v56 }
  0xe0   :  { %2373 = vmatpush1.bf16.msra.mxu0 %v3711_v57  ;;  %2162 = vmatprep.subr.bf16.mxu1 %v3716_v58 }
  0xe1   :  { %2374 = vmatprep.subr.bf16.mxu0 %v3719_v59 }
  0xe3   :  { %2163 = vmatpush1.bf16.msra.mxu1 %v3714_v60 }
  0xe4   :  { %2375 = vmatpush1.bf16.msra.mxu0 %v3717_v61  ;;  %2164 = vmatprep.subr.bf16.mxu1 %v3722_v62 }
  0xe5   :  { %2376 = vmatprep.subr.bf16.mxu0 %v3725_v63 }
  0xe6   :  { %13 = vsyncpa [#allocation3], 0  ;;  %v3726_v4 = vld [vmem:[%s5076_s1 + $0x3a0] ss:$8 sps:$4 sm:$0xff]   ;;  %v3734_v6 = vld [vmem:[%s5076_s1 + $0x3b4] ss:$8 sps:$4 sm:$0xff]  }
  0xe7   :  { %2165 = vmatpush1.bf16.msra.mxu1 %v3720_v0  ;;  %v3729_v5 = vld [vmem:[%s5076_s1 + $0x7a0] ss:$8 sps:$4 sm:$0xff]   ;;  %v3737_v7 = vld [vmem:[%s5076_s1 + $0x7b4] ss:$8 sps:$4 sm:$0xff]   ;;  %v3732_v8 = vld [vmem:[%s5076_s1 + $0x3b0] ss:$8 sps:$4 sm:$0xff]  }
  0xe8   :  { %2377 = vmatpush1.bf16.msra.mxu0 %v3723_v1  ;;  %2166 = vmatprep.subr.bf16.mxu1 %v3728_v2  ;;  %v3735_v9 = vld [vmem:[%s5076_s1 + $0x7b0] ss:$8 sps:$4 sm:$0xff]   ;;  %v3740_v10 = vld [vmem:[%s5076_s1 + $0x3c4] ss:$8 sps:$4 sm:$0xff]   ;;  %v3738_v12 = vld [vmem:[%s5076_s1 + $0x3c0] ss:$8 sps:$4 sm:$0xff]  }
  0xe9   :  { %2378 = vmatprep.subr.bf16.mxu0 %v3731_v3  ;;  %v3743_v11 = vld [vmem:[%s5076_s1 + $0x7c4] ss:$8 sps:$4 sm:$0xff]   ;;  %v3741_v13 = vld [vmem:[%s5076_s1 + $0x7c0] ss:$8 sps:$4 sm:$0xff]   ;;  %v3746_v14 = vld [vmem:[%s5076_s1 + $0x3d4] ss:$8 sps:$4 sm:$0xff]  }
  0xea   :  { %v3749_v15 = vld [vmem:[%s5076_s1 + $0x7d4] ss:$8 sps:$4 sm:$0xff]   ;;  %v3744_v16 = vld [vmem:[%s5076_s1 + $0x3d0] ss:$8 sps:$4 sm:$0xff]   ;;  %v3755_v18 = vld [vmem:[%s5076_s1 + $0x3e4] ss:$8 sps:$4 sm:$0xff]  }
  0xeb   :  { %2167 = vmatpush1.bf16.msra.mxu1 %v3726_v4  ;;  %v3747_v17 = vld [vmem:[%s5076_s1 + $0x7d0] ss:$8 sps:$4 sm:$0xff]   ;;  %v3760_v19 = vld [vmem:[%s5076_s1 + $0x7e4] ss:$8 sps:$4 sm:$0xff]   ;;  %v3753_v20 = vld [vmem:[%s5076_s1 + $0x3e0] ss:$8 sps:$4 sm:$0xff]  }
  0xec   :  { %2379 = vmatpush1.bf16.msra.mxu0 %v3729_v5  ;;  %2168 = vmatprep.subr.bf16.mxu1 %v3734_v6  ;;  %v3758_v21 = vld [vmem:[%s5076_s1 + $0x7e0] ss:$8 sps:$4 sm:$0xff]   ;;  %v3764_v22 = vld [vmem:[%s5076_s1 + $0x3f4] ss:$8 sps:$4 sm:$0xff]   ;;  %v3762_v24 = vld [vmem:[%s5076_s1 + $0x3f0] ss:$8 sps:$4 sm:$0xff]  }
  0xed   :  { %2380 = vmatprep.subr.bf16.mxu0 %v3737_v7  ;;  %v3767_v23 = vld [vmem:[%s5076_s1 + $0x7f4] ss:$8 sps:$4 sm:$0xff]   ;;  %v3765_v25 = vld [vmem:[%s5076_s1 + $0x7f0] ss:$8 sps:$4 sm:$0xff]   ;;  %v3776_v26 = vld [vmem:[%s5076_s1 + $0x804] ss:$8 sps:$4 sm:$0xff]  }
  0xee   :  { %v3803_v27 = vld [vmem:[%s5079_s4 + $0x4] ss:$8 sps:$4 sm:$0xff]   ;;  %v3768_v28 = vld [vmem:[%s5075_s0 + $0x18] ss:$72 sps:$4 sm:$0xff]   ;;  %v3779_v32 = vld [vmem:[%s5076_s1 + $0x814] ss:$8 sps:$4 sm:$0xff]  }
  0xef   :  { %2169 = vmatpush1.bf16.msra.mxu1 %v3732_v8  ;;  %v3771_v29 = vld [vmem:[%s5075_s0 + $0x38] ss:$72 sps:$4 sm:$0xff]   ;;  %v3780_v31 = vld [vmem:[%s5075_s0 + $0xac] ss:$72 sps:$4 sm:$0xff]   ;;  %v3782_v40 = vld [vmem:[%s5075_s0 + $0xa8] ss:$72 sps:$4 sm:$0xff]  }
  0xf0   :  { %2381 = vmatpush1.bf16.msra.mxu0 %v3735_v9  ;;  %2170 = vmatprep.subr.bf16.mxu1 %v3740_v10  ;;  %v3774_v30 = vld [vmem:[%s5076_s1 + $0x800] ss:$8 sps:$4 sm:$0xff]   ;;  %v3809_v34 = vld [vmem:[%s5079_s4 + $0x14] ss:$8 sps:$4 sm:$0xff]   ;;  %v3777_v36 = vld [vmem:[%s5076_s1 + $0x810] ss:$8 sps:$4 sm:$0xff]  }
  0xf1   :  { %2382 = vmatprep.subr.bf16.mxu0 %v3743_v11  ;;  %v3801_v33 = vld [vmem:[%s5079_s4] ss:$8 sps:$4 sm:$0xff]   ;;  %v3837_v35 = vld [vmem:[%s5075_s0 + $0xcc] ss:$72 sps:$4 sm:$0xff]   ;;  %v3807_v38 = vld [vmem:[%s5079_s4 + $0x10] ss:$8 sps:$4 sm:$0xff]  }
  0xf2   :  { %v3785_v37 = vld [vmem:[%s5076_s1 + $0x824] ss:$8 sps:$4 sm:$0xff]   ;;  %v3842_v41 = vld [vmem:[%s5075_s0 + $0xc8] ss:$72 sps:$4 sm:$0xff]   ;;  %v3788_v43 = vld [vmem:[%s5076_s1 + $0x834] ss:$8 sps:$4 sm:$0xff]  }
  0xf3   :  { %2171 = vmatpush1.bf16.msra.mxu1 %v3738_v12  ;;  %v3815_v39 = vld [vmem:[%s5079_s4 + $0x24] ss:$8 sps:$4 sm:$0xff]   ;;  %v3783_v42 = vld [vmem:[%s5076_s1 + $0x820] ss:$8 sps:$4 sm:$0xff]   ;;  %v3821_v45 = vld [vmem:[%s5079_s4 + $0x34] ss:$8 sps:$4 sm:$0xff]  }
  0xf4   :  { %2383 = vmatpush1.bf16.msra.mxu0 %v3741_v13  ;;  %2172 = vmatprep.subr.bf16.mxu1 %v3746_v14  ;;  %v3813_v44 = vld [vmem:[%s5079_s4 + $0x20] ss:$8 sps:$4 sm:$0xff]   ;;  %v3854_v46 = vld [vmem:[%s5075_s0 + $0x44] ss:$72 sps:$4 sm:$0xff]   ;;  %v3786_v47 = vld [vmem:[%s5076_s1 + $0x830] ss:$8 sps:$4 sm:$0xff]  }
  0xf5   :  { %2384 = vmatprep.subr.bf16.mxu0 %v3749_v15  ;;  %v3884_v48 = vmov 0   ;;  %v3791_v49 = vld [vmem:[%s5076_s1 + $0x844] ss:$8 sps:$4 sm:$0xff]   ;;  %v3819_v50 = vld [vmem:[%s5079_s4 + $0x30] ss:$8 sps:$4 sm:$0xff]   ;;  %vm2646_vm0 = vcmask 261120  }
  0xf6   :  { %v3827_v51 = vld [vmem:[%s5079_s4 + $0x44] ss:$8 sps:$4 sm:$0xff]   ;;  %v3789_v52 = vld [vmem:[%s5076_s1 + $0x840] ss:$8 sps:$4 sm:$0xff]   ;;  %v3794_v53 = vld [vmem:[%s5076_s1 + $0x854] ss:$8 sps:$4 sm:$0xff]  }
  0xf7   :  { %2173 = vmatpush1.bf16.msra.mxu1 %v3744_v16  ;;  %v3825_v54 = vld [vmem:[%s5079_s4 + $0x40] ss:$8 sps:$4 sm:$0xff]   ;;  %v3833_v55 = vld [vmem:[%s5079_s4 + $0x54] ss:$8 sps:$4 sm:$0xff]   ;;  %v3792_v56 = vld [vmem:[%s5076_s1 + $0x850] ss:$8 sps:$4 sm:$0xff]  }
  0xf8   :  { %2385 = vmatpush1.bf16.msra.mxu0 %v3747_v17  ;;  %2174 = vmatprep.subr.bf16.mxu1 %v3755_v18  ;;  %v3797_v57 = vld [vmem:[%s5076_s1 + $0x864] ss:$8 sps:$4 sm:$0xff]   ;;  %v3831_v58 = vld [vmem:[%s5079_s4 + $0x50] ss:$8 sps:$4 sm:$0xff]   ;;  %v3795_v60 = vld [vmem:[%s5076_s1 + $0x860] ss:$8 sps:$4 sm:$0xff]  }
  0xf9   :  { %2386 = vmatprep.subr.bf16.mxu0 %v3760_v19  ;;  %v3841_v59 = vld [vmem:[%s5079_s4 + $0x64] ss:$8 sps:$4 sm:$0xff]   ;;  %v3800_v61 = vld [vmem:[%s5076_s1 + $0x874] ss:$8 sps:$4 sm:$0xff]   ;;  %v3839_v62 = vld [vmem:[%s5079_s4 + $0x60] ss:$8 sps:$4 sm:$0xff]  }
  0xfa   :  { %v3848_v63 = vld [vmem:[%s5079_s4 + $0x74] ss:$8 sps:$4 sm:$0xff]   ;;  %v3798_v0 = vld [vmem:[%s5076_s1 + $0x870] ss:$8 sps:$4 sm:$0xff]   ;;  %v3806_v1 = vld [vmem:[%s5076_s1 + $0x884] ss:$8 sps:$4 sm:$0xff]  }
  0xfb   :  { %2175 = vmatpush1.bf16.msra.mxu1 %v3753_v20  ;;  %v3846_v2 = vld [vmem:[%s5079_s4 + $0x70] ss:$8 sps:$4 sm:$0xff]   ;;  %v3804_v3 = vld [vmem:[%s5076_s1 + $0x880] ss:$8 sps:$4 sm:$0xff]   ;;  %v3812_v5 = vld [vmem:[%s5076_s1 + $0x894] ss:$8 sps:$4 sm:$0xff]  }
  0xfc   :  { %2387 = vmatpush1.bf16.msra.mxu0 %v3758_v21  ;;  %2176 = vmatprep.subr.bf16.mxu1 %v3764_v22  ;;  %v3855_v4 = vld [vmem:[%s5078_s3] sm:$0xff]   ;;  %v3810_v6 = vld [vmem:[%s5076_s1 + $0x890] ss:$8 sps:$4 sm:$0xff]   ;;  %v3858_v9 = vld [vmem:[%s5078_s3 + $0x8] sm:$0xff]   ;;  %s3886_s14 = smov [#allocation2]   ;;  %vm2830_vm1 = vcmask 74752  }
  0xfd   :  { %2388 = vmatprep.subr.bf16.mxu0 %v3767_v23  ;;  %v3818_v7 = vld [vmem:[%s5076_s1 + $0x8a4] ss:$8 sps:$4 sm:$0xff]   ;;  %v3816_v8 = vld [vmem:[%s5076_s1 + $0x8a0] ss:$8 sps:$4 sm:$0xff]   ;;  %v3824_v10 = vld [vmem:[%s5076_s1 + $0x8b4] ss:$8 sps:$4 sm:$0xff]  }
  0xfe   :  { %v3822_v11 = vld [vmem:[%s5076_s1 + $0x8b0] ss:$8 sps:$4 sm:$0xff]   ;;  %v3830_v12 = vld [vmem:[%s5076_s1 + $0x8c4] ss:$8 sps:$4 sm:$0xff]   ;;  %v3828_v13 = vld [vmem:[%s5076_s1 + $0x8c0] ss:$8 sps:$4 sm:$0xff]  }
  0xff   :  { %2177 = vmatpush1.bf16.msra.mxu1 %v3762_v24  ;;  %v3836_v14 = vld [vmem:[%s5076_s1 + $0x8d4] ss:$8 sps:$4 sm:$0xff]   ;;  %v3834_v15 = vld [vmem:[%s5076_s1 + $0x8d0] ss:$8 sps:$4 sm:$0xff]   ;;  %v3845_v16 = vld [vmem:[%s5076_s1 + $0x8e4] ss:$8 sps:$4 sm:$0xff]  }
 0x100   :  { %2389 = vmatpush1.bf16.msra.mxu0 %v3765_v25  ;;  %2576 = vmatprep.subr.bf16.mxu1 %v3803_v27  ;;  %v3843_v17 = vld [vmem:[%s5076_s1 + $0x8e0] ss:$8 sps:$4 sm:$0xff]   ;;  %v3851_v18 = vld [vmem:[%s5076_s1 + $0x8f4] ss:$8 sps:$4 sm:$0xff]   ;;  %v3849_v19 = vld [vmem:[%s5076_s1 + $0x8f0] ss:$8 sps:$4 sm:$0xff]  }
 0x101   :  { %2411 = vmatprep.subr.bf16.mxu0 %v3776_v26  ;;  %v3852_v20 = vld [vmem:[%s5075_s0 + $0x40] ss:$72 sps:$4 sm:$0xff]   ;;  %v3856_v21 = vld [vmem:[%s5075_s0 + $0xd4] ss:$72 sps:$4 sm:$0xff]   ;;  %v3859_v22 = vld [vmem:[%s5075_s0 + $0xd0] ss:$72 sps:$4 sm:$0xff]  }
 0x102   :  { %2179 = vmatmul.mubr.bf16.vlgmr.msra.gmra.mrb[0].mxu1 %v3768_v28  ;;  %v3885_v23 = vmov 0.0   ;;  %s2838_s15 = sshll.u32 %s3886_s14, 4  ;;  %s2839_s15 = int_to_ptr.vmem [resolvable:$true] %s2838_s15 }
 0x103   :  { %2391 = vmatmul.mubr.bf16.vlgmr.msra.gmra.mrb[0].mxu0 %v3771_v29  ;;  %2188 = vmatprep.mubr.bf16.mxu1 %v3780_v31  ;;  %p3865_p1 = scmp.lt.s32.totalorder %s2839_s15, %s2839_s15 }
 0x104   :  { %2412 = vmatpush1.bf16.msra.mxu0 %v3774_v30  ;;  %2577 = vmatpush1.bf16.msra.mxu1 %v3801_v33 }
 0x105   :  { %2413 = vmatprep.subr.bf16.mxu0 %v3779_v32  ;;  %2578 = vmatprep.subr.bf16.mxu1 %v3809_v34 }
 0x106   :  { %2400 = vmatprep.mubr.bf16.mxu0 %v3837_v35 }
 0x108   :  { %2414 = vmatpush1.bf16.msra.mxu0 %v3777_v36  ;;  %2579 = vmatpush1.bf16.msra.mxu1 %v3807_v38 }
 0x109   :  { %2415 = vmatprep.subr.bf16.mxu0 %v3785_v37  ;;  %2580 = vmatprep.subr.bf16.mxu1 %v3815_v39 }
 0x10a   :  { %2189 = vmatmul.mubr.bf16.gmra.mrb[4].mxu1 %v3782_v40  ;;  %v357_v40 = vlaneseq }
 0x10b   :  { %2401 = vmatmul.mubr.bf16.gmra.mrb[4].mxu0 %v3842_v41  ;;  %2608 = vmatprep.mubr.bf16.mxu1 %v3884_v48 }
 0x10c   :  { %2416 = vmatpush1.bf16.msra.mxu0 %v3783_v42  ;;  %2581 = vmatpush1.bf16.msra.mxu1 %v3813_v44  ;;  %v358_v41 = vshrl.u32 %v357_v40, 7  ;;  %v2742_v40 = vld [vmem:[%s5081_s6 + $0xa8] sm:$0xff] }
 0x10d   :  { %2417 = vmatprep.subr.bf16.mxu0 %v3788_v43  ;;  %2582 = vmatprep.subr.bf16.mxu1 %v3821_v45  ;;  %v355_v43 = vld [vmem:[%s5077_s2] sm:$0x3] }
 0x10e   :  { %2443 = vmatprep.mubr.bf16.mxu0 %v3854_v46  ;;  %v359_v42 = vsub.s32 0, %v358_v41  ;;  %v363_v44 = vsub.s32 1, %v358_v41 }
 0x110   :  { %2418 = vmatpush1.bf16.msra.mxu0 %v3786_v47  ;;  %2583 = vmatpush1.bf16.msra.mxu1 %v3819_v50  ;;  %v360_v45 = vrot.slane %v355_v43, %v359_v42  ;;  %v364_v46 = vrot.slane %v355_v43, %v363_v44  ;;  %v2725_v43 = vld [vmem:[%s5081_s6 + $0x20] sm:$0xff]  ;;  %v2726_v44 = vld [vmem:[%s5081_s6 + $0x28] sm:$0xff] }
 0x111   :  { %2419 = vmatprep.subr.bf16.mxu0 %v3791_v49  ;;  %2584 = vmatprep.subr.bf16.mxu1 %v3827_v51 }
 0x114   :  { %2420 = vmatpush1.bf16.msra.mxu0 %v3789_v52  ;;  %2585 = vmatpush1.bf16.msra.mxu1 %v3825_v54 }
 0x115   :  { %2421 = vmatprep.subr.bf16.mxu0 %v3794_v53  ;;  %2586 = vmatprep.subr.bf16.mxu1 %v3833_v55 }
 0x118   :  { %2422 = vmatpush1.bf16.msra.mxu0 %v3792_v56  ;;  %2587 = vmatpush1.bf16.msra.mxu1 %v3831_v58 }
 0x119   :  { %2423 = vmatprep.subr.bf16.mxu0 %v3797_v57  ;;  %2588 = vmatprep.subr.bf16.mxu1 %v3841_v59 }
 0x11c   :  { %2424 = vmatpush1.bf16.msra.mxu0 %v3795_v60  ;;  %2589 = vmatpush1.bf16.msra.mxu1 %v3839_v62 }
 0x11d   :  { %2425 = vmatprep.subr.bf16.mxu0 %v3800_v61  ;;  %2590 = vmatprep.subr.bf16.mxu1 %v3848_v63 }
 0x120   :  { %2426 = vmatpush1.bf16.msra.mxu0 %v3798_v0  ;;  %2591 = vmatpush1.bf16.msra.mxu1 %v3846_v2 }
 0x121   :  { %2427 = vmatprep.subr.bf16.mxu0 %v3806_v1 }
 0x123   :  { %2609 = vmatmul.mubr.bf16.vlgmr.msra.gmra.mrb[8].mxu1 %v3855_v4 }
 0x124   :  { %2428 = vmatpush1.bf16.msra.mxu0 %v3804_v3  ;;  %2618 = vmatprep.mubr.bf16.mxu1 %v3884_v48 }
 0x125   :  { %2429 = vmatprep.subr.bf16.mxu0 %v3812_v5 }
 0x128   :  { %2430 = vmatpush1.bf16.msra.mxu0 %v3810_v6 }
 0x129   :  { %2431 = vmatprep.subr.bf16.mxu0 %v3818_v7 }
 0x12b   :  { %2619 = vmatmul.mubr.bf16.gmra.mrb[12].mxu1 %v3858_v9 }
 0x12c   :  { %2432 = vmatpush1.bf16.msra.mxu0 %v3816_v8  ;;  %2714 = vmatprep.mubr.f32.mxu1 %v3885_v23  ;;  %v2737_v23 = vld [vmem:[%s5081_s6 + $0x80] sm:$0xff] }
 0x12d   :  { %2433 = vmatprep.subr.bf16.mxu0 %v3824_v10 }
 0x130   :  { %2434 = vmatpush1.bf16.msra.mxu0 %v3822_v11 }
 0x131   :  { %2435 = vmatprep.subr.bf16.mxu0 %v3830_v12 }
 0x134   :  { %2436 = vmatpush1.bf16.msra.mxu0 %v3828_v13 }
 0x135   :  { %2437 = vmatprep.subr.bf16.mxu0 %v3836_v14 }
 0x138   :  { %2438 = vmatpush1.bf16.msra.mxu0 %v3834_v15 }
 0x139   :  { %2439 = vmatprep.subr.bf16.mxu0 %v3845_v16 }
 0x13c   :  { %2440 = vmatpush1.bf16.msra.mxu0 %v3843_v17 }
 0x13d   :  { %2441 = vmatprep.subr.bf16.mxu0 %v3851_v18 }
 0x140   :  { %2442 = vmatpush1.bf16.msra.mxu0 %v3849_v19 }
 0x143   :  { %2444 = vmatmul.mubr.bf16.vlgmr.msra.gmra.mrb[0].mxu0 %v3852_v20 }
 0x144   :  { %2453 = vmatprep.mubr.bf16.mxu0 %v3856_v21 }
 0x14b   :  { %2454 = vmatmul.mubr.bf16.gmra.mrb[4].mxu0 %v3859_v22 }
 0x1d5   :  { %v2180_v24 = vpop.f32.mrb[0].mxu1 }
 0x1d6   :  { %v2182_v25 = vpop.f32.mrb[1].mxu1  ;;  %v3265_v47 = vadd.f32 %v2180_v24, %v360_v45  ;;  %v2738_v24 = vld [vmem:[%s5081_s6 + $0x88] sm:$0xff] }
 0x1d7   :  { %v2184_v26 = vpop.f32.mrb[2].mxu1  ;;  %v3268_v48 = vadd.f32 %v2182_v25, %v364_v46 }
 0x1d8   :  { %v2186_v27 = vpop.f32.mrb[3].mxu1  ;;  %v3271_v50 = vadd.f32 %v2184_v26, %v360_v45 }
 0x1d9   :  { %v3274_v53 = vadd.f32 %v2186_v27, %v364_v46 }
 0x1dd   :  { %v2190_v28 = vpop.f32.mrb[4].mxu1 }
 0x1de   :  { %v2192_v29 = vpop.f32.mrb[5].mxu1  ;;  %v3277_v63 = vadd.f32 %v2190_v28, %v360_v45 }
 0x1df   :  { %v2194_v30 = vpop.f32.mrb[6].mxu1  ;;  %v3280_v2 = vadd.f32 %v2192_v29, %v364_v46  ;;  %v3233_v29 = vpack.c.bf16 %v2738_v24, %v2737_v23 }
 0x1e0   :  { %v2196_v31 = vpop.f32.mrb[7].mxu1  ;;  %v3283_v6 = vadd.f32 %v2194_v30, %v360_v45  ;;  %v2721_v30 = vld [vmem:[%s5081_s6] sm:$0xff]  ;;  %v2743_v45 = vld [vmem:[%s5081_s6 + $0xb0] sm:$0xff] }
 0x1e1   :  { %v3286_v10 = vadd.f32 %v2196_v31, %v364_v46  ;;  %v2722_v31 = vld [vmem:[%s5081_s6 + $0x8] sm:$0xff]  ;;  %v2744_v46 = vld [vmem:[%s5081_s6 + $0xb8] sm:$0xff] }
 0x1f6   :  { %v2610_v32 = vpop.f32.mrb[8].mxu1 }
 0x1f7   :  { %v2612_v33 = vpop.f32.mrb[9].mxu1 }
 0x1f8   :  { %v2614_v34 = vpop.f32.mrb[10].mxu1 }
 0x1f9   :  { %v2616_v35 = vpop.f32.mrb[11].mxu1 }
 0x1fe   :  { %v2620_v36 = vpop.f32.mrb[12].mxu1 }
 0x1ff   :  { %v2622_v37 = vpop.f32.mrb[13].mxu1 }
 0x200   :  { %v2624_v38 = vpop.f32.mrb[14].mxu1 }
 0x201   :  { %v2626_v39 = vpop.f32.mrb[15].mxu1 }
 0x216   :  { %v2445_v49 = vpop.f32.mrb[0].mxu0 }
 0x217   :  { %v3266_v51 = vadd.f32 %v3265_v47, %v2445_v49  ;;  %v2447_v52 = vpop.f32.mrb[1].mxu0  ;;  %v3243_v47 = vpack.c.bf16 %v2726_v44, %v2725_v43  ;;  %v2727_v49 = vld [vmem:[%s5081_s6 + $0x30] sm:$0xff] }
 0x218   :  { %v3269_v54 = vadd.f32 %v3268_v48, %v2447_v52  ;;  %v2449_v55 = vpop.f32.mrb[2].mxu0  ;;  %v3245_v48 = vpack.c.bf16 %v2744_v46, %v2743_v45  ;;  %v2746_v52 = vld [vmem:[%s5081_s6 + $0xc8] sm:$0xff] }
 0x219   :  { %v3267_v56 = vadd.f32 %v3266_v51, %v2610_v32  ;;  %v3272_v57 = vadd.f32 %v3271_v50, %v2449_v55  ;;  %v2451_v58 = vpop.f32.mrb[3].mxu0  ;;  %v2739_v32 = vld [vmem:[%s5081_s6 + $0x90] sm:$0xff]  ;;  %v2728_v50 = vld [vmem:[%s5081_s6 + $0x38] sm:$0xff]  ;;  %v2745_v51 = vld [vmem:[%s5081_s6 + $0xc0] sm:$0xff] }
 0x21a   :  { %v3270_v59 = vadd.f32 %v3269_v54, %v2612_v33  ;;  %v3275_v60 = vadd.f32 %v3274_v53, %v2451_v58  ;;  %v2740_v33 = vld [vmem:[%s5081_s6 + $0x98] sm:$0xff]  ;;  %v3247_v53 = vpack.c.bf16 %v2728_v50, %v2727_v49  ;;  %v3249_v54 = vpack.c.bf16 %v2746_v52, %v2745_v51  ;;  %v2729_v55 = vld [vmem:[%s5081_s6 + $0x40] sm:$0xff] }
 0x21b   :  { %v3273_v61 = vadd.f32 %v3272_v57, %v2614_v34  ;;  %v2637_v0 = vmax.f32 %v3267_v56, 0.0  ;;  %v2645_v34 = vld [vmem:[%s5080_s5] sm:$0x3]  ;;  %v2730_v56 = vld [vmem:[%s5081_s6 + $0x48] sm:$0xff]  ;;  %v2747_v57 = vld [vmem:[%s5081_s6 + $0xd0] sm:$0xff] }
 0x21c   :  { %v3276_v62 = vadd.f32 %v3275_v60, %v2616_v35  ;;  %v2638_v3 = vmax.f32 %v3270_v59, 0.0  ;;  %v3235_v35 = vpack.c.bf16 %v2722_v31, %v2721_v30  ;;  %v2748_v58 = vld [vmem:[%s5081_s6 + $0xd8] sm:$0xff]  ;;  %v3251_v59 = vpack.c.bf16 %v2730_v56, %v2729_v55 }
 0x21d   :  { %v2639_v1 = vmax.f32 %v3273_v61, 0.0  ;;  %v3253_v60 = vpack.c.bf16 %v2748_v58, %v2747_v57  ;;  %v2731_v61 = vld [vmem:[%s5081_s6 + $0x50] sm:$0xff] }
 0x21e   :  { %v2640_v4 = vmax.f32 %v3276_v62, 0.0  ;;  %v2455_v5 = vpop.f32.mrb[4].mxu0  ;;  %v2732_v62 = vld [vmem:[%s5081_s6 + $0x58] sm:$0xff] }
 0x21f   :  { %v3227_v7 = vpack.c.bf16 %v2639_v1, %v2637_v0  ;;  %v3278_v8 = vadd.f32 %v3277_v63, %v2455_v5  ;;  %v2457_v9 = vpop.f32.mrb[5].mxu0  ;;  %v2749_v63 = vld [vmem:[%s5081_s6 + $0xe0] sm:$0xff]  ;;  %v2750_v0 = vld [vmem:[%s5081_s6 + $0xe8] sm:$0xff]  ;;  %v3255_v1 = vpack.c.bf16 %v2732_v62, %v2731_v61  ;;  %v2751_v5 = vld [vmem:[%s5081_s6 + $0xf0] sm:$0xff] }
 0x220   :  { %v3281_v11 = vadd.f32 %v3280_v2, %v2457_v9  ;;  %v2459_v12 = vpop.f32.mrb[6].mxu0  ;;  %v3225_v13 = vpack.c.bf16 %v2640_v4, %v2638_v3  ;;  %v3257_v2 = vpack.c.bf16 %v2750_v0, %v2749_v63  ;;  %v2733_v3 = vld [vmem:[%s5081_s6 + $0x60] sm:$0xff]  ;;  %v2734_v4 = vld [vmem:[%s5081_s6 + $0x68] sm:$0xff]  ;;  %v2735_v9 = vld [vmem:[%s5081_s6 + $0x70] sm:$0xff] }
 0x221   :  { %v3279_v14 = vadd.f32 %v3278_v8, %v2620_v36  ;;  %v3284_v15 = vadd.f32 %v3283_v6, %v2459_v12  ;;  %v2461_v16 = vpop.f32.mrb[7].mxu0  ;;  %v3237_v36 = vpack.c.bf16 %v2740_v33, %v2739_v32  ;;  %v2752_v6 = vld [vmem:[%s5081_s6 + $0xf8] sm:$0xff] }
 0x222   :  { %v3282_v17 = vadd.f32 %v3281_v11, %v2622_v37  ;;  %v3287_v18 = vadd.f32 %v3286_v10, %v2461_v16  ;;  %3226 = vmatprep.subr.bf16.mxu1 %v3225_v13  ;;  %v2723_v37 = vld [vmem:[%s5081_s6 + $0x10] sm:$0xff]  ;;  %v3261_v8 = vpack.c.bf16 %v2752_v6, %v2751_v5  ;;  %v2736_v10 = vld [vmem:[%s5081_s6 + $0x78] sm:$0xff] }
 0x223   :  { %v3285_v19 = vadd.f32 %v3284_v15, %v2624_v38  ;;  %3228 = vmatpush1.bf16.msra.mxu1 %v3227_v7  ;;  %v2641_v21 = vmax.f32 %v3279_v14, 0.0  ;;  %v2724_v38 = vld [vmem:[%s5081_s6 + $0x18] sm:$0xff]  ;;  %v3259_v7 = vpack.c.bf16 %v2734_v4, %v2733_v3  ;;  %v3263_v11 = vpack.c.bf16 %v2736_v10, %v2735_v9  ;;  %v3189_v15 = vld [vmem:[%s5082_s7] ss:$0 sm:$0xff] }
 0x224   :  { %v3288_v20 = vadd.f32 %v3287_v18, %v2626_v39  ;;  %v2642_v25 = vmax.f32 %v3282_v17, 0.0  ;;  %v2741_v39 = vld [vmem:[%s5081_s6 + $0xa0] sm:$0xff]  ;;  %v3239_v41 = vpack.c.bf16 %v2724_v38, %v2723_v37  ;;  %s3860_s6 = scalar_lea.vmem %s2839_s15, 32 }
 0x225   :  { %v2643_v22 = vmax.f32 %v3285_v19, 0.0  ;;  %v3241_v42 = vpack.c.bf16 %v2742_v40, %v2741_v39  ;;  %p3861_p0 = scmp.ne.s32.totalorder %s2839_s15, %s3860_s6  ;;  %p3866_p2 = scmp.lt.s32.totalorder %s3860_s6, %s3860_s6 }
 0x226   :  { %v2644_v26 = vmax.f32 %v3288_v20, 0.0 }
 0x227   :  { %v3231_v27 = vpack.c.bf16 %v2643_v22, %v2641_v21  ;;  %p3867_p3 = por %p3866_p2, %p3865_p1 }
 0x228   :  { %v3229_v28 = vpack.c.bf16 %v2644_v26, %v2642_v25 }
 0x229   :  { %p3868_p4 = pnand %p3867_p3, %p3861_p0 }
 0x22a   :  { %3230 = vmatprep.subr.bf16.mxu1 %v3229_v28 }
 0x22b   :  { %3232 = vmatpush1.bf16.msra.mxu1 %v3231_v27 }
 0x22c   :  { %3234 = vmatprep.subr.bf16.mxu1 %v3233_v29 }
 0x22e   :  { %3188 = vmatmul.mubr.msk.f32.vlgmr.msra.gmra.mrb[16].mxu1 %vm2646_vm0, %v2645_v34 }
 0x22f   :  { %3236 = vmatpush3.bf16.msra.mxu1 %v3235_v35 }
 0x230   :  { %3238 = vmatprep.subr.bf16.mxu1 %v3237_v36 }
 0x233   :  { %3240 = vmatpush3.bf16.msra.mxu1 %v3239_v41 }
 0x234   :  { %3242 = vmatprep.subr.bf16.mxu1 %v3241_v42 }
 0x237   :  { %3244 = vmatpush3.bf16.msra.mxu1 %v3243_v47 }
 0x238   :  { %3246 = vmatprep.subr.bf16.mxu1 %v3245_v48 }
 0x23b   :  { %3248 = vmatpush3.bf16.msra.mxu1 %v3247_v53 }
 0x23c   :  { %3250 = vmatprep.subr.bf16.mxu1 %v3249_v54 }
 0x23f   :  { %3252 = vmatpush3.bf16.msra.mxu1 %v3251_v59 }
 0x240   :  { %3254 = vmatprep.subr.bf16.mxu1 %v3253_v60 }
 0x243   :  { %3256 = vmatpush3.bf16.msra.mxu1 %v3255_v1 }
 0x244   :  { %3258 = vmatprep.subr.bf16.mxu1 %v3257_v2 }
 0x247   :  { %3260 = vmatpush3.bf16.msra.mxu1 %v3259_v7 }
 0x248   :  { %3262 = vmatprep.subr.bf16.mxu1 %v3261_v8 }
 0x24b   :  { %3264 = vmatpush3.bf16.msra.mxu1 %v3263_v11 }
 0x301   :  { %v2716_v12 = vpop.f32.mrb[16].mxu1 }
 0x302   :  { %v2718_v13 = vpop.f32.mrb[17].mxu1 }
 0x303   :  { %2824 = vmatprep.mubr.f32.mxu1 %v2718_v13 }
 0x304   :  { %2825 = vmatmul.mubr.f32.vlgmr.msra.gmra.mrb[18].mxu1 %v2716_v12 }
 0x3d7   :  { %v3222_v14 = vpop.f32.mrb[18].mxu1 }
 0x3d8   :  { %v3223_v16 = vpop.f32.mrb[19].mxu1 }
 0x3d9   :  { %v3224_v17 = vadd.f32 %v3223_v16, %v3222_v14 }
 0x3db   :  { %v2827_v18 = vadd.f32 %v3224_v17, %v3189_v15 }
 0x3dd   :  { %2831 = vst.msk [vmem:[#allocation2] sm:$0x3] %vm2830_vm1, %v2827_v18 }
 0x3de   :  { %3871 = shalt.err (!%p3868_p4)
}
 0x3df   :  { %s3872_s18 = scalar_lea.hbm %s5083_s8, 32 }
 0x3e0   :  { %p3873_p5 = scmp.ne.s32.totalorder %s5083_s8, %s3872_s18  ;;  %p3876_p6 = scmp.lt.u32.totalorder %s3872_s18, %s5083_s8 }
 0x3e2   :  { %p3878_p7 = pnand %p3876_p6, %p3873_p5 }
 0x3e4   :  { %3881 = shalt.err (!%p3878_p7)
}
 0x3e5   :  { %2841 = dma.vmem_to_hbm [thread:$0]  %s2839_s15, 32, %s5083_s8, [#allocation3]  }
 0x3e6   :  { %3882 = dma.done.wait [#allocation3], 32  }
 0x3e7   :  { %3883 = vsyncadd [#allocation3], 4294967264 }
 0x3e8   :  { %2845 = vsyncpa [#allocation3], 1 }

</bundles_post_ra>
